<compile_context>
chip_gen: v7x
topology: tpu7x:2x2x1
jax: 0.10.0
libtpu: 0.0.40
codegen_flags: <defaults>
</compile_context>

<pallas_src>
import math
import functools

import jax
import jax.numpy as jnp
from jax.experimental import pallas as pl
from jax.experimental.pallas import tpu as pltpu


ACT_DTYPE = jnp.bfloat16   # storage dtype for activations / folded weights


def make_divisible(x, divisor):
    return math.ceil(x / divisor) * divisor


def _cdiv(a, b):
    return (a + b - 1) // b


def _round_up(a, b):
    return _cdiv(a, b) * b


# ----------------------------------------------------------------------------
# Pallas kernels
# ----------------------------------------------------------------------------

def _silu_f32(y):
    # SiLU; the divide goes to the EUP via approximate reciprocal.
    return y * pl.reciprocal(1.0 + jnp.exp(-y), approx=True)


def _pointwise_kernel(*refs, ngroups, has_res):
    """Y = SiLU(sum_g x_g @ w_g + bias) (+ residual) for one row tile."""
    xs = refs[:ngroups]
    ws = refs[ngroups:2 * ngroups]
    b_ref = refs[2 * ngroups]
    r_ref = refs[2 * ngroups + 1] if has_res else None
    o_ref = refs[-1]
    acc = jnp.dot(xs[0][...], ws[0][...], preferred_element_type=jnp.float32)
    for g in range(1, ngroups):
        acc = acc + jnp.dot(xs[g][...], ws[g][...],
                            preferred_element_type=jnp.float32)
    y = _silu_f32(acc + b_ref[...])
    if has_res:
        y = y + r_ref[...].astype(jnp.float32)
    o_ref[...] = y.astype(o_ref.dtype)


def _conv_taps_kernel(*refs, offsets, tm, has_res):
    """Stride-1 kxk conv: in-kernel tap reduction over a halo'd row tile."""
    xa_ref, xb_ref, w_ref, b_ref = refs[0], refs[1], refs[2], refs[3]
    r_ref = refs[4] if has_res else None
    o_ref = refs[-1]
    # Current row tile + next tile as halo (taps need at most `halo` < tm extra
    # rows).  Shift bookkeeping is done in f32 (most robust layout path); the
    # MXU is fed bf16 operands.
    xx = jnp.concatenate([xa_ref[...].astype(jnp.float32),
                          xb_ref[...].astype(jnp.float32)], axis=0)
    w_all = w_ref[...]                      # (k*k, C1, C2)
    acc = None
    for t, off in enumerate(offsets):       # static unroll over taps
        xt = xx[off:off + tm, :].astype(w_all.dtype)
        d = jnp.dot(xt, w_all[t], preferred_element_type=jnp.float32)
        acc = d if acc is None else acc + d
    y = _silu_f32(acc + b_ref[...])
    if has_res:
        y = y + r_ref[...].astype(jnp.float32)
    o_ref[...] = y.astype(o_ref.dtype)


def _maxpool_kernel(x_ref, o_ref, *, k, H, W):
    """Separable kxk / stride-1 / same max-pool of one (padded) image block."""
    x = x_ref[...].astype(jnp.float32)      # (1, Hp, Wp, C)
    h = x[:, :, 0:W, :]                     # horizontal (W) pass
    for dj in range(1, k):
        h = jnp.maximum(h, x[:, :, dj:dj + W, :])
    v = h[:, 0:H, :, :]                     # vertical (H) pass
    for di in range(1, k):
        v = jnp.maximum(v, h[:, di:di + H, :, :])
    o_ref[...] = v.astype(o_ref.dtype)


# ----------------------------------------------------------------------------
# Kernel wrappers
# ----------------------------------------------------------------------------

def fused_pointwise(xs, ws, bias, *, residual=None, out_dtype=None, tm=256):
    """Row-tiled Y = SiLU(sum_g xs[g] @ ws[g] + bias) (+ residual).

    Multiple groups realise channel-concat + 1x1 conv without ever writing the
    concatenated tensor to HBM.
    """
    ngroups = len(xs)
    M = xs[0].shape[0]
    C2 = ws[0].shape[1]
    out_dtype = out_dtype or xs[0].dtype
    tm_eff = min(tm, _round_up(M, 8))
    grid = (_cdiv(M, tm_eff),)
    b2 = bias.reshape(1, C2).astype(jnp.float32)

    args, in_specs = [], []
    for x in xs:
        K = x.shape[1]
        args.append(x)
        in_specs.append(pl.BlockSpec((tm_eff, K), lambda i: (i, 0)))
    for w in ws:
        K = w.shape[0]
        args.append(w)
        in_specs.append(pl.BlockSpec((K, C2), lambda i: (0, 0)))
    args.append(b2)
    in_specs.append(pl.BlockSpec((1, C2), lambda i: (0, 0)))
    has_res = residual is not None
    if has_res:
        args.append(residual)
        in_specs.append(pl.BlockSpec((tm_eff, C2), lambda i: (i, 0)))

    k_total = sum(int(w.shape[0]) for w in ws)
    cost = pl.CostEstimate(
        flops=2 * M * k_total * C2,
        transcendentals=M * C2,
        bytes_accessed=int(sum(int(a.size) * a.dtype.itemsize for a in args)
                           + M * C2 * jnp.dtype(out_dtype).itemsize),
    )
    kern = functools.partial(_pointwise_kernel, ngroups=ngroups,
                             has_res=has_res)
    return pl.pallas_call(
        kern,
        out_shape=jax.ShapeDtypeStruct((M, C2), out_dtype),
        grid=grid,
        in_specs=in_specs,
        out_specs=pl.BlockSpec((tm_eff, C2), lambda i: (i, 0)),
        compiler_params=pltpu.CompilerParams(
            dimension_semantics=("parallel",)),
        cost_estimate=cost,
    )(*args)


def conv_s1_taps(x, p, *, residual=None, out_dtype=None, tm=256):
    """Stride-1 kxk Conv(+folded BN+SiLU) with the k*k tap reduction inside the
    kernel (no im2col materialization in HBM)."""
    k = p['k']
    pad = k // 2
    N, H, W, C1 = x.shape
    Hp, Wp = H + 2 * pad, W + 2 * pad
    C2 = p['w'].shape[-1]
    out_dtype = out_dtype or x.dtype

    halo = (k - 1) * Wp + (k - 1)
    Mflat = N * Hp * Wp
    if C1 >= 256:                 # keep the in-kernel (2*tm, C1) window modest
        tm = min(tm, 128)
    tm_eff = tm if Mflat > tm else _round_up(Mflat, 8)
    tm_eff = max(tm_eff, _round_up(halo, 8))
    nt = _cdiv(Mflat, tm_eff)

    xp = jnp.pad(x, ((0, 0), (pad, pad), (pad, pad), (0, 0)))
    xf = xp.reshape(Mflat, C1)
    xf = jnp.pad(xf, ((0, (nt + 1) * tm_eff - Mflat), (0, 0)))

    offsets = tuple(di * Wp + dj for di in range(k) for dj in range(k))
    b2 = p['bias'].reshape(1, C2).astype(jnp.float32)

    args = [xf, xf, p['w'], b2]
    in_specs = [
        pl.BlockSpec((tm_eff, C1), lambda i: (i, 0)),
        pl.BlockSpec((tm_eff, C1), lambda i: (i + 1, 0)),   # halo tile
        pl.BlockSpec((k * k, C1, C2), lambda i: (0, 0, 0)),
        pl.BlockSpec((1, C2), lambda i: (0, 0)),
    ]
    has_res = residual is not None
    if has_res:
        rp = jnp.pad(residual, ((0, 0), (0, 2 * pad), (0, 2 * pad), (0, 0)))
        rf = rp.reshape(Mflat, C2)
        rf = jnp.pad(rf, ((0, nt * tm_eff - Mflat), (0, 0)))
        args.append(rf)
        in_specs.append(pl.BlockSpec((tm_eff, C2), lambda i: (i, 0)))

    cost = pl.CostEstimate(
        flops=2 * nt * tm_eff * k * k * C1 * C2,
        transcendentals=nt * tm_eff * C2,
        bytes_accessed=int(2 * int(xf.size) * xf.dtype.itemsize
                           + int(p['w'].size) * p['w'].dtype.itemsize
                           + nt * tm_eff * C2 * jnp.dtype(out_dtype).itemsize),
    )
    kern = functools.partial(_conv_taps_kernel, offsets=offsets, tm=tm_eff,
                             has_res=has_res)
    out = pl.pallas_call(
        kern,
        out_shape=jax.ShapeDtypeStruct((nt * tm_eff, C2), out_dtype),
        grid=(nt,),
        in_specs=in_specs,
        out_specs=pl.BlockSpec((tm_eff, C2), lambda i: (i, 0)),
        compiler_params=pltpu.CompilerParams(
            dimension_semantics=("parallel",)),
        cost_estimate=cost,
    )(*args)
    return out[:Mflat].reshape(N, Hp, Wp, C2)[:, :H, :W, :]


def maxpool2d_same(x, k):
    """MaxPool2d(kernel=k, stride=1, padding=k//2) on NHWC, separable in-kernel."""
    pad = k // 2
    N, H, W, C = x.shape
    Hp, Wp = H + 2 * pad, W + 2 * pad
    xp = jnp.pad(x, ((0, 0), (pad, pad), (pad, pad), (0, 0)),
                 constant_values=-jnp.inf)
    cb = 128 if C % 128 == 0 else C
    grid = (N, C // cb)
    kern = functools.partial(_maxpool_kernel, k=k, H=H, W=W)
    return pl.pallas_call(
        kern,
        out_shape=jax.ShapeDtypeStruct((N, H, W, C), x.dtype),
        grid=grid,
        in_specs=[pl.BlockSpec((1, Hp, Wp, cb), lambda n, c: (n, 0, 0, c))],
        out_specs=pl.BlockSpec((1, H, W, cb), lambda n, c: (n, 0, 0, c)),
        compiler_params=pltpu.CompilerParams(
            dimension_semantics=("parallel", "parallel")),
    )(xp)


# ----------------------------------------------------------------------------
# Conv(+BN+SiLU) dispatch
# ----------------------------------------------------------------------------

def _materialize(x):
    if isinstance(x, (list, tuple)):
        return jnp.concatenate(list(x), axis=-1)
    return x


def conv_forward(x, p, stride, *, residual=None, out_dtype=None):
    """Conv(+folded BN+SiLU).  `x` may be a list of NHWC tensors (a deferred
    channel concat) when the conv is 1x1 stride-1 (grouped fused matmul)."""
    k = p['k']
    C2 = p['w'].shape[-1]

    if k == 1 and stride == 1:
        xs = list(x) if isinstance(x, (list, tuple)) else [x]
        N, H, W = xs[0].shape[:3]
        M = N * H * W
        w_full = p['w'].reshape(-1, C2)
        ws, xs2, start = [], [], 0
        for t in xs:
            Kg = t.shape[-1]
            ws.append(w_full[start:start + Kg])
            xs2.append(t.reshape(M, Kg))
            start += Kg
        r2 = residual.reshape(M, C2) if residual is not None else None
        y = fused_pointwise(xs2, ws, p['bias'], residual=r2,
                            out_dtype=out_dtype)
        return y.reshape(N, H, W, C2)

    x = _materialize(x)
    if stride == 1:
        return conv_s1_taps(x, p, residual=residual, out_dtype=out_dtype)

    # TODO(synk): strided (s>1) k>1 convs still go through an im2col gather in
    # HBM (only the three stride-2 downsample convs take this path).
    pad = k // 2
    N, H, W, C1 = x.shape
    Ho = (H + 2 * pad - k) // stride + 1
    Wo = (W + 2 * pad - k) // stride + 1
    xp = jnp.pad(x, ((0, 0), (pad, pad), (pad, pad), (0, 0)))
    cols = []
    for di in range(k):
        for dj in range(k):
            cols.append(xp[:, di:di + (Ho - 1) * stride + 1:stride,
                           dj:dj + (Wo - 1) * stride + 1:stride, :])
    patches = jnp.concatenate(cols, axis=-1).reshape(N * Ho * Wo, k * k * C1)
    w_full = p['w'].reshape(k * k * C1, C2)
    r2 = residual.reshape(N * Ho * Wo, C2) if residual is not None else None
    y = fused_pointwise([patches], [w_full], p['bias'], residual=r2,
                        out_dtype=out_dtype)
    return y.reshape(N, Ho, Wo, C2)


# ----------------------------------------------------------------------------
# Parameter init (deterministic, synthetic; BN folded in eval mode)
# ----------------------------------------------------------------------------

def init_conv(key, c1, c2, k):
    kw, kg, kb, km, kv = jax.random.split(key, 5)
    w = 0.1 * jax.random.normal(kw, (k, k, c1, c2), jnp.float32)
    gamma = 1.0 + 0.1 * jax.random.normal(kg, (c2,), jnp.float32)
    beta = 0.1 * jax.random.normal(kb, (c2,), jnp.float32)
    mean = 0.1 * jax.random.normal(km, (c2,), jnp.float32)
    var = 1.0 + 0.1 * jax.random.uniform(kv, (c2,), jnp.float32)
    eps = 1e-5  # nn.BatchNorm2d default
    scale = gamma / jnp.sqrt(var + eps)
    bias = beta - mean * scale
    w = w * scale  # fold BN scale into the conv weight
    return {'w': w.reshape(k * k, c1, c2).astype(ACT_DTYPE),
            'k': k,
            'bias': bias}


def build_conv(key, c1, c2, k=1, s=1):
    return {'type': 'Conv', 'cv': init_conv(key, c1, c2, k), 's': s}


def build_bottleneck(key, c1, c2, shortcut=True, e=1.0, k=(3, 3)):
    c_ = int(c2 * e)
    k1, k2 = jax.random.split(key)
    return {'cv1': init_conv(k1, c1, c_, k[0]),
            'cv2': init_conv(k2, c_, c2, k[1]),
            'add': bool(shortcut and c1 == c2)}


def build_c2f(key, c1, c2, n=1, shortcut=False):
    c = int(c2 * 0.5)
    keys = jax.random.split(key, n + 2)
    return {'type': 'C2f', 'c': c,
            'cv1': init_conv(keys[0], c1, 2 * c, 1),
            'cv2': init_conv(keys[1], (2 + n) * c, c2, 1),
            'm': [build_bottleneck(keys[2 + j], c, c, shortcut, 1.0, (3, 3))
                  for j in range(n)]}


def build_sppf(key, c1, c2, k=5):
    c_ = c1 // 2
    k1, k2 = jax.random.split(key)
    return {'type': 'SPPF', 'k': k,
            'cv1': init_conv(k1, c1, c_, 1),
            'cv2': init_conv(k2, c_ * 4, c2, 1)}


# ----------------------------------------------------------------------------
# Per-module forward
# ----------------------------------------------------------------------------

def forward_module(mod, x):
    t = mod['type']
    if t == 'Conv':
        return conv_forward(x, mod['cv'], mod['s'])
    if t == 'C2f':
        y1 = conv_forward(x, mod['cv1'], 1)        # handles deferred concat too
        c = mod['c']
        prev = y1[..., c:]                          # torch chunk(2, dim=1)[1]
        parts = [y1]                                # == chunk0 | chunk1
        for b in mod['m']:
            h = conv_forward(prev, b['cv1'], 1)
            h = conv_forward(h, b['cv2'], 1,
                             residual=prev if b['add'] else None)
            parts.append(h)
            prev = h
        return conv_forward(parts, mod['cv2'], 1)   # fused concat + 1x1
    if t == 'SPPF':
        y = conv_forward(x, mod['cv1'], 1)
        outs = [y]
        for _ in range(3):
            outs.append(maxpool2d_same(outs[-1], mod['k']))
        return conv_forward(outs, mod['cv2'], 1)    # fused concat + 1x1
    if t == 'Concat':
        # deferred concat: the following 1x1 conv consumes the list and fuses
        # the concat into its grouped matmul (no HBM round-trip).
        out = []
        for item in x:
            if isinstance(item, (list, tuple)):
                out.extend(item)
            else:
                out.append(item)
        return out
    raise NotImplementedError(t)


# ----------------------------------------------------------------------------
# YOLOv8 builder + forward (mirrors the PyTorch module semantics)
# ----------------------------------------------------------------------------

class YOLOv8:
    def __init__(self, cfg, ch=3, key=jax.random.PRNGKey(0)):
        self.cfg = cfg
        gd, gw = cfg['depth_multiple'], cfg['width_multiple']
        ch = [ch]
        layers, save = [], []
        for i, (f, n, m, args) in enumerate(cfg['backbone'] + cfg['head']):
            lkey = jax.random.fold_in(key, i)
            n = max(round(n * gd), 1) if n > 1 else n
            if m in ('Conv', 'C2f', 'SPPF'):
                c1, c2 = ch[f], args[0]
                c2 = make_divisible(c2 * gw, 8)
                args = [c1, c2, *args[1:]]
                if m == 'C2f':
                    args.insert(2, n)
                    n = 1
            elif m == 'Concat':
                c2 = sum(ch[x] for x in f)
            else:
                c2 = ch[f]
            if m == 'Conv':
                mod = build_conv(lkey, *args)
            elif m == 'C2f':
                mod = build_c2f(lkey, *args)
            elif m == 'SPPF':
                mod = build_sppf(lkey, *args)
            elif m == 'Concat':
                mod = {'type': 'Concat'}
            else:
                # TODO(synk): other YOLO blocks (Focus, GhostConv, Head, ...)
                # are not needed by this cfg and therefore not implemented.
                raise NotImplementedError(m)
            mod['f'], mod['i'] = f, i
            save.extend(x % i for x in ([f] if isinstance(f, int) else f)
                        if x != -1)
            layers.append(mod)
            if i == 0:
                ch = []
            ch.append(c2)
        self.backbone = layers
        save.append(len(self.backbone) - 1)
        self.save = sorted(save)

    def __call__(self, x_nchw):
        x = jnp.transpose(x_nchw, (0, 2, 3, 1)).astype(ACT_DTYPE)  # NCHW->NHWC
        y = []
        for m in self.backbone:
            f = m['f']
            if f != -1:
                x = y[f] if isinstance(f, int) \
                    else [x if j == -1 else y[j] for j in f]
            x = forward_module(m, x)
            y.append(x if m['i'] in self.save else None)
        out = _materialize(y[-1])
        return jnp.transpose(out, (0, 3, 1, 2)).astype(jnp.float32)  # -> NCHW


if __name__ == "__main__":
    cfg = {
        'depth_multiple': 1.0,
        'width_multiple': 1.0,
        'backbone': [
            [-1, 1, 'Conv', [16, 3, 2]],   # 0: P1/2
            [-1, 1, 'Conv', [32, 3, 2]],   # 1: P2/4
            [-1, 1, 'C2f', [32, True]],    # 2
            [-1, 1, 'Conv', [64, 3, 2]],   # 3: P3/8
            [-1, 1, 'SPPF', [64, 5]],      # 4
        ],
        'head': [
            [[-1, 3], 1, 'Concat', [1]],   # 5: cat(SPPF out, layer-3 out)
            [-1, 1, 'C2f', [64, False]],   # 6
        ],
    }
    model = YOLOv8(cfg, ch=3, key=jax.random.PRNGKey(42))
    x = jax.random.normal(jax.random.PRNGKey(0), (2, 3, 32, 32), jnp.float32)
    fwd = jax.jit(lambda inp: model(inp))
    out = fwd(x)
    jax.block_until_ready(out)
    assert out.shape == (2, 64, 4, 4), out.shape
    assert bool(jnp.all(jnp.isfinite(out)))
    print("KERNEL_OK")
</pallas_src>

<mosaic_0001>
module attributes {stable_mosaic.version = 11 : i64} {
  func.func @_pointwise_kernel(%arg0: i32, %arg1: memref<256x27xbf16, #tpu.memory_space<vmem>>, %arg2: memref<27x16xbf16, #tpu.memory_space<vmem>>, %arg3: memref<1x16xf32, #tpu.memory_space<vmem>>, %arg4: memref<256x16xbf16, #tpu.memory_space<vmem>>) attributes {dimension_semantics = [#tpu.dimension_semantics<parallel>], iteration_bounds = array<i64: 2>, scalar_prefetch = 0 : i64, scratch_operands = 0 : i64, tpu.core_type = #tpu.core_type<tc>, window_params = [{transform_indices = @transform_0, window_bounds = array<i64: 256, 27>}, {pipeline_mode = #tpu.pipeline_mode<synchronous>, transform_indices = @transform_1, window_bounds = array<i64: 27, 16>}, {pipeline_mode = #tpu.pipeline_mode<synchronous>, transform_indices = @transform_2, window_bounds = array<i64: 1, 16>}, {transform_indices = @transform_3, window_bounds = array<i64: 256, 16>}]} {
    %c0 = arith.constant 0 : index
    %c0_0 = arith.constant 0 : index
    %0 = vector.load %arg1[%c0, %c0_0] : memref<256x27xbf16, #tpu.memory_space<vmem>>, vector<256x27xbf16>
    %c0_1 = arith.constant 0 : index
    %c0_2 = arith.constant 0 : index
    %1 = vector.load %arg2[%c0_1, %c0_2] : memref<27x16xbf16, #tpu.memory_space<vmem>>, vector<27x16xbf16>
    %cst = arith.constant dense<0.000000e+00> : vector<256x16xf32>
    %2 = tpu.matmul %0, %1, %cst {dimension_numbers = #tpu.dot_dimension_numbers<[1], [0], [0], [1], [0, 0, 1, 1], [], []>} : vector<256x27xbf16>, vector<27x16xbf16>, vector<256x16xf32> -> vector<256x16xf32>
    %c0_3 = arith.constant 0 : index
    %c0_4 = arith.constant 0 : index
    %3 = vector.load %arg3[%c0_3, %c0_4] : memref<1x16xf32, #tpu.memory_space<vmem>>, vector<1x16xf32>
    %4 = vector.broadcast %3 : vector<1x16xf32> to vector<256x16xf32>
    %5 = arith.addf %2, %4 : vector<256x16xf32>
    %cst_5 = arith.constant 0.000000e+00 : f32
    %6 = vector.broadcast %cst_5 : f32 to vector<256x16xf32>
    %7 = arith.subf %6, %5 : vector<256x16xf32>
    %8 = math.exp %7 : vector<256x16xf32>
    %cst_6 = arith.constant 1.000000e+00 : f32
    %9 = vector.broadcast %cst_6 : f32 to vector<256x16xf32>
    %10 = arith.addf %9, %8 : vector<256x16xf32>
    %11 = tpu.reciprocal %10 {approx = true} : vector<256x16xf32> -> vector<256x16xf32>
    %12 = arith.mulf %5, %11 : vector<256x16xf32>
    %13 = arith.truncf %12 : vector<256x16xf32> to vector<256x16xbf16>
    %c0_7 = arith.constant 0 : index
    %c0_8 = arith.constant 0 : index
    %14 = vector.load %arg4[%c0_7, %c0_8] : memref<256x16xbf16, #tpu.memory_space<vmem>>, vector<256x16xbf16>
    tpu.vector_store %arg4[%c0_7, %c0_8], %13 {strides = array<i32>} : memref<256x16xbf16, #tpu.memory_space<vmem>>, vector<256x16xbf16>,
    return
  }
  func.func @transform_0(%arg0: i32) -> (i32, i32) {
    %c0_i32 = arith.constant 0 : i32
    %c0_i32_0 = arith.constant 0 : i32
    return %arg0, %c0_i32 : i32, i32
  }
  func.func @transform_1(%arg0: i32) -> (i32, i32) {
    %c0_i32 = arith.constant 0 : i32
    %c0_i32_0 = arith.constant 0 : i32
    %c0_i32_1 = arith.constant 0 : i32
    return %c0_i32, %c0_i32_0 : i32, i32
  }
  func.func @transform_2(%arg0: i32) -> (i32, i32) {
    %c0_i32 = arith.constant 0 : i32
    %c0_i32_0 = arith.constant 0 : i32
    %c0_i32_1 = arith.constant 0 : i32
    return %c0_i32, %c0_i32_0 : i32, i32
  }
  func.func @transform_3(%arg0: i32) -> (i32, i32) {
    %c0_i32 = arith.constant 0 : i32
    %c0_i32_0 = arith.constant 0 : i32
    return %arg0, %c0_i32 : i32, i32
  }
}

module attributes {stable_mosaic.version = 11 : i64} {
  func.func @_pointwise_kernel(%arg0: i32, %arg1: memref<128x144xbf16, #tpu.memory_space<vmem>>, %arg2: memref<144x32xbf16, #tpu.memory_space<vmem>>, %arg3: memref<1x32xf32, #tpu.memory_space<vmem>>, %arg4: memref<128x32xbf16, #tpu.memory_space<vmem>>) attributes {dimension_semantics = [#tpu.dimension_semantics<parallel>], iteration_bounds = array<i64: 1>, scalar_prefetch = 0 : i64, scratch_operands = 0 : i64, tpu.core_type = #tpu.core_type<tc>, window_params = [{transform_indices = @transform_0, window_bounds = array<i64: 128, 144>}, {pipeline_mode = #tpu.pipeline_mode<synchronous>, transform_indices = @transform_1, window_bounds = array<i64: 144, 32>}, {pipeline_mode = #tpu.pipeline_mode<synchronous>, transform_indices = @transform_2, window_bounds = array<i64: 1, 32>}, {transform_indices = @transform_3, window_bounds = array<i64: 128, 32>}]} {
    %c0 = arith.constant 0 : index
    %c0_0 = arith.constant 0 : index
    %0 = vector.load %arg1[%c0, %c0_0] : memref<128x144xbf16, #tpu.memory_space<vmem>>, vector<128x144xbf16>
    %c0_1 = arith.constant 0 : index
    %c0_2 = arith.constant 0 : index
    %1 = vector.load %arg2[%c0_1, %c0_2] : memref<144x32xbf16, #tpu.memory_space<vmem>>, vector<144x32xbf16>
    %cst = arith.constant dense<0.000000e+00> : vector<128x32xf32>
    %2 = tpu.matmul %0, %1, %cst {dimension_numbers = #tpu.dot_dimension_numbers<[1], [0], [0], [1], [0, 0, 1, 1], [], []>} : vector<128x144xbf16>, vector<144x32xbf16>, vector<128x32xf32> -> vector<128x32xf32>
    %c0_3 = arith.constant 0 : index
    %c0_4 = arith.constant 0 : index
    %3 = vector.load %arg3[%c0_3, %c0_4] : memref<1x32xf32, #tpu.memory_space<vmem>>, vector<1x32xf32>
    %4 = vector.broadcast %3 : vector<1x32xf32> to vector<128x32xf32>
    %5 = arith.addf %2, %4 : vector<128x32xf32>
    %cst_5 = arith.constant 0.000000e+00 : f32
    %6 = vector.broadcast %cst_5 : f32 to vector<128x32xf32>
    %7 = arith.subf %6, %5 : vector<128x32xf32>
    %8 = math.exp %7 : vector<128x32xf32>
    %cst_6 = arith.constant 1.000000e+00 : f32
    %9 = vector.broadcast %cst_6 : f32 to vector<128x32xf32>
    %10 = arith.addf %9, %8 : vector<128x32xf32>
    %11 = tpu.reciprocal %10 {approx = true} : vector<128x32xf32> -> vector<128x32xf32>
    %12 = arith.mulf %5, %11 : vector<128x32xf32>
    %13 = arith.truncf %12 : vector<128x32xf32> to vector<128x32xbf16>
    %c0_7 = arith.constant 0 : index
    %c0_8 = arith.constant 0 : index
    %14 = vector.load %arg4[%c0_7, %c0_8] : memref<128x32xbf16, #tpu.memory_space<vmem>>, vector<128x32xbf16>
    tpu.vector_store %arg4[%c0_7, %c0_8], %13 {strides = array<i32>} : memref<128x32xbf16, #tpu.memory_space<vmem>>, vector<128x32xbf16>,
    return
  }
  func.func @transform_0(%arg0: i32) -> (i32, i32) {
    %c0_i32 = arith.constant 0 : i32
    %c0_i32_0 = arith.constant 0 : i32
    return %arg0, %c0_i32 : i32, i32
  }
  func.func @transform_1(%arg0: i32) -> (i32, i32) {
    %c0_i32 = arith.constant 0 : i32
    %c0_i32_0 = arith.constant 0 : i32
    %c0_i32_1 = arith.constant 0 : i32
    return %c0_i32, %c0_i32_0 : i32, i32
  }
  func.func @transform_2(%arg0: i32) -> (i32, i32) {
    %c0_i32 = arith.constant 0 : i32
    %c0_i32_0 = arith.constant 0 : i32
    %c0_i32_1 = arith.constant 0 : i32
    return %c0_i32, %c0_i32_0 : i32, i32
  }
  func.func @transform_3(%arg0: i32) -> (i32, i32) {
    %c0_i32 = arith.constant 0 : i32
    %c0_i32_0 = arith.constant 0 : i32
    return %arg0, %c0_i32 : i32, i32
  }
}

module attributes {stable_mosaic.version = 11 : i64} {
  func.func @_pointwise_kernel(%arg0: i32, %arg1: memref<128x32xbf16, #tpu.memory_space<vmem>>, %arg2: memref<32x32xbf16, #tpu.memory_space<vmem>>, %arg3: memref<1x32xf32, #tpu.memory_space<vmem>>, %arg4: memref<128x32xbf16, #tpu.memory_space<vmem>>) attributes {dimension_semantics = [#tpu.dimension_semantics<parallel>], iteration_bounds = array<i64: 1>, scalar_prefetch = 0 : i64, scratch_operands = 0 : i64, tpu.core_type = #tpu.core_type<tc>, window_params = [{transform_indices = @transform_0, window_bounds = array<i64: 128, 32>}, {pipeline_mode = #tpu.pipeline_mode<synchronous>, transform_indices = @transform_1, window_bounds = array<i64: 32, 32>}, {pipeline_mode = #tpu.pipeline_mode<synchronous>, transform_indices = @transform_2, window_bounds = array<i64: 1, 32>}, {transform_indices = @transform_3, window_bounds = array<i64: 128, 32>}]} {
    %c0 = arith.constant 0 : index
    %c0_0 = arith.constant 0 : index
    %0 = vector.load %arg1[%c0, %c0_0] : memref<128x32xbf16, #tpu.memory_space<vmem>>, vector<128x32xbf16>
    %c0_1 = arith.constant 0 : index
    %c0_2 = arith.constant 0 : index
    %1 = vector.load %arg2[%c0_1, %c0_2] : memref<32x32xbf16, #tpu.memory_space<vmem>>, vector<32x32xbf16>
    %cst = arith.constant dense<0.000000e+00> : vector<128x32xf32>
    %2 = tpu.matmul %0, %1, %cst {dimension_numbers = #tpu.dot_dimension_numbers<[1], [0], [0], [1], [0, 0, 1, 1], [], []>} : vector<128x32xbf16>, vector<32x32xbf16>, vector<128x32xf32> -> vector<128x32xf32>
    %c0_3 = arith.constant 0 : index
    %c0_4 = arith.constant 0 : index
    %3 = vector.load %arg3[%c0_3, %c0_4] : memref<1x32xf32, #tpu.memory_space<vmem>>, vector<1x32xf32>
    %4 = vector.broadcast %3 : vector<1x32xf32> to vector<128x32xf32>
    %5 = arith.addf %2, %4 : vector<128x32xf32>
    %cst_5 = arith.constant 0.000000e+00 : f32
    %6 = vector.broadcast %cst_5 : f32 to vector<128x32xf32>
    %7 = arith.subf %6, %5 : vector<128x32xf32>
    %8 = math.exp %7 : vector<128x32xf32>
    %cst_6 = arith.constant 1.000000e+00 : f32
    %9 = vector.broadcast %cst_6 : f32 to vector<128x32xf32>
    %10 = arith.addf %9, %8 : vector<128x32xf32>
    %11 = tpu.reciprocal %10 {approx = true} : vector<128x32xf32> -> vector<128x32xf32>
    %12 = arith.mulf %5, %11 : vector<128x32xf32>
    %13 = arith.truncf %12 : vector<128x32xf32> to vector<128x32xbf16>
    %c0_7 = arith.constant 0 : index
    %c0_8 = arith.constant 0 : index
    %14 = vector.load %arg4[%c0_7, %c0_8] : memref<128x32xbf16, #tpu.memory_space<vmem>>, vector<128x32xbf16>
    tpu.vector_store %arg4[%c0_7, %c0_8], %13 {strides = array<i32>} : memref<128x32xbf16, #tpu.memory_space<vmem>>, vector<128x32xbf16>,
    return
  }
  func.func @transform_0(%arg0: i32) -> (i32, i32) {
    %c0_i32 = arith.constant 0 : i32
    %c0_i32_0 = arith.constant 0 : i32
    return %arg0, %c0_i32 : i32, i32
  }
  func.func @transform_1(%arg0: i32) -> (i32, i32) {
    %c0_i32 = arith.constant 0 : i32
    %c0_i32_0 = arith.constant 0 : i32
    %c0_i32_1 = arith.constant 0 : i32
    return %c0_i32, %c0_i32_0 : i32, i32
  }
  func.func @transform_2(%arg0: i32) -> (i32, i32) {
    %c0_i32 = arith.constant 0 : i32
    %c0_i32_0 = arith.constant 0 : i32
    %c0_i32_1 = arith.constant 0 : i32
    return %c0_i32, %c0_i32_0 : i32, i32
  }
  func.func @transform_3(%arg0: i32) -> (i32, i32) {
    %c0_i32 = arith.constant 0 : i32
    %c0_i32_0 = arith.constant 0 : i32
    return %arg0, %c0_i32 : i32, i32
  }
}

module attributes {stable_mosaic.version = 11 : i64} {
  func.func @_conv_taps_kernel(%arg0: i32, %arg1: memref<200x16xbf16, #tpu.memory_space<vmem>>, %arg2: memref<200x16xbf16, #tpu.memory_space<vmem>>, %arg3: memref<9x16x16xbf16, #tpu.memory_space<vmem>>, %arg4: memref<1x16xf32, #tpu.memory_space<vmem>>, %arg5: memref<200x16xbf16, #tpu.memory_space<vmem>>) attributes {dimension_semantics = [#tpu.dimension_semantics<parallel>], iteration_bounds = array<i64: 1>, scalar_prefetch = 0 : i64, scratch_operands = 0 : i64, tpu.core_type = #tpu.core_type<tc>, window_params = [{transform_indices = @transform_0, window_bounds = array<i64: 200, 16>}, {transform_indices = @transform_1, window_bounds = array<i64: 200, 16>}, {pipeline_mode = #tpu.pipeline_mode<synchronous>, transform_indices = @transform_2, window_bounds = array<i64: 9, 16, 16>}, {pipeline_mode = #tpu.pipeline_mode<synchronous>, transform_indices = @transform_3, window_bounds = array<i64: 1, 16>}, {transform_indices = @transform_4, window_bounds = array<i64: 200, 16>}]} {
    %c0 = arith.constant 0 : index
    %c0_0 = arith.constant 0 : index
    %0 = vector.load %arg1[%c0, %c0_0] : memref<200x16xbf16, #tpu.memory_space<vmem>>, vector<200x16xbf16>
    %1 = arith.extf %0 : vector<200x16xbf16> to vector<200x16xf32>
    %c0_1 = arith.constant 0 : index
    %c0_2 = arith.constant 0 : index
    %2 = vector.load %arg2[%c0_1, %c0_2] : memref<200x16xbf16, #tpu.memory_space<vmem>>, vector<200x16xbf16>
    %3 = arith.extf %2 : vector<200x16xbf16> to vector<200x16xf32>
    %4 = tpu.concatenate %1, %3 in 0 : vector<200x16xf32>, vector<200x16xf32> -> vector<400x16xf32>
    %c0_3 = arith.constant 0 : index
    %c0_4 = arith.constant 0 : index
    %c0_5 = arith.constant 0 : index
    %5 = vector.load %arg3[%c0_3, %c0_4, %c0_5] : memref<9x16x16xbf16, #tpu.memory_space<vmem>>, vector<9x16x16xbf16>
    %6 = vector.extract_strided_slice %4 {offsets = [0, 0], sizes = [200, 16], strides = [1, 1]} : vector<400x16xf32> to vector<200x16xf32>
    %7 = arith.truncf %6 : vector<200x16xf32> to vector<200x16xbf16>
    %8 = vector.extract_strided_slice %5 {offsets = [0, 0, 0], sizes = [1, 16, 16], strides = [1, 1, 1]} : vector<9x16x16xbf16> to vector<1x16x16xbf16>
    %9 = vector.shape_cast %8 : vector<1x16x16xbf16> to vector<16x16xbf16>
    %cst = arith.constant dense<0.000000e+00> : vector<200x16xf32>
    %10 = tpu.matmul %7, %9, %cst {dimension_numbers = #tpu.dot_dimension_numbers<[1], [0], [0], [1], [0, 0, 1, 1], [], []>} : vector<200x16xbf16>, vector<16x16xbf16>, vector<200x16xf32> -> vector<200x16xf32>
    %11 = vector.extract_strided_slice %4 {offsets = [1, 0], sizes = [200, 16], strides = [1, 1]} : vector<400x16xf32> to vector<200x16xf32>
    %12 = arith.truncf %11 : vector<200x16xf32> to vector<200x16xbf16>
    %13 = vector.extract_strided_slice %5 {offsets = [1, 0, 0], sizes = [1, 16, 16], strides = [1, 1, 1]} : vector<9x16x16xbf16> to vector<1x16x16xbf16>
    %14 = vector.shape_cast %13 : vector<1x16x16xbf16> to vector<16x16xbf16>
    %cst_6 = arith.constant dense<0.000000e+00> : vector<200x16xf32>
    %15 = tpu.matmul %12, %14, %cst_6 {dimension_numbers = #tpu.dot_dimension_numbers<[1], [0], [0], [1], [0, 0, 1, 1], [], []>} : vector<200x16xbf16>, vector<16x16xbf16>, vector<200x16xf32> -> vector<200x16xf32>
    %16 = arith.addf %10, %15 : vector<200x16xf32>
    %17 = vector.extract_strided_slice %4 {offsets = [2, 0], sizes = [200, 16], strides = [1, 1]} : vector<400x16xf32> to vector<200x16xf32>
    %18 = arith.truncf %17 : vector<200x16xf32> to vector<200x16xbf16>
    %19 = vector.extract_strided_slice %5 {offsets = [2, 0, 0], sizes = [1, 16, 16], strides = [1, 1, 1]} : vector<9x16x16xbf16> to vector<1x16x16xbf16>
    %20 = vector.shape_cast %19 : vector<1x16x16xbf16> to vector<16x16xbf16>
    %cst_7 = arith.constant dense<0.000000e+00> : vector<200x16xf32>
    %21 = tpu.matmul %18, %20, %cst_7 {dimension_numbers = #tpu.dot_dimension_numbers<[1], [0], [0], [1], [0, 0, 1, 1], [], []>} : vector<200x16xbf16>, vector<16x16xbf16>, vector<200x16xf32> -> vector<200x16xf32>
    %22 = arith.addf %16, %21 : vector<200x16xf32>
    %23 = vector.extract_strided_slice %4 {offsets = [10, 0], sizes = [200, 16], strides = [1, 1]} : vector<400x16xf32> to vector<200x16xf32>
    %24 = arith.truncf %23 : vector<200x16xf32> to vector<200x16xbf16>
    %25 = vector.extract_strided_slice %5 {offsets = [3, 0, 0], sizes = [1, 16, 16], strides = [1, 1, 1]} : vector<9x16x16xbf16> to vector<1x16x16xbf16>
    %26 = vector.shape_cast %25 : vector<1x16x16xbf16> to vector<16x16xbf16>
    %cst_8 = arith.constant dense<0.000000e+00> : vector<200x16xf32>
    %27 = tpu.matmul %24, %26, %cst_8 {dimension_numbers = #tpu.dot_dimension_numbers<[1], [0], [0], [1], [0, 0, 1, 1], [], []>} : vector<200x16xbf16>, vector<16x16xbf16>, vector<200x16xf32> -> vector<200x16xf32>
    %28 = arith.addf %22, %27 : vector<200x16xf32>
    %29 = vector.extract_strided_slice %4 {offsets = [11, 0], sizes = [200, 16], strides = [1, 1]} : vector<400x16xf32> to vector<200x16xf32>
    %30 = arith.truncf %29 : vector<200x16xf32> to vector<200x16xbf16>
    %31 = vector.extract_strided_slice %5 {offsets = [4, 0, 0], sizes = [1, 16, 16], strides = [1, 1, 1]} : vector<9x16x16xbf16> to vector<1x16x16xbf16>
    %32 = vector.shape_cast %31 : vector<1x16x16xbf16> to vector<16x16xbf16>
    %cst_9 = arith.constant dense<0.000000e+00> : vector<200x16xf32>
    %33 = tpu.matmul %30, %32, %cst_9 {dimension_numbers = #tpu.dot_dimension_numbers<[1], [0], [0], [1], [0, 0, 1, 1], [], []>} : vector<200x16xbf16>, vector<16x16xbf16>, vector<200x16xf32> -> vector<200x16xf32>
    %34 = arith.addf %28, %33 : vector<200x16xf32>
    %35 = vector.extract_strided_slice %4 {offsets = [12, 0], sizes = [200, 16], strides = [1, 1]} : vector<400x16xf32> to vector<200x16xf32>
    %36 = arith.truncf %35 : vector<200x16xf32> to vector<200x16xbf16>
    %37 = vector.extract_strided_slice %5 {offsets = [5, 0, 0], sizes = [1, 16, 16], strides = [1, 1, 1]} : vector<9x16x16xbf16> to vector<1x16x16xbf16>
    %38 = vector.shape_cast %37 : vector<1x16x16xbf16> to vector<16x16xbf16>
    %cst_10 = arith.constant dense<0.000000e+00> : vector<200x16xf32>
    %39 = tpu.matmul %36, %38, %cst_10 {dimension_numbers = #tpu.dot_dimension_numbers<[1], [0], [0], [1], [0, 0, 1, 1], [], []>} : vector<200x16xbf16>, vector<16x16xbf16>, vector<200x16xf32> -> vector<200x16xf32>
    %40 = arith.addf %34, %39 : vector<200x16xf32>
    %41 = vector.extract_strided_slice %4 {offsets = [20, 0], sizes = [200, 16], strides = [1, 1]} : vector<400x16xf32> to vector<200x16xf32>
    %42 = arith.truncf %41 : vector<200x16xf32> to vector<200x16xbf16>
    %43 = vector.extract_strided_slice %5 {offsets = [6, 0, 0], sizes = [1, 16, 16], strides = [1, 1, 1]} : vector<9x16x16xbf16> to vector<1x16x16xbf16>
    %44 = vector.shape_cast %43 : vector<1x16x16xbf16> to vector<16x16xbf16>
    %cst_11 = arith.constant dense<0.000000e+00> : vector<200x16xf32>
    %45 = tpu.matmul %42, %44, %cst_11 {dimension_numbers = #tpu.dot_dimension_numbers<[1], [0], [0], [1], [0, 0, 1, 1], [], []>} : vector<200x16xbf16>, vector<16x16xbf16>, vector<200x16xf32> -> vector<200x16xf32>
    %46 = arith.addf %40, %45 : vector<200x16xf32>
    %47 = vector.extract_strided_slice %4 {offsets = [21, 0], sizes = [200, 16], strides = [1, 1]} : vector<400x16xf32> to vector<200x16xf32>
    %48 = arith.truncf %47 : vector<200x16xf32> to vector<200x16xbf16>
    %49 = vector.extract_strided_slice %5 {offsets = [7, 0, 0], sizes = [1, 16, 16], strides = [1, 1, 1]} : vector<9x16x16xbf16> to vector<1x16x16xbf16>
    %50 = vector.shape_cast %49 : vector<1x16x16xbf16> to vector<16x16xbf16>
    %cst_12 = arith.constant dense<0.000000e+00> : vector<200x16xf32>
    %51 = tpu.matmul %48, %50, %cst_12 {dimension_numbers = #tpu.dot_dimension_numbers<[1], [0], [0], [1], [0, 0, 1, 1], [], []>} : vector<200x16xbf16>, vector<16x16xbf16>, vector<200x16xf32> -> vector<200x16xf32>
    %52 = arith.addf %46, %51 : vector<200x16xf32>
    %53 = vector.extract_strided_slice %4 {offsets = [22, 0], sizes = [200, 16], strides = [1, 1]} : vector<400x16xf32> to vector<200x16xf32>
    %54 = arith.truncf %53 : vector<200x16xf32> to vector<200x16xbf16>
    %55 = vector.extract_strided_slice %5 {offsets = [8, 0, 0], sizes = [1, 16, 16], strides = [1, 1, 1]} : vector<9x16x16xbf16> to vector<1x16x16xbf16>
    %56 = vector.shape_cast %55 : vector<1x16x16xbf16> to vector<16x16xbf16>
    %cst_13 = arith.constant dense<0.000000e+00> : vector<200x16xf32>
    %57 = tpu.matmul %54, %56, %cst_13 {dimension_numbers = #tpu.dot_dimension_numbers<[1], [0], [0], [1], [0, 0, 1, 1], [], []>} : vector<200x16xbf16>, vector<16x16xbf16>, vector<200x16xf32> -> vector<200x16xf32>
    %58 = arith.addf %52, %57 : vector<200x16xf32>
    %c0_14 = arith.constant 0 : index
    %c0_15 = arith.constant 0 : index
    %59 = vector.load %arg4[%c0_14, %c0_15] : memref<1x16xf32, #tpu.memory_space<vmem>>, vector<1x16xf32>
    %60 = vector.broadcast %59 : vector<1x16xf32> to vector<200x16xf32>
    %61 = arith.addf %58, %60 : vector<200x16xf32>
    %cst_16 = arith.constant 0.000000e+00 : f32
    %62 = vector.broadcast %cst_16 : f32 to vector<200x16xf32>
    %63 = arith.subf %62, %61 : vector<200x16xf32>
    %64 = math.exp %63 : vector<200x16xf32>
    %cst_17 = arith.constant 1.000000e+00 : f32
    %65 = vector.broadcast %cst_17 : f32 to vector<200x16xf32>
    %66 = arith.addf %65, %64 : vector<200x16xf32>
    %67 = tpu.reciprocal %66 {approx = true} : vector<200x16xf32> -> vector<200x16xf32>
    %68 = arith.mulf %61, %67 : vector<200x16xf32>
    %69 = arith.truncf %68 : vector<200x16xf32> to vector<200x16xbf16>
    %c0_18 = arith.constant 0 : index
    %c0_19 = arith.constant 0 : index
    %70 = vector.load %arg5[%c0_18, %c0_19] : memref<200x16xbf16, #tpu.memory_space<vmem>>, vector<200x16xbf16>
    tpu.vector_store %arg5[%c0_18, %c0_19], %69 {strides = array<i32>} : memref<200x16xbf16, #tpu.memory_space<vmem>>, vector<200x16xbf16>,
    return
  }
  func.func @transform_0(%arg0: i32) -> (i32, i32) {
    %c0_i32 = arith.constant 0 : i32
    %c0_i32_0 = arith.constant 0 : i32
    return %arg0, %c0_i32 : i32, i32
  }
  func.func @transform_1(%arg0: i32) -> (i32, i32) {
    %c1_i32 = arith.constant 1 : i32
    %0 = arith.addi %arg0, %c1_i32 : i32
    %c0_i32 = arith.constant 0 : i32
    %c0_i32_0 = arith.constant 0 : i32
    return %0, %c0_i32 : i32, i32
  }
  func.func @transform_2(%arg0: i32) -> (i32, i32, i32) {
    %c0_i32 = arith.constant 0 : i32
    %c0_i32_0 = arith.constant 0 : i32
    %c0_i32_1 = arith.constant 0 : i32
    %c0_i32_2 = arith.constant 0 : i32
    return %c0_i32, %c0_i32_0, %c0_i32_1 : i32, i32, i32
  }
  func.func @transform_3(%arg0: i32) -> (i32, i32) {
    %c0_i32 = arith.constant 0 : i32
    %c0_i32_0 = arith.constant 0 : i32
    %c0_i32_1 = arith.constant 0 : i32
    return %c0_i32, %c0_i32_0 : i32, i32
  }
  func.func @transform_4(%arg0: i32) -> (i32, i32) {
    %c0_i32 = arith.constant 0 : i32
    %c0_i32_0 = arith.constant 0 : i32
    return %arg0, %c0_i32 : i32, i32
  }
}

module attributes {stable_mosaic.version = 11 : i64} {
  func.func @_conv_taps_kernel(%arg0: i32, %arg1: memref<200x16xbf16, #tpu.memory_space<vmem>>, %arg2: memref<200x16xbf16, #tpu.memory_space<vmem>>, %arg3: memref<9x16x16xbf16, #tpu.memory_space<vmem>>, %arg4: memref<1x16xf32, #tpu.memory_space<vmem>>, %arg5: memref<200x16xbf16, #tpu.memory_space<vmem>>, %arg6: memref<200x16xbf16, #tpu.memory_space<vmem>>) attributes {dimension_semantics = [#tpu.dimension_semantics<parallel>], iteration_bounds = array<i64: 1>, scalar_prefetch = 0 : i64, scratch_operands = 0 : i64, tpu.core_type = #tpu.core_type<tc>, window_params = [{transform_indices = @transform_0, window_bounds = array<i64: 200, 16>}, {transform_indices = @transform_1, window_bounds = array<i64: 200, 16>}, {pipeline_mode = #tpu.pipeline_mode<synchronous>, transform_indices = @transform_2, window_bounds = array<i64: 9, 16, 16>}, {pipeline_mode = #tpu.pipeline_mode<synchronous>, transform_indices = @transform_3, window_bounds = array<i64: 1, 16>}, {transform_indices = @transform_4, window_bounds = array<i64: 200, 16>}, {transform_indices = @transform_5, window_bounds = array<i64: 200, 16>}]} {
    %c0 = arith.constant 0 : index
    %c0_0 = arith.constant 0 : index
    %0 = vector.load %arg1[%c0, %c0_0] : memref<200x16xbf16, #tpu.memory_space<vmem>>, vector<200x16xbf16>
    %1 = arith.extf %0 : vector<200x16xbf16> to vector<200x16xf32>
    %c0_1 = arith.constant 0 : index
    %c0_2 = arith.constant 0 : index
    %2 = vector.load %arg2[%c0_1, %c0_2] : memref<200x16xbf16, #tpu.memory_space<vmem>>, vector<200x16xbf16>
    %3 = arith.extf %2 : vector<200x16xbf16> to vector<200x16xf32>
    %4 = tpu.concatenate %1, %3 in 0 : vector<200x16xf32>, vector<200x16xf32> -> vector<400x16xf32>
    %c0_3 = arith.constant 0 : index
    %c0_4 = arith.constant 0 : index
    %c0_5 = arith.constant 0 : index
    %5 = vector.load %arg3[%c0_3, %c0_4, %c0_5] : memref<9x16x16xbf16, #tpu.memory_space<vmem>>, vector<9x16x16xbf16>
    %6 = vector.extract_strided_slice %4 {offsets = [0, 0], sizes = [200, 16], strides = [1, 1]} : vector<400x16xf32> to vector<200x16xf32>
    %7 = arith.truncf %6 : vector<200x16xf32> to vector<200x16xbf16>
    %8 = vector.extract_strided_slice %5 {offsets = [0, 0, 0], sizes = [1, 16, 16], strides = [1, 1, 1]} : vector<9x16x16xbf16> to vector<1x16x16xbf16>
    %9 = vector.shape_cast %8 : vector<1x16x16xbf16> to vector<16x16xbf16>
    %cst = arith.constant dense<0.000000e+00> : vector<200x16xf32>
    %10 = tpu.matmul %7, %9, %cst {dimension_numbers = #tpu.dot_dimension_numbers<[1], [0], [0], [1], [0, 0, 1, 1], [], []>} : vector<200x16xbf16>, vector<16x16xbf16>, vector<200x16xf32> -> vector<200x16xf32>
    %11 = vector.extract_strided_slice %4 {offsets = [1, 0], sizes = [200, 16], strides = [1, 1]} : vector<400x16xf32> to vector<200x16xf32>
    %12 = arith.truncf %11 : vector<200x16xf32> to vector<200x16xbf16>
    %13 = vector.extract_strided_slice %5 {offsets = [1, 0, 0], sizes = [1, 16, 16], strides = [1, 1, 1]} : vector<9x16x16xbf16> to vector<1x16x16xbf16>
    %14 = vector.shape_cast %13 : vector<1x16x16xbf16> to vector<16x16xbf16>
    %cst_6 = arith.constant dense<0.000000e+00> : vector<200x16xf32>
    %15 = tpu.matmul %12, %14, %cst_6 {dimension_numbers = #tpu.dot_dimension_numbers<[1], [0], [0], [1], [0, 0, 1, 1], [], []>} : vector<200x16xbf16>, vector<16x16xbf16>, vector<200x16xf32> -> vector<200x16xf32>
    %16 = arith.addf %10, %15 : vector<200x16xf32>
    %17 = vector.extract_strided_slice %4 {offsets = [2, 0], sizes = [200, 16], strides = [1, 1]} : vector<400x16xf32> to vector<200x16xf32>
    %18 = arith.truncf %17 : vector<200x16xf32> to vector<200x16xbf16>
    %19 = vector.extract_strided_slice %5 {offsets = [2, 0, 0], sizes = [1, 16, 16], strides = [1, 1, 1]} : vector<9x16x16xbf16> to vector<1x16x16xbf16>
    %20 = vector.shape_cast %19 : vector<1x16x16xbf16> to vector<16x16xbf16>
    %cst_7 = arith.constant dense<0.000000e+00> : vector<200x16xf32>
    %21 = tpu.matmul %18, %20, %cst_7 {dimension_numbers = #tpu.dot_dimension_numbers<[1], [0], [0], [1], [0, 0, 1, 1], [], []>} : vector<200x16xbf16>, vector<16x16xbf16>, vector<200x16xf32> -> vector<200x16xf32>
    %22 = arith.addf %16, %21 : vector<200x16xf32>
    %23 = vector.extract_strided_slice %4 {offsets = [10, 0], sizes = [200, 16], strides = [1, 1]} : vector<400x16xf32> to vector<200x16xf32>
    %24 = arith.truncf %23 : vector<200x16xf32> to vector<200x16xbf16>
    %25 = vector.extract_strided_slice %5 {offsets = [3, 0, 0], sizes = [1, 16, 16], strides = [1, 1, 1]} : vector<9x16x16xbf16> to vector<1x16x16xbf16>
    %26 = vector.shape_cast %25 : vector<1x16x16xbf16> to vector<16x16xbf16>
    %cst_8 = arith.constant dense<0.000000e+00> : vector<200x16xf32>
    %27 = tpu.matmul %24, %26, %cst_8 {dimension_numbers = #tpu.dot_dimension_numbers<[1], [0], [0], [1], [0, 0, 1, 1], [], []>} : vector<200x16xbf16>, vector<16x16xbf16>, vector<200x16xf32> -> vector<200x16xf32>
    %28 = arith.addf %22, %27 : vector<200x16xf32>
    %29 = vector.extract_strided_slice %4 {offsets = [11, 0], sizes = [200, 16], strides = [1, 1]} : vector<400x16xf32> to vector<200x16xf32>
    %30 = arith.truncf %29 : vector<200x16xf32> to vector<200x16xbf16>
    %31 = vector.extract_strided_slice %5 {offsets = [4, 0, 0], sizes = [1, 16, 16], strides = [1, 1, 1]} : vector<9x16x16xbf16> to vector<1x16x16xbf16>
    %32 = vector.shape_cast %31 : vector<1x16x16xbf16> to vector<16x16xbf16>
    %cst_9 = arith.constant dense<0.000000e+00> : vector<200x16xf32>
    %33 = tpu.matmul %30, %32, %cst_9 {dimension_numbers = #tpu.dot_dimension_numbers<[1], [0], [0], [1], [0, 0, 1, 1], [], []>} : vector<200x16xbf16>, vector<16x16xbf16>, vector<200x16xf32> -> vector<200x16xf32>
    %34 = arith.addf %28, %33 : vector<200x16xf32>
    %35 = vector.extract_strided_slice %4 {offsets = [12, 0], sizes = [200, 16], strides = [1, 1]} : vector<400x16xf32> to vector<200x16xf32>
    %36 = arith.truncf %35 : vector<200x16xf32> to vector<200x16xbf16>
    %37 = vector.extract_strided_slice %5 {offsets = [5, 0, 0], sizes = [1, 16, 16], strides = [1, 1, 1]} : vector<9x16x16xbf16> to vector<1x16x16xbf16>
    %38 = vector.shape_cast %37 : vector<1x16x16xbf16> to vector<16x16xbf16>
    %cst_10 = arith.constant dense<0.000000e+00> : vector<200x16xf32>
    %39 = tpu.matmul %36, %38, %cst_10 {dimension_numbers = #tpu.dot_dimension_numbers<[1], [0], [0], [1], [0, 0, 1, 1], [], []>} : vector<200x16xbf16>, vector<16x16xbf16>, vector<200x16xf32> -> vector<200x16xf32>
    %40 = arith.addf %34, %39 : vector<200x16xf32>
    %41 = vector.extract_strided_slice %4 {offsets = [20, 0], sizes = [200, 16], strides = [1, 1]} : vector<400x16xf32> to vector<200x16xf32>
    %42 = arith.truncf %41 : vector<200x16xf32> to vector<200x16xbf16>
    %43 = vector.extract_strided_slice %5 {offsets = [6, 0, 0], sizes = [1, 16, 16], strides = [1, 1, 1]} : vector<9x16x16xbf16> to vector<1x16x16xbf16>
    %44 = vector.shape_cast %43 : vector<1x16x16xbf16> to vector<16x16xbf16>
    %cst_11 = arith.constant dense<0.000000e+00> : vector<200x16xf32>
    %45 = tpu.matmul %42, %44, %cst_11 {dimension_numbers = #tpu.dot_dimension_numbers<[1], [0], [0], [1], [0, 0, 1, 1], [], []>} : vector<200x16xbf16>, vector<16x16xbf16>, vector<200x16xf32> -> vector<200x16xf32>
    %46 = arith.addf %40, %45 : vector<200x16xf32>
    %47 = vector.extract_strided_slice %4 {offsets = [21, 0], sizes = [200, 16], strides = [1, 1]} : vector<400x16xf32> to vector<200x16xf32>
    %48 = arith.truncf %47 : vector<200x16xf32> to vector<200x16xbf16>
    %49 = vector.extract_strided_slice %5 {offsets = [7, 0, 0], sizes = [1, 16, 16], strides = [1, 1, 1]} : vector<9x16x16xbf16> to vector<1x16x16xbf16>
    %50 = vector.shape_cast %49 : vector<1x16x16xbf16> to vector<16x16xbf16>
    %cst_12 = arith.constant dense<0.000000e+00> : vector<200x16xf32>
    %51 = tpu.matmul %48, %50, %cst_12 {dimension_numbers = #tpu.dot_dimension_numbers<[1], [0], [0], [1], [0, 0, 1, 1], [], []>} : vector<200x16xbf16>, vector<16x16xbf16>, vector<200x16xf32> -> vector<200x16xf32>
    %52 = arith.addf %46, %51 : vector<200x16xf32>
    %53 = vector.extract_strided_slice %4 {offsets = [22, 0], sizes = [200, 16], strides = [1, 1]} : vector<400x16xf32> to vector<200x16xf32>
    %54 = arith.truncf %53 : vector<200x16xf32> to vector<200x16xbf16>
    %55 = vector.extract_strided_slice %5 {offsets = [8, 0, 0], sizes = [1, 16, 16], strides = [1, 1, 1]} : vector<9x16x16xbf16> to vector<1x16x16xbf16>
    %56 = vector.shape_cast %55 : vector<1x16x16xbf16> to vector<16x16xbf16>
    %cst_13 = arith.constant dense<0.000000e+00> : vector<200x16xf32>
    %57 = tpu.matmul %54, %56, %cst_13 {dimension_numbers = #tpu.dot_dimension_numbers<[1], [0], [0], [1], [0, 0, 1, 1], [], []>} : vector<200x16xbf16>, vector<16x16xbf16>, vector<200x16xf32> -> vector<200x16xf32>
    %58 = arith.addf %52, %57 : vector<200x16xf32>
    %c0_14 = arith.constant 0 : index
    %c0_15 = arith.constant 0 : index
    %59 = vector.load %arg4[%c0_14, %c0_15] : memref<1x16xf32, #tpu.memory_space<vmem>>, vector<1x16xf32>
    %60 = vector.broadcast %59 : vector<1x16xf32> to vector<200x16xf32>
    %61 = arith.addf %58, %60 : vector<200x16xf32>
    %cst_16 = arith.constant 0.000000e+00 : f32
    %62 = vector.broadcast %cst_16 : f32 to vector<200x16xf32>
    %63 = arith.subf %62, %61 : vector<200x16xf32>
    %64 = math.exp %63 : vector<200x16xf32>
    %cst_17 = arith.constant 1.000000e+00 : f32
    %65 = vector.broadcast %cst_17 : f32 to vector<200x16xf32>
    %66 = arith.addf %65, %64 : vector<200x16xf32>
    %67 = tpu.reciprocal %66 {approx = true} : vector<200x16xf32> -> vector<200x16xf32>
    %68 = arith.mulf %61, %67 : vector<200x16xf32>
    %c0_18 = arith.constant 0 : index
    %c0_19 = arith.constant 0 : index
    %69 = vector.load %arg5[%c0_18, %c0_19] : memref<200x16xbf16, #tpu.memory_space<vmem>>, vector<200x16xbf16>
    %70 = arith.extf %69 : vector<200x16xbf16> to vector<200x16xf32>
    %71 = arith.addf %68, %70 : vector<200x16xf32>
    %72 = arith.truncf %71 : vector<200x16xf32> to vector<200x16xbf16>
    %c0_20 = arith.constant 0 : index
    %c0_21 = arith.constant 0 : index
    %73 = vector.load %arg6[%c0_20, %c0_21] : memref<200x16xbf16, #tpu.memory_space<vmem>>, vector<200x16xbf16>
    tpu.vector_store %arg6[%c0_20, %c0_21], %72 {strides = array<i32>} : memref<200x16xbf16, #tpu.memory_space<vmem>>, vector<200x16xbf16>,
    return
  }
  func.func @transform_0(%arg0: i32) -> (i32, i32) {
    %c0_i32 = arith.constant 0 : i32
    %c0_i32_0 = arith.constant 0 : i32
    return %arg0, %c0_i32 : i32, i32
  }
  func.func @transform_1(%arg0: i32) -> (i32, i32) {
    %c1_i32 = arith.constant 1 : i32
    %0 = arith.addi %arg0, %c1_i32 : i32
    %c0_i32 = arith.constant 0 : i32
    %c0_i32_0 = arith.constant 0 : i32
    return %0, %c0_i32 : i32, i32
  }
  func.func @transform_2(%arg0: i32) -> (i32, i32, i32) {
    %c0_i32 = arith.constant 0 : i32
    %c0_i32_0 = arith.constant 0 : i32
    %c0_i32_1 = arith.constant 0 : i32
    %c0_i32_2 = arith.constant 0 : i32
    return %c0_i32, %c0_i32_0, %c0_i32_1 : i32, i32, i32
  }
  func.func @transform_3(%arg0: i32) -> (i32, i32) {
    %c0_i32 = arith.constant 0 : i32
    %c0_i32_0 = arith.constant 0 : i32
    %c0_i32_1 = arith.constant 0 : i32
    return %c0_i32, %c0_i32_0 : i32, i32
  }
  func.func @transform_4(%arg0: i32) -> (i32, i32) {
    %c0_i32 = arith.constant 0 : i32
    %c0_i32_0 = arith.constant 0 : i32
    return %arg0, %c0_i32 : i32, i32
  }
  func.func @transform_5(%arg0: i32) -> (i32, i32) {
    %c0_i32 = arith.constant 0 : i32
    %c0_i32_0 = arith.constant 0 : i32
    return %arg0, %c0_i32 : i32, i32
  }
}

module attributes {stable_mosaic.version = 11 : i64} {
  func.func @_pointwise_kernel(%arg0: i32, %arg1: memref<128x32xbf16, #tpu.memory_space<vmem>>, %arg2: memref<128x16xbf16, #tpu.memory_space<vmem>>, %arg3: memref<32x32xbf16, #tpu.memory_space<vmem>>, %arg4: memref<16x32xbf16, #tpu.memory_space<vmem>>, %arg5: memref<1x32xf32, #tpu.memory_space<vmem>>, %arg6: memref<128x32xbf16, #tpu.memory_space<vmem>>) attributes {dimension_semantics = [#tpu.dimension_semantics<parallel>], iteration_bounds = array<i64: 1>, scalar_prefetch = 0 : i64, scratch_operands = 0 : i64, tpu.core_type = #tpu.core_type<tc>, window_params = [{transform_indices = @transform_0, window_bounds = array<i64: 128, 32>}, {transform_indices = @transform_1, window_bounds = array<i64: 128, 16>}, {pipeline_mode = #tpu.pipeline_mode<synchronous>, transform_indices = @transform_2, window_bounds = array<i64: 32, 32>}, {pipeline_mode = #tpu.pipeline_mode<synchronous>, transform_indices = @transform_3, window_bounds = array<i64: 16, 32>}, {pipeline_mode = #tpu.pipeline_mode<synchronous>, transform_indices = @transform_4, window_bounds = array<i64: 1, 32>}, {transform_indices = @transform_5, window_bounds = array<i64: 128, 32>}]} {
    %c0 = arith.constant 0 : index
    %c0_0 = arith.constant 0 : index
    %0 = vector.load %arg1[%c0, %c0_0] : memref<128x32xbf16, #tpu.memory_space<vmem>>, vector<128x32xbf16>
    %c0_1 = arith.constant 0 : index
    %c0_2 = arith.constant 0 : index
    %1 = vector.load %arg3[%c0_1, %c0_2] : memref<32x32xbf16, #tpu.memory_space<vmem>>, vector<32x32xbf16>
    %cst = arith.constant dense<0.000000e+00> : vector<128x32xf32>
    %2 = tpu.matmul %0, %1, %cst {dimension_numbers = #tpu.dot_dimension_numbers<[1], [0], [0], [1], [0, 0, 1, 1], [], []>} : vector<128x32xbf16>, vector<32x32xbf16>, vector<128x32xf32> -> vector<128x32xf32>
    %c0_3 = arith.constant 0 : index
    %c0_4 = arith.constant 0 : index
    %3 = vector.load %arg2[%c0_3, %c0_4] : memref<128x16xbf16, #tpu.memory_space<vmem>>, vector<128x16xbf16>
    %c0_5 = arith.constant 0 : index
    %c0_6 = arith.constant 0 : index
    %4 = vector.load %arg4[%c0_5, %c0_6] : memref<16x32xbf16, #tpu.memory_space<vmem>>, vector<16x32xbf16>
    %cst_7 = arith.constant dense<0.000000e+00> : vector<128x32xf32>
    %5 = tpu.matmul %3, %4, %cst_7 {dimension_numbers = #tpu.dot_dimension_numbers<[1], [0], [0], [1], [0, 0, 1, 1], [], []>} : vector<128x16xbf16>, vector<16x32xbf16>, vector<128x32xf32> -> vector<128x32xf32>
    %6 = arith.addf %2, %5 : vector<128x32xf32>
    %c0_8 = arith.constant 0 : index
    %c0_9 = arith.constant 0 : index
    %7 = vector.load %arg5[%c0_8, %c0_9] : memref<1x32xf32, #tpu.memory_space<vmem>>, vector<1x32xf32>
    %8 = vector.broadcast %7 : vector<1x32xf32> to vector<128x32xf32>
    %9 = arith.addf %6, %8 : vector<128x32xf32>
    %cst_10 = arith.constant 0.000000e+00 : f32
    %10 = vector.broadcast %cst_10 : f32 to vector<128x32xf32>
    %11 = arith.subf %10, %9 : vector<128x32xf32>
    %12 = math.exp %11 : vector<128x32xf32>
    %cst_11 = arith.constant 1.000000e+00 : f32
    %13 = vector.broadcast %cst_11 : f32 to vector<128x32xf32>
    %14 = arith.addf %13, %12 : vector<128x32xf32>
    %15 = tpu.reciprocal %14 {approx = true} : vector<128x32xf32> -> vector<128x32xf32>
    %16 = arith.mulf %9, %15 : vector<128x32xf32>
    %17 = arith.truncf %16 : vector<128x32xf32> to vector<128x32xbf16>
    %c0_12 = arith.constant 0 : index
    %c0_13 = arith.constant 0 : index
    %18 = vector.load %arg6[%c0_12, %c0_13] : memref<128x32xbf16, #tpu.memory_space<vmem>>, vector<128x32xbf16>
    tpu.vector_store %arg6[%c0_12, %c0_13], %17 {strides = array<i32>} : memref<128x32xbf16, #tpu.memory_space<vmem>>, vector<128x32xbf16>,
    return
  }
  func.func @transform_0(%arg0: i32) -> (i32, i32) {
    %c0_i32 = arith.constant 0 : i32
    %c0_i32_0 = arith.constant 0 : i32
    return %arg0, %c0_i32 : i32, i32
  }
  func.func @transform_1(%arg0: i32) -> (i32, i32) {
    %c0_i32 = arith.constant 0 : i32
    %c0_i32_0 = arith.constant 0 : i32
    return %arg0, %c0_i32 : i32, i32
  }
  func.func @transform_2(%arg0: i32) -> (i32, i32) {
    %c0_i32 = arith.constant 0 : i32
    %c0_i32_0 = arith.constant 0 : i32
    %c0_i32_1 = arith.constant 0 : i32
    return %c0_i32, %c0_i32_0 : i32, i32
  }
  func.func @transform_3(%arg0: i32) -> (i32, i32) {
    %c0_i32 = arith.constant 0 : i32
    %c0_i32_0 = arith.constant 0 : i32
    %c0_i32_1 = arith.constant 0 : i32
    return %c0_i32, %c0_i32_0 : i32, i32
  }
  func.func @transform_4(%arg0: i32) -> (i32, i32) {
    %c0_i32 = arith.constant 0 : i32
    %c0_i32_0 = arith.constant 0 : i32
    %c0_i32_1 = arith.constant 0 : i32
    return %c0_i32, %c0_i32_0 : i32, i32
  }
  func.func @transform_5(%arg0: i32) -> (i32, i32) {
    %c0_i32 = arith.constant 0 : i32
    %c0_i32_0 = arith.constant 0 : i32
    return %arg0, %c0_i32 : i32, i32
  }
}

module attributes {stable_mosaic.version = 11 : i64} {
  func.func @_pointwise_kernel(%arg0: i32, %arg1: memref<32x288xbf16, #tpu.memory_space<vmem>>, %arg2: memref<288x64xbf16, #tpu.memory_space<vmem>>, %arg3: memref<1x64xf32, #tpu.memory_space<vmem>>, %arg4: memref<32x64xbf16, #tpu.memory_space<vmem>>) attributes {dimension_semantics = [#tpu.dimension_semantics<parallel>], iteration_bounds = array<i64: 1>, scalar_prefetch = 0 : i64, scratch_operands = 0 : i64, tpu.core_type = #tpu.core_type<tc>, window_params = [{transform_indices = @transform_0, window_bounds = array<i64: 32, 288>}, {pipeline_mode = #tpu.pipeline_mode<synchronous>, transform_indices = @transform_1, window_bounds = array<i64: 288, 64>}, {pipeline_mode = #tpu.pipeline_mode<synchronous>, transform_indices = @transform_2, window_bounds = array<i64: 1, 64>}, {transform_indices = @transform_3, window_bounds = array<i64: 32, 64>}]} {
    %c0 = arith.constant 0 : index
    %c0_0 = arith.constant 0 : index
    %0 = vector.load %arg1[%c0, %c0_0] : memref<32x288xbf16, #tpu.memory_space<vmem>>, vector<32x288xbf16>
    %c0_1 = arith.constant 0 : index
    %c0_2 = arith.constant 0 : index
    %1 = vector.load %arg2[%c0_1, %c0_2] : memref<288x64xbf16, #tpu.memory_space<vmem>>, vector<288x64xbf16>
    %cst = arith.constant dense<0.000000e+00> : vector<32x64xf32>
    %2 = tpu.matmul %0, %1, %cst {dimension_numbers = #tpu.dot_dimension_numbers<[1], [0], [0], [1], [0, 0, 1, 1], [], []>} : vector<32x288xbf16>, vector<288x64xbf16>, vector<32x64xf32> -> vector<32x64xf32>
    %c0_3 = arith.constant 0 : index
    %c0_4 = arith.constant 0 : index
    %3 = vector.load %arg3[%c0_3, %c0_4] : memref<1x64xf32, #tpu.memory_space<vmem>>, vector<1x64xf32>
    %4 = vector.broadcast %3 : vector<1x64xf32> to vector<32x64xf32>
    %5 = arith.addf %2, %4 : vector<32x64xf32>
    %cst_5 = arith.constant 0.000000e+00 : f32
    %6 = vector.broadcast %cst_5 : f32 to vector<32x64xf32>
    %7 = arith.subf %6, %5 : vector<32x64xf32>
    %8 = math.exp %7 : vector<32x64xf32>
    %cst_6 = arith.constant 1.000000e+00 : f32
    %9 = vector.broadcast %cst_6 : f32 to vector<32x64xf32>
    %10 = arith.addf %9, %8 : vector<32x64xf32>
    %11 = tpu.reciprocal %10 {approx = true} : vector<32x64xf32> -> vector<32x64xf32>
    %12 = arith.mulf %5, %11 : vector<32x64xf32>
    %13 = arith.truncf %12 : vector<32x64xf32> to vector<32x64xbf16>
    %c0_7 = arith.constant 0 : index
    %c0_8 = arith.constant 0 : index
    %14 = vector.load %arg4[%c0_7, %c0_8] : memref<32x64xbf16, #tpu.memory_space<vmem>>, vector<32x64xbf16>
    tpu.vector_store %arg4[%c0_7, %c0_8], %13 {strides = array<i32>} : memref<32x64xbf16, #tpu.memory_space<vmem>>, vector<32x64xbf16>,
    return
  }
  func.func @transform_0(%arg0: i32) -> (i32, i32) {
    %c0_i32 = arith.constant 0 : i32
    %c0_i32_0 = arith.constant 0 : i32
    return %arg0, %c0_i32 : i32, i32
  }
  func.func @transform_1(%arg0: i32) -> (i32, i32) {
    %c0_i32 = arith.constant 0 : i32
    %c0_i32_0 = arith.constant 0 : i32
    %c0_i32_1 = arith.constant 0 : i32
    return %c0_i32, %c0_i32_0 : i32, i32
  }
  func.func @transform_2(%arg0: i32) -> (i32, i32) {
    %c0_i32 = arith.constant 0 : i32
    %c0_i32_0 = arith.constant 0 : i32
    %c0_i32_1 = arith.constant 0 : i32
    return %c0_i32, %c0_i32_0 : i32, i32
  }
  func.func @transform_3(%arg0: i32) -> (i32, i32) {
    %c0_i32 = arith.constant 0 : i32
    %c0_i32_0 = arith.constant 0 : i32
    return %arg0, %c0_i32 : i32, i32
  }
}

module attributes {stable_mosaic.version = 11 : i64} {
  func.func @_pointwise_kernel(%arg0: i32, %arg1: memref<32x64xbf16, #tpu.memory_space<vmem>>, %arg2: memref<64x32xbf16, #tpu.memory_space<vmem>>, %arg3: memref<1x32xf32, #tpu.memory_space<vmem>>, %arg4: memref<32x32xbf16, #tpu.memory_space<vmem>>) attributes {dimension_semantics = [#tpu.dimension_semantics<parallel>], iteration_bounds = array<i64: 1>, scalar_prefetch = 0 : i64, scratch_operands = 0 : i64, tpu.core_type = #tpu.core_type<tc>, window_params = [{transform_indices = @transform_0, window_bounds = array<i64: 32, 64>}, {pipeline_mode = #tpu.pipeline_mode<synchronous>, transform_indices = @transform_1, window_bounds = array<i64: 64, 32>}, {pipeline_mode = #tpu.pipeline_mode<synchronous>, transform_indices = @transform_2, window_bounds = array<i64: 1, 32>}, {transform_indices = @transform_3, window_bounds = array<i64: 32, 32>}]} {
    %c0 = arith.constant 0 : index
    %c0_0 = arith.constant 0 : index
    %0 = vector.load %arg1[%c0, %c0_0] : memref<32x64xbf16, #tpu.memory_space<vmem>>, vector<32x64xbf16>
    %c0_1 = arith.constant 0 : index
    %c0_2 = arith.constant 0 : index
    %1 = vector.load %arg2[%c0_1, %c0_2] : memref<64x32xbf16, #tpu.memory_space<vmem>>, vector<64x32xbf16>
    %cst = arith.constant dense<0.000000e+00> : vector<32x32xf32>
    %2 = tpu.matmul %0, %1, %cst {dimension_numbers = #tpu.dot_dimension_numbers<[1], [0], [0], [1], [0, 0, 1, 1], [], []>} : vector<32x64xbf16>, vector<64x32xbf16>, vector<32x32xf32> -> vector<32x32xf32>
    %c0_3 = arith.constant 0 : index
    %c0_4 = arith.constant 0 : index
    %3 = vector.load %arg3[%c0_3, %c0_4] : memref<1x32xf32, #tpu.memory_space<vmem>>, vector<1x32xf32>
    %4 = vector.broadcast %3 : vector<1x32xf32> to vector<32x32xf32>
    %5 = arith.addf %2, %4 : vector<32x32xf32>
    %cst_5 = arith.constant 0.000000e+00 : f32
    %6 = vector.broadcast %cst_5 : f32 to vector<32x32xf32>
    %7 = arith.subf %6, %5 : vector<32x32xf32>
    %8 = math.exp %7 : vector<32x32xf32>
    %cst_6 = arith.constant 1.000000e+00 : f32
    %9 = vector.broadcast %cst_6 : f32 to vector<32x32xf32>
    %10 = arith.addf %9, %8 : vector<32x32xf32>
    %11 = tpu.reciprocal %10 {approx = true} : vector<32x32xf32> -> vector<32x32xf32>
    %12 = arith.mulf %5, %11 : vector<32x32xf32>
    %13 = arith.truncf %12 : vector<32x32xf32> to vector<32x32xbf16>
    %c0_7 = arith.constant 0 : index
    %c0_8 = arith.constant 0 : index
    %14 = vector.load %arg4[%c0_7, %c0_8] : memref<32x32xbf16, #tpu.memory_space<vmem>>, vector<32x32xbf16>
    tpu.vector_store %arg4[%c0_7, %c0_8], %13 {strides = array<i32>} : memref<32x32xbf16, #tpu.memory_space<vmem>>, vector<32x32xbf16>,
    return
  }
  func.func @transform_0(%arg0: i32) -> (i32, i32) {
    %c0_i32 = arith.constant 0 : i32
    %c0_i32_0 = arith.constant 0 : i32
    return %arg0, %c0_i32 : i32, i32
  }
  func.func @transform_1(%arg0: i32) -> (i32, i32) {
    %c0_i32 = arith.constant 0 : i32
    %c0_i32_0 = arith.constant 0 : i32
    %c0_i32_1 = arith.constant 0 : i32
    return %c0_i32, %c0_i32_0 : i32, i32
  }
  func.func @transform_2(%arg0: i32) -> (i32, i32) {
    %c0_i32 = arith.constant 0 : i32
    %c0_i32_0 = arith.constant 0 : i32
    %c0_i32_1 = arith.constant 0 : i32
    return %c0_i32, %c0_i32_0 : i32, i32
  }
  func.func @transform_3(%arg0: i32) -> (i32, i32) {
    %c0_i32 = arith.constant 0 : i32
    %c0_i32_0 = arith.constant 0 : i32
    return %arg0, %c0_i32 : i32, i32
  }
}

module attributes {stable_mosaic.version = 11 : i64} {
  func.func @_maxpool_kernel(%arg0: i32, %arg1: i32, %arg2: memref<1x8x8x32xbf16, #tpu.memory_space<vmem>>, %arg3: memref<1x4x4x32xbf16, #tpu.memory_space<vmem>>) attributes {dimension_semantics = [#tpu.dimension_semantics<parallel>, #tpu.dimension_semantics<parallel>], iteration_bounds = array<i64: 2, 1>, scalar_prefetch = 0 : i64, scratch_operands = 0 : i64, tpu.core_type = #tpu.core_type<tc>, window_params = [{transform_indices = @transform_0, window_bounds = array<i64: 1, 8, 8, 32>}, {transform_indices = @transform_1, window_bounds = array<i64: 1, 4, 4, 32>}]} {
    %c0 = arith.constant 0 : index
    %c0_0 = arith.constant 0 : index
    %c0_1 = arith.constant 0 : index
    %c0_2 = arith.constant 0 : index
    %0 = vector.load %arg2[%c0, %c0_0, %c0_1, %c0_2] : memref<1x8x8x32xbf16, #tpu.memory_space<vmem>>, vector<1x8x8x32xbf16>
    %1 = arith.extf %0 : vector<1x8x8x32xbf16> to vector<1x8x8x32xf32>
    %2 = vector.extract_strided_slice %1 {offsets = [0, 0, 0, 0], sizes = [1, 8, 4, 32], strides = [1, 1, 1, 1]} : vector<1x8x8x32xf32> to vector<1x8x4x32xf32>
    %3 = vector.extract_strided_slice %1 {offsets = [0, 0, 1, 0], sizes = [1, 8, 4, 32], strides = [1, 1, 1, 1]} : vector<1x8x8x32xf32> to vector<1x8x4x32xf32>
    %4 = arith.maximumf %2, %3 : vector<1x8x4x32xf32>
    %5 = vector.extract_strided_slice %1 {offsets = [0, 0, 2, 0], sizes = [1, 8, 4, 32], strides = [1, 1, 1, 1]} : vector<1x8x8x32xf32> to vector<1x8x4x32xf32>
    %6 = arith.maximumf %4, %5 : vector<1x8x4x32xf32>
    %7 = vector.extract_strided_slice %1 {offsets = [0, 0, 3, 0], sizes = [1, 8, 4, 32], strides = [1, 1, 1, 1]} : vector<1x8x8x32xf32> to vector<1x8x4x32xf32>
    %8 = arith.maximumf %6, %7 : vector<1x8x4x32xf32>
    %9 = vector.extract_strided_slice %1 {offsets = [0, 0, 4, 0], sizes = [1, 8, 4, 32], strides = [1, 1, 1, 1]} : vector<1x8x8x32xf32> to vector<1x8x4x32xf32>
    %10 = arith.maximumf %8, %9 : vector<1x8x4x32xf32>
    %11 = vector.extract_strided_slice %10 {offsets = [0, 0, 0, 0], sizes = [1, 4, 4, 32], strides = [1, 1, 1, 1]} : vector<1x8x4x32xf32> to vector<1x4x4x32xf32>
    %12 = vector.extract_strided_slice %10 {offsets = [0, 1, 0, 0], sizes = [1, 4, 4, 32], strides = [1, 1, 1, 1]} : vector<1x8x4x32xf32> to vector<1x4x4x32xf32>
    %13 = arith.maximumf %11, %12 : vector<1x4x4x32xf32>
    %14 = vector.extract_strided_slice %10 {offsets = [0, 2, 0, 0], sizes = [1, 4, 4, 32], strides = [1, 1, 1, 1]} : vector<1x8x4x32xf32> to vector<1x4x4x32xf32>
    %15 = arith.maximumf %13, %14 : vector<1x4x4x32xf32>
    %16 = vector.extract_strided_slice %10 {offsets = [0, 3, 0, 0], sizes = [1, 4, 4, 32], strides = [1, 1, 1, 1]} : vector<1x8x4x32xf32> to vector<1x4x4x32xf32>
    %17 = arith.maximumf %15, %16 : vector<1x4x4x32xf32>
    %18 = vector.extract_strided_slice %10 {offsets = [0, 4, 0, 0], sizes = [1, 4, 4, 32], strides = [1, 1, 1, 1]} : vector<1x8x4x32xf32> to vector<1x4x4x32xf32>
    %19 = arith.maximumf %17, %18 : vector<1x4x4x32xf32>
    %20 = arith.truncf %19 : vector<1x4x4x32xf32> to vector<1x4x4x32xbf16>
    %c0_3 = arith.constant 0 : index
    %c0_4 = arith.constant 0 : index
    %c0_5 = arith.constant 0 : index
    %c0_6 = arith.constant 0 : index
    %21 = vector.load %arg3[%c0_3, %c0_4, %c0_5, %c0_6] : memref<1x4x4x32xbf16, #tpu.memory_space<vmem>>, vector<1x4x4x32xbf16>
    tpu.vector_store %arg3[%c0_3, %c0_4, %c0_5, %c0_6], %20 {strides = array<i32>} : memref<1x4x4x32xbf16, #tpu.memory_space<vmem>>, vector<1x4x4x32xbf16>,
    return
  }
  func.func @transform_0(%arg0: i32, %arg1: i32) -> (i32, i32, i32, i32) {
    %c0_i32 = arith.constant 0 : i32
    %c0_i32_0 = arith.constant 0 : i32
    %c0_i32_1 = arith.constant 0 : i32
    return %arg0, %c0_i32, %c0_i32_0, %arg1 : i32, i32, i32, i32
  }
  func.func @transform_1(%arg0: i32, %arg1: i32) -> (i32, i32, i32, i32) {
    %c0_i32 = arith.constant 0 : i32
    %c0_i32_0 = arith.constant 0 : i32
    %c0_i32_1 = arith.constant 0 : i32
    return %arg0, %c0_i32, %c0_i32_0, %arg1 : i32, i32, i32, i32
  }
}

module attributes {stable_mosaic.version = 11 : i64} {
  func.func @_pointwise_kernel(%arg0: i32, %arg1: memref<32x32xbf16, #tpu.memory_space<vmem>>, %arg2: memref<32x32xbf16, #tpu.memory_space<vmem>>, %arg3: memref<32x32xbf16, #tpu.memory_space<vmem>>, %arg4: memref<32x32xbf16, #tpu.memory_space<vmem>>, %arg5: memref<32x64xbf16, #tpu.memory_space<vmem>>, %arg6: memref<32x64xbf16, #tpu.memory_space<vmem>>, %arg7: memref<32x64xbf16, #tpu.memory_space<vmem>>, %arg8: memref<32x64xbf16, #tpu.memory_space<vmem>>, %arg9: memref<1x64xf32, #tpu.memory_space<vmem>>, %arg10: memref<32x64xbf16, #tpu.memory_space<vmem>>) attributes {dimension_semantics = [#tpu.dimension_semantics<parallel>], iteration_bounds = array<i64: 1>, scalar_prefetch = 0 : i64, scratch_operands = 0 : i64, tpu.core_type = #tpu.core_type<tc>, window_params = [{transform_indices = @transform_0, window_bounds = array<i64: 32, 32>}, {transform_indices = @transform_1, window_bounds = array<i64: 32, 32>}, {transform_indices = @transform_2, window_bounds = array<i64: 32, 32>}, {transform_indices = @transform_3, window_bounds = array<i64: 32, 32>}, {pipeline_mode = #tpu.pipeline_mode<synchronous>, transform_indices = @transform_4, window_bounds = array<i64: 32, 64>}, {pipeline_mode = #tpu.pipeline_mode<synchronous>, transform_indices = @transform_5, window_bounds = array<i64: 32, 64>}, {pipeline_mode = #tpu.pipeline_mode<synchronous>, transform_indices = @transform_6, window_bounds = array<i64: 32, 64>}, {pipeline_mode = #tpu.pipeline_mode<synchronous>, transform_indices = @transform_7, window_bounds = array<i64: 32, 64>}, {pipeline_mode = #tpu.pipeline_mode<synchronous>, transform_indices = @transform_8, window_bounds = array<i64: 1, 64>}, {transform_indices = @transform_9, window_bounds = array<i64: 32, 64>}]} {
    %c0 = arith.constant 0 : index
    %c0_0 = arith.constant 0 : index
    %0 = vector.load %arg1[%c0, %c0_0] : memref<32x32xbf16, #tpu.memory_space<vmem>>, vector<32x32xbf16>
    %c0_1 = arith.constant 0 : index
    %c0_2 = arith.constant 0 : index
    %1 = vector.load %arg5[%c0_1, %c0_2] : memref<32x64xbf16, #tpu.memory_space<vmem>>, vector<32x64xbf16>
    %cst = arith.constant dense<0.000000e+00> : vector<32x64xf32>
    %2 = tpu.matmul %0, %1, %cst {dimension_numbers = #tpu.dot_dimension_numbers<[1], [0], [0], [1], [0, 0, 1, 1], [], []>} : vector<32x32xbf16>, vector<32x64xbf16>, vector<32x64xf32> -> vector<32x64xf32>
    %c0_3 = arith.constant 0 : index
    %c0_4 = arith.constant 0 : index
    %3 = vector.load %arg2[%c0_3, %c0_4] : memref<32x32xbf16, #tpu.memory_space<vmem>>, vector<32x32xbf16>
    %c0_5 = arith.constant 0 : index
    %c0_6 = arith.constant 0 : index
    %4 = vector.load %arg6[%c0_5, %c0_6] : memref<32x64xbf16, #tpu.memory_space<vmem>>, vector<32x64xbf16>
    %cst_7 = arith.constant dense<0.000000e+00> : vector<32x64xf32>
    %5 = tpu.matmul %3, %4, %cst_7 {dimension_numbers = #tpu.dot_dimension_numbers<[1], [0], [0], [1], [0, 0, 1, 1], [], []>} : vector<32x32xbf16>, vector<32x64xbf16>, vector<32x64xf32> -> vector<32x64xf32>
    %6 = arith.addf %2, %5 : vector<32x64xf32>
    %c0_8 = arith.constant 0 : index
    %c0_9 = arith.constant 0 : index
    %7 = vector.load %arg3[%c0_8, %c0_9] : memref<32x32xbf16, #tpu.memory_space<vmem>>, vector<32x32xbf16>
    %c0_10 = arith.constant 0 : index
    %c0_11 = arith.constant 0 : index
    %8 = vector.load %arg7[%c0_10, %c0_11] : memref<32x64xbf16, #tpu.memory_space<vmem>>, vector<32x64xbf16>
    %cst_12 = arith.constant dense<0.000000e+00> : vector<32x64xf32>
    %9 = tpu.matmul %7, %8, %cst_12 {dimension_numbers = #tpu.dot_dimension_numbers<[1], [0], [0], [1], [0, 0, 1, 1], [], []>} : vector<32x32xbf16>, vector<32x64xbf16>, vector<32x64xf32> -> vector<32x64xf32>
    %10 = arith.addf %6, %9 : vector<32x64xf32>
    %c0_13 = arith.constant 0 : index
    %c0_14 = arith.constant 0 : index
    %11 = vector.load %arg4[%c0_13, %c0_14] : memref<32x32xbf16, #tpu.memory_space<vmem>>, vector<32x32xbf16>
    %c0_15 = arith.constant 0 : index
    %c0_16 = arith.constant 0 : index
    %12 = vector.load %arg8[%c0_15, %c0_16] : memref<32x64xbf16, #tpu.memory_space<vmem>>, vector<32x64xbf16>
    %cst_17 = arith.constant dense<0.000000e+00> : vector<32x64xf32>
    %13 = tpu.matmul %11, %12, %cst_17 {dimension_numbers = #tpu.dot_dimension_numbers<[1], [0], [0], [1], [0, 0, 1, 1], [], []>} : vector<32x32xbf16>, vector<32x64xbf16>, vector<32x64xf32> -> vector<32x64xf32>
    %14 = arith.addf %10, %13 : vector<32x64xf32>
    %c0_18 = arith.constant 0 : index
    %c0_19 = arith.constant 0 : index
    %15 = vector.load %arg9[%c0_18, %c0_19] : memref<1x64xf32, #tpu.memory_space<vmem>>, vector<1x64xf32>
    %16 = vector.broadcast %15 : vector<1x64xf32> to vector<32x64xf32>
    %17 = arith.addf %14, %16 : vector<32x64xf32>
    %cst_20 = arith.constant 0.000000e+00 : f32
    %18 = vector.broadcast %cst_20 : f32 to vector<32x64xf32>
    %19 = arith.subf %18, %17 : vector<32x64xf32>
    %20 = math.exp %19 : vector<32x64xf32>
    %cst_21 = arith.constant 1.000000e+00 : f32
    %21 = vector.broadcast %cst_21 : f32 to vector<32x64xf32>
    %22 = arith.addf %21, %20 : vector<32x64xf32>
    %23 = tpu.reciprocal %22 {approx = true} : vector<32x64xf32> -> vector<32x64xf32>
    %24 = arith.mulf %17, %23 : vector<32x64xf32>
    %25 = arith.truncf %24 : vector<32x64xf32> to vector<32x64xbf16>
    %c0_22 = arith.constant 0 : index
    %c0_23 = arith.constant 0 : index
    %26 = vector.load %arg10[%c0_22, %c0_23] : memref<32x64xbf16, #tpu.memory_space<vmem>>, vector<32x64xbf16>
    tpu.vector_store %arg10[%c0_22, %c0_23], %25 {strides = array<i32>} : memref<32x64xbf16, #tpu.memory_space<vmem>>, vector<32x64xbf16>,
    return
  }
  func.func @transform_0(%arg0: i32) -> (i32, i32) {
    %c0_i32 = arith.constant 0 : i32
    %c0_i32_0 = arith.constant 0 : i32
    return %arg0, %c0_i32 : i32, i32
  }
  func.func @transform_1(%arg0: i32) -> (i32, i32) {
    %c0_i32 = arith.constant 0 : i32
    %c0_i32_0 = arith.constant 0 : i32
    return %arg0, %c0_i32 : i32, i32
  }
  func.func @transform_2(%arg0: i32) -> (i32, i32) {
    %c0_i32 = arith.constant 0 : i32
    %c0_i32_0 = arith.constant 0 : i32
    return %arg0, %c0_i32 : i32, i32
  }
  func.func @transform_3(%arg0: i32) -> (i32, i32) {
    %c0_i32 = arith.constant 0 : i32
    %c0_i32_0 = arith.constant 0 : i32
    return %arg0, %c0_i32 : i32, i32
  }
  func.func @transform_4(%arg0: i32) -> (i32, i32) {
    %c0_i32 = arith.constant 0 : i32
    %c0_i32_0 = arith.constant 0 : i32
    %c0_i32_1 = arith.constant 0 : i32
    return %c0_i32, %c0_i32_0 : i32, i32
  }
  func.func @transform_5(%arg0: i32) -> (i32, i32) {
    %c0_i32 = arith.constant 0 : i32
    %c0_i32_0 = arith.constant 0 : i32
    %c0_i32_1 = arith.constant 0 : i32
    return %c0_i32, %c0_i32_0 : i32, i32
  }
  func.func @transform_6(%arg0: i32) -> (i32, i32) {
    %c0_i32 = arith.constant 0 : i32
    %c0_i32_0 = arith.constant 0 : i32
    %c0_i32_1 = arith.constant 0 : i32
    return %c0_i32, %c0_i32_0 : i32, i32
  }
  func.func @transform_7(%arg0: i32) -> (i32, i32) {
    %c0_i32 = arith.constant 0 : i32
    %c0_i32_0 = arith.constant 0 : i32
    %c0_i32_1 = arith.constant 0 : i32
    return %c0_i32, %c0_i32_0 : i32, i32
  }
  func.func @transform_8(%arg0: i32) -> (i32, i32) {
    %c0_i32 = arith.constant 0 : i32
    %c0_i32_0 = arith.constant 0 : i32
    %c0_i32_1 = arith.constant 0 : i32
    return %c0_i32, %c0_i32_0 : i32, i32
  }
  func.func @transform_9(%arg0: i32) -> (i32, i32) {
    %c0_i32 = arith.constant 0 : i32
    %c0_i32_0 = arith.constant 0 : i32
    return %arg0, %c0_i32 : i32, i32
  }
}

module attributes {stable_mosaic.version = 11 : i64} {
  func.func @_pointwise_kernel(%arg0: i32, %arg1: memref<32x64xbf16, #tpu.memory_space<vmem>>, %arg2: memref<32x64xbf16, #tpu.memory_space<vmem>>, %arg3: memref<64x64xbf16, #tpu.memory_space<vmem>>, %arg4: memref<64x64xbf16, #tpu.memory_space<vmem>>, %arg5: memref<1x64xf32, #tpu.memory_space<vmem>>, %arg6: memref<32x64xbf16, #tpu.memory_space<vmem>>) attributes {dimension_semantics = [#tpu.dimension_semantics<parallel>], iteration_bounds = array<i64: 1>, scalar_prefetch = 0 : i64, scratch_operands = 0 : i64, tpu.core_type = #tpu.core_type<tc>, window_params = [{transform_indices = @transform_0, window_bounds = array<i64: 32, 64>}, {transform_indices = @transform_1, window_bounds = array<i64: 32, 64>}, {pipeline_mode = #tpu.pipeline_mode<synchronous>, transform_indices = @transform_2, window_bounds = array<i64: 64, 64>}, {pipeline_mode = #tpu.pipeline_mode<synchronous>, transform_indices = @transform_3, window_bounds = array<i64: 64, 64>}, {pipeline_mode = #tpu.pipeline_mode<synchronous>, transform_indices = @transform_4, window_bounds = array<i64: 1, 64>}, {transform_indices = @transform_5, window_bounds = array<i64: 32, 64>}]} {
    %c0 = arith.constant 0 : index
    %c0_0 = arith.constant 0 : index
    %0 = vector.load %arg1[%c0, %c0_0] : memref<32x64xbf16, #tpu.memory_space<vmem>>, vector<32x64xbf16>
    %c0_1 = arith.constant 0 : index
    %c0_2 = arith.constant 0 : index
    %1 = vector.load %arg3[%c0_1, %c0_2] : memref<64x64xbf16, #tpu.memory_space<vmem>>, vector<64x64xbf16>
    %cst = arith.constant dense<0.000000e+00> : vector<32x64xf32>
    %2 = tpu.matmul %0, %1, %cst {dimension_numbers = #tpu.dot_dimension_numbers<[1], [0], [0], [1], [0, 0, 1, 1], [], []>} : vector<32x64xbf16>, vector<64x64xbf16>, vector<32x64xf32> -> vector<32x64xf32>
    %c0_3 = arith.constant 0 : index
    %c0_4 = arith.constant 0 : index
    %3 = vector.load %arg2[%c0_3, %c0_4] : memref<32x64xbf16, #tpu.memory_space<vmem>>, vector<32x64xbf16>
    %c0_5 = arith.constant 0 : index
    %c0_6 = arith.constant 0 : index
    %4 = vector.load %arg4[%c0_5, %c0_6] : memref<64x64xbf16, #tpu.memory_space<vmem>>, vector<64x64xbf16>
    %cst_7 = arith.constant dense<0.000000e+00> : vector<32x64xf32>
    %5 = tpu.matmul %3, %4, %cst_7 {dimension_numbers = #tpu.dot_dimension_numbers<[1], [0], [0], [1], [0, 0, 1, 1], [], []>} : vector<32x64xbf16>, vector<64x64xbf16>, vector<32x64xf32> -> vector<32x64xf32>
    %6 = arith.addf %2, %5 : vector<32x64xf32>
    %c0_8 = arith.constant 0 : index
    %c0_9 = arith.constant 0 : index
    %7 = vector.load %arg5[%c0_8, %c0_9] : memref<1x64xf32, #tpu.memory_space<vmem>>, vector<1x64xf32>
    %8 = vector.broadcast %7 : vector<1x64xf32> to vector<32x64xf32>
    %9 = arith.addf %6, %8 : vector<32x64xf32>
    %cst_10 = arith.constant 0.000000e+00 : f32
    %10 = vector.broadcast %cst_10 : f32 to vector<32x64xf32>
    %11 = arith.subf %10, %9 : vector<32x64xf32>
    %12 = math.exp %11 : vector<32x64xf32>
    %cst_11 = arith.constant 1.000000e+00 : f32
    %13 = vector.broadcast %cst_11 : f32 to vector<32x64xf32>
    %14 = arith.addf %13, %12 : vector<32x64xf32>
    %15 = tpu.reciprocal %14 {approx = true} : vector<32x64xf32> -> vector<32x64xf32>
    %16 = arith.mulf %9, %15 : vector<32x64xf32>
    %17 = arith.truncf %16 : vector<32x64xf32> to vector<32x64xbf16>
    %c0_12 = arith.constant 0 : index
    %c0_13 = arith.constant 0 : index
    %18 = vector.load %arg6[%c0_12, %c0_13] : memref<32x64xbf16, #tpu.memory_space<vmem>>, vector<32x64xbf16>
    tpu.vector_store %arg6[%c0_12, %c0_13], %17 {strides = array<i32>} : memref<32x64xbf16, #tpu.memory_space<vmem>>, vector<32x64xbf16>,
    return
  }
  func.func @transform_0(%arg0: i32) -> (i32, i32) {
    %c0_i32 = arith.constant 0 : i32
    %c0_i32_0 = arith.constant 0 : i32
    return %arg0, %c0_i32 : i32, i32
  }
  func.func @transform_1(%arg0: i32) -> (i32, i32) {
    %c0_i32 = arith.constant 0 : i32
    %c0_i32_0 = arith.constant 0 : i32
    return %arg0, %c0_i32 : i32, i32
  }
  func.func @transform_2(%arg0: i32) -> (i32, i32) {
    %c0_i32 = arith.constant 0 : i32
    %c0_i32_0 = arith.constant 0 : i32
    %c0_i32_1 = arith.constant 0 : i32
    return %c0_i32, %c0_i32_0 : i32, i32
  }
  func.func @transform_3(%arg0: i32) -> (i32, i32) {
    %c0_i32 = arith.constant 0 : i32
    %c0_i32_0 = arith.constant 0 : i32
    %c0_i32_1 = arith.constant 0 : i32
    return %c0_i32, %c0_i32_0 : i32, i32
  }
  func.func @transform_4(%arg0: i32) -> (i32, i32) {
    %c0_i32 = arith.constant 0 : i32
    %c0_i32_0 = arith.constant 0 : i32
    %c0_i32_1 = arith.constant 0 : i32
    return %c0_i32, %c0_i32_0 : i32, i32
  }
  func.func @transform_5(%arg0: i32) -> (i32, i32) {
    %c0_i32 = arith.constant 0 : i32
    %c0_i32_0 = arith.constant 0 : i32
    return %arg0, %c0_i32 : i32, i32
  }
}

module attributes {stable_mosaic.version = 11 : i64} {
  func.func @_conv_taps_kernel(%arg0: i32, %arg1: memref<72x32xbf16, #tpu.memory_space<vmem>>, %arg2: memref<72x32xbf16, #tpu.memory_space<vmem>>, %arg3: memref<9x32x32xbf16, #tpu.memory_space<vmem>>, %arg4: memref<1x32xf32, #tpu.memory_space<vmem>>, %arg5: memref<72x32xbf16, #tpu.memory_space<vmem>>) attributes {dimension_semantics = [#tpu.dimension_semantics<parallel>], iteration_bounds = array<i64: 1>, scalar_prefetch = 0 : i64, scratch_operands = 0 : i64, tpu.core_type = #tpu.core_type<tc>, window_params = [{transform_indices = @transform_0, window_bounds = array<i64: 72, 32>}, {transform_indices = @transform_1, window_bounds = array<i64: 72, 32>}, {pipeline_mode = #tpu.pipeline_mode<synchronous>, transform_indices = @transform_2, window_bounds = array<i64: 9, 32, 32>}, {pipeline_mode = #tpu.pipeline_mode<synchronous>, transform_indices = @transform_3, window_bounds = array<i64: 1, 32>}, {transform_indices = @transform_4, window_bounds = array<i64: 72, 32>}]} {
    %c0 = arith.constant 0 : index
    %c0_0 = arith.constant 0 : index
    %0 = vector.load %arg1[%c0, %c0_0] : memref<72x32xbf16, #tpu.memory_space<vmem>>, vector<72x32xbf16>
    %1 = arith.extf %0 : vector<72x32xbf16> to vector<72x32xf32>
    %c0_1 = arith.constant 0 : index
    %c0_2 = arith.constant 0 : index
    %2 = vector.load %arg2[%c0_1, %c0_2] : memref<72x32xbf16, #tpu.memory_space<vmem>>, vector<72x32xbf16>
    %3 = arith.extf %2 : vector<72x32xbf16> to vector<72x32xf32>
    %4 = tpu.concatenate %1, %3 in 0 : vector<72x32xf32>, vector<72x32xf32> -> vector<144x32xf32>
    %c0_3 = arith.constant 0 : index
    %c0_4 = arith.constant 0 : index
    %c0_5 = arith.constant 0 : index
    %5 = vector.load %arg3[%c0_3, %c0_4, %c0_5] : memref<9x32x32xbf16, #tpu.memory_space<vmem>>, vector<9x32x32xbf16>
    %6 = vector.extract_strided_slice %4 {offsets = [0, 0], sizes = [72, 32], strides = [1, 1]} : vector<144x32xf32> to vector<72x32xf32>
    %7 = arith.truncf %6 : vector<72x32xf32> to vector<72x32xbf16>
    %8 = vector.extract_strided_slice %5 {offsets = [0, 0, 0], sizes = [1, 32, 32], strides = [1, 1, 1]} : vector<9x32x32xbf16> to vector<1x32x32xbf16>
    %9 = vector.shape_cast %8 : vector<1x32x32xbf16> to vector<32x32xbf16>
    %cst = arith.constant dense<0.000000e+00> : vector<72x32xf32>
    %10 = tpu.matmul %7, %9, %cst {dimension_numbers = #tpu.dot_dimension_numbers<[1], [0], [0], [1], [0, 0, 1, 1], [], []>} : vector<72x32xbf16>, vector<32x32xbf16>, vector<72x32xf32> -> vector<72x32xf32>
    %11 = vector.extract_strided_slice %4 {offsets = [1, 0], sizes = [72, 32], strides = [1, 1]} : vector<144x32xf32> to vector<72x32xf32>
    %12 = arith.truncf %11 : vector<72x32xf32> to vector<72x32xbf16>
    %13 = vector.extract_strided_slice %5 {offsets = [1, 0, 0], sizes = [1, 32, 32], strides = [1, 1, 1]} : vector<9x32x32xbf16> to vector<1x32x32xbf16>
    %14 = vector.shape_cast %13 : vector<1x32x32xbf16> to vector<32x32xbf16>
    %cst_6 = arith.constant dense<0.000000e+00> : vector<72x32xf32>
    %15 = tpu.matmul %12, %14, %cst_6 {dimension_numbers = #tpu.dot_dimension_numbers<[1], [0], [0], [1], [0, 0, 1, 1], [], []>} : vector<72x32xbf16>, vector<32x32xbf16>, vector<72x32xf32> -> vector<72x32xf32>
    %16 = arith.addf %10, %15 : vector<72x32xf32>
    %17 = vector.extract_strided_slice %4 {offsets = [2, 0], sizes = [72, 32], strides = [1, 1]} : vector<144x32xf32> to vector<72x32xf32>
    %18 = arith.truncf %17 : vector<72x32xf32> to vector<72x32xbf16>
    %19 = vector.extract_strided_slice %5 {offsets = [2, 0, 0], sizes = [1, 32, 32], strides = [1, 1, 1]} : vector<9x32x32xbf16> to vector<1x32x32xbf16>
    %20 = vector.shape_cast %19 : vector<1x32x32xbf16> to vector<32x32xbf16>
    %cst_7 = arith.constant dense<0.000000e+00> : vector<72x32xf32>
    %21 = tpu.matmul %18, %20, %cst_7 {dimension_numbers = #tpu.dot_dimension_numbers<[1], [0], [0], [1], [0, 0, 1, 1], [], []>} : vector<72x32xbf16>, vector<32x32xbf16>, vector<72x32xf32> -> vector<72x32xf32>
    %22 = arith.addf %16, %21 : vector<72x32xf32>
    %23 = vector.extract_strided_slice %4 {offsets = [6, 0], sizes = [72, 32], strides = [1, 1]} : vector<144x32xf32> to vector<72x32xf32>
    %24 = arith.truncf %23 : vector<72x32xf32> to vector<72x32xbf16>
    %25 = vector.extract_strided_slice %5 {offsets = [3, 0, 0], sizes = [1, 32, 32], strides = [1, 1, 1]} : vector<9x32x32xbf16> to vector<1x32x32xbf16>
    %26 = vector.shape_cast %25 : vector<1x32x32xbf16> to vector<32x32xbf16>
    %cst_8 = arith.constant dense<0.000000e+00> : vector<72x32xf32>
    %27 = tpu.matmul %24, %26, %cst_8 {dimension_numbers = #tpu.dot_dimension_numbers<[1], [0], [0], [1], [0, 0, 1, 1], [], []>} : vector<72x32xbf16>, vector<32x32xbf16>, vector<72x32xf32> -> vector<72x32xf32>
    %28 = arith.addf %22, %27 : vector<72x32xf32>
    %29 = vector.extract_strided_slice %4 {offsets = [7, 0], sizes = [72, 32], strides = [1, 1]} : vector<144x32xf32> to vector<72x32xf32>
    %30 = arith.truncf %29 : vector<72x32xf32> to vector<72x32xbf16>
    %31 = vector.extract_strided_slice %5 {offsets = [4, 0, 0], sizes = [1, 32, 32], strides = [1, 1, 1]} : vector<9x32x32xbf16> to vector<1x32x32xbf16>
    %32 = vector.shape_cast %31 : vector<1x32x32xbf16> to vector<32x32xbf16>
    %cst_9 = arith.constant dense<0.000000e+00> : vector<72x32xf32>
    %33 = tpu.matmul %30, %32, %cst_9 {dimension_numbers = #tpu.dot_dimension_numbers<[1], [0], [0], [1], [0, 0, 1, 1], [], []>} : vector<72x32xbf16>, vector<32x32xbf16>, vector<72x32xf32> -> vector<72x32xf32>
    %34 = arith.addf %28, %33 : vector<72x32xf32>
    %35 = vector.extract_strided_slice %4 {offsets = [8, 0], sizes = [72, 32], strides = [1, 1]} : vector<144x32xf32> to vector<72x32xf32>
    %36 = arith.truncf %35 : vector<72x32xf32> to vector<72x32xbf16>
    %37 = vector.extract_strided_slice %5 {offsets = [5, 0, 0], sizes = [1, 32, 32], strides = [1, 1, 1]} : vector<9x32x32xbf16> to vector<1x32x32xbf16>
    %38 = vector.shape_cast %37 : vector<1x32x32xbf16> to vector<32x32xbf16>
    %cst_10 = arith.constant dense<0.000000e+00> : vector<72x32xf32>
    %39 = tpu.matmul %36, %38, %cst_10 {dimension_numbers = #tpu.dot_dimension_numbers<[1], [0], [0], [1], [0, 0, 1, 1], [], []>} : vector<72x32xbf16>, vector<32x32xbf16>, vector<72x32xf32> -> vector<72x32xf32>
    %40 = arith.addf %34, %39 : vector<72x32xf32>
    %41 = vector.extract_strided_slice %4 {offsets = [12, 0], sizes = [72, 32], strides = [1, 1]} : vector<144x32xf32> to vector<72x32xf32>
    %42 = arith.truncf %41 : vector<72x32xf32> to vector<72x32xbf16>
    %43 = vector.extract_strided_slice %5 {offsets = [6, 0, 0], sizes = [1, 32, 32], strides = [1, 1, 1]} : vector<9x32x32xbf16> to vector<1x32x32xbf16>
    %44 = vector.shape_cast %43 : vector<1x32x32xbf16> to vector<32x32xbf16>
    %cst_11 = arith.constant dense<0.000000e+00> : vector<72x32xf32>
    %45 = tpu.matmul %42, %44, %cst_11 {dimension_numbers = #tpu.dot_dimension_numbers<[1], [0], [0], [1], [0, 0, 1, 1], [], []>} : vector<72x32xbf16>, vector<32x32xbf16>, vector<72x32xf32> -> vector<72x32xf32>
    %46 = arith.addf %40, %45 : vector<72x32xf32>
    %47 = vector.extract_strided_slice %4 {offsets = [13, 0], sizes = [72, 32], strides = [1, 1]} : vector<144x32xf32> to vector<72x32xf32>
    %48 = arith.truncf %47 : vector<72x32xf32> to vector<72x32xbf16>
    %49 = vector.extract_strided_slice %5 {offsets = [7, 0, 0], sizes = [1, 32, 32], strides = [1, 1, 1]} : vector<9x32x32xbf16> to vector<1x32x32xbf16>
    %50 = vector.shape_cast %49 : vector<1x32x32xbf16> to vector<32x32xbf16>
    %cst_12 = arith.constant dense<0.000000e+00> : vector<72x32xf32>
    %51 = tpu.matmul %48, %50, %cst_12 {dimension_numbers = #tpu.dot_dimension_numbers<[1], [0], [0], [1], [0, 0, 1, 1], [], []>} : vector<72x32xbf16>, vector<32x32xbf16>, vector<72x32xf32> -> vector<72x32xf32>
    %52 = arith.addf %46, %51 : vector<72x32xf32>
    %53 = vector.extract_strided_slice %4 {offsets = [14, 0], sizes = [72, 32], strides = [1, 1]} : vector<144x32xf32> to vector<72x32xf32>
    %54 = arith.truncf %53 : vector<72x32xf32> to vector<72x32xbf16>
    %55 = vector.extract_strided_slice %5 {offsets = [8, 0, 0], sizes = [1, 32, 32], strides = [1, 1, 1]} : vector<9x32x32xbf16> to vector<1x32x32xbf16>
    %56 = vector.shape_cast %55 : vector<1x32x32xbf16> to vector<32x32xbf16>
    %cst_13 = arith.constant dense<0.000000e+00> : vector<72x32xf32>
    %57 = tpu.matmul %54, %56, %cst_13 {dimension_numbers = #tpu.dot_dimension_numbers<[1], [0], [0], [1], [0, 0, 1, 1], [], []>} : vector<72x32xbf16>, vector<32x32xbf16>, vector<72x32xf32> -> vector<72x32xf32>
    %58 = arith.addf %52, %57 : vector<72x32xf32>
    %c0_14 = arith.constant 0 : index
    %c0_15 = arith.constant 0 : index
    %59 = vector.load %arg4[%c0_14, %c0_15] : memref<1x32xf32, #tpu.memory_space<vmem>>, vector<1x32xf32>
    %60 = vector.broadcast %59 : vector<1x32xf32> to vector<72x32xf32>
    %61 = arith.addf %58, %60 : vector<72x32xf32>
    %cst_16 = arith.constant 0.000000e+00 : f32
    %62 = vector.broadcast %cst_16 : f32 to vector<72x32xf32>
    %63 = arith.subf %62, %61 : vector<72x32xf32>
    %64 = math.exp %63 : vector<72x32xf32>
    %cst_17 = arith.constant 1.000000e+00 : f32
    %65 = vector.broadcast %cst_17 : f32 to vector<72x32xf32>
    %66 = arith.addf %65, %64 : vector<72x32xf32>
    %67 = tpu.reciprocal %66 {approx = true} : vector<72x32xf32> -> vector<72x32xf32>
    %68 = arith.mulf %61, %67 : vector<72x32xf32>
    %69 = arith.truncf %68 : vector<72x32xf32> to vector<72x32xbf16>
    %c0_18 = arith.constant 0 : index
    %c0_19 = arith.constant 0 : index
    %70 = vector.load %arg5[%c0_18, %c0_19] : memref<72x32xbf16, #tpu.memory_space<vmem>>, vector<72x32xbf16>
    tpu.vector_store %arg5[%c0_18, %c0_19], %69 {strides = array<i32>} : memref<72x32xbf16, #tpu.memory_space<vmem>>, vector<72x32xbf16>,
    return
  }
  func.func @transform_0(%arg0: i32) -> (i32, i32) {
    %c0_i32 = arith.constant 0 : i32
    %c0_i32_0 = arith.constant 0 : i32
    return %arg0, %c0_i32 : i32, i32
  }
  func.func @transform_1(%arg0: i32) -> (i32, i32) {
    %c1_i32 = arith.constant 1 : i32
    %0 = arith.addi %arg0, %c1_i32 : i32
    %c0_i32 = arith.constant 0 : i32
    %c0_i32_0 = arith.constant 0 : i32
    return %0, %c0_i32 : i32, i32
  }
  func.func @transform_2(%arg0: i32) -> (i32, i32, i32) {
    %c0_i32 = arith.constant 0 : i32
    %c0_i32_0 = arith.constant 0 : i32
    %c0_i32_1 = arith.constant 0 : i32
    %c0_i32_2 = arith.constant 0 : i32
    return %c0_i32, %c0_i32_0, %c0_i32_1 : i32, i32, i32
  }
  func.func @transform_3(%arg0: i32) -> (i32, i32) {
    %c0_i32 = arith.constant 0 : i32
    %c0_i32_0 = arith.constant 0 : i32
    %c0_i32_1 = arith.constant 0 : i32
    return %c0_i32, %c0_i32_0 : i32, i32
  }
  func.func @transform_4(%arg0: i32) -> (i32, i32) {
    %c0_i32 = arith.constant 0 : i32
    %c0_i32_0 = arith.constant 0 : i32
    return %arg0, %c0_i32 : i32, i32
  }
}

module attributes {stable_mosaic.version = 11 : i64} {
  func.func @_pointwise_kernel(%arg0: i32, %arg1: memref<32x64xbf16, #tpu.memory_space<vmem>>, %arg2: memref<32x32xbf16, #tpu.memory_space<vmem>>, %arg3: memref<64x64xbf16, #tpu.memory_space<vmem>>, %arg4: memref<32x64xbf16, #tpu.memory_space<vmem>>, %arg5: memref<1x64xf32, #tpu.memory_space<vmem>>, %arg6: memref<32x64xbf16, #tpu.memory_space<vmem>>) attributes {dimension_semantics = [#tpu.dimension_semantics<parallel>], iteration_bounds = array<i64: 1>, scalar_prefetch = 0 : i64, scratch_operands = 0 : i64, tpu.core_type = #tpu.core_type<tc>, window_params = [{transform_indices = @transform_0, window_bounds = array<i64: 32, 64>}, {transform_indices = @transform_1, window_bounds = array<i64: 32, 32>}, {pipeline_mode = #tpu.pipeline_mode<synchronous>, transform_indices = @transform_2, window_bounds = array<i64: 64, 64>}, {pipeline_mode = #tpu.pipeline_mode<synchronous>, transform_indices = @transform_3, window_bounds = array<i64: 32, 64>}, {pipeline_mode = #tpu.pipeline_mode<synchronous>, transform_indices = @transform_4, window_bounds = array<i64: 1, 64>}, {transform_indices = @transform_5, window_bounds = array<i64: 32, 64>}]} {
    %c0 = arith.constant 0 : index
    %c0_0 = arith.constant 0 : index
    %0 = vector.load %arg1[%c0, %c0_0] : memref<32x64xbf16, #tpu.memory_space<vmem>>, vector<32x64xbf16>
    %c0_1 = arith.constant 0 : index
    %c0_2 = arith.constant 0 : index
    %1 = vector.load %arg3[%c0_1, %c0_2] : memref<64x64xbf16, #tpu.memory_space<vmem>>, vector<64x64xbf16>
    %cst = arith.constant dense<0.000000e+00> : vector<32x64xf32>
    %2 = tpu.matmul %0, %1, %cst {dimension_numbers = #tpu.dot_dimension_numbers<[1], [0], [0], [1], [0, 0, 1, 1], [], []>} : vector<32x64xbf16>, vector<64x64xbf16>, vector<32x64xf32> -> vector<32x64xf32>
    %c0_3 = arith.constant 0 : index
    %c0_4 = arith.constant 0 : index
    %3 = vector.load %arg2[%c0_3, %c0_4] : memref<32x32xbf16, #tpu.memory_space<vmem>>, vector<32x32xbf16>
    %c0_5 = arith.constant 0 : index
    %c0_6 = arith.constant 0 : index
    %4 = vector.load %arg4[%c0_5, %c0_6] : memref<32x64xbf16, #tpu.memory_space<vmem>>, vector<32x64xbf16>
    %cst_7 = arith.constant dense<0.000000e+00> : vector<32x64xf32>
    %5 = tpu.matmul %3, %4, %cst_7 {dimension_numbers = #tpu.dot_dimension_numbers<[1], [0], [0], [1], [0, 0, 1, 1], [], []>} : vector<32x32xbf16>, vector<32x64xbf16>, vector<32x64xf32> -> vector<32x64xf32>
    %6 = arith.addf %2, %5 : vector<32x64xf32>
    %c0_8 = arith.constant 0 : index
    %c0_9 = arith.constant 0 : index
    %7 = vector.load %arg5[%c0_8, %c0_9] : memref<1x64xf32, #tpu.memory_space<vmem>>, vector<1x64xf32>
    %8 = vector.broadcast %7 : vector<1x64xf32> to vector<32x64xf32>
    %9 = arith.addf %6, %8 : vector<32x64xf32>
    %cst_10 = arith.constant 0.000000e+00 : f32
    %10 = vector.broadcast %cst_10 : f32 to vector<32x64xf32>
    %11 = arith.subf %10, %9 : vector<32x64xf32>
    %12 = math.exp %11 : vector<32x64xf32>
    %cst_11 = arith.constant 1.000000e+00 : f32
    %13 = vector.broadcast %cst_11 : f32 to vector<32x64xf32>
    %14 = arith.addf %13, %12 : vector<32x64xf32>
    %15 = tpu.reciprocal %14 {approx = true} : vector<32x64xf32> -> vector<32x64xf32>
    %16 = arith.mulf %9, %15 : vector<32x64xf32>
    %17 = arith.truncf %16 : vector<32x64xf32> to vector<32x64xbf16>
    %c0_12 = arith.constant 0 : index
    %c0_13 = arith.constant 0 : index
    %18 = vector.load %arg6[%c0_12, %c0_13] : memref<32x64xbf16, #tpu.memory_space<vmem>>, vector<32x64xbf16>
    tpu.vector_store %arg6[%c0_12, %c0_13], %17 {strides = array<i32>} : memref<32x64xbf16, #tpu.memory_space<vmem>>, vector<32x64xbf16>,
    return
  }
  func.func @transform_0(%arg0: i32) -> (i32, i32) {
    %c0_i32 = arith.constant 0 : i32
    %c0_i32_0 = arith.constant 0 : i32
    return %arg0, %c0_i32 : i32, i32
  }
  func.func @transform_1(%arg0: i32) -> (i32, i32) {
    %c0_i32 = arith.constant 0 : i32
    %c0_i32_0 = arith.constant 0 : i32
    return %arg0, %c0_i32 : i32, i32
  }
  func.func @transform_2(%arg0: i32) -> (i32, i32) {
    %c0_i32 = arith.constant 0 : i32
    %c0_i32_0 = arith.constant 0 : i32
    %c0_i32_1 = arith.constant 0 : i32
    return %c0_i32, %c0_i32_0 : i32, i32
  }
  func.func @transform_3(%arg0: i32) -> (i32, i32) {
    %c0_i32 = arith.constant 0 : i32
    %c0_i32_0 = arith.constant 0 : i32
    %c0_i32_1 = arith.constant 0 : i32
    return %c0_i32, %c0_i32_0 : i32, i32
  }
  func.func @transform_4(%arg0: i32) -> (i32, i32) {
    %c0_i32 = arith.constant 0 : i32
    %c0_i32_0 = arith.constant 0 : i32
    %c0_i32_1 = arith.constant 0 : i32
    return %c0_i32, %c0_i32_0 : i32, i32
  }
  func.func @transform_5(%arg0: i32) -> (i32, i32) {
    %c0_i32 = arith.constant 0 : i32
    %c0_i32_0 = arith.constant 0 : i32
    return %arg0, %c0_i32 : i32, i32
  }
}

</mosaic_0001>

<bundles_post_ra>
// kernel: _lambda_.16
= control target key start
LH: loop header
LB: loop body
LE: loop exit
PB: predicated region body
PF: predicated region fallthrough
CT: control target
= control target key end

     0   :  { %s1287_s12 = smov 0   ;;  %s1609_s0 = inlined_call_operand.vmem [shape: bf16[512,27], index: 0, kind: input, shape index: {}]   ;;  %s1610_s1 = inlined_call_operand.vmem [shape: bf16[27,16], index: 1, kind: input, shape index: {}]   ;;  %s1611_s2 = inlined_call_operand.vmem [shape: f32[1,16], index: 2, kind: input, shape index: {}]   ;;  %s1612_s3 = inlined_call_operand.vmem [shape: bf16[512,16], index: 3, kind: output, shape index: {}]  }
   0x1 LB: > { %s935_s13 = sadd.s32 4294967295, %s1264_s12   ;;  %p939_p0 = scmp.ge.s32.totalorder %s1264_s12, 1  ;;  %s1264_s12 = sphi %s1287_s12, %s13_s12  }
   0x2   : > { %p138_p1 = scmp.lt.s32.totalorder %s1264_s12, 3 }
   0x4   : > { %p139_p2 = pnand %p939_p0, %p138_p1 }
   0x5   : > { %v1112_v0 = vld [vmem:[%s1610_s1] sm:$0xff] (!%p139_p2)   ;;  %vm358_vm0 = vcmask (!%p139_p2), 1044480   ;;  %v1113_v1 = vld [vmem:[%s1610_s1 + $0x8] sm:$0x3f] (!%p139_p2)   ;;  %vm359_vm1 = vcmask (!%p139_p2), 1045504   ;;  %s940_s18 = sshll.u32 (!%p139_p2), %s935_s13, 5 }
   0x6   : > { %142 = sbr.rel (%p139_p2) target bundleno = 324 (0x144), region = 32  ;;  %1063 = vmatprep.subr.bf16.mxu0 (!%p139_p2), %v1112_v0  ;;  %1099 = vmatprep.subr.bf16.mxu1 (!%p139_p2), %v1112_v0  ;;  %v1266_v2 = vmov (!%p139_p2), 65535   ;;  %p163_p3 = scmp.lt.s32.totalorder (!%p139_p2), %s940_s18, 63  ;;  %vm309_vm2 = vcmask (!%p139_p2), 220160   ;;  %v1346_v22 = vld [vmem:[%s1611_s2] ss:$0 sm:$0xff] (!%p139_p2) }
   0x7   : > { %1064 = vmatpush3.bf16.msra.mxu0 (!%p139_p2), %v1112_v0  ;;  %1101 = vmatpush3.bf16.msra.mxu1 (!%p139_p2), %v1112_v0  ;;  %v360_v3 = vsel (!%p139_p2), %vm358_vm0, 4294967295, %v1266_v2  ;;  %vm846_vm3 = vcmask (!%p139_p2), 125952  }
   0x8   : > { %v361_v4 = vsel (!%p139_p2), %vm359_vm1, %v360_v3, 0 }
   0x9   : > { %v363_v5 = vand.u32 (!%p139_p2), %v1113_v1, %v361_v4 }
   0xb   : > { %1065 = vmatprep.subr.bf16.mxu0 (!%p139_p2), %v363_v5  ;;  %1100 = vmatprep.subr.bf16.mxu1 (!%p139_p2), %v363_v5 }
   0xc   : > { %1066 = vmatpush3.bf16.msra.mxu0 (!%p139_p2), %v363_v5  ;;  %1102 = vmatpush3.bf16.msra.mxu1 (!%p139_p2), %v363_v5 }
   0xd   : > { %s1614_s18 = smov (!%p163_p3, %s940_s18), 63 }
   0xe   : > { %s941_s19 = sshll.u32 %s1614_s18, 2 }
   0xf   : > { %s1309_s22 = scalar_lea.vmem %s1609_s0, %s941_s19  ;;  %s1468_s27 = scalar_lea.vmem %s1612_s3, %s941_s19 }
  0x10   : > { %v1114_v6 = vld [vmem:[%s1309_s22] sm:$0xff]   ;;  %v1116_v8 = vld [vmem:[%s1309_s22 + $0x8] sm:$0xff]   ;;  %v1118_v10 = vld [vmem:[%s1309_s22 + $0x10] sm:$0xff]  }
  0x11   : > { %v1115_v7 = vld [vmem:[%s1309_s22 + $0x40] sm:$0xff]   ;;  %1067 = vmatprep.mubr.msk.bf16.mxu0 %vm309_vm2, %v1114_v6  ;;  %v1117_v9 = vld [vmem:[%s1309_s22 + $0x48] sm:$0xff]   ;;  %v1119_v11 = vld [vmem:[%s1309_s22 + $0x50] sm:$0xff]  }
  0x12   : > { %1083 = vmatprep.mubr.msk.bf16.mxu1 %vm309_vm2, %v1115_v7  ;;  %1068 = vmatmul.mubr.msk.bf16.vlgmr.msra.gmra.mrb[0].mxu0 %vm309_vm2, %v1116_v8  ;;  %v1120_v12 = vld [vmem:[%s1309_s22 + $0x18] sm:$0xff]   ;;  %v1122_v14 = vld [vmem:[%s1309_s22 + $0x20] sm:$0xff]   ;;  %v1124_v16 = vld [vmem:[%s1309_s22 + $0x28] sm:$0xff]  }
  0x13   : > { %1084 = vmatmul.mubr.msk.bf16.vlgmr.msra.gmra.mrb[0].mxu1 %vm309_vm2, %v1117_v9  ;;  %1071 = vmatprep.mubr.msk.bf16.mxu0 %vm309_vm2, %v1118_v10  ;;  %v1121_v13 = vld [vmem:[%s1309_s22 + $0x58] sm:$0xff]   ;;  %v1123_v15 = vld [vmem:[%s1309_s22 + $0x60] sm:$0xff]   ;;  %v1125_v17 = vld [vmem:[%s1309_s22 + $0x68] sm:$0xff]  }
  0x14   : > { %1087 = vmatprep.mubr.msk.bf16.mxu1 %vm309_vm2, %v1119_v11  ;;  %v1126_v18 = vld [vmem:[%s1309_s22 + $0x30] sm:$0xff]   ;;  %v1128_v20 = vld [vmem:[%s1309_s22 + $0x38] sm:$0xff]  }
  0x15   : > { %v1127_v19 = vld [vmem:[%s1309_s22 + $0x70] sm:$0xff]   ;;  %v1129_v21 = vld [vmem:[%s1309_s22 + $0x78] sm:$0xff]  }
  0x1a   : > { %1072 = vmatmul.mubr.msk.bf16.gmra.mrb[4].mxu0 %vm309_vm2, %v1120_v12 }
  0x1b   : > { %1088 = vmatmul.mubr.msk.bf16.gmra.mrb[4].mxu1 %vm309_vm2, %v1121_v13  ;;  %1075 = vmatprep.mubr.msk.bf16.mxu0 %vm309_vm2, %v1122_v14 }
  0x1c   : > { %1091 = vmatprep.mubr.msk.bf16.mxu1 %vm309_vm2, %v1123_v15 }
  0x22   : > { %1076 = vmatmul.mubr.msk.bf16.gmra.mrb[8].mxu0 %vm309_vm2, %v1124_v16 }
  0x23   : > { %1092 = vmatmul.mubr.msk.bf16.gmra.mrb[8].mxu1 %vm309_vm2, %v1125_v17  ;;  %1079 = vmatprep.mubr.msk.bf16.mxu0 %vm309_vm2, %v1126_v18 }
  0x24   : > { %1095 = vmatprep.mubr.msk.bf16.mxu1 %vm309_vm2, %v1127_v19 }
  0x2a   : > { %1080 = vmatmul.mubr.msk.bf16.gmra.mrb[12].mxu0 %vm309_vm2, %v1128_v20 }
  0x2b   : > { %1096 = vmatmul.mubr.msk.bf16.gmra.mrb[12].mxu1 %vm309_vm2, %v1129_v21 }
  0xe5   : > { %v1069_v23 = vpop.f32.mrb[0].mxu0 }
  0xe6   : > { %v1349_v24 = vadd.f32 %v1069_v23, %v1346_v22  ;;  %v1085_v25 = vpop.f32.mrb[0].mxu1  ;;  %v399_v26 = vpop.f32.mrb[1].mxu0 }
  0xe7   : > { %v1352_v27 = vadd.f32 %v1085_v25, %v1346_v22  ;;  %v1355_v28 = vadd.f32 %v1346_v22, %v399_v26  ;;  %v463_v29 = vpop.f32.mrb[1].mxu1  ;;  %v1070_v30 = vpop.f32.mrb[2].mxu0 }
  0xe8   : > { %v528_v31 = vsub.f32 0.0, %v1349_v24  ;;  %v1359_v32 = vadd.f32 %v1346_v22, %v463_v29  ;;  %v1362_v33 = vadd.f32 %v1070_v30, %v1346_v22  ;;  %v1086_v34 = vpop.f32.mrb[2].mxu1  ;;  %v402_v35 = vpop.f32.mrb[3].mxu0 }
  0xe9   : > { %v544_v36 = vsub.f32 0.0, %v1352_v27  ;;  %v526_v37 = vsub.f32 0.0, %v1355_v28  ;;  %v1367_v38 = vadd.f32 %v1086_v34, %v1346_v22  ;;  %v1370_v39 = vadd.f32 %v1346_v22, %v402_v35  ;;  %v466_v40 = vpop.f32.mrb[3].mxu1 }
  0xea   : > { %v562_v41 = vmul.f32 1.442695, %v528_v31  ;;  %v542_v42 = vsub.f32 0.0, %v1359_v32  ;;  %v529_v43 = vsub.f32 0.0, %v1362_v33  ;;  %v1375_v44 = vadd.f32 %v1346_v22, %v466_v40 }
  0xeb   : > { %v594_v45 = vmul.f32 1.442695, %v544_v36  ;;  %v558_v46 = vmul.f32 1.442695, %v526_v37  ;;  %v545_v47 = vsub.f32 0.0, %v1367_v38  ;;  %v527_v48 = vsub.f32 0.0, %v1370_v39 }
  0xec   : > { %1130 = vpow2.f32 %v562_v41  ;;  %v590_v49 = vmul.f32 1.442695, %v542_v42  ;;  %v564_v50 = vmul.f32 1.442695, %v529_v43  ;;  %v543_v51 = vsub.f32 0.0, %v1375_v44 }
  0xed   : > { %1132 = vpow2.f32 %v594_v45  ;;  %v596_v52 = vmul.f32 1.442695, %v545_v47  ;;  %v1073_v53 = vpop.f32.mrb[4].mxu0  ;;  %v560_v54 = vmul.f32 1.442695, %v527_v48 }
  0xee   : > { %1134 = vpow2.f32 %v558_v46  ;;  %v1381_v55 = vadd.f32 %v1073_v53, %v1346_v22  ;;  %v1089_v56 = vpop.f32.mrb[4].mxu1  ;;  %v415_v57 = vpop.f32.mrb[5].mxu0  ;;  %v592_v58 = vmul.f32 1.442695, %v543_v51 }
  0xef   : > { %1136 = vpow2.f32 %v590_v49  ;;  %v1384_v59 = vadd.f32 %v1089_v56, %v1346_v22  ;;  %v1387_v60 = vadd.f32 %v1346_v22, %v415_v57  ;;  %v479_v61 = vpop.f32.mrb[5].mxu1  ;;  %v1074_v62 = vpop.f32.mrb[6].mxu0 }
  0xf0   : > { %1138 = vpow2.f32 %v564_v50  ;;  %v532_v63 = vsub.f32 0.0, %v1381_v55  ;;  %v1391_v0 = vadd.f32 %v1346_v22, %v479_v61  ;;  %v1394_v1 = vadd.f32 %v1074_v62, %v1346_v22  ;;  %v1090_v2 = vpop.f32.mrb[6].mxu1  ;;  %v418_v3 = vpop.f32.mrb[7].mxu0 }
  0xf1   : > { %1140 = vpow2.f32 %v596_v52  ;;  %v548_v4 = vsub.f32 0.0, %v1384_v59  ;;  %v530_v5 = vsub.f32 0.0, %v1387_v60  ;;  %v1399_v6 = vadd.f32 %v1090_v2, %v1346_v22  ;;  %v482_v7 = vpop.f32.mrb[7].mxu1 }
  0xf2   : > { %1142 = vpow2.f32 %v560_v54  ;;  %v570_v8 = vmul.f32 1.442695, %v532_v63  ;;  %v546_v9 = vsub.f32 0.0, %v1391_v0  ;;  %v533_v10 = vsub.f32 0.0, %v1394_v1 }
  0xf3   : > { %1144 = vpow2.f32 %v592_v58  ;;  %v602_v11 = vmul.f32 1.442695, %v548_v4  ;;  %v566_v12 = vmul.f32 1.442695, %v530_v5  ;;  %v549_v15 = vsub.f32 0.0, %v1399_v6 }
  0xf4   : > { %1146 = vpow2.f32 %v570_v8  ;;  %v598_v13 = vmul.f32 1.442695, %v546_v9  ;;  %v572_v14 = vmul.f32 1.442695, %v533_v10  ;;  %v1405_v23 = vadd.f32 %v1346_v22, %v418_v3 }
  0xf5   : > { %1148 = vpow2.f32 %v602_v11  ;;  %v1077_v16 = vpop.f32.mrb[8].mxu0  ;;  %v1408_v31 = vadd.f32 %v1346_v22, %v482_v7  ;;  %v1412_v40 = vmul.f32 1.442695, %v549_v15 }
  0xf6   : > { %v1131_v17 = vpop.eup %1130  ;;  %1150 = vpow2.f32 %v566_v12  ;;  %v1093_v18 = vpop.f32.mrb[8].mxu1  ;;  %v1415_v41 = vadd.f32 %v1077_v16, %v1346_v22  ;;  %v531_v50 = vsub.f32 0.0, %v1405_v23 }
  0xf7   : > { %v431_v19 = vpop.f32.mrb[9].mxu0  ;;  %v1133_v20 = vpop.eup %1132  ;;  %v624_v21 = vadd.f32 1.0, %v1131_v17  ;;  %1152 = vpow2.f32 %v598_v13  ;;  %v1420_v46 = vadd.f32 %v1093_v18, %v1346_v22  ;;  %v547_v54 = vsub.f32 0.0, %v1408_v31 }
  0xf8   : > { %v495_v25 = vpop.f32.mrb[9].mxu1  ;;  %v1078_v26 = vpop.f32.mrb[10].mxu0  ;;  %v640_v30 = vadd.f32 1.0, %v1133_v20  ;;  %1154 = vpow2.f32 %v572_v14  ;;  %v1423_v47 = vadd.f32 %v1346_v22, %v431_v19  ;;  %v536_v61 = vsub.f32 0.0, %v1415_v41 }
  0xf9   : > { %v1135_v29 = vpop.eup %1134  ;;  %v1094_v34 = vpop.f32.mrb[10].mxu1  ;;  %1156 = vrcp.f32 %v624_v21  ;;  %v1427_v51 = vadd.f32 %v1346_v22, %v495_v25  ;;  %v1431_v56 = vadd.f32 %v1078_v26, %v1346_v22  ;;  %v552_v4 = vsub.f32 0.0, %v1420_v46 }
  0xfa   : > { %v1410_v35 = vpop.f32.mrb[11].mxu0  ;;  %v1137_v36 = vpop.eup %1136  ;;  %v622_v37 = vadd.f32 1.0, %v1135_v29  ;;  %1158 = vrcp.f32 %v640_v30  ;;  %v1435_v62 = vadd.f32 %v1094_v34, %v1346_v22  ;;  %v534_v5 = vsub.f32 0.0, %v1423_v47 }
  0xfb   : > { %v1417_v42 = vpop.f32.mrb[11].mxu1  ;;  %v1139_v43 = vpop.eup %1138  ;;  %v638_v45 = vadd.f32 1.0, %v1137_v36  ;;  %v568_v11 = vmul.f32 1.442695, %v531_v50  ;;  %v550_v12 = vsub.f32 0.0, %v1427_v51  ;;  %v537_v18 = vsub.f32 0.0, %v1431_v56 }
  0xfc   : > { %v1141_v48 = vpop.eup %1140  ;;  %1160 = vrcp.f32 %v622_v37  ;;  %v625_v49 = vadd.f32 1.0, %v1139_v43  ;;  %v600_v17 = vmul.f32 1.442695, %v547_v54  ;;  %v578_v26 = vmul.f32 1.442695, %v536_v61 }
  0xfd   : > { %v1143_v52 = vpop.eup %1142  ;;  %1162 = vrcp.f32 %v638_v45  ;;  %v641_v53 = vadd.f32 1.0, %v1141_v48  ;;  %v1081_v63 = vpop.f32.mrb[12].mxu0  ;;  %v553_v29 = vsub.f32 0.0, %v1435_v62  ;;  %v610_v37 = vmul.f32 1.442695, %v552_v4 }
  0xfe   : > { %v1145_v57 = vpop.eup %1144  ;;  %1164 = vrcp.f32 %v625_v49  ;;  %v623_v58 = vadd.f32 1.0, %v1143_v52  ;;  %v1097_v7 = vpop.f32.mrb[12].mxu1  ;;  %v574_v43 = vmul.f32 1.442695, %v534_v5  ;;  %v606_v49 = vmul.f32 1.442695, %v550_v12 }
  0xff   : > { %v1147_v2 = vpop.eup %1146  ;;  %1166 = vrcp.f32 %v641_v53  ;;  %v639_v3 = vadd.f32 1.0, %v1145_v57  ;;  %v1439_v8 = vpop.f32.mrb[13].mxu0  ;;  %v1456_v50 = vadd.f32 %v1346_v22, %v1410_v35  ;;  %v580_v54 = vmul.f32 1.442695, %v537_v18 }
 0x100   : > { %v1149_v9 = vpop.eup %1148  ;;  %1168 = vrcp.f32 %v623_v58  ;;  %v628_v10 = vadd.f32 1.0, %v1147_v2  ;;  %v1442_v13 = vpop.f32.mrb[13].mxu1  ;;  %v1461_v57 = vadd.f32 %v1346_v22, %v1417_v42  ;;  %v612_v61 = vmul.f32 1.442695, %v553_v29 }
 0x101   : > { %v1444_v14 = vpop.f32.mrb[14].mxu0  ;;  %v1151_v15 = vpop.eup %1150  ;;  %1170 = vrcp.f32 %v639_v3  ;;  %v644_v16 = vadd.f32 1.0, %v1149_v9  ;;  %v1477_v4 = vadd.f32 %v1097_v7, %v1346_v22 }
 0x102   : > { %v1447_v19 = vpop.f32.mrb[14].mxu1  ;;  %v1449_v20 = vpop.f32.mrb[15].mxu0  ;;  %1172 = vrcp.f32 %v628_v10  ;;  %v626_v25 = vadd.f32 1.0, %v1151_v15 }
 0x103   : > { %v1153_v21 = vpop.eup %1152  ;;  %v1452_v30 = vpop.f32.mrb[15].mxu1  ;;  %1174 = vrcp.f32 %v644_v16 }
 0x104   : > { %v1155_v34 = vpop.eup %1154  ;;  %v642_v36 = vadd.f32 1.0, %v1153_v21  ;;  %1176 = vrcp.f32 %v626_v25 }
 0x105   : > { %v1157_v45 = vpop.eup %1156  ;;  %v629_v48 = vadd.f32 1.0, %v1155_v34 }
 0x106   : > { %v1159_v52 = vpop.eup %1158  ;;  %v688_v53 = vmul.f32 %v1157_v45, %v1349_v24  ;;  %1178 = vrcp.f32 %v642_v36  ;;  %v1472_v24 = vadd.f32 %v1081_v63, %v1346_v22 }
 0x107   : > { %v1161_v58 = vpop.eup %1160  ;;  %v704_v35 = vmul.f32 %v1159_v52, %v1352_v27  ;;  %1180 = vrcp.f32 %v629_v48  ;;  %v535_v27 = vsub.f32 0.0, %v1456_v50 }
 0x108   : > { %v1163_v2 = vpop.eup %1162  ;;  %v1015_v3 = vpack.c.bf16 %v688_v53, %v688_v53  ;;  %v686_v42 = vmul.f32 %v1161_v58, %v1355_v28  ;;  %1182 = vpow2.f32 %v1412_v40  ;;  %v551_v28 = vsub.f32 0.0, %v1461_v57 }
 0x109   : > { %v1165_v5 = vpop.eup %1164  ;;  %v1031_v9 = vpack.c.bf16 %v704_v35, %v704_v35  ;;  %v702_v10 = vmul.f32 %v1163_v2, %v1359_v32  ;;  %1184 = vpow2.f32 %v568_v11  ;;  %v540_v11 = vsub.f32 0.0, %v1472_v24 }
 0x10a   : > { %v1167_v63 = vpop.eup %1166  ;;  %849 = vst.msk [vmem:[%s1468_s27 + $0x8] sm:$0xf] %vm846_vm3, %v1015_v3  ;;  %v1013_v12 = vpack.c.bf16 %v686_v42, %v686_v42  ;;  %v689_v15 = vmul.f32 %v1165_v5, %v1362_v33  ;;  %1186 = vpow2.f32 %v600_v17  ;;  %v556_v17 = vsub.f32 0.0, %v1477_v4 }
 0x10b   : > { %v1169_v40 = vpop.eup %1168  ;;  %865 = vst.msk [vmem:[%s1468_s27 + $0x48] sm:$0xf] %vm846_vm3, %v1031_v9  ;;  %v1029_v7 = vpack.c.bf16 %v702_v10, %v702_v10  ;;  %v705_v32 = vmul.f32 %v1167_v63, %v1367_v38  ;;  %1188 = vpow2.f32 %v578_v26  ;;  %v576_v26 = vmul.f32 1.442695, %v535_v27 }
 0x10c   : > { %v1171_v16 = vpop.eup %1170  ;;  %847 = vst.msk [vmem:[%s1468_s27] sm:$0xf] %vm846_vm3, %v1013_v12  ;;  %v1016_v18 = vpack.c.bf16 %v689_v15, %v689_v15  ;;  %v687_v33 = vmul.f32 %v1169_v40, %v1370_v39  ;;  %1190 = vpow2.f32 %v610_v37  ;;  %v608_v39 = vmul.f32 1.442695, %v551_v28 }
 0x10d   : > { %v1173_v21 = vpop.eup %1172  ;;  %863 = vst.msk [vmem:[%s1468_s27 + $0x40] sm:$0xf] %vm846_vm3, %v1029_v7  ;;  %v1032_v25 = vpack.c.bf16 %v705_v32, %v705_v32  ;;  %v703_v38 = vmul.f32 %v1171_v16, %v1375_v44  ;;  %1192 = vpow2.f32 %v574_v43  ;;  %v586_v44 = vmul.f32 1.442695, %v540_v11 }
 0x10e   : > { %v1175_v29 = vpop.eup %1174  ;;  %850 = vst.msk [vmem:[%s1468_s27 + $0xc] sm:$0xf] %vm846_vm3, %v1016_v18  ;;  %v1014_v34 = vpack.c.bf16 %v687_v33, %v687_v33  ;;  %v692_v36 = vmul.f32 %v1173_v21, %v1381_v55  ;;  %1194 = vpow2.f32 %v606_v49  ;;  %v618_v55 = vmul.f32 1.442695, %v556_v17 }
 0x10f   : > { %v1177_v37 = vpop.eup %1176  ;;  %866 = vst.msk [vmem:[%s1468_s27 + $0x4c] sm:$0xf] %vm846_vm3, %v1032_v25  ;;  %v1030_v45 = vpack.c.bf16 %v703_v38, %v703_v38  ;;  %v708_v48 = vmul.f32 %v1175_v29, %v1384_v59  ;;  %1196 = vpow2.f32 %v580_v54  ;;  %v1521_v63 = vadd.f32 %v1346_v22, %v1439_v8 }
 0x110   : > { %v1179_v43 = vpop.eup %1178  ;;  %848 = vst.msk [vmem:[%s1468_s27 + $0x4] sm:$0xf] %vm846_vm3, %v1014_v34  ;;  %v1019_v52 = vpack.c.bf16 %v692_v36, %v692_v36  ;;  %v690_v53 = vmul.f32 %v1177_v37, %v1387_v60  ;;  %1198 = vpow2.f32 %v612_v61  ;;  %v1525_v28 = vadd.f32 %v1346_v22, %v1442_v13 }
 0x111   : > { %v1181_v49 = vpop.eup %1180  ;;  %864 = vst.msk [vmem:[%s1468_s27 + $0x44] sm:$0xf] %vm846_vm3, %v1030_v45  ;;  %v1035_v58 = vpack.c.bf16 %v708_v48, %v708_v48  ;;  %v706_v35 = vmul.f32 %v1179_v43, %v1391_v0  ;;  %1200 = vpow2.f32 %v576_v26  ;;  %v1529_v32 = vadd.f32 %v1444_v14, %v1346_v22 }
 0x112   : > { %v1183_v59 = vpop.eup %1182  ;;  %853 = vst.msk [vmem:[%s1468_s27 + $0x18] sm:$0xf] %vm846_vm3, %v1019_v52  ;;  %v1017_v54 = vpack.c.bf16 %v690_v53, %v690_v53  ;;  %v693_v2 = vmul.f32 %v1181_v49, %v1394_v1  ;;  %1202 = vpow2.f32 %v608_v39  ;;  %v1533_v8 = vadd.f32 %v1447_v19, %v1346_v22 }
 0x113   : > { %v1185_v60 = vpop.eup %1184  ;;  %869 = vst.msk [vmem:[%s1468_s27 + $0x58] sm:$0xf] %vm846_vm3, %v1035_v58  ;;  %v1033_v61 = vpack.c.bf16 %v706_v35, %v706_v35  ;;  %v645_v3 = vadd.f32 1.0, %v1183_v59  ;;  %1204 = vpow2.f32 %v586_v44  ;;  %v538_v13 = vsub.f32 0.0, %v1521_v63 }
 0x114   : > { %v1187_v42 = vpop.eup %1186  ;;  %851 = vst.msk [vmem:[%s1468_s27 + $0x10] sm:$0xf] %vm846_vm3, %v1017_v54  ;;  %v1020_v0 = vpack.c.bf16 %v693_v2, %v693_v2  ;;  %v627_v5 = vadd.f32 1.0, %v1185_v60  ;;  %1206 = vpow2.f32 %v618_v55  ;;  %v1538_v17 = vadd.f32 %v1346_v22, %v1449_v20 }
 0x115   : > { %v1189_v9 = vpop.eup %1188  ;;  %867 = vst.msk [vmem:[%s1468_s27 + $0x50] sm:$0xf] %vm846_vm3, %v1033_v61  ;;  %1208 = vrcp.f32 %v645_v3  ;;  %v643_v10 = vadd.f32 1.0, %v1187_v42  ;;  %v554_v25 = vsub.f32 0.0, %v1525_v28  ;;  %v1543_v38 = vadd.f32 %v1346_v22, %v1452_v30 }
 0x116   : > { %v1191_v1 = vpop.eup %1190  ;;  %854 = vst.msk [vmem:[%s1468_s27 + $0x1c] sm:$0xf] %vm846_vm3, %v1020_v0  ;;  %1210 = vrcp.f32 %v627_v5  ;;  %v632_v27 = vadd.f32 1.0, %v1189_v9  ;;  %v541_v29 = vsub.f32 0.0, %v1529_v32  ;;  %v557_v20 = vsub.f32 0.0, %v1533_v8 }
 0x117   : > { %v1193_v12 = vpop.eup %1192  ;;  %1212 = vrcp.f32 %v643_v10  ;;  %v648_v15 = vadd.f32 1.0, %v1191_v1  ;;  %v582_v45 = vmul.f32 1.442695, %v538_v13  ;;  %v539_v48 = vsub.f32 0.0, %v1538_v17 }
 0x118   : > { %v1195_v40 = vpop.eup %1194  ;;  %1214 = vrcp.f32 %v632_v27  ;;  %v630_v7 = vadd.f32 1.0, %v1193_v12  ;;  %v614_v30 = vmul.f32 1.442695, %v554_v25  ;;  %v555_v43 = vsub.f32 0.0, %v1543_v38 }
 0x119   : > { %v1197_v11 = vpop.eup %1196  ;;  %1216 = vrcp.f32 %v648_v15  ;;  %v646_v16 = vadd.f32 1.0, %v1195_v40  ;;  %v588_v55 = vmul.f32 1.442695, %v541_v29  ;;  %v620_v35 = vmul.f32 1.442695, %v557_v20 }
 0x11a   : > { %v1199_v18 = vpop.eup %1198  ;;  %1218 = vrcp.f32 %v630_v7  ;;  %v633_v33 = vadd.f32 1.0, %v1197_v11  ;;  %v584_v60 = vmul.f32 1.442695, %v539_v48  ;;  %v616_v42 = vmul.f32 1.442695, %v555_v43 }
 0x11b   : > { %v1201_v21 = vpop.eup %1200  ;;  %1220 = vrcp.f32 %v646_v16  ;;  %v649_v14 = vadd.f32 1.0, %v1199_v18 }
 0x11c   : > { %v1203_v19 = vpop.eup %1202  ;;  %1222 = vrcp.f32 %v633_v33  ;;  %v631_v26 = vadd.f32 1.0, %v1201_v21 }
 0x11d   : > { %v1205_v34 = vpop.eup %1204  ;;  %1224 = vrcp.f32 %v649_v14  ;;  %v647_v36 = vadd.f32 1.0, %v1203_v19 }
 0x11e   : > { %v1207_v39 = vpop.eup %1206  ;;  %1226 = vrcp.f32 %v631_v26  ;;  %v636_v37 = vadd.f32 1.0, %v1205_v34 }
 0x11f   : > { %v1209_v44 = vpop.eup %1208  ;;  %1228 = vrcp.f32 %v647_v36  ;;  %v652_v22 = vadd.f32 1.0, %v1207_v39 }
 0x120   : > { %v1211_v52 = vpop.eup %1210  ;;  %v709_v53 = vmul.f32 %v1209_v44, %v1399_v6  ;;  %1230 = vrcp.f32 %v636_v37 }
 0x121   : > { %v1213_v49 = vpop.eup %1212  ;;  %v691_v58 = vmul.f32 %v1211_v52, %v1405_v23  ;;  %1232 = vrcp.f32 %v652_v22 }
 0x122   : > { %v1215_v59 = vpop.eup %1214  ;;  %v1036_v54 = vpack.c.bf16 %v709_v53, %v709_v53  ;;  %v707_v2 = vmul.f32 %v1213_v49, %v1408_v31  ;;  %1234 = vpow2.f32 %v582_v45 }
 0x123   : > { %v1217_v61 = vpop.eup %1216  ;;  %v1018_v3 = vpack.c.bf16 %v691_v58, %v691_v58  ;;  %v696_v6 = vmul.f32 %v1215_v59, %v1415_v41  ;;  %1236 = vpow2.f32 %v614_v30 }
 0x124   : > { %v1219_v0 = vpop.eup %1218  ;;  %870 = vst.msk [vmem:[%s1468_s27 + $0x5c] sm:$0xf] %vm846_vm3, %v1036_v54  ;;  %v1034_v23 = vpack.c.bf16 %v707_v2, %v707_v2  ;;  %v712_v5 = vmul.f32 %v1217_v61, %v1420_v46  ;;  %1238 = vpow2.f32 %v588_v55 }
 0x125   : > { %v1221_v9 = vpop.eup %1220  ;;  %852 = vst.msk [vmem:[%s1468_s27 + $0x14] sm:$0xf] %vm846_vm3, %v1018_v3  ;;  %v1023_v31 = vpack.c.bf16 %v696_v6, %v696_v6  ;;  %v694_v10 = vmul.f32 %v1219_v0, %v1423_v47  ;;  %1240 = vpow2.f32 %v620_v35 }
 0x126   : > { %v1223_v41 = vpop.eup %1222  ;;  %868 = vst.msk [vmem:[%s1468_s27 + $0x54] sm:$0xf] %vm846_vm3, %v1034_v23  ;;  %v1039_v1 = vpack.c.bf16 %v712_v5, %v712_v5  ;;  %v710_v27 = vmul.f32 %v1221_v9, %v1427_v51  ;;  %1242 = vpow2.f32 %v584_v60 }
 0x127   : > { %v1225_v12 = vpop.eup %1224  ;;  %857 = vst.msk [vmem:[%s1468_s27 + $0x28] sm:$0xf] %vm846_vm3, %v1023_v31  ;;  %v1021_v46 = vpack.c.bf16 %v694_v10, %v694_v10  ;;  %v697_v15 = vmul.f32 %v1223_v41, %v1431_v56  ;;  %1244 = vpow2.f32 %v616_v42 }
 0x128   : > { %v1227_v40 = vpop.eup %1226  ;;  %873 = vst.msk [vmem:[%s1468_s27 + $0x68] sm:$0xf] %vm846_vm3, %v1039_v1  ;;  %v1037_v47 = vpack.c.bf16 %v710_v27, %v710_v27  ;;  %v713_v7 = vmul.f32 %v1225_v12, %v1435_v62 }
 0x129   : > { %v1229_v11 = vpop.eup %1228  ;;  %855 = vst.msk [vmem:[%s1468_s27 + $0x20] sm:$0xf] %vm846_vm3, %v1021_v46  ;;  %v1024_v51 = vpack.c.bf16 %v697_v15, %v697_v15  ;;  %v695_v16 = vmul.f32 %v1227_v40, %v1456_v50 }
 0x12a   : > { %v1231_v18 = vpop.eup %1230  ;;  %871 = vst.msk [vmem:[%s1468_s27 + $0x60] sm:$0xf] %vm846_vm3, %v1037_v47  ;;  %v1040_v56 = vpack.c.bf16 %v713_v7, %v713_v7  ;;  %v711_v33 = vmul.f32 %v1229_v11, %v1461_v57 }
 0x12b   : > { %v1233_v13 = vpop.eup %1232  ;;  %858 = vst.msk [vmem:[%s1468_s27 + $0x2c] sm:$0xf] %vm846_vm3, %v1024_v51  ;;  %v1022_v21 = vpack.c.bf16 %v695_v16, %v695_v16  ;;  %v700_v62 = vmul.f32 %v1231_v18, %v1472_v24 }
 0x12c   : > { %v1235_v14 = vpop.eup %1234  ;;  %874 = vst.msk [vmem:[%s1468_s27 + $0x6c] sm:$0xf] %vm846_vm3, %v1040_v56  ;;  %v1038_v25 = vpack.c.bf16 %v711_v33, %v711_v33  ;;  %v716_v50 = vmul.f32 %v1233_v13, %v1477_v4 }
 0x12d   : > { %v1237_v19 = vpop.eup %1236  ;;  %856 = vst.msk [vmem:[%s1468_s27 + $0x24] sm:$0xf] %vm846_vm3, %v1022_v21  ;;  %v1027_v26 = vpack.c.bf16 %v700_v62, %v700_v62  ;;  %v634_v29 = vadd.f32 1.0, %v1235_v14 }
 0x12e   : > { %v1239_v57 = vpop.eup %1238  ;;  %872 = vst.msk [vmem:[%s1468_s27 + $0x64] sm:$0xf] %vm846_vm3, %v1038_v25  ;;  %v1043_v34 = vpack.c.bf16 %v716_v50, %v716_v50  ;;  %v650_v36 = vadd.f32 1.0, %v1237_v19 }
 0x12f   : > { %v1241_v20 = vpop.eup %1240  ;;  %861 = vst.msk [vmem:[%s1468_s27 + $0x38] sm:$0xf] %vm846_vm3, %v1027_v26  ;;  %1246 = vrcp.f32 %v634_v29  ;;  %v637_v24 = vadd.f32 1.0, %v1239_v57 }
 0x130   : > { %v1243_v39 = vpop.eup %1242  ;;  %877 = vst.msk [vmem:[%s1468_s27 + $0x78] sm:$0xf] %vm846_vm3, %v1043_v34  ;;  %1248 = vrcp.f32 %v650_v36  ;;  %v653_v4 = vadd.f32 1.0, %v1241_v20 }
 0x131   : > { %v1245_v37 = vpop.eup %1244  ;;  %1250 = vrcp.f32 %v637_v24  ;;  %v635_v45 = vadd.f32 1.0, %v1243_v39 }
 0x132   : > { %1252 = vrcp.f32 %v653_v4  ;;  %v651_v48 = vadd.f32 1.0, %v1245_v37 }
 0x133   : > { %1254 = vrcp.f32 %v635_v45 }
 0x134   : > { %1256 = vrcp.f32 %v651_v48 }
 0x139   : > { %v1247_v44 = vpop.eup %1246 }
 0x13a   : > { %v1249_v22 = vpop.eup %1248  ;;  %v698_v30 = vmul.f32 %v1247_v44, %v1521_v63 }
 0x13b   : > { %v1251_v43 = vpop.eup %1250  ;;  %v714_v52 = vmul.f32 %v1249_v22, %v1525_v28 }
 0x13c   : > { %v1253_v53 = vpop.eup %1252  ;;  %v1025_v55 = vpack.c.bf16 %v698_v30, %v698_v30  ;;  %v701_v49 = vmul.f32 %v1251_v43, %v1529_v32 }
 0x13d   : > { %v1255_v58 = vpop.eup %1254  ;;  %v1041_v35 = vpack.c.bf16 %v714_v52, %v714_v52  ;;  %v717_v59 = vmul.f32 %v1253_v53, %v1533_v8 }
 0x13e   : > { %v1257_v54 = vpop.eup %1256  ;;  %859 = vst.msk [vmem:[%s1468_s27 + $0x30] sm:$0xf] %vm846_vm3, %v1025_v55  ;;  %v1028_v2 = vpack.c.bf16 %v701_v49, %v701_v49  ;;  %v699_v63 = vmul.f32 %v1255_v58, %v1538_v17 }
 0x13f   : > { %875 = vst.msk [vmem:[%s1468_s27 + $0x70] sm:$0xf] %vm846_vm3, %v1041_v35  ;;  %v1044_v28 = vpack.c.bf16 %v717_v59, %v717_v59  ;;  %v715_v60 = vmul.f32 %v1257_v54, %v1543_v38 }
 0x140   : > { %862 = vst.msk [vmem:[%s1468_s27 + $0x3c] sm:$0xf] %vm846_vm3, %v1028_v2  ;;  %v1026_v61 = vpack.c.bf16 %v699_v63, %v699_v63 }
 0x141   : > { %878 = vst.msk [vmem:[%s1468_s27 + $0x7c] sm:$0xf] %vm846_vm3, %v1044_v28  ;;  %v1042_v32 = vpack.c.bf16 %v715_v60, %v715_v60 }
 0x142   : > { %860 = vst.msk [vmem:[%s1468_s27 + $0x34] sm:$0xf] %vm846_vm3, %v1026_v61 }
 0x143   : > { %876 = vst.msk [vmem:[%s1468_s27 + $0x74] sm:$0xf] %vm846_vm3, %v1042_v32 }
 0x144 PF: > { %s13_s12 = sadd.s32 1, %s1264_s12  }
 0x145   : > { %p10_p4 = scmp.ge.s32.totalorder %s13_s12, 4  }
 0x147   :  { %12 = sbr.rel (!%p10_p4) target bundleno = 1 (0x1), region = 62 }

// kernel: _lambda_.17
= control target key start
LH: loop header
LB: loop body
LE: loop exit
PB: predicated region body
PF: predicated region fallthrough
CT: control target
= control target key end

     0   :  { %v667_v0 = vmov 0   ;;  %vm182_vm0 = vcmask 130048   ;;  %vm464_vm1 = vcmask 257024   ;;  %s920_s1 = inlined_call_operand.vmem [shape: bf16[144,32], index: 1, kind: input, shape index: {}]   ;;  %s921_s0 = inlined_call_operand.vmem [shape: bf16[128,144], index: 0, kind: input, shape index: {}]   ;;  %s922_s2 = inlined_call_operand.vmem [shape: f32[1,32], index: 2, kind: input, shape index: {}]   ;;  %s923_s3 = inlined_call_operand.vmem [shape: bf16[128,32], index: 3, kind: output, shape index: {}]  }
   0x1   :  { %207 = vmatprep.subr.bf16.mxu0 %v667_v0  ;;  %551 = vmatprep.subr.bf16.mxu1 %v667_v0  ;;  %v570_v1 = vld [vmem:[%s920_s1] sm:$0xff]   ;;  %v571_v2 = vld [vmem:[%s920_s1 + $0x8] sm:$0xff]   ;;  %v572_v3 = vld [vmem:[%s920_s1 + $0x10] sm:$0xff]  }
   0x2   :  { %208 = vmatpush1.bf16.msra.mxu0 %v570_v1  ;;  %560 = vmatpush1.bf16.msra.mxu1 %v570_v1  ;;  %v573_v4 = vld [vmem:[%s920_s1 + $0x18] sm:$0xff]   ;;  %v581_v5 = vld [vmem:[%s921_s0 + $0x4] ss:$8 sps:$4 sm:$0xff]   ;;  %v576_v9 = vld [vmem:[%s920_s1 + $0x30] sm:$0xff]  }
   0x3   :  { %209 = vmatprep.subr.bf16.mxu0 %v667_v0  ;;  %552 = vmatprep.subr.bf16.mxu1 %v667_v0  ;;  %v584_v6 = vld [vmem:[%s921_s0 + $0x44] ss:$8 sps:$4 sm:$0xff]   ;;  %v577_v10 = vld [vmem:[%s920_s1 + $0x38] sm:$0xff]   ;;  %v579_v12 = vld [vmem:[%s921_s0] ss:$8 sps:$4 sm:$0xff]  }
   0x4   :  { %511 = vmatprep.mubr.msk.bf16.mxu0 %vm182_vm0, %v581_v5  ;;  %515 = vmatprep.mubr.msk.bf16.mxu1 %vm182_vm0, %v584_v6  ;;  %v574_v7 = vld [vmem:[%s920_s1 + $0x20] sm:$0xff]   ;;  %v575_v8 = vld [vmem:[%s920_s1 + $0x28] sm:$0xff]   ;;  %v585_v14 = vld [vmem:[%s921_s0 + $0x14] ss:$8 sps:$4 sm:$0xff]  }
   0x5   :  { %v578_v11 = vld [vmem:[%s920_s1 + $0x40] sm:$0xff]   ;;  %v587_v15 = vld [vmem:[%s921_s0 + $0x54] ss:$8 sps:$4 sm:$0xff]   ;;  %v589_v16 = vld [vmem:[%s921_s0 + $0x10] ss:$8 sps:$4 sm:$0xff]  }
   0x6   :  { %210 = vmatpush1.bf16.msra.mxu0 %v571_v2  ;;  %561 = vmatpush1.bf16.msra.mxu1 %v571_v2  ;;  %v582_v13 = vld [vmem:[%s921_s0 + $0x40] ss:$8 sps:$4 sm:$0xff]   ;;  %v590_v17 = vld [vmem:[%s921_s0 + $0x50] ss:$8 sps:$4 sm:$0xff]   ;;  %v591_v18 = vld [vmem:[%s921_s0 + $0x24] ss:$8 sps:$4 sm:$0xff]  }
   0x7   :  { %211 = vmatprep.subr.bf16.mxu0 %v667_v0  ;;  %553 = vmatprep.subr.bf16.mxu1 %v667_v0  ;;  %v593_v19 = vld [vmem:[%s921_s0 + $0x64] ss:$8 sps:$4 sm:$0xff]   ;;  %v595_v20 = vld [vmem:[%s921_s0 + $0x20] ss:$8 sps:$4 sm:$0xff]   ;;  %v597_v22 = vld [vmem:[%s921_s0 + $0x34] ss:$8 sps:$4 sm:$0xff]  }
   0x8   :  { %v596_v21 = vld [vmem:[%s921_s0 + $0x60] ss:$8 sps:$4 sm:$0xff]   ;;  %v599_v23 = vld [vmem:[%s921_s0 + $0x74] ss:$8 sps:$4 sm:$0xff]   ;;  %v601_v24 = vld [vmem:[%s921_s0 + $0x30] ss:$8 sps:$4 sm:$0xff]  }
   0x9   :  { %v602_v25 = vld [vmem:[%s921_s0 + $0x70] ss:$8 sps:$4 sm:$0xff]   ;;  %v774_v26 = vld [vmem:[%s922_s2] ss:$0 sm:$0xff] }
   0xa   :  { %212 = vmatpush1.bf16.msra.mxu0 %v572_v3  ;;  %562 = vmatpush1.bf16.msra.mxu1 %v572_v3 }
   0xb   :  { %213 = vmatprep.subr.bf16.mxu0 %v667_v0  ;;  %554 = vmatprep.subr.bf16.mxu1 %v667_v0 }
   0xe   :  { %214 = vmatpush1.bf16.msra.mxu0 %v573_v4  ;;  %563 = vmatpush1.bf16.msra.mxu1 %v573_v4 }
   0xf   :  { %215 = vmatprep.subr.bf16.mxu0 %v667_v0  ;;  %555 = vmatprep.subr.bf16.mxu1 %v667_v0 }
  0x12   :  { %216 = vmatpush1.bf16.msra.mxu0 %v574_v7  ;;  %564 = vmatpush1.bf16.msra.mxu1 %v574_v7 }
  0x13   :  { %217 = vmatprep.subr.bf16.mxu0 %v667_v0  ;;  %556 = vmatprep.subr.bf16.mxu1 %v667_v0 }
  0x16   :  { %218 = vmatpush1.bf16.msra.mxu0 %v575_v8  ;;  %565 = vmatpush1.bf16.msra.mxu1 %v575_v8 }
  0x17   :  { %219 = vmatprep.subr.bf16.mxu0 %v667_v0  ;;  %557 = vmatprep.subr.bf16.mxu1 %v667_v0 }
  0x1a   :  { %220 = vmatpush1.bf16.msra.mxu0 %v576_v9  ;;  %566 = vmatpush1.bf16.msra.mxu1 %v576_v9 }
  0x1b   :  { %221 = vmatprep.subr.bf16.mxu0 %v667_v0  ;;  %558 = vmatprep.subr.bf16.mxu1 %v667_v0 }
  0x1e   :  { %222 = vmatpush1.bf16.msra.mxu0 %v577_v10  ;;  %567 = vmatpush1.bf16.msra.mxu1 %v577_v10 }
  0x1f   :  { %223 = vmatprep.subr.bf16.mxu0 %v667_v0  ;;  %559 = vmatprep.subr.bf16.mxu1 %v667_v0 }
  0x22   :  { %224 = vmatpush1.bf16.msra.mxu0 %v578_v11  ;;  %568 = vmatpush1.bf16.msra.mxu1 %v578_v11 }
  0x25   :  { %240 = vmatmul.mubr.bf16.vlgmr.msra.gmra.mrb[0].mxu0 %v579_v12  ;;  %272 = vmatmul.mubr.bf16.vlgmr.msra.gmra.mrb[0].mxu1 %v582_v13 }
  0x26   :  { %512 = vmatprep.mubr.msk.bf16.mxu0 %vm182_vm0, %v585_v14  ;;  %516 = vmatprep.mubr.msk.bf16.mxu1 %vm182_vm0, %v587_v15 }
  0x2d   :  { %248 = vmatmul.mubr.bf16.gmra.mrb[4].mxu0 %v589_v16  ;;  %280 = vmatmul.mubr.bf16.gmra.mrb[4].mxu1 %v590_v17 }
  0x2e   :  { %513 = vmatprep.mubr.msk.bf16.mxu0 %vm182_vm0, %v591_v18  ;;  %517 = vmatprep.mubr.msk.bf16.mxu1 %vm182_vm0, %v593_v19 }
  0x35   :  { %256 = vmatmul.mubr.bf16.gmra.mrb[8].mxu0 %v595_v20  ;;  %288 = vmatmul.mubr.bf16.gmra.mrb[8].mxu1 %v596_v21 }
  0x36   :  { %514 = vmatprep.mubr.msk.bf16.mxu0 %vm182_vm0, %v597_v22  ;;  %518 = vmatprep.mubr.msk.bf16.mxu1 %vm182_vm0, %v599_v23 }
  0x3d   :  { %264 = vmatmul.mubr.bf16.gmra.mrb[12].mxu0 %v601_v24  ;;  %296 = vmatmul.mubr.bf16.gmra.mrb[12].mxu1 %v602_v25 }
  0xf8   :  { %v241_v27 = vpop.f32.mrb[0].mxu0  ;;  %v273_v28 = vpop.f32.mrb[0].mxu1 }
  0xf9   :  { %v777_v29 = vadd.f32 %v774_v26, %v241_v27  ;;  %v780_v30 = vadd.f32 %v774_v26, %v273_v28  ;;  %v243_v31 = vpop.f32.mrb[1].mxu0  ;;  %v275_v32 = vpop.f32.mrb[1].mxu1 }
  0xfa   :  { %v244_v33 = vpop.f32.mrb[2].mxu0  ;;  %v276_v34 = vpop.f32.mrb[2].mxu1 }
  0xfb   :  { %v304_v35 = vsub.f32 0.0, %v777_v29  ;;  %v312_v36 = vsub.f32 0.0, %v780_v30  ;;  %v785_v37 = vadd.f32 %v774_v26, %v244_v33  ;;  %v788_v38 = vadd.f32 %v774_v26, %v276_v34  ;;  %v246_v39 = vpop.f32.mrb[3].mxu0  ;;  %v278_v40 = vpop.f32.mrb[3].mxu1 }
  0xfd   :  { %v320_v41 = vmul.f32 1.442695, %v304_v35  ;;  %v336_v42 = vmul.f32 1.442695, %v312_v36  ;;  %v305_v43 = vsub.f32 0.0, %v785_v37  ;;  %v313_v44 = vsub.f32 0.0, %v788_v38 }
  0xff   :  { %603 = vpow2.f32 %v320_v41  ;;  %v322_v45 = vmul.f32 1.442695, %v305_v43  ;;  %v338_v46 = vmul.f32 1.442695, %v313_v44 }
 0x100   :  { %605 = vpow2.f32 %v336_v42  ;;  %v249_v47 = vpop.f32.mrb[4].mxu0  ;;  %v281_v48 = vpop.f32.mrb[4].mxu1 }
 0x101   :  { %607 = vpow2.f32 %v322_v45  ;;  %v793_v49 = vadd.f32 %v774_v26, %v249_v47  ;;  %v796_v50 = vadd.f32 %v774_v26, %v281_v48  ;;  %v251_v51 = vpop.f32.mrb[5].mxu0  ;;  %v283_v52 = vpop.f32.mrb[5].mxu1 }
 0x102   :  { %609 = vpow2.f32 %v338_v46  ;;  %v252_v53 = vpop.f32.mrb[6].mxu0  ;;  %v284_v54 = vpop.f32.mrb[6].mxu1 }
 0x103   :  { %v306_v55 = vsub.f32 0.0, %v793_v49  ;;  %v314_v56 = vsub.f32 0.0, %v796_v50  ;;  %v801_v57 = vadd.f32 %v774_v26, %v252_v53  ;;  %v804_v58 = vadd.f32 %v774_v26, %v284_v54  ;;  %v254_v59 = vpop.f32.mrb[7].mxu0  ;;  %v286_v60 = vpop.f32.mrb[7].mxu1 }
 0x105   :  { %v324_v61 = vmul.f32 1.442695, %v306_v55  ;;  %v340_v62 = vmul.f32 1.442695, %v314_v56  ;;  %v307_v63 = vsub.f32 0.0, %v801_v57  ;;  %v315_v0 = vsub.f32 0.0, %v804_v58 }
 0x107   :  { %611 = vpow2.f32 %v324_v61  ;;  %v326_v1 = vmul.f32 1.442695, %v307_v63  ;;  %v342_v2 = vmul.f32 1.442695, %v315_v0 }
 0x108   :  { %613 = vpow2.f32 %v340_v62  ;;  %v257_v3 = vpop.f32.mrb[8].mxu0  ;;  %v289_v4 = vpop.f32.mrb[8].mxu1 }
 0x109   :  { %v604_v5 = vpop.eup %603  ;;  %615 = vpow2.f32 %v326_v1  ;;  %v809_v6 = vadd.f32 %v774_v26, %v257_v3  ;;  %v812_v7 = vadd.f32 %v774_v26, %v289_v4  ;;  %v259_v8 = vpop.f32.mrb[9].mxu0 }
 0x10a   :  { %v291_v9 = vpop.f32.mrb[9].mxu1  ;;  %v606_v10 = vpop.eup %605  ;;  %v352_v11 = vadd.f32 1.0, %v604_v5  ;;  %617 = vpow2.f32 %v342_v2 }
 0x10b   :  { %v260_v12 = vpop.f32.mrb[10].mxu0  ;;  %v292_v13 = vpop.f32.mrb[10].mxu1  ;;  %v360_v15 = vadd.f32 1.0, %v606_v10  ;;  %v308_v16 = vsub.f32 0.0, %v809_v6  ;;  %v316_v17 = vsub.f32 0.0, %v812_v7 }
 0x10c   :  { %v608_v14 = vpop.eup %607  ;;  %v817_v18 = vadd.f32 %v774_v26, %v260_v12  ;;  %v262_v19 = vpop.f32.mrb[11].mxu0  ;;  %619 = vrcp.f32 %v352_v11  ;;  %v820_v23 = vadd.f32 %v774_v26, %v292_v13 }
 0x10d   :  { %v294_v20 = vpop.f32.mrb[11].mxu1  ;;  %v610_v21 = vpop.eup %609  ;;  %v353_v22 = vadd.f32 1.0, %v608_v14  ;;  %621 = vrcp.f32 %v360_v15  ;;  %v328_v25 = vmul.f32 1.442695, %v308_v16  ;;  %v344_v27 = vmul.f32 1.442695, %v316_v17 }
 0x10e   :  { %v361_v24 = vadd.f32 1.0, %v610_v21  ;;  %v309_v28 = vsub.f32 0.0, %v817_v18  ;;  %v317_v31 = vsub.f32 0.0, %v820_v23 }
 0x10f   :  { %623 = vrcp.f32 %v353_v22 }
 0x110   :  { %625 = vrcp.f32 %v361_v24  ;;  %v330_v32 = vmul.f32 1.442695, %v309_v28  ;;  %v346_v33 = vmul.f32 1.442695, %v317_v31  ;;  %v265_v34 = vpop.f32.mrb[12].mxu0  ;;  %v297_v35 = vpop.f32.mrb[12].mxu1 }
 0x111   :  { %627 = vpow2.f32 %v328_v25  ;;  %v612_v36 = vpop.eup %611  ;;  %v825_v39 = vadd.f32 %v774_v26, %v265_v34  ;;  %v828_v40 = vadd.f32 %v774_v26, %v297_v35  ;;  %v267_v41 = vpop.f32.mrb[13].mxu0 }
 0x112   :  { %629 = vpow2.f32 %v344_v27  ;;  %v299_v42 = vpop.f32.mrb[13].mxu1  ;;  %v614_v43 = vpop.eup %613  ;;  %v354_v44 = vadd.f32 1.0, %v612_v36 }
 0x113   :  { %631 = vpow2.f32 %v330_v32  ;;  %v268_v45 = vpop.f32.mrb[14].mxu0  ;;  %v300_v46 = vpop.f32.mrb[14].mxu1  ;;  %v362_v48 = vadd.f32 1.0, %v614_v43  ;;  %v310_v51 = vsub.f32 0.0, %v825_v39  ;;  %v318_v52 = vsub.f32 0.0, %v828_v40 }
 0x114   :  { %v616_v47 = vpop.eup %615  ;;  %633 = vpow2.f32 %v346_v33  ;;  %v270_v53 = vpop.f32.mrb[15].mxu0  ;;  %v833_v59 = vadd.f32 %v774_v26, %v268_v45  ;;  %v836_v60 = vadd.f32 %v774_v26, %v300_v46 }
 0x115   :  { %v302_v54 = vpop.f32.mrb[15].mxu1  ;;  %v618_v55 = vpop.eup %617  ;;  %635 = vrcp.f32 %v354_v44  ;;  %v355_v56 = vadd.f32 1.0, %v616_v47  ;;  %v332_v62 = vmul.f32 1.442695, %v310_v51  ;;  %v348_v63 = vmul.f32 1.442695, %v318_v52 }
 0x116   :  { %637 = vrcp.f32 %v362_v48  ;;  %v363_v61 = vadd.f32 1.0, %v618_v55  ;;  %v620_v0 = vpop.eup %619  ;;  %v311_v1 = vsub.f32 0.0, %v833_v59  ;;  %v319_v2 = vsub.f32 0.0, %v836_v60 }
 0x117   :  { %639 = vrcp.f32 %v355_v56  ;;  %v622_v3 = vpop.eup %621  ;;  %v384_v4 = vmul.f32 %v620_v0, %v777_v29 }
 0x118   :  { %641 = vrcp.f32 %v363_v61  ;;  %v392_v8 = vmul.f32 %v622_v3, %v780_v30  ;;  %v334_v26 = vmul.f32 1.442695, %v311_v1  ;;  %v350_v9 = vmul.f32 1.442695, %v319_v2 }
 0x119   :  { %v624_v5 = vpop.eup %623  ;;  %643 = vpow2.f32 %v332_v62  ;;  %v535_v11 = vpack.c.bf16 %v384_v4, %v384_v4 }
 0x11a   :  { %v626_v10 = vpop.eup %625  ;;  %v385_v12 = vmul.f32 %v624_v5, %v785_v37  ;;  %645 = vpow2.f32 %v348_v63  ;;  %v543_v14 = vpack.c.bf16 %v392_v8, %v392_v8 }
 0x11b   :  { %v628_v13 = vpop.eup %627  ;;  %v393_v15 = vmul.f32 %v626_v10, %v788_v38  ;;  %647 = vpow2.f32 %v334_v26  ;;  %465 = vst.msk [vmem:[%s923_s3] sm:$0xf] %vm464_vm1, %v535_v11 }
 0x11c   :  { %v630_v16 = vpop.eup %629  ;;  %v536_v29 = vpack.c.bf16 %v385_v12, %v385_v12  ;;  %v356_v30 = vadd.f32 1.0, %v628_v13  ;;  %649 = vpow2.f32 %v350_v9  ;;  %473 = vst.msk [vmem:[%s923_s3 + $0x20] sm:$0xf] %vm464_vm1, %v543_v14 }
 0x11d   :  { %v632_v17 = vpop.eup %631  ;;  %v544_v37 = vpack.c.bf16 %v393_v15, %v393_v15  ;;  %v364_v19 = vadd.f32 1.0, %v630_v16 }
 0x11e   :  { %v634_v20 = vpop.eup %633  ;;  %466 = vst.msk [vmem:[%s923_s3 + $0x4] sm:$0xf] %vm464_vm1, %v536_v29  ;;  %651 = vrcp.f32 %v356_v30  ;;  %v357_v38 = vadd.f32 1.0, %v632_v17 }
 0x11f   :  { %v636_v21 = vpop.eup %635  ;;  %474 = vst.msk [vmem:[%s923_s3 + $0x24] sm:$0xf] %vm464_vm1, %v544_v37  ;;  %653 = vrcp.f32 %v364_v19  ;;  %v365_v22 = vadd.f32 1.0, %v634_v20 }
 0x120   :  { %v638_v24 = vpop.eup %637  ;;  %v386_v25 = vmul.f32 %v636_v21, %v793_v49  ;;  %655 = vrcp.f32 %v357_v38 }
 0x121   :  { %v640_v27 = vpop.eup %639  ;;  %v394_v28 = vmul.f32 %v638_v24, %v796_v50  ;;  %657 = vrcp.f32 %v365_v22 }
 0x122   :  { %v642_v31 = vpop.eup %641  ;;  %v537_v32 = vpack.c.bf16 %v386_v25, %v386_v25  ;;  %v387_v33 = vmul.f32 %v640_v27, %v801_v57 }
 0x123   :  { %v644_v34 = vpop.eup %643  ;;  %v545_v35 = vpack.c.bf16 %v394_v28, %v394_v28  ;;  %v395_v36 = vmul.f32 %v642_v31, %v804_v58 }
 0x124   :  { %v646_v41 = vpop.eup %645  ;;  %467 = vst.msk [vmem:[%s923_s3 + $0x8] sm:$0xf] %vm464_vm1, %v537_v32  ;;  %v538_v49 = vpack.c.bf16 %v387_v33, %v387_v33  ;;  %v358_v42 = vadd.f32 1.0, %v644_v34 }
 0x125   :  { %v648_v43 = vpop.eup %647  ;;  %475 = vst.msk [vmem:[%s923_s3 + $0x28] sm:$0xf] %vm464_vm1, %v545_v35  ;;  %v546_v50 = vpack.c.bf16 %v395_v36, %v395_v36  ;;  %v366_v57 = vadd.f32 1.0, %v646_v41 }
 0x126   :  { %v650_v44 = vpop.eup %649  ;;  %468 = vst.msk [vmem:[%s923_s3 + $0xc] sm:$0xf] %vm464_vm1, %v538_v49  ;;  %659 = vrcp.f32 %v358_v42  ;;  %v359_v58 = vadd.f32 1.0, %v648_v43 }
 0x127   :  { %476 = vst.msk [vmem:[%s923_s3 + $0x2c] sm:$0xf] %vm464_vm1, %v546_v50  ;;  %661 = vrcp.f32 %v366_v57  ;;  %v367_v45 = vadd.f32 1.0, %v650_v44 }
 0x128   :  { %v652_v46 = vpop.eup %651  ;;  %663 = vrcp.f32 %v359_v58 }
 0x129   :  { %v654_v47 = vpop.eup %653  ;;  %v388_v48 = vmul.f32 %v652_v46, %v809_v6  ;;  %665 = vrcp.f32 %v367_v45 }
 0x12a   :  { %v656_v51 = vpop.eup %655  ;;  %v396_v52 = vmul.f32 %v654_v47, %v812_v7 }
 0x12b   :  { %v658_v53 = vpop.eup %657  ;;  %v539_v54 = vpack.c.bf16 %v388_v48, %v388_v48  ;;  %v389_v55 = vmul.f32 %v656_v51, %v817_v18 }
 0x12c   :  { %v547_v56 = vpack.c.bf16 %v396_v52, %v396_v52  ;;  %v397_v61 = vmul.f32 %v658_v53, %v820_v23 }
 0x12d   :  { %469 = vst.msk [vmem:[%s923_s3 + $0x10] sm:$0xf] %vm464_vm1, %v539_v54  ;;  %v540_v62 = vpack.c.bf16 %v389_v55, %v389_v55 }
 0x12e   :  { %477 = vst.msk [vmem:[%s923_s3 + $0x30] sm:$0xf] %vm464_vm1, %v547_v56  ;;  %v548_v6 = vpack.c.bf16 %v397_v61, %v397_v61 }
 0x12f   :  { %470 = vst.msk [vmem:[%s923_s3 + $0x14] sm:$0xf] %vm464_vm1, %v540_v62 }
 0x130   :  { %v660_v7 = vpop.eup %659  ;;  %478 = vst.msk [vmem:[%s923_s3 + $0x34] sm:$0xf] %vm464_vm1, %v548_v6 }
 0x131   :  { %v662_v18 = vpop.eup %661  ;;  %v390_v23 = vmul.f32 %v660_v7, %v825_v39 }
 0x132   :  { %v664_v63 = vpop.eup %663  ;;  %v398_v0 = vmul.f32 %v662_v18, %v828_v40 }
 0x133   :  { %v666_v1 = vpop.eup %665  ;;  %v541_v2 = vpack.c.bf16 %v390_v23, %v390_v23  ;;  %v391_v3 = vmul.f32 %v664_v63, %v833_v59 }
 0x134   :  { %v549_v4 = vpack.c.bf16 %v398_v0, %v398_v0  ;;  %v399_v5 = vmul.f32 %v666_v1, %v836_v60 }
 0x135   :  { %471 = vst.msk [vmem:[%s923_s3 + $0x18] sm:$0xf] %vm464_vm1, %v541_v2  ;;  %v542_v8 = vpack.c.bf16 %v391_v3, %v391_v3 }
 0x136   :  { %479 = vst.msk [vmem:[%s923_s3 + $0x38] sm:$0xf] %vm464_vm1, %v549_v4  ;;  %v550_v39 = vpack.c.bf16 %v399_v5, %v399_v5 }
 0x137   :  { %472 = vst.msk [vmem:[%s923_s3 + $0x1c] sm:$0xf] %vm464_vm1, %v542_v8 }
 0x138   :  { %480 = vst.msk [vmem:[%s923_s3 + $0x3c] sm:$0xf] %vm464_vm1, %v550_v39 }

// kernel: _lambda_.18
= control target key start
LH: loop header
LB: loop body
LE: loop exit
PB: predicated region body
PF: predicated region fallthrough
CT: control target
= control target key end

     0   :  { %vm94_vm0 = vcmask 261120   ;;  %vm376_vm1 = vcmask 257024   ;;  %s763_s1 = inlined_call_operand.vmem [shape: bf16[32,32], index: 1, kind: input, shape index: {}]   ;;  %s764_s0 = inlined_call_operand.vmem [shape: bf16[128,32], index: 0, kind: input, shape index: {}]   ;;  %s765_s2 = inlined_call_operand.vmem [shape: f32[1,32], index: 2, kind: input, shape index: {}]   ;;  %s766_s3 = inlined_call_operand.vmem [shape: bf16[128,32], index: 3, kind: output, shape index: {}]  }
   0x1   :  { %v482_v0 = vld [vmem:[%s763_s1] sm:$0xff]   ;;  %v483_v1 = vld [vmem:[%s763_s1 + $0x8] sm:$0xff]   ;;  %v488_v6 = vld [vmem:[%s764_s0 + $0x10] sm:$0xff]  }
   0x2   :  { %458 = vmatprep.subr.bf16.mxu0 %v482_v0  ;;  %478 = vmatprep.subr.bf16.mxu1 %v482_v0  ;;  %v484_v2 = vld [vmem:[%s764_s0] sm:$0xff]   ;;  %v486_v4 = vld [vmem:[%s764_s0 + $0x8] sm:$0xff]   ;;  %v489_v7 = vld [vmem:[%s764_s0 + $0x30] sm:$0xff]  }
   0x3   :  { %459 = vmatpush3.bf16.msra.mxu0 %v482_v0  ;;  %480 = vmatpush3.bf16.msra.mxu1 %v482_v0  ;;  %v485_v3 = vld [vmem:[%s764_s0 + $0x20] sm:$0xff]   ;;  %v487_v5 = vld [vmem:[%s764_s0 + $0x28] sm:$0xff]   ;;  %v490_v8 = vld [vmem:[%s764_s0 + $0x18] sm:$0xff]  }
   0x4   :  { %460 = vmatprep.subr.bf16.mxu0 %v483_v1  ;;  %479 = vmatprep.subr.bf16.mxu1 %v483_v1  ;;  %v491_v9 = vld [vmem:[%s764_s0 + $0x38] sm:$0xff]   ;;  %v617_v10 = vld [vmem:[%s765_s2] ss:$0 sm:$0xff] }
   0x5   :  { %462 = vmatprep.mubr.msk.bf16.mxu0 %vm94_vm0, %v484_v2  ;;  %470 = vmatprep.mubr.msk.bf16.mxu1 %vm94_vm0, %v485_v3 }
   0x7   :  { %461 = vmatpush3.bf16.msra.mxu0 %v483_v1  ;;  %481 = vmatpush3.bf16.msra.mxu1 %v483_v1 }
   0xa   :  { %463 = vmatmul.mubr.msk.bf16.vlgmr.msra.gmra.mrb[0].mxu0 %vm94_vm0, %v486_v4  ;;  %471 = vmatmul.mubr.msk.bf16.vlgmr.msra.gmra.mrb[0].mxu1 %vm94_vm0, %v487_v5 }
   0xb   :  { %466 = vmatprep.mubr.msk.bf16.mxu0 %vm94_vm0, %v488_v6  ;;  %474 = vmatprep.mubr.msk.bf16.mxu1 %vm94_vm0, %v489_v7 }
  0x12   :  { %467 = vmatmul.mubr.msk.bf16.gmra.mrb[4].mxu0 %vm94_vm0, %v490_v8  ;;  %475 = vmatmul.mubr.msk.bf16.gmra.mrb[4].mxu1 %vm94_vm0, %v491_v9 }
  0xdd   :  { %v464_v11 = vpop.f32.mrb[0].mxu0  ;;  %v472_v12 = vpop.f32.mrb[0].mxu1 }
  0xde   :  { %v620_v13 = vadd.f32 %v464_v11, %v617_v10  ;;  %v623_v14 = vadd.f32 %v472_v12, %v617_v10  ;;  %v153_v15 = vpop.f32.mrb[1].mxu0  ;;  %v185_v16 = vpop.f32.mrb[1].mxu1 }
  0xdf   :  { %v626_v17 = vadd.f32 %v617_v10, %v153_v15  ;;  %v629_v18 = vadd.f32 %v617_v10, %v185_v16  ;;  %v465_v19 = vpop.f32.mrb[2].mxu0  ;;  %v473_v20 = vpop.f32.mrb[2].mxu1 }
  0xe0   :  { %v218_v21 = vsub.f32 0.0, %v620_v13  ;;  %v226_v22 = vsub.f32 0.0, %v623_v14  ;;  %v634_v23 = vadd.f32 %v465_v19, %v617_v10  ;;  %v637_v24 = vadd.f32 %v473_v20, %v617_v10  ;;  %v156_v25 = vpop.f32.mrb[3].mxu0  ;;  %v188_v26 = vpop.f32.mrb[3].mxu1 }
  0xe1   :  { %v216_v27 = vsub.f32 0.0, %v626_v17  ;;  %v224_v28 = vsub.f32 0.0, %v629_v18  ;;  %v642_v29 = vadd.f32 %v617_v10, %v156_v25  ;;  %v645_v30 = vadd.f32 %v617_v10, %v188_v26 }
  0xe2   :  { %v236_v31 = vmul.f32 1.442695, %v218_v21  ;;  %v252_v32 = vmul.f32 1.442695, %v226_v22  ;;  %v219_v33 = vsub.f32 0.0, %v634_v23  ;;  %v227_v34 = vsub.f32 0.0, %v637_v24 }
  0xe3   :  { %v232_v35 = vmul.f32 1.442695, %v216_v27  ;;  %v248_v36 = vmul.f32 1.442695, %v224_v28  ;;  %v217_v37 = vsub.f32 0.0, %v642_v29  ;;  %v225_v38 = vsub.f32 0.0, %v645_v30 }
  0xe4   :  { %492 = vpow2.f32 %v236_v31  ;;  %v238_v39 = vmul.f32 1.442695, %v219_v33  ;;  %v254_v40 = vmul.f32 1.442695, %v227_v34 }
  0xe5   :  { %494 = vpow2.f32 %v252_v32  ;;  %v468_v41 = vpop.f32.mrb[4].mxu0  ;;  %v476_v42 = vpop.f32.mrb[4].mxu1  ;;  %v234_v43 = vmul.f32 1.442695, %v217_v37  ;;  %v250_v48 = vmul.f32 1.442695, %v225_v38 }
  0xe6   :  { %496 = vpow2.f32 %v232_v35  ;;  %v652_v44 = vadd.f32 %v468_v41, %v617_v10  ;;  %v655_v45 = vadd.f32 %v476_v42, %v617_v10  ;;  %v169_v46 = vpop.f32.mrb[5].mxu0  ;;  %v201_v47 = vpop.f32.mrb[5].mxu1 }
  0xe7   :  { %498 = vpow2.f32 %v248_v36  ;;  %v658_v49 = vadd.f32 %v617_v10, %v169_v46  ;;  %v661_v50 = vadd.f32 %v617_v10, %v201_v47  ;;  %v469_v51 = vpop.f32.mrb[6].mxu0  ;;  %v477_v52 = vpop.f32.mrb[6].mxu1 }
  0xe8   :  { %500 = vpow2.f32 %v238_v39  ;;  %v222_v53 = vsub.f32 0.0, %v652_v44  ;;  %v230_v54 = vsub.f32 0.0, %v655_v45  ;;  %v666_v55 = vadd.f32 %v469_v51, %v617_v10  ;;  %v172_v56 = vpop.f32.mrb[7].mxu0  ;;  %v204_v57 = vpop.f32.mrb[7].mxu1 }
  0xe9   :  { %502 = vpow2.f32 %v254_v40  ;;  %v220_v58 = vsub.f32 0.0, %v658_v49  ;;  %v228_v59 = vsub.f32 0.0, %v661_v50  ;;  %v672_v12 = vadd.f32 %v477_v52, %v617_v10 }
  0xea   :  { %504 = vpow2.f32 %v234_v43  ;;  %v244_v60 = vmul.f32 1.442695, %v222_v53  ;;  %v260_v61 = vmul.f32 1.442695, %v230_v54  ;;  %v223_v62 = vsub.f32 0.0, %v666_v55 }
  0xeb   :  { %506 = vpow2.f32 %v250_v48  ;;  %v240_v63 = vmul.f32 1.442695, %v220_v58  ;;  %v256_v0 = vmul.f32 1.442695, %v228_v59  ;;  %v675_v19 = vadd.f32 %v617_v10, %v172_v56 }
  0xec   :  { %508 = vpow2.f32 %v244_v60  ;;  %v246_v1 = vmul.f32 1.442695, %v223_v62  ;;  %v678_v22 = vadd.f32 %v617_v10, %v204_v57  ;;  %v231_v31 = vsub.f32 0.0, %v672_v12 }
  0xed   :  { %510 = vpow2.f32 %v260_v61  ;;  %v221_v34 = vsub.f32 0.0, %v675_v19 }
  0xee   :  { %v493_v2 = vpop.eup %492  ;;  %512 = vpow2.f32 %v240_v63  ;;  %v229_v37 = vsub.f32 0.0, %v678_v22  ;;  %v262_v41 = vmul.f32 1.442695, %v231_v31 }
  0xef   :  { %v495_v3 = vpop.eup %494  ;;  %v266_v4 = vadd.f32 1.0, %v493_v2  ;;  %514 = vpow2.f32 %v256_v0  ;;  %v242_v46 = vmul.f32 1.442695, %v221_v34 }
  0xf0   :  { %v497_v5 = vpop.eup %496  ;;  %v274_v6 = vadd.f32 1.0, %v495_v3  ;;  %516 = vpow2.f32 %v246_v1  ;;  %v258_v51 = vmul.f32 1.442695, %v229_v37 }
  0xf1   :  { %v499_v7 = vpop.eup %498  ;;  %518 = vrcp.f32 %v266_v4  ;;  %v264_v8 = vadd.f32 1.0, %v497_v5 }
  0xf2   :  { %v501_v9 = vpop.eup %500  ;;  %520 = vrcp.f32 %v274_v6  ;;  %v272_v11 = vadd.f32 1.0, %v499_v7 }
  0xf3   :  { %v503_v15 = vpop.eup %502  ;;  %522 = vrcp.f32 %v264_v8  ;;  %v267_v16 = vadd.f32 1.0, %v501_v9 }
  0xf4   :  { %v505_v20 = vpop.eup %504  ;;  %524 = vrcp.f32 %v272_v11  ;;  %v275_v21 = vadd.f32 1.0, %v503_v15 }
  0xf5   :  { %v507_v25 = vpop.eup %506  ;;  %526 = vrcp.f32 %v267_v16  ;;  %v265_v26 = vadd.f32 1.0, %v505_v20 }
  0xf6   :  { %v509_v27 = vpop.eup %508  ;;  %528 = vrcp.f32 %v275_v21  ;;  %v273_v28 = vadd.f32 1.0, %v507_v25 }
  0xf7   :  { %v511_v32 = vpop.eup %510  ;;  %530 = vrcp.f32 %v265_v26  ;;  %v270_v33 = vadd.f32 1.0, %v509_v27 }
  0xf8   :  { %v513_v35 = vpop.eup %512  ;;  %532 = vrcp.f32 %v273_v28  ;;  %v278_v36 = vadd.f32 1.0, %v511_v32 }
  0xf9   :  { %v515_v10 = vpop.eup %514  ;;  %534 = vrcp.f32 %v270_v33  ;;  %v268_v38 = vadd.f32 1.0, %v513_v35 }
  0xfa   :  { %v517_v39 = vpop.eup %516  ;;  %536 = vrcp.f32 %v278_v36  ;;  %v276_v40 = vadd.f32 1.0, %v515_v10 }
  0xfb   :  { %v519_v42 = vpop.eup %518  ;;  %538 = vrcp.f32 %v268_v38  ;;  %v271_v43 = vadd.f32 1.0, %v517_v39 }
  0xfc   :  { %v521_v47 = vpop.eup %520  ;;  %v298_v48 = vmul.f32 %v519_v42, %v620_v13  ;;  %540 = vrcp.f32 %v276_v40 }
  0xfd   :  { %v523_v52 = vpop.eup %522  ;;  %v306_v53 = vmul.f32 %v521_v47, %v623_v14  ;;  %542 = vrcp.f32 %v271_v43 }
  0xfe   :  { %v525_v54 = vpop.eup %524  ;;  %v434_v56 = vpack.c.bf16 %v298_v48, %v298_v48  ;;  %v296_v57 = vmul.f32 %v523_v52, %v626_v17  ;;  %544 = vpow2.f32 %v262_v41 }
  0xff   :  { %v527_v58 = vpop.eup %526  ;;  %v442_v59 = vpack.c.bf16 %v306_v53, %v306_v53  ;;  %v304_v60 = vmul.f32 %v525_v54, %v629_v18  ;;  %546 = vpow2.f32 %v242_v46 }
 0x100   :  { %v529_v61 = vpop.eup %528  ;;  %379 = vst.msk [vmem:[%s766_s3 + $0x8] sm:$0xf] %vm376_vm1, %v434_v56  ;;  %v432_v13 = vpack.c.bf16 %v296_v57, %v296_v57  ;;  %v299_v14 = vmul.f32 %v527_v58, %v634_v23  ;;  %548 = vpow2.f32 %v258_v51 }
 0x101   :  { %v531_v62 = vpop.eup %530  ;;  %387 = vst.msk [vmem:[%s766_s3 + $0x28] sm:$0xf] %vm376_vm1, %v442_v59  ;;  %v440_v17 = vpack.c.bf16 %v304_v60, %v304_v60  ;;  %v307_v18 = vmul.f32 %v529_v61, %v637_v24 }
 0x102   :  { %v533_v63 = vpop.eup %532  ;;  %377 = vst.msk [vmem:[%s766_s3] sm:$0xf] %vm376_vm1, %v432_v13  ;;  %v435_v0 = vpack.c.bf16 %v299_v14, %v299_v14  ;;  %v297_v1 = vmul.f32 %v531_v62, %v642_v29 }
 0x103   :  { %v535_v23 = vpop.eup %534  ;;  %385 = vst.msk [vmem:[%s766_s3 + $0x20] sm:$0xf] %vm376_vm1, %v440_v17  ;;  %v443_v2 = vpack.c.bf16 %v307_v18, %v307_v18  ;;  %v305_v3 = vmul.f32 %v533_v63, %v645_v30 }
 0x104   :  { %v537_v4 = vpop.eup %536  ;;  %380 = vst.msk [vmem:[%s766_s3 + $0xc] sm:$0xf] %vm376_vm1, %v435_v0  ;;  %v433_v24 = vpack.c.bf16 %v297_v1, %v297_v1  ;;  %v302_v5 = vmul.f32 %v535_v23, %v652_v44 }
 0x105   :  { %v539_v6 = vpop.eup %538  ;;  %388 = vst.msk [vmem:[%s766_s3 + $0x2c] sm:$0xf] %vm376_vm1, %v443_v2  ;;  %v441_v29 = vpack.c.bf16 %v305_v3, %v305_v3  ;;  %v310_v7 = vmul.f32 %v537_v4, %v655_v45 }
 0x106   :  { %v541_v8 = vpop.eup %540  ;;  %378 = vst.msk [vmem:[%s766_s3 + $0x4] sm:$0xf] %vm376_vm1, %v433_v24  ;;  %v438_v30 = vpack.c.bf16 %v302_v5, %v302_v5  ;;  %v300_v9 = vmul.f32 %v539_v6, %v658_v49 }
 0x107   :  { %v543_v11 = vpop.eup %542  ;;  %386 = vst.msk [vmem:[%s766_s3 + $0x24] sm:$0xf] %vm376_vm1, %v441_v29  ;;  %v446_v44 = vpack.c.bf16 %v310_v7, %v310_v7  ;;  %v308_v15 = vmul.f32 %v541_v8, %v661_v50 }
 0x108   :  { %v545_v16 = vpop.eup %544  ;;  %383 = vst.msk [vmem:[%s766_s3 + $0x18] sm:$0xf] %vm376_vm1, %v438_v30  ;;  %v436_v45 = vpack.c.bf16 %v300_v9, %v300_v9  ;;  %v303_v20 = vmul.f32 %v543_v11, %v666_v55 }
 0x109   :  { %v547_v21 = vpop.eup %546  ;;  %391 = vst.msk [vmem:[%s766_s3 + $0x38] sm:$0xf] %vm376_vm1, %v446_v44  ;;  %v444_v49 = vpack.c.bf16 %v308_v15, %v308_v15  ;;  %v279_v25 = vadd.f32 1.0, %v545_v16 }
 0x10a   :  { %v549_v26 = vpop.eup %548  ;;  %381 = vst.msk [vmem:[%s766_s3 + $0x10] sm:$0xf] %vm376_vm1, %v436_v45  ;;  %v439_v50 = vpack.c.bf16 %v303_v20, %v303_v20  ;;  %v269_v27 = vadd.f32 1.0, %v547_v21 }
 0x10b   :  { %389 = vst.msk [vmem:[%s766_s3 + $0x30] sm:$0xf] %vm376_vm1, %v444_v49  ;;  %550 = vrcp.f32 %v279_v25  ;;  %v277_v55 = vadd.f32 1.0, %v549_v26 }
 0x10c   :  { %384 = vst.msk [vmem:[%s766_s3 + $0x1c] sm:$0xf] %vm376_vm1, %v439_v50  ;;  %552 = vrcp.f32 %v269_v27 }
 0x10d   :  { %554 = vrcp.f32 %v277_v55 }
 0x115   :  { %v551_v28 = vpop.eup %550 }
 0x116   :  { %v553_v31 = vpop.eup %552  ;;  %v311_v32 = vmul.f32 %v551_v28, %v672_v12 }
 0x117   :  { %v555_v33 = vpop.eup %554  ;;  %v301_v34 = vmul.f32 %v553_v31, %v675_v19 }
 0x118   :  { %v447_v35 = vpack.c.bf16 %v311_v32, %v311_v32  ;;  %v309_v36 = vmul.f32 %v555_v33, %v678_v22 }
 0x119   :  { %v437_v37 = vpack.c.bf16 %v301_v34, %v301_v34 }
 0x11a   :  { %392 = vst.msk [vmem:[%s766_s3 + $0x3c] sm:$0xf] %vm376_vm1, %v447_v35  ;;  %v445_v10 = vpack.c.bf16 %v309_v36, %v309_v36 }
 0x11b   :  { %382 = vst.msk [vmem:[%s766_s3 + $0x14] sm:$0xf] %vm376_vm1, %v437_v37 }
 0x11c   :  { %390 = vst.msk [vmem:[%s766_s3 + $0x34] sm:$0xf] %vm376_vm1, %v445_v10 }

// kernel: _lambda_.21
= control target key start
LH: loop header
LB: loop body
LE: loop exit
PB: predicated region body
PF: predicated region fallthrough
CT: control target
= control target key end

     0   :  { %vm105_vm0 = vcmask 130048   ;;  %vm279_vm1 = vcmask 261120   ;;  %vm584_vm2 = vcmask 257024   ;;  %s1081_s2 = inlined_call_operand.vmem [shape: bf16[32,32], index: 2, kind: input, shape index: {}]   ;;  %s1082_s3 = inlined_call_operand.vmem [shape: bf16[16,32], index: 3, kind: input, shape index: {}]   ;;  %s1083_s1 = inlined_call_operand.vmem [shape: bf16[128,16], index: 1, kind: input, shape index: {}]   ;;  %s1084_s0 = inlined_call_operand.vmem [shape: bf16[128,32], index: 0, kind: input, shape index: {}]   ;;  %s1085_s4 = inlined_call_operand.vmem [shape: f32[1,32], index: 4, kind: input, shape index: {}]   ;;  %s1086_s5 = inlined_call_operand.vmem [shape: bf16[128,32], index: 5, kind: output, shape index: {}]  }
   0x1   :  { %v746_v0 = vld [vmem:[%s1081_s2] sm:$0xff]   ;;  %v749_v3 = vld [vmem:[%s1081_s2 + $0x8] sm:$0xff]   ;;  %v753_v7 = vld [vmem:[%s1083_s1 + $0x10] sm:$0xff]  }
   0x2   :  { %v747_v1 = vld [vmem:[%s1082_s3] sm:$0xff]   ;;  %710 = vmatprep.subr.bf16.mxu0 %v746_v0  ;;  %v750_v4 = vld [vmem:[%s1083_s1 + $0x8] sm:$0xff]   ;;  %v755_v8 = vld [vmem:[%s1084_s0 + $0x10] sm:$0xff]  }
   0x3   :  { %v748_v2 = vld [vmem:[%s1083_s1] sm:$0xff]   ;;  %692 = vmatprep.subr.bf16.mxu1 %v747_v1  ;;  %711 = vmatpush3.bf16.msra.mxu0 %v746_v0  ;;  %v752_v6 = vld [vmem:[%s1084_s0 + $0x8] sm:$0xff]   ;;  %v754_v9 = vld [vmem:[%s1083_s1 + $0x18] sm:$0xff]  }
   0x4   :  { %693 = vmatpush3.bf16.msra.mxu1 %v747_v1  ;;  %694 = vmatprep.mubr.msk.bf16.mxu1 %vm105_vm0, %v748_v2  ;;  %v751_v5 = vld [vmem:[%s1084_s0] sm:$0xff]   ;;  %v756_v11 = vld [vmem:[%s1084_s0 + $0x18] sm:$0xff]   ;;  %v758_v13 = vld [vmem:[%s1083_s1 + $0x28] sm:$0xff]  }
   0x5   :  { %712 = vmatprep.subr.bf16.mxu0 %v749_v3  ;;  %714 = vmatprep.mubr.msk.bf16.mxu0 %vm279_vm1, %v751_v5  ;;  %v757_v10 = vld [vmem:[%s1083_s1 + $0x20] sm:$0xff]   ;;  %v761_v14 = vld [vmem:[%s1083_s1 + $0x30] sm:$0xff]   ;;  %v760_v15 = vld [vmem:[%s1084_s0 + $0x28] sm:$0xff]  }
   0x6   :  { %v759_v12 = vld [vmem:[%s1084_s0 + $0x20] sm:$0xff]   ;;  %v763_v16 = vld [vmem:[%s1084_s0 + $0x30] sm:$0xff]   ;;  %v762_v17 = vld [vmem:[%s1083_s1 + $0x38] sm:$0xff]  }
   0x7   :  { %695 = vmatmul.mubr.msk.bf16.vlgmr.msra.gmra.mrb[0].mxu1 %vm105_vm0, %v750_v4  ;;  %713 = vmatpush3.bf16.msra.mxu0 %v749_v3  ;;  %v764_v18 = vld [vmem:[%s1084_s0 + $0x38] sm:$0xff]   ;;  %v935_v24 = vld [vmem:[%s1085_s4] ss:$0 sm:$0xff] }
   0x8   :  { %698 = vmatprep.mubr.msk.bf16.mxu1 %vm105_vm0, %v753_v7 }
   0xa   :  { %715 = vmatmul.mubr.msk.bf16.vlgmr.msra.gmra.mrb[0].mxu0 %vm279_vm1, %v752_v6 }
   0xb   :  { %718 = vmatprep.mubr.msk.bf16.mxu0 %vm279_vm1, %v755_v8 }
   0xf   :  { %699 = vmatmul.mubr.msk.bf16.gmra.mrb[4].mxu1 %vm105_vm0, %v754_v9 }
  0x10   :  { %702 = vmatprep.mubr.msk.bf16.mxu1 %vm105_vm0, %v757_v10 }
  0x12   :  { %719 = vmatmul.mubr.msk.bf16.gmra.mrb[4].mxu0 %vm279_vm1, %v756_v11 }
  0x13   :  { %722 = vmatprep.mubr.msk.bf16.mxu0 %vm279_vm1, %v759_v12 }
  0x17   :  { %703 = vmatmul.mubr.msk.bf16.gmra.mrb[8].mxu1 %vm105_vm0, %v758_v13 }
  0x18   :  { %706 = vmatprep.mubr.msk.bf16.mxu1 %vm105_vm0, %v761_v14 }
  0x1a   :  { %723 = vmatmul.mubr.msk.bf16.gmra.mrb[8].mxu0 %vm279_vm1, %v760_v15 }
  0x1b   :  { %726 = vmatprep.mubr.msk.bf16.mxu0 %vm279_vm1, %v763_v16 }
  0x1f   :  { %707 = vmatmul.mubr.msk.bf16.gmra.mrb[12].mxu1 %vm105_vm0, %v762_v17 }
  0x22   :  { %727 = vmatmul.mubr.msk.bf16.gmra.mrb[12].mxu0 %vm279_vm1, %v764_v18 }
  0xda   :  { %v696_v19 = vpop.f32.mrb[0].mxu1 }
  0xdb   :  { %v164_v20 = vpop.f32.mrb[1].mxu1 }
  0xdc   :  { %v697_v21 = vpop.f32.mrb[2].mxu1 }
  0xdd   :  { %v167_v22 = vpop.f32.mrb[3].mxu1  ;;  %v716_v23 = vpop.f32.mrb[0].mxu0 }
  0xde   :  { %v347_v25 = vadd.f32 %v716_v23, %v696_v19  ;;  %v338_v26 = vpop.f32.mrb[1].mxu0 }
  0xdf   :  { %v339_v27 = vadd.f32 %v338_v26, %v164_v20  ;;  %v717_v28 = vpop.f32.mrb[2].mxu0 }
  0xe0   :  { %v938_v29 = vadd.f32 %v935_v24, %v347_v25  ;;  %v350_v30 = vadd.f32 %v717_v28, %v697_v21  ;;  %v341_v31 = vpop.f32.mrb[3].mxu0 }
  0xe1   :  { %v941_v32 = vadd.f32 %v935_v24, %v339_v27  ;;  %v342_v33 = vadd.f32 %v341_v31, %v167_v22 }
  0xe2   :  { %v426_v34 = vsub.f32 0.0, %v938_v29  ;;  %v945_v35 = vadd.f32 %v935_v24, %v350_v30  ;;  %v700_v36 = vpop.f32.mrb[4].mxu1 }
  0xe3   :  { %v424_v37 = vsub.f32 0.0, %v941_v32  ;;  %v949_v38 = vadd.f32 %v935_v24, %v342_v33  ;;  %v180_v39 = vpop.f32.mrb[5].mxu1 }
  0xe4   :  { %v444_v40 = vmul.f32 1.442695, %v426_v34  ;;  %v427_v41 = vsub.f32 0.0, %v945_v35  ;;  %v701_v42 = vpop.f32.mrb[6].mxu1 }
  0xe5   :  { %v440_v43 = vmul.f32 1.442695, %v424_v37  ;;  %v425_v44 = vsub.f32 0.0, %v949_v38  ;;  %v183_v45 = vpop.f32.mrb[7].mxu1  ;;  %v720_v46 = vpop.f32.mrb[4].mxu0 }
  0xe6   :  { %765 = vpow2.f32 %v444_v40  ;;  %v446_v47 = vmul.f32 1.442695, %v427_v41  ;;  %v363_v48 = vadd.f32 %v720_v46, %v700_v36  ;;  %v354_v49 = vpop.f32.mrb[5].mxu0 }
  0xe7   :  { %767 = vpow2.f32 %v440_v43  ;;  %v442_v50 = vmul.f32 1.442695, %v425_v44  ;;  %v355_v51 = vadd.f32 %v354_v49, %v180_v39  ;;  %v721_v52 = vpop.f32.mrb[6].mxu0 }
  0xe8   :  { %769 = vpow2.f32 %v446_v47  ;;  %v954_v53 = vadd.f32 %v935_v24, %v363_v48  ;;  %v366_v54 = vadd.f32 %v721_v52, %v701_v42  ;;  %v357_v55 = vpop.f32.mrb[7].mxu0 }
  0xe9   :  { %771 = vpow2.f32 %v442_v50  ;;  %v957_v56 = vadd.f32 %v935_v24, %v355_v51  ;;  %v358_v57 = vadd.f32 %v357_v55, %v183_v45 }
  0xea   :  { %v430_v58 = vsub.f32 0.0, %v954_v53  ;;  %v961_v59 = vadd.f32 %v935_v24, %v366_v54  ;;  %v704_v60 = vpop.f32.mrb[8].mxu1 }
  0xeb   :  { %v428_v61 = vsub.f32 0.0, %v957_v56  ;;  %v965_v62 = vadd.f32 %v935_v24, %v358_v57  ;;  %v196_v63 = vpop.f32.mrb[9].mxu1 }
  0xec   :  { %v452_v0 = vmul.f32 1.442695, %v430_v58  ;;  %v431_v1 = vsub.f32 0.0, %v961_v59  ;;  %v705_v2 = vpop.f32.mrb[10].mxu1 }
  0xed   :  { %v448_v3 = vmul.f32 1.442695, %v428_v61  ;;  %v429_v4 = vsub.f32 0.0, %v965_v62  ;;  %v199_v5 = vpop.f32.mrb[11].mxu1  ;;  %v724_v6 = vpop.f32.mrb[8].mxu0 }
  0xee   :  { %773 = vpow2.f32 %v452_v0  ;;  %v454_v7 = vmul.f32 1.442695, %v431_v1  ;;  %v379_v8 = vadd.f32 %v724_v6, %v704_v60  ;;  %v370_v9 = vpop.f32.mrb[9].mxu0 }
  0xef   :  { %775 = vpow2.f32 %v448_v3  ;;  %v450_v10 = vmul.f32 1.442695, %v429_v4  ;;  %v371_v11 = vadd.f32 %v370_v9, %v196_v63  ;;  %v725_v12 = vpop.f32.mrb[10].mxu0 }
  0xf0   :  { %v766_v13 = vpop.eup %765  ;;  %777 = vpow2.f32 %v454_v7  ;;  %v970_v14 = vadd.f32 %v935_v24, %v379_v8  ;;  %v382_v15 = vadd.f32 %v725_v12, %v705_v2  ;;  %v373_v16 = vpop.f32.mrb[11].mxu0 }
  0xf1   :  { %v768_v17 = vpop.eup %767  ;;  %v474_v18 = vadd.f32 1.0, %v766_v13  ;;  %779 = vpow2.f32 %v450_v10  ;;  %v973_v19 = vadd.f32 %v935_v24, %v371_v11  ;;  %v374_v20 = vadd.f32 %v373_v16, %v199_v5 }
  0xf2   :  { %v770_v21 = vpop.eup %769  ;;  %v472_v22 = vadd.f32 1.0, %v768_v17  ;;  %v434_v23 = vsub.f32 0.0, %v970_v14  ;;  %v977_v25 = vadd.f32 %v935_v24, %v382_v15  ;;  %v708_v26 = vpop.f32.mrb[12].mxu1 }
  0xf3   :  { %v772_v27 = vpop.eup %771  ;;  %781 = vrcp.f32 %v474_v18  ;;  %v475_v28 = vadd.f32 1.0, %v770_v21  ;;  %v432_v30 = vsub.f32 0.0, %v973_v19  ;;  %v981_v31 = vadd.f32 %v935_v24, %v374_v20  ;;  %v212_v33 = vpop.f32.mrb[13].mxu1 }
  0xf4   :  { %783 = vrcp.f32 %v472_v22  ;;  %v473_v34 = vadd.f32 1.0, %v772_v27  ;;  %v460_v36 = vmul.f32 1.442695, %v434_v23  ;;  %v435_v37 = vsub.f32 0.0, %v977_v25  ;;  %v709_v39 = vpop.f32.mrb[14].mxu1 }
  0xf5   :  { %785 = vrcp.f32 %v475_v28  ;;  %v456_v40 = vmul.f32 1.442695, %v432_v30  ;;  %v433_v41 = vsub.f32 0.0, %v981_v31  ;;  %v215_v42 = vpop.f32.mrb[15].mxu1  ;;  %v728_v43 = vpop.f32.mrb[12].mxu0 }
  0xf6   :  { %787 = vrcp.f32 %v473_v34  ;;  %v462_v44 = vmul.f32 1.442695, %v435_v37  ;;  %v395_v45 = vadd.f32 %v728_v43, %v708_v26  ;;  %v386_v46 = vpop.f32.mrb[13].mxu0 }
  0xf7   :  { %789 = vpow2.f32 %v460_v36  ;;  %v458_v47 = vmul.f32 1.442695, %v433_v41  ;;  %v387_v48 = vadd.f32 %v386_v46, %v212_v33  ;;  %v729_v49 = vpop.f32.mrb[14].mxu0 }
  0xf8   :  { %v774_v50 = vpop.eup %773  ;;  %791 = vpow2.f32 %v456_v40  ;;  %v986_v51 = vadd.f32 %v935_v24, %v395_v45  ;;  %v398_v52 = vadd.f32 %v729_v49, %v709_v39  ;;  %v389_v54 = vpop.f32.mrb[15].mxu0 }
  0xf9   :  { %v776_v55 = vpop.eup %775  ;;  %v478_v57 = vadd.f32 1.0, %v774_v50  ;;  %793 = vpow2.f32 %v462_v44  ;;  %v989_v58 = vadd.f32 %v935_v24, %v387_v48  ;;  %v390_v60 = vadd.f32 %v389_v54, %v215_v42 }
  0xfa   :  { %v778_v61 = vpop.eup %777  ;;  %v476_v63 = vadd.f32 1.0, %v776_v55  ;;  %795 = vpow2.f32 %v458_v47  ;;  %v438_v0 = vsub.f32 0.0, %v986_v51  ;;  %v993_v1 = vadd.f32 %v935_v24, %v398_v52 }
  0xfb   :  { %v780_v2 = vpop.eup %779  ;;  %797 = vrcp.f32 %v478_v57  ;;  %v479_v3 = vadd.f32 1.0, %v778_v61  ;;  %v436_v4 = vsub.f32 0.0, %v989_v58  ;;  %v997_v5 = vadd.f32 %v935_v24, %v390_v60 }
  0xfc   :  { %799 = vrcp.f32 %v476_v63  ;;  %v477_v6 = vadd.f32 1.0, %v780_v2  ;;  %v468_v7 = vmul.f32 1.442695, %v438_v0  ;;  %v439_v8 = vsub.f32 0.0, %v993_v1 }
  0xfd   :  { %v782_v9 = vpop.eup %781  ;;  %801 = vrcp.f32 %v479_v3  ;;  %v464_v10 = vmul.f32 1.442695, %v436_v4  ;;  %v437_v11 = vsub.f32 0.0, %v997_v5 }
  0xfe   :  { %v784_v12 = vpop.eup %783  ;;  %v506_v13 = vmul.f32 %v782_v9, %v938_v29  ;;  %803 = vrcp.f32 %v477_v6  ;;  %v470_v15 = vmul.f32 1.442695, %v439_v8 }
  0xff   :  { %v786_v16 = vpop.eup %785  ;;  %v504_v24 = vmul.f32 %v784_v12, %v941_v32  ;;  %805 = vpow2.f32 %v468_v7  ;;  %v466_v17 = vmul.f32 1.442695, %v437_v11 }
 0x100   :  { %v788_v18 = vpop.eup %787  ;;  %v659_v20 = vpack.c.bf16 %v506_v13, %v506_v13  ;;  %v507_v21 = vmul.f32 %v786_v16, %v945_v35  ;;  %807 = vpow2.f32 %v464_v10 }
 0x101   :  { %v790_v22 = vpop.eup %789  ;;  %v657_v23 = vpack.c.bf16 %v504_v24, %v504_v24  ;;  %v505_v26 = vmul.f32 %v788_v18, %v949_v38  ;;  %809 = vpow2.f32 %v470_v15 }
 0x102   :  { %v792_v27 = vpop.eup %791  ;;  %587 = vst.msk [vmem:[%s1086_s5 + $0x8] sm:$0xf] %vm584_vm2, %v659_v20  ;;  %v660_v29 = vpack.c.bf16 %v507_v21, %v507_v21  ;;  %v482_v32 = vadd.f32 1.0, %v790_v22  ;;  %811 = vpow2.f32 %v466_v17 }
 0x103   :  { %v794_v28 = vpop.eup %793  ;;  %585 = vst.msk [vmem:[%s1086_s5] sm:$0xf] %vm584_vm2, %v657_v23  ;;  %v658_v35 = vpack.c.bf16 %v505_v26, %v505_v26  ;;  %v480_v30 = vadd.f32 1.0, %v792_v27 }
 0x104   :  { %v796_v33 = vpop.eup %795  ;;  %588 = vst.msk [vmem:[%s1086_s5 + $0xc] sm:$0xf] %vm584_vm2, %v660_v29  ;;  %813 = vrcp.f32 %v482_v32  ;;  %v483_v38 = vadd.f32 1.0, %v794_v28 }
 0x105   :  { %v798_v34 = vpop.eup %797  ;;  %586 = vst.msk [vmem:[%s1086_s5 + $0x4] sm:$0xf] %vm584_vm2, %v658_v35  ;;  %815 = vrcp.f32 %v480_v30  ;;  %v481_v36 = vadd.f32 1.0, %v796_v33 }
 0x106   :  { %v800_v37 = vpop.eup %799  ;;  %v510_v39 = vmul.f32 %v798_v34, %v954_v53  ;;  %817 = vrcp.f32 %v483_v38 }
 0x107   :  { %v802_v40 = vpop.eup %801  ;;  %v508_v41 = vmul.f32 %v800_v37, %v957_v56  ;;  %819 = vrcp.f32 %v481_v36 }
 0x108   :  { %v804_v42 = vpop.eup %803  ;;  %v663_v43 = vpack.c.bf16 %v510_v39, %v510_v39  ;;  %v511_v44 = vmul.f32 %v802_v40, %v961_v59 }
 0x109   :  { %v806_v45 = vpop.eup %805  ;;  %v661_v46 = vpack.c.bf16 %v508_v41, %v508_v41  ;;  %v509_v47 = vmul.f32 %v804_v42, %v965_v62 }
 0x10a   :  { %v808_v48 = vpop.eup %807  ;;  %591 = vst.msk [vmem:[%s1086_s5 + $0x18] sm:$0xf] %vm584_vm2, %v663_v43  ;;  %v664_v53 = vpack.c.bf16 %v511_v44, %v511_v44  ;;  %v486_v49 = vadd.f32 1.0, %v806_v45 }
 0x10b   :  { %v810_v50 = vpop.eup %809  ;;  %589 = vst.msk [vmem:[%s1086_s5 + $0x10] sm:$0xf] %vm584_vm2, %v661_v46  ;;  %v662_v56 = vpack.c.bf16 %v509_v47, %v509_v47  ;;  %v484_v59 = vadd.f32 1.0, %v808_v48 }
 0x10c   :  { %v812_v52 = vpop.eup %811  ;;  %592 = vst.msk [vmem:[%s1086_s5 + $0x1c] sm:$0xf] %vm584_vm2, %v664_v53  ;;  %821 = vrcp.f32 %v486_v49  ;;  %v487_v62 = vadd.f32 1.0, %v810_v50 }
 0x10d   :  { %590 = vst.msk [vmem:[%s1086_s5 + $0x14] sm:$0xf] %vm584_vm2, %v662_v56  ;;  %823 = vrcp.f32 %v484_v59  ;;  %v485_v54 = vadd.f32 1.0, %v812_v52 }
 0x10e   :  { %v814_v55 = vpop.eup %813  ;;  %825 = vrcp.f32 %v487_v62 }
 0x10f   :  { %v816_v57 = vpop.eup %815  ;;  %v514_v60 = vmul.f32 %v814_v55, %v970_v14  ;;  %827 = vrcp.f32 %v485_v54 }
 0x110   :  { %v818_v61 = vpop.eup %817  ;;  %v512_v63 = vmul.f32 %v816_v57, %v973_v19 }
 0x111   :  { %v820_v0 = vpop.eup %819  ;;  %v667_v2 = vpack.c.bf16 %v514_v60, %v514_v60  ;;  %v515_v3 = vmul.f32 %v818_v61, %v977_v25 }
 0x112   :  { %v665_v4 = vpack.c.bf16 %v512_v63, %v512_v63  ;;  %v513_v6 = vmul.f32 %v820_v0, %v981_v31 }
 0x113   :  { %595 = vst.msk [vmem:[%s1086_s5 + $0x28] sm:$0xf] %vm584_vm2, %v667_v2  ;;  %v668_v7 = vpack.c.bf16 %v515_v3, %v515_v3 }
 0x114   :  { %593 = vst.msk [vmem:[%s1086_s5 + $0x20] sm:$0xf] %vm584_vm2, %v665_v4  ;;  %v666_v14 = vpack.c.bf16 %v513_v6, %v513_v6 }
 0x115   :  { %596 = vst.msk [vmem:[%s1086_s5 + $0x2c] sm:$0xf] %vm584_vm2, %v668_v7 }
 0x116   :  { %v822_v19 = vpop.eup %821  ;;  %594 = vst.msk [vmem:[%s1086_s5 + $0x24] sm:$0xf] %vm584_vm2, %v666_v14 }
 0x117   :  { %v824_v25 = vpop.eup %823  ;;  %v518_v31 = vmul.f32 %v822_v19, %v986_v51 }
 0x118   :  { %v826_v8 = vpop.eup %825  ;;  %v516_v9 = vmul.f32 %v824_v25, %v989_v58 }
 0x119   :  { %v828_v10 = vpop.eup %827  ;;  %v671_v11 = vpack.c.bf16 %v518_v31, %v518_v31  ;;  %v519_v12 = vmul.f32 %v826_v8, %v993_v1 }
 0x11a   :  { %v669_v13 = vpack.c.bf16 %v516_v9, %v516_v9  ;;  %v517_v15 = vmul.f32 %v828_v10, %v997_v5 }
 0x11b   :  { %599 = vst.msk [vmem:[%s1086_s5 + $0x38] sm:$0xf] %vm584_vm2, %v671_v11  ;;  %v672_v16 = vpack.c.bf16 %v519_v12, %v519_v12 }
 0x11c   :  { %597 = vst.msk [vmem:[%s1086_s5 + $0x30] sm:$0xf] %vm584_vm2, %v669_v13  ;;  %v670_v51 = vpack.c.bf16 %v517_v15, %v517_v15 }
 0x11d   :  { %600 = vst.msk [vmem:[%s1086_s5 + $0x3c] sm:$0xf] %vm584_vm2, %v672_v16 }
 0x11e   :  { %598 = vst.msk [vmem:[%s1086_s5 + $0x34] sm:$0xf] %vm584_vm2, %v670_v51 }

// kernel: _lambda_.19
= control target key start
LH: loop header
LB: loop body
LE: loop exit
PB: predicated region body
PF: predicated region fallthrough
CT: control target
= control target key end

     0   :  { %v5171_v0 = vmov 0.0   ;;  %vm3648_vm0 = vmmov 0   ;;  %vm128_vm1 = vsmask.f32 7424  ;;  %vm238_vm2 = vcmask 130048   ;;  %s5146_s2 = inlined_call_operand.vmem [shape: bf16[9,16,16], index: 2, kind: input, shape index: {}]   ;;  %s5147_s0 = inlined_call_operand.vmem [shape: bf16[400,16], index: 0, kind: input, shape index: {}, may-alias: {0,1}]   ;;  %s5148_s1 = inlined_call_operand.vmem [shape: bf16[400,16], index: 1, kind: input, shape index: {}, may-alias: {0,1}]   ;;  %s5149_s3 = inlined_call_operand.vmem [shape: f32[1,16], index: 3, kind: input, shape index: {}]   ;;  %s5150_s4 = inlined_call_operand.vmem [shape: bf16[200,16], index: 4, kind: output, shape index: {}]  }
   0x1   :  { %3021 = vmatprep.subr.bf16.mxu0 %v5171_v0  ;;  %3507 = vmatprep.subr.bf16.mxu1 %v5171_v0  ;;  %v3511_v1 = vld [vmem:[%s5146_s2 + $0x8] sm:$0xff]   ;;  %v40_v2 = vld [vmem:[%s5147_s0] sm:$0xf]  ;;  %v41_v3 = vld [vmem:[%s5147_s0 + $0x4] sm:$0xf]  ;;  %vm596_vm3 = vcmask 1046528  }
   0x2   :  { %3023 = vmatprep.mubr.msk.bf16.mxu0 %vm3648_vm0, %v5171_v0  ;;  %3051 = vmatprep.mubr.msk.bf16.mxu1 %vm3648_vm0, %v5171_v0  ;;  %v42_v4 = vld [vmem:[%s5147_s0 + $0x8] sm:$0xf]  ;;  %v3695_v5 = vld [vmem:[%s5147_s0 + $0xc] sm:$0xf]  ;;  %v3697_v6 = vcombine.low %v40_v2, %v41_v3  ;;  %v3704_v8 = vld [vmem:[%s5147_s0 + $0x38] sm:$0xf] }
   0x3   :  { %3022 = vmatpush3.bf16.msra.mxu0 %v3511_v1  ;;  %3508 = vmatpush3.bf16.msra.mxu1 %v3511_v1  ;;  %v3699_v7 = vcombine.low %v41_v3, %v42_v4  ;;  %v3709_v9 = vld [vmem:[%s5147_s0 + $0x3c] sm:$0xf]  ;;  %v3713_v10 = vcombine.low %v42_v4, %v3695_v5  ;;  %v3718_v11 = vld [vmem:[%s5147_s0 + $0x40] sm:$0xf]  ;;  %v3723_v12 = vld [vmem:[%s5147_s0 + $0x44] sm:$0xf] }
   0x4   :  { %3129 = vmatprep.subr.bf16.mxu0 %v5171_v0  ;;  %v3727_v13 = vcombine.low %v3704_v8, %v3709_v9  ;;  %3075 = vmatprep.subr.bf16.mxu1 %v5171_v0  ;;  %v130_v14 = vshrl.u32 %v3697_v6, 16  ;;  %v132_v15 = vshll.u32 %v3697_v6, 16  ;;  %v3734_v16 = vcombine.low %v3718_v11, %v3723_v12  ;;  %v3743_v22 = vld [vmem:[%s5147_s0 + $0x10] sm:$0xf]  ;;  %v3757_v26 = vld [vmem:[%s5147_s0 + $0x14] sm:$0xf] }
   0x5   :  { %5176 = vst [vmem:[#allocation2_spill] sm:$0xff] %v3713_v10  ;;  %v137_v17 = vshll.u32 %v3713_v10, 16  ;;  %v3517_v25 = vld [vmem:[%s5146_s2 + $0x10] sm:$0xff]   ;;  %v3763_v29 = vcombine.low %v3743_v22, %v3757_v26  ;;  %v141_v30 = vshrl.u32 %v3713_v10, 16  ;;  %v3769_v31 = vld [vmem:[%s5147_s0 + $0x48] sm:$0xf] }
   0x6   :  { %v5161_v18 = vshll.u32 %v3727_v13, 16  ;;  %v5162_v19 = vshrl.u32 %v3727_v13, 16  ;;  %v134_v20 = vrot.slane %v132_v15, 1  ;;  %v5159_v21 = vshll.u32 %v3734_v16, 16  ;;  %v3774_v32 = vld [vmem:[%s5147_s0 + $0x4c] sm:$0xf] }
   0x7   :  { %v139_v23 = vrot.slane %v137_v17, 1  ;;  %5177 = vst [vmem:[#allocation3_spill] sm:$0xff] %v3763_v29  ;;  %v3518_v34 = vld [vmem:[%s5146_s2] sm:$0xff]   ;;  %v3784_v35 = vcombine.low %v3769_v31, %v3774_v32  ;;  %v5160_v36 = vshrl.u32 %v3734_v16, 16  ;;  %v3790_v37 = vld [vmem:[%s5147_s0 + $0x18] sm:$0xf] }
   0x8   :  { %v3749_v24 = vrot.slane %v5161_v18, 1  ;;  %v135_v27 = vor.u32 %v134_v20, %v130_v14  ;;  %v195_v28 = vrot.slane %v5159_v21, 1  ;;  %v3795_v38 = vld [vmem:[%s5147_s0 + $0x1c] sm:$0xf]  ;;  %v145_v40 = vshll.u32 %v3763_v29, 16 }
   0x9   :  { %v3802_v41 = vld [vmem:[%s5147_s0 + $0x50] sm:$0xf]  ;;  %v3807_v42 = vld [vmem:[%s5147_s0 + $0x54] sm:$0xf]  ;;  %v5154_v44 = vshll.u32 %v3784_v35, 16  ;;  %v143_v45 = vor.u32 %v141_v30, %v139_v23  ;;  %v3819_v47 = vcombine.low %v3790_v37, %v3795_v38  ;;  %v149_v54 = vshrl.u32 %v3763_v29, 16 }
   0xa   :  { %v191_v33 = vor.u32 %v5162_v19, %v3749_v24  ;;  %v140_v39 = vsel %vm128_vm1, %v135_v27, %v139_v23  ;;  %v147_v46 = vrot.slane %v145_v40, 1  ;;  %v199_v48 = vor.u32 %v5160_v36, %v195_v28  ;;  %v3837_v51 = vld [vmem:[%s5147_s0 + $0x20] sm:$0xf]  ;;  %v3842_v52 = vld [vmem:[%s5147_s0 + $0x24] sm:$0xf] }
   0xb   :  { %3024 = vmatmul.mubr.msk.bf16.vlgmr.msra.gmra.mrb[0].mxu0 %vm238_vm2, %v140_v39  ;;  %v203_v49 = vrot.slane %v5154_v44, 1  ;;  %v3829_v50 = vcombine.low %v3802_v41, %v3807_v42  ;;  %v5169_v55 = vshll.u32 %v3819_v47, 16  ;;  %v3851_v56 = vld [vmem:[%s5147_s0 + $0x58] sm:$0xf]  ;;  %v5158_v58 = vshrl.u32 %v3784_v35, 16 }
   0xc   :  { %v196_v43 = vsel %vm128_vm1, %v191_v33, %v195_v28  ;;  %3130 = vmatpush3.bf16.msra.mxu0 %v3517_v25  ;;  %3027 = vmatprep.mubr.msk.bf16.mxu0 %vm3648_vm0, %v5171_v0  ;;  %v148_v53 = vsel %vm128_vm1, %v143_v45, %v147_v46  ;;  %v3859_v60 = vld [vmem:[%s5147_s0 + $0x5c] sm:$0xf]  ;;  %v151_v61 = vor.u32 %v149_v54, %v147_v46  ;;  %v5170_v14 = vshrl.u32 %v3819_v47, 16  ;;  %v50_v27 = vld [vmem:[%s5147_s0 + $0x28] sm:$0xf] }
   0xd   :  { %3052 = vmatmul.mubr.msk.bf16.vlgmr.msra.gmra.mrb[0].mxu1 %vm238_vm2, %v196_v43  ;;  %3237 = vmatprep.subr.bf16.mxu0 %v5171_v0  ;;  %v204_v57 = vsel %vm128_vm1, %v199_v48, %v203_v49  ;;  %v5152_v59 = vshll.u32 %v3829_v50, 16  ;;  %v155_v62 = vrot.slane %v5169_v55, 1  ;;  %v3871_v63 = vcombine.low %v3837_v51, %v3842_v52  ;;  %v3895_v28 = vld [vmem:[%s5147_s0 + $0x2c] sm:$0xf]  ;;  %v3900_v33 = vld [vmem:[%s5147_s0 + $0x60] sm:$0xf] }
   0xe   :  { %3076 = vmatpush3.bf16.msra.mxu1 %v3518_v34  ;;  %3055 = vmatprep.mubr.msk.bf16.mxu1 %vm3648_vm0, %v5171_v0  ;;  %v207_v1 = vor.u32 %v5158_v58, %v203_v49  ;;  %v3881_v3 = vcombine.low %v3851_v56, %v3859_v60  ;;  %v5153_v23 = vshrl.u32 %v3829_v50, 16  ;;  %v3905_v34 = vld [vmem:[%s5148_s1 + $0x64] sm:$0xf]  ;;  %v3916_v45 = vcombine.low %v50_v27, %v3895_v28 }
   0xf   :  { %3183 = vmatprep.subr.bf16.mxu1 %v5171_v0  ;;  %v211_v2 = vrot.slane %v5152_v59, 1  ;;  %v156_v4 = vsel %vm128_vm1, %v151_v61, %v155_v62  ;;  %v5167_v15 = vshll.u32 %v3871_v63, 16  ;;  %v159_v39 = vor.u32 %v5170_v14, %v155_v62 }
  0x10   :  { %v5151_v25 = vshll.u32 %v3881_v3, 16  ;;  %v3926_v49 = vcombine.low %v3900_v33, %v3905_v34  ;;  %v5168_v61 = vshrl.u32 %v3871_v63, 16  ;;  %v5165_v62 = vshll.u32 %v3916_v45, 16 }
  0x11   :  { %v212_v20 = vsel %vm128_vm1, %v207_v1, %v211_v2  ;;  %v163_v43 = vrot.slane %v5167_v15, 1  ;;  %v215_v46 = vor.u32 %v5153_v23, %v211_v2  ;;  %v5157_v2 = vshrl.u32 %v3881_v3, 16  ;;  %v3544_v15 = vld [vmem:[%s5146_s2 + $0x38] sm:$0xff]  }
  0x12   :  { %v219_v48 = vrot.slane %v5151_v25, 1  ;;  %v3965_v25 = vcombine.low %v3757_v26, %v3790_v37  ;;  %v5166_v59 = vshrl.u32 %v3916_v45, 16  ;;  %v5156_v37 = vshrl.u32 %v3926_v49, 16 }
  0x13   :  { %3028 = vmatmul.mubr.msk.bf16.gmra.mrb[4].mxu0 %vm238_vm2, %v148_v53  ;;  %v3930_v53 = vcombine.low %v3695_v5, %v3743_v22  ;;  %v3944_v5 = vld [vmem:[%s5147_s0 + $0x34] sm:$0xf]  ;;  %v167_v22 = vor.u32 %v5168_v61, %v163_v43  ;;  %vm1085_vm4 = vsmask.f32 6400  ;;  %v4283_v21 = vcombine.low %v3859_v60, %v3900_v33 }
  0x14   :  { %3031 = vmatprep.mubr.msk.bf16.mxu0 %vm3648_vm0, %v5171_v0  ;;  %v220_v1 = vsel %vm128_vm1, %v215_v46, %v219_v48  ;;  %v1874_v60 = vrot.slane %v141_v30, 2  ;;  %vm1873_vm5 = vsmask.f32 5376  ;;  %vm1408_vm6 = vcmask 1045504  }
  0x15   :  { %3056 = vmatmul.mubr.msk.bf16.gmra.mrb[4].mxu1 %vm238_vm2, %v204_v57  ;;  %v164_v57 = vsel %vm128_vm1, %v159_v39, %v163_v43  ;;  %v171_v39 = vrot.slane %v5165_v62, 1  ;;  %vm2136_vm7 = vcmask 1044480   ;;  %vm2651_vm8 = vcmask 125952  }
  0x16   :  { %3059 = vmatprep.mubr.msk.bf16.mxu1 %vm3648_vm0, %v5171_v0 }
  0x17   :  { %v172_v43 = vsel %vm128_vm1, %v167_v22, %v171_v39  ;;  %v3984_v22 = vcombine.low %v3795_v38, %v3837_v51  ;;  %v3999_v38 = vcombine.low %v3842_v52, %v50_v27  ;;  %v598_v52 = vrot.slane %v3713_v10, 1 }
  0x1b   :  { %3032 = vmatmul.mubr.msk.bf16.gmra.mrb[8].mxu0 %vm238_vm2, %v156_v4  ;;  %v5155_v4 = vshll.u32 %v3926_v49, 16 }
  0x1c   :  { %3035 = vmatprep.mubr.msk.bf16.mxu0 %vm3648_vm0, %v5171_v0 }
  0x1d   :  { %3060 = vmatmul.mubr.msk.bf16.gmra.mrb[8].mxu1 %vm238_vm2, %v212_v20  ;;  %v52_v20 = vld [vmem:[%s5147_s0 + $0x30] sm:$0xf] }
  0x1e   :  { %3063 = vmatprep.mubr.msk.bf16.mxu1 %vm3648_vm0, %v5171_v0  ;;  %v3955_v46 = vcombine.low %v52_v20, %v3944_v5 }
  0x20   :  { %v5163_v23 = vshll.u32 %v3955_v46, 16 }
  0x22   :  { %v179_v26 = vrot.slane %v5163_v23, 1 }
  0x23   :  { %3036 = vmatmul.mubr.msk.bf16.gmra.mrb[12].mxu0 %vm238_vm2, %v164_v57  ;;  %v223_v57 = vor.u32 %v5157_v2, %v219_v48  ;;  %v175_v48 = vor.u32 %v5166_v59, %v171_v39 }
  0x24   :  { %3039 = vmatprep.mubr.msk.bf16.mxu0 %vm3648_vm0, %v5171_v0 }
  0x25   :  { %3064 = vmatmul.mubr.msk.bf16.gmra.mrb[12].mxu1 %vm238_vm2, %v220_v1  ;;  %v227_v1 = vrot.slane %v5155_v4, 1  ;;  %v3531_v4 = vld [vmem:[%s5146_s2 + $0x28] sm:$0xff]  }
  0x26   :  { %3067 = vmatprep.mubr.msk.bf16.mxu1 %vm3648_vm0, %v5171_v0 }
  0x27   :  { %v228_v44 = vsel %vm128_vm1, %v223_v57, %v227_v1  ;;  %v231_v57 = vor.u32 %v5156_v37, %v227_v1  ;;  %v3527_v1 = vld [vmem:[%s5146_s2 + $0x18] sm:$0xff]  }
  0x2b   :  { %3040 = vmatmul.mubr.msk.bf16.gmra.mrb[16].mxu0 %vm238_vm2, %v172_v43  ;;  %v5164_v43 = vshrl.u32 %v3955_v46, 16 }
  0x2c   :  { %3043 = vmatprep.mubr.msk.bf16.mxu0 %vm3648_vm0, %v5171_v0 }
  0x2d   :  { %3068 = vmatmul.mubr.msk.bf16.gmra.mrb[16].mxu1 %vm238_vm2, %v228_v44  ;;  %v180_v44 = vsel %vm128_vm1, %v175_v48, %v179_v26  ;;  %v183_v39 = vor.u32 %v5164_v43, %v179_v26  ;;  %v597_v48 = vrot.slane %v3697_v6, 1  ;;  %v3528_v26 = vld [vmem:[%s5146_s2 + $0x20] sm:$0xff]  }
  0x2e   :  { %3071 = vmatprep.mubr.msk.bf16.mxu1 %vm3648_vm0, %v5171_v0 }
  0x2f   :  { %v188_v51 = vsel %vm128_vm1, %v183_v39, %v3749_v24  ;;  %v4016_v24 = vcombine.low %v3895_v28, %v52_v20  ;;  %v599_v27 = vsel %vm596_vm3, %v597_v48, %v598_v52  ;;  %v602_v20 = vrot.slane %v3819_v47, 1 }
  0x30   :  { %v608_v48 = vrot.slane %v3955_v46, 1 }
  0x33   :  { %3044 = vmatmul.mubr.msk.bf16.gmra.mrb[20].mxu0 %vm238_vm2, %v180_v44 }
  0x34   :  { %3047 = vmatprep.mubr.msk.bf16.mxu0 %vm3648_vm0, %v5171_v0 }
  0x35   :  { %3072 = vmatmul.mubr.msk.bf16.gmra.mrb[20].mxu1 %vm238_vm2, %v231_v57  ;;  %v604_v57 = vrot.slane %v3871_v63, 1 }
  0x36   :  { %3077 = vmatprep.mubr.msk.bf16.mxu1 %vm3648_vm0, %v5171_v0 }
  0x37   :  { %v605_v39 = vsel %vm596_vm3, %v602_v20, %v604_v57 }
  0x3b   :  { %3048 = vmatmul.mubr.msk.bf16.gmra.mrb[24].mxu0 %vm238_vm2, %v188_v51  ;;  %v606_v51 = vrot.slane %v3916_v45, 1 }
  0x3c   :  { %3131 = vmatprep.mubr.msk.bf16.mxu0 %vm3648_vm0, %v5171_v0 }
  0x3d   :  { %3078 = vmatmul.mubr.msk.bf16.vlgmr.msra.gmra.mrb[24].mxu1 %vm238_vm2, %v3697_v6  ;;  %v600_v6 = vrot.slane %v3763_v29, 1 }
  0x3e   :  { %3184 = vmatpush3.bf16.msra.mxu1 %v3527_v1  ;;  %3081 = vmatprep.mubr.msk.bf16.mxu1 %vm3648_vm0, %v5171_v0  ;;  %v607_v1 = vsel %vm596_vm3, %v604_v57, %v606_v51  ;;  %v616_v57 = vrot.slane %v3829_v50, 1 }
  0x3f   :  { %3291 = vmatprep.subr.bf16.mxu1 %v5171_v0  ;;  %v601_v28 = vsel %vm596_vm3, %v598_v52, %v600_v6  ;;  %v603_v44 = vsel %vm596_vm3, %v600_v6, %v602_v20  ;;  %v609_v52 = vsel %vm596_vm3, %v606_v51, %v608_v48  ;;  %v612_v6 = vrot.slane %v3734_v16, 1 }
  0x40   :  { %v614_v20 = vrot.slane %v3784_v35, 1  ;;  %v618_v51 = vrot.slane %v3881_v3, 1 }
  0x43   :  { %3132 = vmatmul.mubr.msk.bf16.vlgmr.msra.gmra.mrb[28].mxu0 %vm238_vm2, %v599_v27  ;;  %v610_v27 = vrot.slane %v3727_v13, 1 }
  0x44   :  { %3238 = vmatpush3.bf16.msra.mxu0 %v3528_v26  ;;  %3135 = vmatprep.mubr.msk.bf16.mxu0 %vm3648_vm0, %v5171_v0 }
  0x45   :  { %3082 = vmatmul.mubr.msk.bf16.gmra.mrb[28].mxu1 %vm238_vm2, %v3713_v10  ;;  %3345 = vmatprep.subr.bf16.mxu0 %v5171_v0  ;;  %v611_v26 = vsel %vm596_vm3, %v608_v48, %v610_v27  ;;  %v620_v48 = vrot.slane %v3926_v49, 1 }
  0x46   :  { %3085 = vmatprep.mubr.msk.bf16.mxu1 %vm3648_vm0, %v5171_v0 }
  0x4b   :  { %3136 = vmatmul.mubr.msk.bf16.gmra.mrb[32].mxu0 %vm238_vm2, %v601_v28  ;;  %v613_v28 = vsel %vm596_vm3, %v610_v27, %v612_v6  ;;  %v621_v27 = vsel %vm596_vm3, %v618_v51, %v620_v48 }
  0x4c   :  { %3139 = vmatprep.mubr.msk.bf16.mxu0 %vm3648_vm0, %v5171_v0 }
  0x4d   :  { %3086 = vmatmul.mubr.msk.bf16.gmra.mrb[32].mxu1 %vm238_vm2, %v3763_v29 }
  0x4e   :  { %3089 = vmatprep.mubr.msk.bf16.mxu1 %vm3648_vm0, %v5171_v0 }
  0x53   :  { %3140 = vmatmul.mubr.msk.bf16.gmra.mrb[36].mxu0 %vm238_vm2, %v603_v44  ;;  %v615_v44 = vsel %vm596_vm3, %v612_v6, %v614_v20  ;;  %v1090_v6 = vshll.u32 %v3699_v7, 16 }
  0x54   :  { %3143 = vmatprep.mubr.msk.bf16.mxu0 %vm3648_vm0, %v5171_v0 }
  0x55   :  { %3090 = vmatmul.mubr.msk.bf16.gmra.mrb[36].mxu1 %vm238_vm2, %v3819_v47 }
  0x56   :  { %3093 = vmatprep.mubr.msk.bf16.mxu1 %vm3648_vm0, %v5171_v0 }
  0x5b   :  { %3144 = vmatmul.mubr.msk.bf16.gmra.mrb[40].mxu0 %vm238_vm2, %v605_v39  ;;  %v617_v39 = vsel %vm596_vm3, %v614_v20, %v616_v57  ;;  %v1098_v20 = vshll.u32 %v3930_v53, 16 }
  0x5c   :  { %3147 = vmatprep.mubr.msk.bf16.mxu0 %vm3648_vm0, %v5171_v0 }
  0x5d   :  { %3094 = vmatmul.mubr.msk.bf16.gmra.mrb[40].mxu1 %vm238_vm2, %v3871_v63 }
  0x5e   :  { %3097 = vmatprep.mubr.msk.bf16.mxu1 %vm3648_vm0, %v5171_v0 }
  0x63   :  { %3148 = vmatmul.mubr.msk.bf16.gmra.mrb[44].mxu0 %vm238_vm2, %v607_v1  ;;  %v619_v1 = vsel %vm596_vm3, %v616_v57, %v618_v51  ;;  %v855_v57 = vrot.slane %v3930_v53, 1  ;;  %v1092_v51 = vrot.slane %v1090_v6, 2  ;;  %v1107_v6 = vshll.u32 %v3965_v25, 16 }
  0x64   :  { %3151 = vmatprep.mubr.msk.bf16.mxu0 %vm3648_vm0, %v5171_v0 }
  0x65   :  { %3098 = vmatmul.mubr.msk.bf16.gmra.mrb[44].mxu1 %vm238_vm2, %v3916_v45 }
  0x66   :  { %3101 = vmatprep.mubr.msk.bf16.mxu1 %vm3648_vm0, %v5171_v0 }
  0x6b   :  { %3152 = vmatmul.mubr.msk.bf16.gmra.mrb[48].mxu0 %vm238_vm2, %v609_v52  ;;  %v2702_v52 = vcombine.low %v3900_v33, %v3900_v33  ;;  %v1877_v33 = vrot.slane %v149_v54, 2 }
  0x6c   :  { %3155 = vmatprep.mubr.msk.bf16.mxu0 %vm3648_vm0, %v5171_v0 }
  0x6d   :  { %3102 = vmatmul.mubr.msk.bf16.gmra.mrb[48].mxu1 %vm238_vm2, %v3955_v46 }
  0x6e   :  { %3105 = vmatprep.mubr.msk.bf16.mxu1 %vm3648_vm0, %v5171_v0 }
  0x73   :  { %3156 = vmatmul.mubr.msk.bf16.gmra.mrb[52].mxu0 %vm238_vm2, %v611_v26  ;;  %v1087_v26 = vshrl.u32 %v3699_v7, 16 }
  0x74   :  { %3159 = vmatprep.mubr.msk.bf16.mxu0 %vm3648_vm0, %v5171_v0 }
  0x75   :  { %3106 = vmatmul.mubr.msk.bf16.gmra.mrb[52].mxu1 %vm238_vm2, %v3727_v13 }
  0x76   :  { %3109 = vmatprep.mubr.msk.bf16.mxu1 %vm3648_vm0, %v5171_v0 }
  0x7b   :  { %3160 = vmatmul.mubr.msk.bf16.gmra.mrb[56].mxu0 %vm238_vm2, %v613_v28  ;;  %v1095_v28 = vshrl.u32 %v3930_v53, 16 }
  0x7c   :  { %3163 = vmatprep.mubr.msk.bf16.mxu0 %vm3648_vm0, %v5171_v0 }
  0x7d   :  { %3110 = vmatmul.mubr.msk.bf16.gmra.mrb[56].mxu1 %vm238_vm2, %v3734_v16 }
  0x7e   :  { %3113 = vmatprep.mubr.msk.bf16.mxu1 %vm3648_vm0, %v5171_v0 }
  0x83   :  { %3164 = vmatmul.mubr.msk.bf16.gmra.mrb[60].mxu0 %vm238_vm2, %v615_v44  ;;  %v854_v44 = vrot.slane %v3699_v7, 1 }
  0x84   :  { %3167 = vmatprep.mubr.msk.bf16.mxu0 %vm3648_vm0, %v5171_v0 }
  0x85   :  { %3114 = vmatmul.mubr.msk.bf16.gmra.mrb[60].mxu1 %vm238_vm2, %v3784_v35 }
  0x86   :  { %3117 = vmatprep.mubr.msk.bf16.mxu1 %vm3648_vm0, %v5171_v0 }
  0x8b   :  { %3168 = vmatmul.mubr.msk.bf16.gmra.mrb[64].mxu0 %vm238_vm2, %v617_v39  ;;  %v1089_v39 = vrot.slane %v1087_v26, 1  ;;  %v1104_v26 = vshrl.u32 %v3965_v25, 16 }
  0x8c   :  { %3171 = vmatprep.mubr.msk.bf16.mxu0 %vm3648_vm0, %v5171_v0 }
  0x8d   :  { %3118 = vmatmul.mubr.msk.bf16.gmra.mrb[64].mxu1 %vm238_vm2, %v3829_v50  ;;  %v1093_v37 = vor.u32 %v1092_v51, %v1089_v39  ;;  %v1109_v39 = vrot.slane %v1107_v6, 2 }
  0x8e   :  { %3121 = vmatprep.mubr.msk.bf16.mxu1 %vm3648_vm0, %v5171_v0 }
  0x93   :  { %3172 = vmatmul.mubr.msk.bf16.gmra.mrb[68].mxu0 %vm238_vm2, %v619_v1  ;;  %v1097_v1 = vrot.slane %v1095_v28, 1  ;;  %v857_v28 = vrot.slane %v3965_v25, 1 }
  0x94   :  { %3175 = vmatprep.mubr.msk.bf16.mxu0 %vm3648_vm0, %v5171_v0 }
  0x95   :  { %3122 = vmatmul.mubr.msk.bf16.gmra.mrb[68].mxu1 %vm238_vm2, %v3881_v3  ;;  %v858_v51 = vsel %vm596_vm3, %v855_v57, %v857_v28 }
  0x96   :  { %3125 = vmatprep.mubr.msk.bf16.mxu1 %vm3648_vm0, %v5171_v0 }
  0x9b   :  { %3176 = vmatmul.mubr.msk.bf16.gmra.mrb[72].mxu0 %vm238_vm2, %v621_v27  ;;  %v856_v27 = vsel %vm596_vm3, %v854_v44, %v855_v57  ;;  %v1106_v44 = vrot.slane %v1104_v26, 1 }
  0x9c   :  { %3179 = vmatprep.mubr.msk.bf16.mxu0 %vm3648_vm0, %v5171_v0 }
  0x9d   :  { %3126 = vmatmul.mubr.msk.bf16.gmra.mrb[72].mxu1 %vm238_vm2, %v2702_v52  ;;  %v1100_v52 = vrot.slane %v1098_v20, 2  ;;  %v3533_v20 = vld [vmem:[%s5146_s2 + $0x30] sm:$0xff]  }
  0x9e   :  { %3185 = vmatprep.mubr.msk.bf16.mxu1 %vm3648_vm0, %v5171_v0 }
  0x9f   :  { %v1101_v2 = vor.u32 %v1100_v52, %v1097_v1  ;;  %v1113_v1 = vshrl.u32 %v3984_v22, 16  ;;  %v1116_v52 = vshll.u32 %v3984_v22, 16 }
  0xa1   :  { %v1118_v26 = vrot.slane %v1116_v52, 2 }
  0xa3   :  { %3180 = vmatmul.mubr.msk.bf16.gmra.mrb[76].mxu0 %vm238_vm2, %v620_v48  ;;  %v1102_v48 = vsel %vm1085_vm4, %v1093_v37, %v1101_v2  ;;  %v859_v37 = vrot.slane %v3984_v22, 1 }
  0xa4   :  { %3239 = vmatprep.mubr.msk.bf16.mxu0 %vm3648_vm0, %v5171_v0 }
  0xa5   :  { %3186 = vmatmul.mubr.msk.bf16.vlgmr.msra.gmra.mrb[76].mxu1 %vm238_vm2, %v856_v27  ;;  %v1115_v27 = vrot.slane %v1113_v1, 1  ;;  %v860_v6 = vsel %vm596_vm3, %v857_v28, %v859_v37 }
  0xa6   :  { %3292 = vmatpush3.bf16.msra.mxu1 %v3531_v4  ;;  %3189 = vmatprep.mubr.msk.bf16.mxu1 %vm3648_vm0, %v5171_v0  ;;  %v1110_v4 = vor.u32 %v1109_v39, %v1106_v44  ;;  %v1125_v44 = vshll.u32 %v3999_v38, 16 }
  0xa7   :  { %3399 = vmatprep.subr.bf16.mxu1 %v5171_v0 }
  0xa8   :  { %v1111_v57 = vsel %vm1085_vm4, %v1101_v2, %v1110_v4  ;;  %v861_v2 = vrot.slane %v3999_v38, 1 }
  0xaa   :  { %v862_v1 = vsel %vm596_vm3, %v859_v37, %v861_v2 }
  0xab   :  { %3240 = vmatmul.mubr.msk.bf16.vlgmr.msra.gmra.mrb[80].mxu0 %vm238_vm2, %v1102_v48  ;;  %v1119_v48 = vor.u32 %v1118_v26, %v1115_v27  ;;  %v1134_v27 = vshll.u32 %v4016_v24, 16 }
  0xac   :  { %3346 = vmatpush3.bf16.msra.mxu0 %v3533_v20  ;;  %3243 = vmatprep.mubr.msk.bf16.mxu0 %vm3648_vm0, %v5171_v0  ;;  %v1122_v20 = vshrl.u32 %v3999_v38, 16 }
  0xad   :  { %3190 = vmatmul.mubr.msk.bf16.gmra.mrb[80].mxu1 %vm238_vm2, %v858_v51  ;;  %3453 = vmatprep.subr.bf16.mxu0 %v5171_v0  ;;  %v1120_v39 = vsel %vm1085_vm4, %v1110_v4, %v1119_v48  ;;  %v1127_v51 = vrot.slane %v1125_v44, 2  ;;  %v863_v4 = vrot.slane %v4016_v24, 1  ;;  %v4192_v44 = vcombine.low %v3944_v5, %v3704_v8 }
  0xae   :  { %3193 = vmatprep.mubr.msk.bf16.mxu1 %vm3648_vm0, %v5171_v0  ;;  %v1124_v28 = vrot.slane %v1122_v20, 1 }
  0xaf   :  { %v864_v20 = vsel %vm596_vm3, %v861_v2, %v863_v4  ;;  %v865_v2 = vrot.slane %v4192_v44, 1 }
  0xb0   :  { %v1128_v52 = vor.u32 %v1127_v51, %v1124_v28  ;;  %v1140_v28 = vshrl.u32 %v4192_v44, 16 }
  0xb2   :  { %v1129_v26 = vsel %vm1085_vm4, %v1119_v48, %v1128_v52  ;;  %v1143_v48 = vshll.u32 %v4192_v44, 16  ;;  %v1142_v5 = vrot.slane %v1140_v28, 1 }
  0xb3   :  { %3244 = vmatmul.mubr.msk.bf16.gmra.mrb[84].mxu0 %vm238_vm2, %v1111_v57  ;;  %v1131_v57 = vshrl.u32 %v4016_v24, 16 }
  0xb4   :  { %3247 = vmatprep.mubr.msk.bf16.mxu0 %vm3648_vm0, %v5171_v0  ;;  %v1145_v51 = vrot.slane %v1143_v48, 2 }
  0xb5   :  { %3194 = vmatmul.mubr.msk.bf16.gmra.mrb[84].mxu1 %vm238_vm2, %v860_v6  ;;  %v1133_v37 = vrot.slane %v1131_v57, 1  ;;  %v1136_v6 = vrot.slane %v1134_v27, 2  ;;  %v4207_v57 = vcombine.low %v3709_v9, %v3718_v11 }
  0xb6   :  { %3197 = vmatprep.mubr.msk.bf16.mxu1 %vm3648_vm0, %v5171_v0  ;;  %v1146_v27 = vor.u32 %v1145_v51, %v1142_v5  ;;  %v4237_v51 = vcombine.low %v3774_v32, %v3802_v41 }
  0xbb   :  { %3248 = vmatmul.mubr.msk.bf16.gmra.mrb[88].mxu0 %vm238_vm2, %v1120_v39  ;;  %v1137_v39 = vor.u32 %v1136_v6, %v1133_v37 }
  0xbc   :  { %3251 = vmatprep.mubr.msk.bf16.mxu0 %vm3648_vm0, %v5171_v0 }
  0xbd   :  { %3198 = vmatmul.mubr.msk.bf16.gmra.mrb[88].mxu1 %vm238_vm2, %v862_v1  ;;  %v1138_v8 = vsel %vm1085_vm4, %v1128_v52, %v1137_v39  ;;  %v866_v1 = vsel %vm596_vm3, %v863_v4, %v865_v2  ;;  %v1152_v52 = vshll.u32 %v4207_v57, 16  ;;  %v867_v4 = vrot.slane %v4207_v57, 1 }
  0xbe   :  { %3201 = vmatprep.mubr.msk.bf16.mxu1 %vm3648_vm0, %v5171_v0  ;;  %v1147_v9 = vsel %vm1085_vm4, %v1137_v39, %v1146_v27 }
  0xbf   :  { %v1154_v37 = vrot.slane %v1152_v52, 2  ;;  %v868_v6 = vsel %vm596_vm3, %v865_v2, %v867_v4  ;;  %v871_v52 = vrot.slane %v4237_v51, 1 }
  0xc3   :  { %3252 = vmatmul.mubr.msk.bf16.gmra.mrb[92].mxu0 %vm238_vm2, %v1129_v26  ;;  %v1149_v26 = vshrl.u32 %v4207_v57, 16 }
  0xc4   :  { %3255 = vmatprep.mubr.msk.bf16.mxu0 %vm3648_vm0, %v5171_v0 }
  0xc5   :  { %3202 = vmatmul.mubr.msk.bf16.gmra.mrb[92].mxu1 %vm238_vm2, %v864_v20  ;;  %v1151_v11 = vrot.slane %v1149_v26, 1  ;;  %v4222_v20 = vcombine.low %v3723_v12, %v3769_v31  ;;  %v1167_v26 = vshrl.u32 %v4237_v51, 16 }
  0xc6   :  { %3205 = vmatprep.mubr.msk.bf16.mxu1 %vm3648_vm0, %v5171_v0 }
  0xc7   :  { %v1155_v28 = vor.u32 %v1154_v37, %v1151_v11  ;;  %v1158_v48 = vshrl.u32 %v4222_v20, 16  ;;  %v1161_v39 = vshll.u32 %v4222_v20, 16  ;;  %v869_v2 = vrot.slane %v4222_v20, 1 }
  0xc9   :  { %v1156_v12 = vsel %vm1085_vm4, %v1146_v27, %v1155_v28  ;;  %v1160_v31 = vrot.slane %v1158_v48, 1  ;;  %v870_v5 = vsel %vm596_vm3, %v867_v4, %v869_v2  ;;  %v1170_v27 = vshll.u32 %v4237_v51, 16 }
  0xcb   :  { %3256 = vmatmul.mubr.msk.bf16.gmra.mrb[96].mxu0 %vm238_vm2, %v1138_v8  ;;  %v1163_v8 = vrot.slane %v1161_v39, 2  ;;  %v1172_v48 = vrot.slane %v1170_v27, 2 }
  0xcc   :  { %3259 = vmatprep.mubr.msk.bf16.mxu0 %vm3648_vm0, %v5171_v0 }
  0xcd   :  { %3206 = vmatmul.mubr.msk.bf16.gmra.mrb[96].mxu1 %vm238_vm2, %v866_v1  ;;  %v1164_v1 = vor.u32 %v1163_v8, %v1160_v31  ;;  %v872_v31 = vsel %vm596_vm3, %v869_v2, %v871_v52  ;;  %v4260_v8 = vcombine.low %v3807_v42, %v3851_v56 }
  0xce   :  { %3209 = vmatprep.mubr.msk.bf16.mxu1 %vm3648_vm0, %v5171_v0 }
  0xcf   :  { %v1165_v37 = vsel %vm1085_vm4, %v1155_v28, %v1164_v1  ;;  %v1179_v27 = vshll.u32 %v4260_v8, 16  ;;  %v873_v2 = vrot.slane %v4260_v8, 1 }
  0xd1   :  { %v874_v58 = vsel %vm596_vm3, %v871_v52, %v873_v2  ;;  %v1188_v52 = vshll.u32 %v4283_v21, 16 }
  0xd3   :  { %3260 = vmatmul.mubr.msk.bf16.gmra.mrb[100].mxu0 %vm238_vm2, %v1147_v9 }
  0xd4   :  { %3263 = vmatprep.mubr.msk.bf16.mxu0 %vm3648_vm0, %v5171_v0 }
  0xd5   :  { %3210 = vmatmul.mubr.msk.bf16.gmra.mrb[100].mxu1 %vm238_vm2, %v868_v6  ;;  %v1169_v6 = vrot.slane %v1167_v26, 1  ;;  %v1176_v26 = vshrl.u32 %v4260_v8, 16 }
  0xd6   :  { %3213 = vmatprep.mubr.msk.bf16.mxu1 %vm3648_vm0, %v5171_v0 }
  0xd7   :  { %v1173_v28 = vor.u32 %v1172_v48, %v1169_v6  ;;  %v1178_v6 = vrot.slane %v1176_v26, 1  ;;  %v1181_v48 = vrot.slane %v1179_v27, 2  ;;  %v1185_v26 = vshrl.u32 %v4283_v21, 16  ;;  %v4307_v27 = vld [vmem:[%s5148_s1 + $0x68] sm:$0xf] }
  0xd8   :  { %v4319_v23 = vcombine.low %v3905_v34, %v4307_v27 }
  0xda   :  { %v1194_v34 = vshrl.u32 %v4319_v23, 16 }
  0xdb   :  { %3264 = vmatmul.mubr.msk.bf16.gmra.mrb[104].mxu0 %vm238_vm2, %v1156_v12 }
  0xdc   :  { %3267 = vmatprep.mubr.msk.bf16.mxu0 %vm3648_vm0, %v5171_v0 }
  0xdd   :  { %3214 = vmatmul.mubr.msk.bf16.gmra.mrb[104].mxu1 %vm238_vm2, %v870_v5 }
  0xde   :  { %3217 = vmatprep.mubr.msk.bf16.mxu1 %vm3648_vm0, %v5171_v0  ;;  %v4248_v4 = vpop.f32.mrb[0].mxu0 }
  0xdf   :  { %v3025_v32 = vpop.f32.mrb[1].mxu0 }
  0xe0   :  { %v4250_v41 = vpop.f32.mrb[0].mxu1  ;;  %v4252_v9 = vpop.f32.mrb[2].mxu0 }
  0xe1   :  { %v3053_v11 = vpop.f32.mrb[1].mxu1  ;;  %v3026_v39 = vpop.f32.mrb[3].mxu0 }
  0xe2   :  { %v4255_v12 = vpop.f32.mrb[2].mxu1  ;;  %v1174_v39 = vsel %vm1085_vm4, %v1164_v1, %v1173_v28  ;;  %v1182_v1 = vor.u32 %v1181_v48, %v1178_v6  ;;  %v1187_v6 = vrot.slane %v1185_v26, 1  ;;  %v1190_v48 = vrot.slane %v1188_v52, 2 }
  0xe3   :  { %v3054_v5 = vpop.f32.mrb[3].mxu1  ;;  %3268 = vmatmul.mubr.msk.bf16.gmra.mrb[108].mxu0 %vm238_vm2, %v1165_v37 }
  0xe4   :  { %3271 = vmatprep.mubr.msk.bf16.mxu0 %vm3648_vm0, %v5171_v0  ;;  %v1183_v54 = vsel %vm1085_vm4, %v1173_v28, %v1182_v1 }
  0xe5   :  { %3218 = vmatmul.mubr.msk.bf16.gmra.mrb[108].mxu1 %vm238_vm2, %v872_v31 }
  0xe6   :  { %3221 = vmatprep.mubr.msk.bf16.mxu1 %vm3648_vm0, %v5171_v0  ;;  %v4271_v42 = vpop.f32.mrb[4].mxu0 }
  0xe7   :  { %v3029_v56 = vpop.f32.mrb[5].mxu0 }
  0xe8   :  { %v4273_v32 = vpop.f32.mrb[4].mxu1  ;;  %v4275_v11 = vpop.f32.mrb[6].mxu0  ;;  %v1875_v56 = vrot.slane %v137_v17, 3  ;;  %v875_v17 = vrot.slane %v4283_v21, 1 }
  0xe9   :  { %v3057_v37 = vpop.f32.mrb[5].mxu1  ;;  %v3030_v31 = vpop.f32.mrb[7].mxu0 }
  0xea   :  { %v4278_v5 = vpop.f32.mrb[6].mxu1  ;;  %v876_v19 = vsel %vm596_vm3, %v873_v2, %v875_v17  ;;  %v1876_v43 = vor.u32 %v1875_v56, %v1874_v60  ;;  %v1191_v2 = vor.u32 %v1190_v48, %v1187_v6  ;;  %v1197_v56 = vshll.u32 %v4319_v23, 16 }
  0xeb   :  { %v3058_v36 = vpop.f32.mrb[7].mxu1  ;;  %3272 = vmatmul.mubr.msk.bf16.gmra.mrb[112].mxu0 %vm238_vm2, %v1174_v39 }
  0xec   :  { %3275 = vmatprep.mubr.msk.bf16.mxu0 %vm3648_vm0, %v5171_v0  ;;  %v1878_v36 = vrot.slane %v145_v40, 3 }
  0xed   :  { %3222 = vmatmul.mubr.msk.bf16.gmra.mrb[112].mxu1 %vm238_vm2, %v874_v58 }
  0xee   :  { %3225 = vmatprep.mubr.msk.bf16.mxu1 %vm3648_vm0, %v5171_v0  ;;  %v4302_v58 = vpop.f32.mrb[8].mxu0 }
  0xef   :  { %v3033_v37 = vpop.f32.mrb[9].mxu0 }
  0xf0   :  { %v4309_v30 = vpop.f32.mrb[8].mxu1  ;;  %v4311_v39 = vpop.f32.mrb[10].mxu0  ;;  %v4321_v37 = vor.u32 %v1878_v36, %v1877_v33  ;;  %v1192_v36 = vsel %vm1085_vm4, %v1182_v1, %v1191_v2  ;;  %v1196_v33 = vrot.slane %v1194_v34, 1 }
  0xf1   :  { %v3061_v40 = vpop.f32.mrb[9].mxu1  ;;  %v3034_v31 = vpop.f32.mrb[11].mxu0 }
  0xf2   :  { %v4314_v18 = vpop.f32.mrb[10].mxu1  ;;  %5178 = vst [vmem:[#allocation4_spill] sm:$0xff] %v4321_v37  ;;  %v4326_v28 = vsel %vm1873_vm5, %v1876_v43, %v4321_v37  ;;  %v1199_v40 = vrot.slane %v1197_v56, 2 }
  0xf3   :  { %v3062_v62 = vpop.f32.mrb[11].mxu1  ;;  %3276 = vmatmul.mubr.msk.bf16.gmra.mrb[116].mxu0 %vm238_vm2, %v1183_v54  ;;  %5179 = vst [vmem:[#allocation5_spill] sm:$0xff] %v4326_v28 }
  0xf4   :  { %3279 = vmatprep.mubr.msk.bf16.mxu0 %vm3648_vm0, %v5171_v0  ;;  %v877_v62 = vrot.slane %v4319_v23, 1 }
  0xf5   :  { %3226 = vmatmul.mubr.msk.bf16.gmra.mrb[116].mxu1 %vm238_vm2, %v876_v19 }
  0xf6   :  { %3229 = vmatprep.mubr.msk.bf16.mxu1 %vm3648_vm0, %v5171_v0  ;;  %v4336_v26 = vpop.f32.mrb[12].mxu0  ;;  %v878_v48 = vsel %vm596_vm3, %v875_v17, %v877_v62 }
  0xf7   :  { %v3037_v52 = vpop.f32.mrb[13].mxu0 }
  0xf8   :  { %v4338_v43 = vpop.f32.mrb[12].mxu1  ;;  %v4340_v60 = vpop.f32.mrb[14].mxu0  ;;  %v1200_v52 = vor.u32 %v1199_v40, %v1196_v33  ;;  %v1409_v33 = vrot.slane %v3699_v7, 2  ;;  %v1410_v40 = vrot.slane %v3930_v53, 2  ;;  %v1642_v53 = vrot.slane %v3713_v10, 2 }
  0xf9   :  { %v3065_v19 = vpop.f32.mrb[13].mxu1  ;;  %v3038_v54 = vpop.f32.mrb[15].mxu0 }
  0xfa   :  { %v4343_v6 = vpop.f32.mrb[14].mxu1  ;;  %v1201_v54 = vsel %vm1085_vm4, %v1191_v2, %v1200_v52  ;;  %v1411_v59 = vsel %vm1408_vm6, %v1409_v33, %v1410_v40  ;;  %v1412_v33 = vrot.slane %v3965_v25, 2 }
  0xfb   :  { %v3066_v31 = vpop.f32.mrb[15].mxu1  ;;  %3280 = vmatmul.mubr.msk.bf16.gmra.mrb[120].mxu0 %vm238_vm2, %v1192_v36 }
  0xfc   :  { %3283 = vmatprep.mubr.msk.bf16.mxu0 %vm3648_vm0, %v5171_v0 }
  0xfd   :  { %3230 = vmatmul.mubr.msk.bf16.gmra.mrb[120].mxu1 %vm238_vm2, %v878_v48 }
  0xfe   :  { %3233 = vmatprep.mubr.msk.bf16.mxu1 %vm3648_vm0, %v5171_v0  ;;  %v4352_v1 = vpop.f32.mrb[16].mxu0 }
  0xff   :  { %v3041_v34 = vpop.f32.mrb[17].mxu0 }
 0x100   :  { %v4354_v56 = vpop.f32.mrb[16].mxu1  ;;  %v4356_v19 = vpop.f32.mrb[18].mxu0 }
 0x101   :  { %v3069_v17 = vpop.f32.mrb[17].mxu1  ;;  %v3042_v36 = vpop.f32.mrb[19].mxu0 }
 0x102   :  { %v4359_v31 = vpop.f32.mrb[18].mxu1 }
 0x103   :  { %v3070_v48 = vpop.f32.mrb[19].mxu1  ;;  %3284 = vmatmul.mubr.msk.bf16.gmra.mrb[124].mxu0 %vm238_vm2, %v1201_v54 }
 0x104   :  { %3287 = vmatprep.mubr.msk.bf16.mxu0 %vm3648_vm0, %v5171_v0 }
 0x105   :  { %3234 = vmatmul.mubr.msk.bf16.gmra.mrb[124].mxu1 %vm238_vm2, %v877_v62 }
 0x106   :  { %3293 = vmatprep.mubr.msk.bf16.mxu1 %vm3648_vm0, %v5171_v0  ;;  %v4369_v34 = vpop.f32.mrb[20].mxu0 }
 0x107   :  { %v3045_v2 = vpop.f32.mrb[21].mxu0 }
 0x108   :  { %v4371_v17 = vpop.f32.mrb[20].mxu1  ;;  %v4373_v36 = vpop.f32.mrb[22].mxu0  ;;  %v1643_v2 = vrot.slane %v3763_v29, 2 }
 0x109   :  { %v3073_v54 = vpop.f32.mrb[21].mxu1  ;;  %v3046_v62 = vpop.f32.mrb[23].mxu0 }
 0x10a   :  { %v411_v48 = vpop.f32.mrb[22].mxu1  ;;  %v1644_v61 = vsel %vm1408_vm6, %v1642_v53, %v1643_v2 }
 0x10b   :  { %v3074_v7 = vpop.f32.mrb[23].mxu1  ;;  %3288 = vmatmul.mubr.msk.bf16.gmra.mrb[128].mxu0 %vm238_vm2, %v1200_v52 }
 0x10c   :  { %3347 = vmatprep.mubr.msk.bf16.mxu0 %vm3648_vm0, %v5171_v0 }
 0x10d   :  { %3294 = vmatmul.mubr.msk.bf16.vlgmr.msra.gmra.mrb[128].mxu1 %vm238_vm2, %v1411_v59 }
 0x10e   :  { %3400 = vmatpush3.bf16.msra.mxu1 %v3544_v15  ;;  %3297 = vmatprep.mubr.msk.bf16.mxu1 %vm3648_vm0, %v5171_v0  ;;  %v4388_v54 = vpop.f32.mrb[24].mxu0  ;;  %v3545_v15 = vld [vmem:[%s5146_s2 + $0x40] sm:$0xff]   ;;  %v1413_v0 = vsel %vm1408_vm6, %v1410_v40, %v1412_v33 }
 0x10f   :  { %v3049_v48 = vpop.f32.mrb[25].mxu0 }
 0x110   :  { %v481_v62 = vpop.f32.mrb[24].mxu1  ;;  %v4391_v7 = vpop.f32.mrb[26].mxu0 }
 0x111   :  { %v482_v52 = vadd.f32 %v481_v62, %v4248_v4  ;;  %v3079_v59 = vpop.f32.mrb[25].mxu1  ;;  %v3050_v14 = vpop.f32.mrb[27].mxu0  ;;  %v1645_v4 = vrot.slane %v3819_v47, 2  ;;  %v5180_v62 = vmov 0.0  }
 0x112   :  { %v484_v55 = vpop.f32.mrb[26].mxu1  ;;  %v1414_v14 = vrot.slane %v3984_v22, 2 }
 0x113   :  { %v485_v25 = vadd.f32 %v484_v55, %v4252_v9  ;;  %v3080_v37 = vpop.f32.mrb[27].mxu1  ;;  %3348 = vmatmul.mubr.msk.bf16.vlgmr.msra.gmra.mrb[132].mxu0 %vm238_vm2, %v1644_v61 }
 0x114   :  { %3454 = vmatpush3.bf16.msra.mxu0 %v3545_v15  ;;  %3351 = vmatprep.mubr.msk.bf16.mxu0 %vm3648_vm0, %v5180_v62  ;;  %v1646_v37 = vsel %vm1408_vm6, %v1643_v2, %v1645_v4  ;;  %v1415_v10 = vsel %vm1408_vm6, %v1412_v33, %v1414_v14  ;;  %v1416_v2 = vrot.slane %v3999_v38, 2 }
 0x115   :  { %3298 = vmatmul.mubr.msk.bf16.gmra.mrb[132].mxu1 %vm238_vm2, %v1413_v0 }
 0x116   :  { %3301 = vmatprep.mubr.msk.bf16.mxu1 %vm3648_vm0, %v5180_v62  ;;  %v701_v53 = vpop.f32.mrb[28].mxu0 }
 0x117   :  { %v4407_v48 = vadd.f32 %v701_v53, %v482_v52  ;;  %v3133_v55 = vpop.f32.mrb[29].mxu0 }
 0x118   :  { %v489_v40 = vpop.f32.mrb[28].mxu1  ;;  %v704_v0 = vpop.f32.mrb[30].mxu0 }
 0x119   :  { %v490_v61 = vadd.f32 %v489_v40, %v4271_v42  ;;  %v3083_v9 = vpop.f32.mrb[29].mxu1  ;;  %v4411_v15 = vadd.f32 %v704_v0, %v485_v25  ;;  %v3134_v29 = vpop.f32.mrb[31].mxu0  ;;  %v1647_v42 = vrot.slane %v3871_v63, 2 }
 0x11a   :  { %v492_v59 = vpop.f32.mrb[30].mxu1 }
 0x11b   :  { %v493_v28 = vadd.f32 %v492_v59, %v4275_v11  ;;  %v3084_v22 = vpop.f32.mrb[31].mxu1  ;;  %3352 = vmatmul.mubr.msk.bf16.gmra.mrb[136].mxu0 %vm238_vm2, %v1646_v37  ;;  %v1417_v37 = vsel %vm1408_vm6, %v1414_v14, %v1416_v2 }
 0x11c   :  { %3355 = vmatprep.mubr.msk.bf16.mxu0 %vm3648_vm0, %v5180_v62 }
 0x11d   :  { %3302 = vmatmul.mubr.msk.bf16.gmra.mrb[136].mxu1 %vm238_vm2, %v1415_v10  ;;  %v1648_v10 = vsel %vm1408_vm6, %v1645_v4, %v1647_v42 }
 0x11e   :  { %3305 = vmatprep.mubr.msk.bf16.mxu1 %vm3648_vm0, %v5180_v62  ;;  %v709_v29 = vpop.f32.mrb[32].mxu0 }
 0x11f   :  { %v4423_v33 = vadd.f32 %v709_v29, %v490_v61  ;;  %v3137_v11 = vpop.f32.mrb[33].mxu0 }
 0x120   :  { %v497_v52 = vpop.f32.mrb[32].mxu1  ;;  %v712_v40 = vpop.f32.mrb[34].mxu0 }
 0x121   :  { %v498_v25 = vadd.f32 %v497_v52, %v4302_v58  ;;  %v3087_v53 = vpop.f32.mrb[33].mxu1  ;;  %v4427_v9 = vadd.f32 %v712_v40, %v493_v28  ;;  %v3138_v0 = vpop.f32.mrb[35].mxu0  ;;  %v1649_v58 = vrot.slane %v3916_v45, 2  ;;  %v1418_v28 = vrot.slane %v4016_v24, 2 }
 0x122   :  { %v500_v55 = vpop.f32.mrb[34].mxu1 }
 0x123   :  { %v501_v59 = vadd.f32 %v500_v55, %v4311_v39  ;;  %v3088_v38 = vpop.f32.mrb[35].mxu1  ;;  %3356 = vmatmul.mubr.msk.bf16.gmra.mrb[140].mxu0 %vm238_vm2, %v1648_v10  ;;  %v1650_v11 = vsel %vm1408_vm6, %v1647_v42, %v1649_v58  ;;  %v1419_v55 = vsel %vm1408_vm6, %v1416_v2, %v1418_v28  ;;  %v1420_v42 = vrot.slane %v4192_v44, 2 }
 0x124   :  { %3359 = vmatprep.mubr.msk.bf16.mxu0 %vm3648_vm0, %v5180_v62 }
 0x125   :  { %3306 = vmatmul.mubr.msk.bf16.gmra.mrb[140].mxu1 %vm238_vm2, %v1417_v37 }
 0x126   :  { %3309 = vmatprep.mubr.msk.bf16.mxu1 %vm3648_vm0, %v5180_v62  ;;  %v717_v4 = vpop.f32.mrb[36].mxu0 }
 0x127   :  { %v4439_v14 = vadd.f32 %v717_v4, %v498_v25  ;;  %v3141_v39 = vpop.f32.mrb[37].mxu0 }
 0x128   :  { %v505_v61 = vpop.f32.mrb[36].mxu1  ;;  %v720_v52 = vpop.f32.mrb[38].mxu0 }
 0x129   :  { %v506_v22 = vadd.f32 %v505_v61, %v4336_v26  ;;  %v3091_v29 = vpop.f32.mrb[37].mxu1  ;;  %v4443_v40 = vadd.f32 %v720_v52, %v501_v59  ;;  %v3142_v10 = vpop.f32.mrb[39].mxu0  ;;  %v1651_v26 = vrot.slane %v3955_v46, 2 }
 0x12a   :  { %v508_v53 = vpop.f32.mrb[38].mxu1 }
 0x12b   :  { %v509_v0 = vadd.f32 %v508_v53, %v4340_v60  ;;  %v3092_v24 = vpop.f32.mrb[39].mxu1  ;;  %3360 = vmatmul.mubr.msk.bf16.gmra.mrb[144].mxu0 %vm238_vm2, %v1650_v11  ;;  %v1652_v61 = vsel %vm1408_vm6, %v1649_v58, %v1651_v26  ;;  %v1421_v11 = vsel %vm1408_vm6, %v1418_v28, %v1420_v42  ;;  %v1422_v58 = vrot.slane %v4207_v57, 2 }
 0x12c   :  { %3363 = vmatprep.mubr.msk.bf16.mxu0 %vm3648_vm0, %v5180_v62 }
 0x12d   :  { %3310 = vmatmul.mubr.msk.bf16.gmra.mrb[144].mxu1 %vm238_vm2, %v1419_v55 }
 0x12e   :  { %3313 = vmatprep.mubr.msk.bf16.mxu1 %vm3648_vm0, %v5180_v62  ;;  %v725_v25 = vpop.f32.mrb[40].mxu0 }
 0x12f   :  { %v4455_v2 = vadd.f32 %v725_v25, %v506_v22  ;;  %v3145_v60 = vpop.f32.mrb[41].mxu0 }
 0x130   :  { %v513_v37 = vpop.f32.mrb[40].mxu1  ;;  %v728_v4 = vpop.f32.mrb[42].mxu0 }
 0x131   :  { %v514_v59 = vadd.f32 %v513_v37, %v4352_v1  ;;  %v3095_v38 = vpop.f32.mrb[41].mxu1  ;;  %v4459_v29 = vadd.f32 %v728_v4, %v509_v0  ;;  %v3146_v52 = vpop.f32.mrb[43].mxu0  ;;  %v1653_v1 = vrot.slane %v3727_v13, 2  ;;  %v1423_v4 = vsel %vm1408_vm6, %v1420_v42, %v1422_v58 }
 0x132   :  { %v516_v39 = vpop.f32.mrb[42].mxu1 }
 0x133   :  { %v517_v53 = vadd.f32 %v516_v39, %v4356_v19  ;;  %v3096_v44 = vpop.f32.mrb[43].mxu1  ;;  %3364 = vmatmul.mubr.msk.bf16.gmra.mrb[148].mxu0 %vm238_vm2, %v1652_v61  ;;  %v1654_v25 = vsel %vm1408_vm6, %v1651_v26, %v1653_v1  ;;  %v1424_v26 = vrot.slane %v4222_v20, 2 }
 0x134   :  { %3367 = vmatprep.mubr.msk.bf16.mxu0 %vm3648_vm0, %v5180_v62 }
 0x135   :  { %3314 = vmatmul.mubr.msk.bf16.gmra.mrb[148].mxu1 %vm238_vm2, %v1421_v11 }
 0x136   :  { %3317 = vmatprep.mubr.msk.bf16.mxu1 %vm3648_vm0, %v5180_v62  ;;  %v733_v22 = vpop.f32.mrb[44].mxu0 }
 0x137   :  { %v4471_v28 = vadd.f32 %v733_v22, %v514_v59  ;;  %v3149_v19 = vpop.f32.mrb[45].mxu0 }
 0x138   :  { %v521_v10 = vpop.f32.mrb[44].mxu1  ;;  %v736_v24 = vpop.f32.mrb[46].mxu0 }
 0x139   :  { %v522_v55 = vadd.f32 %v521_v10, %v4369_v34  ;;  %v3099_v0 = vpop.f32.mrb[45].mxu1  ;;  %v4475_v60 = vadd.f32 %v736_v24, %v517_v53  ;;  %v3150_v38 = vpop.f32.mrb[47].mxu0  ;;  %v1655_v34 = vrot.slane %v3734_v16, 2 }
 0x13a   :  { %v524_v37 = vpop.f32.mrb[46].mxu1  ;;  %v1425_v0 = vsel %vm1408_vm6, %v1422_v58, %v1424_v26 }
 0x13b   :  { %v525_v61 = vadd.f32 %v524_v37, %v4373_v36  ;;  %v3100_v57 = vpop.f32.mrb[47].mxu1  ;;  %3368 = vmatmul.mubr.msk.bf16.gmra.mrb[152].mxu0 %vm238_vm2, %v1654_v25  ;;  %v1656_v44 = vsel %vm1408_vm6, %v1653_v1, %v1655_v34  ;;  %v1426_v1 = vrot.slane %v4237_v51, 2 }
 0x13c   :  { %3371 = vmatprep.mubr.msk.bf16.mxu0 %vm3648_vm0, %v5180_v62 }
 0x13d   :  { %3318 = vmatmul.mubr.msk.bf16.gmra.mrb[152].mxu1 %vm238_vm2, %v1423_v4 }
 0x13e   :  { %3321 = vmatprep.mubr.msk.bf16.mxu1 %vm3648_vm0, %v5180_v62  ;;  %v741_v59 = vpop.f32.mrb[48].mxu0 }
 0x13f   :  { %v4487_v42 = vadd.f32 %v741_v59, %v522_v55  ;;  %v3153_v36 = vpop.f32.mrb[49].mxu0 }
 0x140   :  { %v529_v39 = vpop.f32.mrb[48].mxu1  ;;  %v744_v53 = vpop.f32.mrb[50].mxu0  ;;  %v1427_v36 = vsel %vm1408_vm6, %v1424_v26, %v1426_v1 }
 0x141   :  { %v530_v52 = vadd.f32 %v529_v39, %v4388_v54  ;;  %v3103_v11 = vpop.f32.mrb[49].mxu1  ;;  %v4491_v10 = vadd.f32 %v744_v53, %v525_v61  ;;  %v3154_v19 = vpop.f32.mrb[51].mxu0  ;;  %v1657_v54 = vrot.slane %v3784_v35, 2 }
 0x142   :  { %v532_v22 = vpop.f32.mrb[50].mxu1 }
 0x143   :  { %v533_v24 = vadd.f32 %v532_v22, %v4391_v7  ;;  %v3104_v20 = vpop.f32.mrb[51].mxu1  ;;  %3372 = vmatmul.mubr.msk.bf16.gmra.mrb[156].mxu0 %vm238_vm2, %v1656_v44  ;;  %v1658_v61 = vsel %vm1408_vm6, %v1655_v34, %v1657_v54  ;;  %v1428_v34 = vrot.slane %v4260_v8, 2 }
 0x144   :  { %3375 = vmatprep.mubr.msk.bf16.mxu0 %vm3648_vm0, %v5180_v62 }
 0x145   :  { %3322 = vmatmul.mubr.msk.bf16.gmra.mrb[156].mxu1 %vm238_vm2, %v1425_v0 }
 0x146   :  { %3325 = vmatprep.mubr.msk.bf16.mxu1 %vm3648_vm0, %v5180_v62  ;;  %v749_v55 = vpop.f32.mrb[52].mxu0 }
 0x147   :  { %v4503_v58 = vadd.f32 %v749_v55, %v530_v52  ;;  %v3157_v7 = vpop.f32.mrb[53].mxu0 }
 0x148   :  { %v537_v25 = vpop.f32.mrb[52].mxu1  ;;  %v752_v4 = vpop.f32.mrb[54].mxu0 }
 0x149   :  { %v538_v37 = vadd.f32 %v537_v25, %v4250_v41  ;;  %v3107_v38 = vpop.f32.mrb[53].mxu1  ;;  %v4507_v59 = vadd.f32 %v752_v4, %v533_v24  ;;  %v3158_v39 = vpop.f32.mrb[55].mxu0  ;;  %v1659_v41 = vrot.slane %v3829_v50, 2  ;;  %v1429_v25 = vsel %vm1408_vm6, %v1426_v1, %v1428_v34 }
 0x14a   :  { %v540_v57 = vpop.f32.mrb[54].mxu1 }
 0x14b   :  { %v541_v11 = vadd.f32 %v540_v57, %v4255_v12  ;;  %v3108_v51 = vpop.f32.mrb[55].mxu1  ;;  %3376 = vmatmul.mubr.msk.bf16.gmra.mrb[160].mxu0 %vm238_vm2, %v1658_v61  ;;  %v1660_v0 = vsel %vm1408_vm6, %v1657_v54, %v1659_v41  ;;  %v1430_v54 = vrot.slane %v4283_v21, 2 }
 0x14c   :  { %3379 = vmatprep.mubr.msk.bf16.mxu0 %vm3648_vm0, %v5180_v62 }
 0x14d   :  { %3326 = vmatmul.mubr.msk.bf16.gmra.mrb[160].mxu1 %vm238_vm2, %v1427_v36 }
 0x14e   :  { %3329 = vmatprep.mubr.msk.bf16.mxu1 %vm3648_vm0, %v5180_v62  ;;  %v757_v52 = vpop.f32.mrb[56].mxu0 }
 0x14f   :  { %v4519_v26 = vadd.f32 %v757_v52, %v538_v37  ;;  %v3161_v12 = vpop.f32.mrb[57].mxu0  ;;  %v1431_v52 = vsel %vm1408_vm6, %v1428_v34, %v1430_v54  ;;  %v2689_v34 = vld [vmem:[%s5148_s1 + $0x6c] sm:$0xf] }
 0x150   :  { %v545_v53 = vpop.f32.mrb[56].mxu1  ;;  %v760_v19 = vpop.f32.mrb[58].mxu0 }
 0x151   :  { %v546_v44 = vadd.f32 %v545_v53, %v4273_v32  ;;  %v3111_v22 = vpop.f32.mrb[57].mxu1  ;;  %v4523_v20 = vadd.f32 %v760_v19, %v541_v11  ;;  %v3162_v55 = vpop.f32.mrb[59].mxu0  ;;  %v1661_v32 = vrot.slane %v3881_v3, 2 }
 0x152   :  { %v548_v24 = vpop.f32.mrb[58].mxu1 }
 0x153   :  { %v549_v7 = vadd.f32 %v548_v24, %v4278_v5  ;;  %v3112_v8 = vpop.f32.mrb[59].mxu1  ;;  %3380 = vmatmul.mubr.msk.bf16.gmra.mrb[164].mxu0 %vm238_vm2, %v1660_v0  ;;  %v1662_v39 = vsel %vm1408_vm6, %v1659_v41, %v1661_v32  ;;  %v1432_v41 = vrot.slane %v4319_v23, 2 }
 0x154   :  { %3383 = vmatprep.mubr.msk.bf16.mxu0 %vm3648_vm0, %v5180_v62 }
 0x155   :  { %3330 = vmatmul.mubr.msk.bf16.gmra.mrb[164].mxu1 %vm238_vm2, %v1429_v25  ;;  %v4559_v25 = vcombine.low %v4307_v27, %v2689_v34 }
 0x156   :  { %3333 = vmatprep.mubr.msk.bf16.mxu1 %vm3648_vm0, %v5180_v62  ;;  %v765_v37 = vpop.f32.mrb[60].mxu0 }
 0x157   :  { %v4535_v1 = vadd.f32 %v765_v37, %v546_v44  ;;  %v3165_v5 = vpop.f32.mrb[61].mxu0  ;;  %v1433_v37 = vsel %vm1408_vm6, %v1430_v54, %v1432_v41 }
 0x158   :  { %v553_v38 = vpop.f32.mrb[60].mxu1  ;;  %v768_v57 = vpop.f32.mrb[62].mxu0 }
 0x159   :  { %v554_v4 = vadd.f32 %v553_v38, %v4309_v30  ;;  %v3115_v61 = vpop.f32.mrb[61].mxu1  ;;  %v4539_v11 = vadd.f32 %v768_v57, %v549_v7  ;;  %v3166_v51 = vpop.f32.mrb[63].mxu0  ;;  %v1663_v30 = vrot.slane %v3926_v49, 2 }
 0x15a   :  { %v556_v36 = vpop.f32.mrb[62].mxu1 }
 0x15b   :  { %v557_v53 = vadd.f32 %v556_v36, %v4314_v18  ;;  %v3116_v21 = vpop.f32.mrb[63].mxu1  ;;  %3384 = vmatmul.mubr.msk.bf16.gmra.mrb[168].mxu0 %vm238_vm2, %v1662_v39  ;;  %v1664_v55 = vsel %vm1408_vm6, %v1661_v32, %v1663_v30 }
 0x15c   :  { %3387 = vmatprep.mubr.msk.bf16.mxu0 %vm3648_vm0, %v5180_v62 }
 0x15d   :  { %3334 = vmatmul.mubr.msk.bf16.gmra.mrb[168].mxu1 %vm238_vm2, %v1431_v52 }
 0x15e   :  { %3337 = vmatprep.mubr.msk.bf16.mxu1 %vm3648_vm0, %v5180_v62  ;;  %v773_v18 = vpop.f32.mrb[64].mxu0 }
 0x15f   :  { %v4554_v44 = vadd.f32 %v773_v18, %v554_v4  ;;  %v3169_v22 = vpop.f32.mrb[65].mxu0 }
 0x160   :  { %v561_v12 = vpop.f32.mrb[64].mxu1  ;;  %v776_v24 = vpop.f32.mrb[66].mxu0 }
 0x161   :  { %v562_v19 = vadd.f32 %v561_v12, %v4338_v43  ;;  %v3119_v0 = vpop.f32.mrb[65].mxu1  ;;  %v4561_v23 = vadd.f32 %v776_v24, %v557_v53  ;;  %v3170_v8 = vpop.f32.mrb[67].mxu0  ;;  %v1665_v43 = vrot.slane %v4559_v25, 2 }
 0x162   :  { %v564_v7 = vpop.f32.mrb[66].mxu1 }
 0x163   :  { %v565_v38 = vadd.f32 %v564_v7, %v4343_v6  ;;  %v3120_v5 = vpop.f32.mrb[67].mxu1  ;;  %3388 = vmatmul.mubr.msk.bf16.gmra.mrb[172].mxu0 %vm238_vm2, %v1664_v55  ;;  %v1666_v39 = vsel %vm1408_vm6, %v1663_v30, %v1665_v43  ;;  %v5182_v7 = vshll.u32 %v3819_v47, 16 }
 0x164   :  { %3391 = vmatprep.mubr.msk.bf16.mxu0 %vm3648_vm0, %v5180_v62 }
 0x165   :  { %3338 = vmatmul.mubr.msk.bf16.gmra.mrb[172].mxu1 %vm238_vm2, %v1433_v37  ;;  %v1882_v8 = vrot.slane %v5182_v7, 3 }
 0x166   :  { %3341 = vmatprep.mubr.msk.bf16.mxu1 %vm3648_vm0, %v5180_v62  ;;  %v781_v27 = vpop.f32.mrb[68].mxu0 }
 0x167   :  { %v4572_v4 = vadd.f32 %v781_v27, %v562_v19  ;;  %v3173_v54 = vpop.f32.mrb[69].mxu0  ;;  %v5185_v27 = vld [vmem:[#allocation3_spill] sm:$0xff] }
 0x168   :  { %v569_v32 = vpop.f32.mrb[68].mxu1  ;;  %v784_v57 = vpop.f32.mrb[70].mxu0 }
 0x169   :  { %v570_v6 = vadd.f32 %v569_v32, %v4354_v56  ;;  %v3123_v61 = vpop.f32.mrb[69].mxu1  ;;  %v4576_v51 = vadd.f32 %v784_v57, %v565_v38  ;;  %v3174_v52 = vpop.f32.mrb[71].mxu0  ;;  %v5183_v38 = vld [vmem:[#allocation5_spill] sm:$0xff]  ;;  %v2138_v32 = vrot.slane %v5185_v27, 3 }
 0x16a   :  { %v572_v36 = vpop.f32.mrb[70].mxu1 }
 0x16b   :  { %v573_v53 = vadd.f32 %v572_v36, %v4359_v31  ;;  %v3124_v21 = vpop.f32.mrb[71].mxu1  ;;  %3392 = vmatmul.mubr.msk.bf16.gmra.mrb[176].mxu0 %vm238_vm2, %v1666_v39 }
 0x16c   :  { %3395 = vmatprep.mubr.msk.bf16.mxu0 %vm3648_vm0, %v5180_v62 }
 0x16d   :  { %3342 = vmatmul.mubr.msk.bf16.gmra.mrb[176].mxu1 %vm238_vm2, %v1432_v41  ;;  %v5181_v41 = vshrl.u32 %v3819_v47, 16 }
 0x16e   :  { %3401 = vmatprep.mubr.msk.bf16.mxu1 %vm3648_vm0, %v5180_v62  ;;  %v789_v56 = vpop.f32.mrb[72].mxu0 }
 0x16f   :  { %v4585_v30 = vadd.f32 %v789_v56, %v570_v6  ;;  %v3177_v18 = vpop.f32.mrb[73].mxu0  ;;  %v1881_v55 = vrot.slane %v5181_v41, 2 }
 0x170   :  { %v577_v34 = vpop.f32.mrb[72].mxu1  ;;  %v792_v22 = vpop.f32.mrb[74].mxu0 }
 0x171   :  { %v578_v12 = vadd.f32 %v577_v34, %v4371_v17  ;;  %v3127_v31 = vpop.f32.mrb[73].mxu1  ;;  %v4588_v19 = vadd.f32 %v792_v22, %v573_v53  ;;  %v3178_v0 = vpop.f32.mrb[75].mxu0  ;;  %v5184_v17 = vld [vmem:[#allocation2_spill] sm:$0xff]  ;;  %v1883_v54 = vor.u32 %v1882_v8, %v1881_v55  ;;  %v5186_v34 = vld [vmem:[#allocation4_spill] sm:$0xff]  ;;  %v5187_v22 = vshrl.u32 %v3871_v63, 16 }
 0x172   :  { %v580_v24 = vpop.f32.mrb[74].mxu1  ;;  %v2137_v5 = vrot.slane %v5184_v17, 3  ;;  %v5188_v0 = vshll.u32 %v3871_v63, 16 }
 0x173   :  { %v3128_v37 = vpop.f32.mrb[75].mxu1  ;;  %3396 = vmatmul.mubr.msk.bf16.gmra.mrb[180].mxu0 %vm238_vm2, %v1665_v43  ;;  %v1884_v18 = vsel %vm1873_vm5, %v5186_v34, %v1883_v54  ;;  %v1885_v31 = vrot.slane %v5187_v22, 2 }
 0x174   :  { %3455 = vmatprep.mubr.msk.bf16.mxu0 %vm3648_vm0, %v5180_v62  ;;  %v2139_v53 = vsel %vm2136_vm7, %v2137_v5, %v2138_v32 }
 0x175   :  { %3402 = vmatmul.mubr.msk.bf16.vlgmr.msra.gmra.mrb[180].mxu1 %vm238_vm2, %v5183_v38 }
 0x176   :  { %3405 = vmatprep.mubr.msk.bf16.mxu1 %vm3648_vm0, %v5180_v62  ;;  %v797_v6 = vpop.f32.mrb[76].mxu0 }
 0x177   :  { %v4603_v61 = vadd.f32 %v797_v6, %v578_v12  ;;  %v3181_v43 = vpop.f32.mrb[77].mxu0  ;;  %v1886_v12 = vrot.slane %v5188_v0, 3 }
 0x178   :  { %v958_v57 = vpop.f32.mrb[76].mxu1  ;;  %v800_v52 = vpop.f32.mrb[78].mxu0 }
 0x179   :  { %v1060_v39 = vadd.f32 %v958_v57, %v4407_v48  ;;  %v3187_v36 = vpop.f32.mrb[77].mxu1  ;;  %v3182_v56 = vpop.f32.mrb[79].mxu0  ;;  %v2140_v48 = vrot.slane %v3819_v47, 3  ;;  %v1887_v55 = vor.u32 %v1886_v12, %v1885_v31 }
 0x17a   :  { %v961_v21 = vpop.f32.mrb[78].mxu1  ;;  %v5189_v36 = vshrl.u32 %v3916_v45, 16 }
 0x17b   :  { %v1061_v24 = vadd.f32 %v961_v21, %v4411_v15  ;;  %v3188_v41 = vpop.f32.mrb[79].mxu1  ;;  %3456 = vmatmul.mubr.msk.bf16.vlgmr.msra.gmra.mrb[184].mxu0 %vm238_vm2, %v2139_v53  ;;  %v2141_v27 = vsel %vm2136_vm7, %v2138_v32, %v2140_v48  ;;  %v1888_v47 = vsel %vm1873_vm5, %v1883_v54, %v1887_v55  ;;  %v5190_v53 = vshll.u32 %v3916_v45, 16 }
 0x17c   :  { %3459 = vmatprep.mubr.msk.bf16.mxu0 %vm3648_vm0, %v5180_v62  ;;  %v1889_v52 = vrot.slane %v5189_v36, 2 }
 0x17d   :  { %3406 = vmatmul.mubr.msk.bf16.gmra.mrb[184].mxu1 %vm238_vm2, %v1884_v18 }
 0x17e   :  { %3409 = vmatprep.mubr.msk.bf16.mxu1 %vm3648_vm0, %v5180_v62  ;;  %v1281_v7 = vpop.f32.mrb[80].mxu0 }
 0x17f   :  { %v4621_v37 = vadd.f32 %v1281_v7, %v1060_v39  ;;  %v3241_v38 = vpop.f32.mrb[81].mxu0  ;;  %v1890_v39 = vrot.slane %v5190_v53, 3 }
 0x180   :  { %v966_v8 = vpop.f32.mrb[80].mxu1  ;;  %v1284_v5 = vpop.f32.mrb[82].mxu0 }
 0x181   :  { %v1062_v15 = vadd.f32 %v966_v8, %v4423_v33  ;;  %v3191_v17 = vpop.f32.mrb[81].mxu1  ;;  %v4625_v57 = vadd.f32 %v1284_v5, %v1061_v24  ;;  %v3242_v43 = vpop.f32.mrb[83].mxu0  ;;  %v2142_v33 = vrot.slane %v3871_v63, 3  ;;  %v1891_v32 = vor.u32 %v1890_v39, %v1889_v52 }
 0x182   :  { %v969_v6 = vpop.f32.mrb[82].mxu1  ;;  %v5191_v8 = vshrl.u32 %v3955_v46, 16  ;;  %v5192_v17 = vshll.u32 %v3955_v46, 16 }
 0x183   :  { %v1063_v21 = vadd.f32 %v969_v6, %v4427_v9  ;;  %v3192_v56 = vpop.f32.mrb[83].mxu1  ;;  %3460 = vmatmul.mubr.msk.bf16.gmra.mrb[188].mxu0 %vm238_vm2, %v2141_v27  ;;  %v2143_v12 = vsel %vm2136_vm7, %v2140_v48, %v2142_v33  ;;  %v1892_v63 = vsel %vm1873_vm5, %v1887_v55, %v1891_v32 }
 0x184   :  { %3463 = vmatprep.mubr.msk.bf16.mxu0 %vm3648_vm0, %v5180_v62  ;;  %v1893_v38 = vrot.slane %v5191_v8, 2 }
 0x185   :  { %3410 = vmatmul.mubr.msk.bf16.gmra.mrb[188].mxu1 %vm238_vm2, %v1888_v47 }
 0x186   :  { %3413 = vmatprep.mubr.msk.bf16.mxu1 %vm3648_vm0, %v5180_v62  ;;  %v1289_v54 = vpop.f32.mrb[84].mxu0 }
 0x187   :  { %v4640_v18 = vadd.f32 %v1289_v54, %v1062_v15  ;;  %v3245_v22 = vpop.f32.mrb[85].mxu0  ;;  %v1894_v15 = vrot.slane %v5192_v17, 3  ;;  %v5193_v54 = vshrl.u32 %v3727_v13, 16 }
 0x188   :  { %v974_v34 = vpop.f32.mrb[84].mxu1  ;;  %v1292_v0 = vpop.f32.mrb[86].mxu0  ;;  %v5194_v22 = vshll.u32 %v3727_v13, 16 }
 0x189   :  { %v1064_v9 = vadd.f32 %v974_v34, %v4439_v14  ;;  %v3195_v31 = vpop.f32.mrb[85].mxu1  ;;  %v4644_v41 = vadd.f32 %v1292_v0, %v1063_v21  ;;  %v3246_v7 = vpop.f32.mrb[87].mxu0  ;;  %v2144_v14 = vrot.slane %v3916_v45, 3  ;;  %v1895_v48 = vor.u32 %v1894_v15, %v1893_v38 }
 0x18a   :  { %v977_v24 = vpop.f32.mrb[86].mxu1  ;;  %v1897_v34 = vrot.slane %v5193_v54, 2 }
 0x18b   :  { %v1065_v5 = vadd.f32 %v977_v24, %v4443_v40  ;;  %v3196_v27 = vpop.f32.mrb[87].mxu1  ;;  %3464 = vmatmul.mubr.msk.bf16.gmra.mrb[192].mxu0 %vm238_vm2, %v2143_v12  ;;  %v2145_v53 = vsel %vm2136_vm7, %v2142_v33, %v2144_v14  ;;  %v1896_v45 = vsel %vm1873_vm5, %v1891_v32, %v1895_v48 }
 0x18c   :  { %3467 = vmatprep.mubr.msk.bf16.mxu0 %vm3648_vm0, %v5180_v62  ;;  %v5195_v27 = vshrl.u32 %v3734_v16, 16 }
 0x18d   :  { %3414 = vmatmul.mubr.msk.bf16.gmra.mrb[192].mxu1 %vm238_vm2, %v1892_v63 }
 0x18e   :  { %3417 = vmatprep.mubr.msk.bf16.mxu1 %vm3648_vm0, %v5180_v62  ;;  %v1297_v55 = vpop.f32.mrb[88].mxu0 }
 0x18f   :  { %v4659_v43 = vadd.f32 %v1297_v55, %v1064_v9  ;;  %v3249_v47 = vpop.f32.mrb[89].mxu0  ;;  %v1898_v9 = vrot.slane %v5194_v22, 3  ;;  %v1901_v55 = vrot.slane %v5195_v27, 2 }
 0x190   :  { %v982_v6 = vpop.f32.mrb[88].mxu1  ;;  %v1300_v52 = vpop.f32.mrb[90].mxu0 }
 0x191   :  { %v1066_v40 = vadd.f32 %v982_v6, %v4455_v2  ;;  %v3199_v36 = vpop.f32.mrb[89].mxu1  ;;  %v4663_v21 = vadd.f32 %v1300_v52, %v1065_v5  ;;  %v3250_v56 = vpop.f32.mrb[91].mxu0  ;;  %v2146_v2 = vrot.slane %v3955_v46, 3  ;;  %v1899_v33 = vor.u32 %v1898_v9, %v1897_v34 }
 0x192   :  { %v985_v39 = vpop.f32.mrb[90].mxu1  ;;  %v5196_v6 = vshll.u32 %v3734_v16, 16 }
 0x193   :  { %v1067_v31 = vadd.f32 %v985_v39, %v4459_v29  ;;  %v3200_v0 = vpop.f32.mrb[91].mxu1  ;;  %3468 = vmatmul.mubr.msk.bf16.gmra.mrb[196].mxu0 %vm238_vm2, %v2145_v53  ;;  %v2147_v38 = vsel %vm2136_vm7, %v2144_v14, %v2146_v2  ;;  %v1900_v46 = vsel %vm1873_vm5, %v1895_v48, %v1899_v33 }
 0x194   :  { %3471 = vmatprep.mubr.msk.bf16.mxu0 %vm3648_vm0, %v5180_v62  ;;  %v1902_v47 = vrot.slane %v5196_v6, 3 }
 0x195   :  { %3418 = vmatmul.mubr.msk.bf16.gmra.mrb[196].mxu1 %vm238_vm2, %v1896_v45 }
 0x196   :  { %3421 = vmatprep.mubr.msk.bf16.mxu1 %vm3648_vm0, %v5180_v62  ;;  %v1305_v32 = vpop.f32.mrb[92].mxu0  ;;  %v1903_v14 = vor.u32 %v1902_v47, %v1901_v55  ;;  %v5199_v47 = vshrl.u32 %v3829_v50, 16 }
 0x197   :  { %v4678_v24 = vadd.f32 %v1305_v32, %v1066_v40  ;;  %v3253_v7 = vpop.f32.mrb[93].mxu0  ;;  %v5198_v32 = vshll.u32 %v3784_v35, 16 }
 0x198   :  { %v990_v12 = vpop.f32.mrb[92].mxu1  ;;  %v1308_v8 = vpop.f32.mrb[94].mxu0 }
 0x199   :  { %v1068_v29 = vadd.f32 %v990_v12, %v4471_v28  ;;  %v3203_v63 = vpop.f32.mrb[93].mxu1  ;;  %v4682_v15 = vadd.f32 %v1308_v8, %v1067_v31  ;;  %v3254_v5 = vpop.f32.mrb[95].mxu0  ;;  %v2148_v28 = vrot.slane %v3727_v13, 3  ;;  %v1904_v13 = vsel %vm1873_vm5, %v1899_v33, %v1903_v14 }
 0x19a   :  { %v993_v17 = vpop.f32.mrb[94].mxu1  ;;  %v5197_v31 = vshrl.u32 %v3784_v35, 16  ;;  %v1906_v12 = vrot.slane %v5198_v32, 3  ;;  %v5201_v32 = vshrl.u32 %v3881_v3, 16 }
 0x19b   :  { %v1069_v40 = vadd.f32 %v993_v17, %v4475_v60  ;;  %v3204_v36 = vpop.f32.mrb[95].mxu1  ;;  %3472 = vmatmul.mubr.msk.bf16.gmra.mrb[200].mxu0 %vm238_vm2, %v2147_v38  ;;  %v2149_v54 = vsel %vm2136_vm7, %v2146_v2, %v2148_v28 }
 0x19c   :  { %3475 = vmatprep.mubr.msk.bf16.mxu0 %vm3648_vm0, %v5180_v62  ;;  %v1905_v0 = vrot.slane %v5197_v31, 2  ;;  %v5200_v36 = vshll.u32 %v3829_v50, 16 }
 0x19d   :  { %3422 = vmatmul.mubr.msk.bf16.gmra.mrb[200].mxu1 %vm238_vm2, %v1900_v46 }
 0x19e   :  { %3425 = vmatprep.mubr.msk.bf16.mxu1 %vm3648_vm0, %v5180_v62  ;;  %v1313_v48 = vpop.f32.mrb[96].mxu0  ;;  %v1907_v2 = vor.u32 %v1906_v12, %v1905_v0  ;;  %v1913_v12 = vrot.slane %v5201_v32, 2 }
 0x19f   :  { %v4697_v53 = vadd.f32 %v1313_v48, %v1068_v29  ;;  %v3257_v39 = vpop.f32.mrb[97].mxu0  ;;  %v1910_v48 = vrot.slane %v5200_v36, 3 }
 0x1a0   :  { %v998_v52 = vpop.f32.mrb[96].mxu1  ;;  %v1316_v45 = vpop.f32.mrb[98].mxu0 }
 0x1a1   :  { %v1070_v60 = vadd.f32 %v998_v52, %v4487_v42  ;;  %v3207_v56 = vpop.f32.mrb[97].mxu1  ;;  %v4701_v22 = vadd.f32 %v1316_v45, %v1069_v40  ;;  %v3258_v9 = vpop.f32.mrb[99].mxu0  ;;  %v2150_v42 = vrot.slane %v3734_v16, 3  ;;  %v1908_v16 = vsel %vm1873_vm5, %v1903_v14, %v1907_v2 }
 0x1a2   :  { %v1001_v34 = vpop.f32.mrb[98].mxu1  ;;  %v1909_v40 = vrot.slane %v5199_v47, 2 }
 0x1a3   :  { %v1071_v7 = vadd.f32 %v1001_v34, %v4491_v10  ;;  %v3208_v29 = vpop.f32.mrb[99].mxu1  ;;  %3476 = vmatmul.mubr.msk.bf16.gmra.mrb[204].mxu0 %vm238_vm2, %v2149_v54  ;;  %v2151_v46 = vsel %vm2136_vm7, %v2148_v28, %v2150_v42 }
 0x1a4   :  { %3479 = vmatprep.mubr.msk.bf16.mxu0 %vm3648_vm0, %v5180_v62  ;;  %v1911_v28 = vor.u32 %v1910_v48, %v1909_v40  ;;  %v5203_v40 = vshrl.u32 %v3926_v49, 16  ;;  %v5204_v48 = vshll.u32 %v3926_v49, 16 }
 0x1a5   :  { %3426 = vmatmul.mubr.msk.bf16.gmra.mrb[204].mxu1 %vm238_vm2, %v1904_v13 }
 0x1a6   :  { %3429 = vmatprep.mubr.msk.bf16.mxu1 %vm3648_vm0, %v5180_v62  ;;  %v1321_v33 = vpop.f32.mrb[100].mxu0  ;;  %v1917_v36 = vrot.slane %v5203_v40, 2 }
 0x1a7   :  { %v4716_v8 = vadd.f32 %v1321_v33, %v1070_v60  ;;  %v3261_v38 = vpop.f32.mrb[101].mxu0 }
 0x1a8   :  { %v1006_v63 = vpop.f32.mrb[100].mxu1  ;;  %v1324_v5 = vpop.f32.mrb[102].mxu0 }
 0x1a9   :  { %v1072_v10 = vadd.f32 %v1006_v63, %v4503_v58  ;;  %v3211_v17 = vpop.f32.mrb[101].mxu1  ;;  %v4720_v55 = vadd.f32 %v1324_v5, %v1071_v7  ;;  %v3262_v6 = vpop.f32.mrb[103].mxu0  ;;  %v2152_v58 = vrot.slane %v3784_v35, 3  ;;  %v1912_v35 = vsel %vm1873_vm5, %v1907_v2, %v1911_v28 }
 0x1aa   :  { %v1009_v27 = vpop.f32.mrb[102].mxu1  ;;  %v5202_v7 = vshll.u32 %v3881_v3, 16 }
 0x1ab   :  { %v1073_v52 = vadd.f32 %v1009_v27, %v4507_v59  ;;  %v3212_v39 = vpop.f32.mrb[103].mxu1  ;;  %3480 = vmatmul.mubr.msk.bf16.gmra.mrb[208].mxu0 %vm238_vm2, %v2151_v46  ;;  %v2153_v9 = vsel %vm2136_vm7, %v2150_v42, %v2152_v58 }
 0x1ac   :  { %3483 = vmatprep.mubr.msk.bf16.mxu0 %vm3648_vm0, %v5180_v62  ;;  %v1914_v29 = vrot.slane %v5202_v7, 3 }
 0x1ad   :  { %3430 = vmatmul.mubr.msk.bf16.gmra.mrb[208].mxu1 %vm238_vm2, %v1908_v16 }
 0x1ae   :  { %3433 = vmatprep.mubr.msk.bf16.mxu1 %vm3648_vm0, %v5180_v62  ;;  %v1329_v14 = vpop.f32.mrb[104].mxu0  ;;  %v1915_v42 = vor.u32 %v1914_v29, %v1913_v12 }
 0x1af   :  { %v4735_v56 = vadd.f32 %v1329_v14, %v1072_v10  ;;  %v3265_v45 = vpop.f32.mrb[105].mxu0 }
 0x1b0   :  { %v1014_v60 = vpop.f32.mrb[104].mxu1  ;;  %v1332_v34 = vpop.f32.mrb[106].mxu0 }
 0x1b1   :  { %v1074_v59 = vadd.f32 %v1014_v60, %v4519_v26  ;;  %v3215_v54 = vpop.f32.mrb[105].mxu1  ;;  %v4739_v31 = vadd.f32 %v1332_v34, %v1073_v52  ;;  %v3266_v0 = vpop.f32.mrb[107].mxu0  ;;  %v2154_v26 = vrot.slane %v3829_v50, 3  ;;  %v1916_v50 = vsel %vm1873_vm5, %v1911_v28, %v1915_v42 }
 0x1b2   :  { %v1017_v13 = vpop.f32.mrb[106].mxu1  ;;  %v1918_v52 = vrot.slane %v5204_v48, 3  ;;  %v1922_v28 = vshrl.u32 %v4559_v25, 16  ;;  %v1925_v60 = vshll.u32 %v4559_v25, 16 }
 0x1b3   :  { %v1075_v33 = vadd.f32 %v1017_v13, %v4523_v20  ;;  %v3216_v63 = vpop.f32.mrb[107].mxu1  ;;  %3484 = vmatmul.mubr.msk.bf16.gmra.mrb[212].mxu0 %vm238_vm2, %v2153_v9  ;;  %v2155_v27 = vsel %vm2136_vm7, %v2152_v58, %v2154_v26 }
 0x1b4   :  { %3487 = vmatprep.mubr.msk.bf16.mxu0 %vm3648_vm0, %v5180_v62  ;;  %v1919_v58 = vor.u32 %v1918_v52, %v1917_v36  ;;  %v1924_v7 = vrot.slane %v1922_v28, 2  ;;  %v1927_v29 = vrot.slane %v1925_v60, 3 }
 0x1b5   :  { %3434 = vmatmul.mubr.msk.bf16.gmra.mrb[212].mxu1 %vm238_vm2, %v1912_v35 }
 0x1b6   :  { %3437 = vmatprep.mubr.msk.bf16.mxu1 %vm3648_vm0, %v5180_v62  ;;  %v1337_v2 = vpop.f32.mrb[108].mxu0  ;;  %v1920_v12 = vsel %vm1873_vm5, %v1915_v42, %v1919_v58 }
 0x1b7   :  { %v4754_v10 = vadd.f32 %v1337_v2, %v1074_v59  ;;  %v3269_v17 = vpop.f32.mrb[109].mxu0 }
 0x1b8   :  { %v1022_v38 = vpop.f32.mrb[108].mxu1  ;;  %v1340_v46 = vpop.f32.mrb[110].mxu0 }
 0x1b9   :  { %v1076_v20 = vadd.f32 %v1022_v38, %v4535_v1  ;;  %v3219_v5 = vpop.f32.mrb[109].mxu1  ;;  %v4758_v16 = vadd.f32 %v1340_v46, %v1075_v33  ;;  %v3270_v47 = vpop.f32.mrb[111].mxu0  ;;  %v2156_v1 = vrot.slane %v3881_v3, 3 }
 0x1ba   :  { %v1025_v6 = vpop.f32.mrb[110].mxu1 }
 0x1bb   :  { %v1077_v39 = vadd.f32 %v1025_v6, %v4539_v11  ;;  %v3220_v14 = vpop.f32.mrb[111].mxu1  ;;  %3488 = vmatmul.mubr.msk.bf16.gmra.mrb[216].mxu0 %vm238_vm2, %v2155_v27  ;;  %v2157_v0 = vsel %vm2136_vm7, %v2154_v26, %v2156_v1  ;;  %v1928_v26 = vor.u32 %v1927_v29, %v1924_v7 }
 0x1bc   :  { %3491 = vmatprep.mubr.msk.bf16.mxu0 %vm3648_vm0, %v5180_v62 }
 0x1bd   :  { %3438 = vmatmul.mubr.msk.bf16.gmra.mrb[216].mxu1 %vm238_vm2, %v1916_v50 }
 0x1be   :  { %3441 = vmatprep.mubr.msk.bf16.mxu1 %vm3648_vm0, %v5180_v62  ;;  %v1345_v45 = vpop.f32.mrb[112].mxu0 }
 0x1bf   :  { %v4775_v59 = vadd.f32 %v1345_v45, %v1076_v20  ;;  %v3273_v54 = vpop.f32.mrb[113].mxu0 }
 0x1c0   :  { %v1030_v11 = vpop.f32.mrb[112].mxu1  ;;  %v1348_v13 = vpop.f32.mrb[114].mxu0 }
 0x1c1   :  { %v1078_v34 = vadd.f32 %v1030_v11, %v4554_v44  ;;  %v3223_v9 = vpop.f32.mrb[113].mxu1  ;;  %v4779_v35 = vadd.f32 %v1348_v13, %v1077_v39  ;;  %v3274_v32 = vpop.f32.mrb[115].mxu0  ;;  %v2158_v44 = vrot.slane %v3926_v49, 3  ;;  %v1929_v49 = vsel %vm1873_vm5, %v1919_v58, %v1928_v26 }
 0x1c2   :  { %v1033_v3 = vpop.f32.mrb[114].mxu1 }
 0x1c3   :  { %v1079_v33 = vadd.f32 %v1033_v3, %v4561_v23  ;;  %v3224_v63 = vpop.f32.mrb[115].mxu1  ;;  %3492 = vmatmul.mubr.msk.bf16.gmra.mrb[220].mxu0 %vm238_vm2, %v2157_v0  ;;  %v2159_v46 = vsel %vm2136_vm7, %v2156_v1, %v2158_v44 }
 0x1c4   :  { %3495 = vmatprep.mubr.msk.bf16.mxu0 %vm3648_vm0, %v5180_v62 }
 0x1c5   :  { %3442 = vmatmul.mubr.msk.bf16.gmra.mrb[220].mxu1 %vm238_vm2, %v1920_v12 }
 0x1c6   :  { %3445 = vmatprep.mubr.msk.bf16.mxu1 %vm3648_vm0, %v5180_v62  ;;  %v1353_v2 = vpop.f32.mrb[116].mxu0 }
 0x1c7   :  { %v4790_v38 = vadd.f32 %v1353_v2, %v1078_v34  ;;  %v3277_v17 = vpop.f32.mrb[117].mxu0 }
 0x1c8   :  { %v1038_v42 = vpop.f32.mrb[116].mxu1  ;;  %v1356_v5 = vpop.f32.mrb[118].mxu0 }
 0x1c9   :  { %v1080_v23 = vadd.f32 %v1038_v42, %v4572_v4  ;;  %v3227_v20 = vpop.f32.mrb[117].mxu1  ;;  %v4794_v6 = vadd.f32 %v1356_v5, %v1079_v33  ;;  %v3278_v47 = vpop.f32.mrb[119].mxu0  ;;  %v2160_v4 = vrot.slane %v4559_v25, 3 }
 0x1ca   :  { %v1041_v27 = vpop.f32.mrb[118].mxu1 }
 0x1cb   :  { %v1081_v50 = vadd.f32 %v1041_v27, %v4576_v51  ;;  %v3228_v40 = vpop.f32.mrb[119].mxu1  ;;  %3496 = vmatmul.mubr.msk.bf16.gmra.mrb[224].mxu0 %vm238_vm2, %v2159_v46  ;;  %v2161_v58 = vsel %vm2136_vm7, %v2158_v44, %v2160_v4 }
 0x1cc   :  { %3499 = vmatprep.mubr.msk.bf16.mxu0 %vm3648_vm0, %v5180_v62 }
 0x1cd   :  { %3446 = vmatmul.mubr.msk.bf16.gmra.mrb[224].mxu1 %vm238_vm2, %v1929_v49 }
 0x1ce   :  { %3449 = vmatprep.mubr.msk.bf16.mxu1 %vm3648_vm0, %v5180_v62  ;;  %v1361_v36 = vpop.f32.mrb[120].mxu0 }
 0x1cf   :  { %v4805_v52 = vadd.f32 %v1361_v36, %v1080_v23  ;;  %v3281_v39 = vpop.f32.mrb[121].mxu0 }
 0x1d0   :  { %v1046_v48 = vpop.f32.mrb[120].mxu1  ;;  %v1364_v1 = vpop.f32.mrb[122].mxu0 }
 0x1d1   :  { %v1082_v51 = vadd.f32 %v1046_v48, %v4585_v30  ;;  %v3231_v14 = vpop.f32.mrb[121].mxu1  ;;  %v4809_v60 = vadd.f32 %v1364_v1, %v1081_v50  ;;  %v3282_v45 = vpop.f32.mrb[123].mxu0 }
 0x1d2   :  { %v1049_v28 = vpop.f32.mrb[122].mxu1 }
 0x1d3   :  { %v1083_v25 = vadd.f32 %v1049_v28, %v4588_v19  ;;  %v3232_v11 = vpop.f32.mrb[123].mxu1  ;;  %3500 = vmatmul.mubr.msk.bf16.gmra.mrb[228].mxu0 %vm238_vm2, %v2161_v58 }
 0x1d4   :  { %3503 = vmatprep.mubr.msk.bf16.mxu0 %vm3648_vm0, %v5180_v62 }
 0x1d5   :  { %3450 = vmatmul.mubr.msk.bf16.gmra.mrb[228].mxu1 %vm238_vm2, %v1928_v26 }
 0x1d6   :  { %v1369_v54 = vpop.f32.mrb[124].mxu0 }
 0x1d7   :  { %v4816_v34 = vadd.f32 %v1369_v54, %v1082_v51  ;;  %v3285_v9 = vpop.f32.mrb[125].mxu0 }
 0x1d8   :  { %v1054_v30 = vpop.f32.mrb[124].mxu1  ;;  %v1372_v0 = vpop.f32.mrb[126].mxu0 }
 0x1d9   :  { %v1084_v13 = vadd.f32 %v1054_v30, %v4603_v61  ;;  %v3235_v3 = vpop.f32.mrb[125].mxu1  ;;  %v4819_v32 = vadd.f32 %v1372_v0, %v1083_v25  ;;  %v3286_v19 = vpop.f32.mrb[127].mxu0 }
 0x1da   :  { %v1057_v12 = vpop.f32.mrb[126].mxu1 }
 0x1db   :  { %v3236_v7 = vpop.f32.mrb[127].mxu1  ;;  %3504 = vmatmul.mubr.msk.bf16.gmra.mrb[232].mxu0 %vm238_vm2, %v2160_v4 }
 0x1de   :  { %v1377_v29 = vpop.f32.mrb[128].mxu0 }
 0x1df   :  { %v4822_v33 = vadd.f32 %v1377_v29, %v1084_v13  ;;  %v3289_v63 = vpop.f32.mrb[129].mxu0 }
 0x1e0   :  { %v1513_v62 = vpop.f32.mrb[128].mxu1  ;;  %v1380_v2 = vpop.f32.mrb[130].mxu0 }
 0x1e1   :  { %v1615_v44 = vadd.f32 %v1513_v62, %v4621_v37  ;;  %v3295_v26 = vpop.f32.mrb[129].mxu1  ;;  %v3290_v61 = vpop.f32.mrb[131].mxu0 }
 0x1e2   :  { %v1516_v42 = vpop.f32.mrb[130].mxu1 }
 0x1e3   :  { %v1616_v17 = vadd.f32 %v1516_v42, %v4625_v57  ;;  %v3296_v23 = vpop.f32.mrb[131].mxu1 }
 0x1e6   :  { %v1746_v20 = vpop.f32.mrb[132].mxu0 }
 0x1e7   :  { %v4826_v46 = vadd.f32 %v1746_v20, %v1615_v44  ;;  %v3349_v27 = vpop.f32.mrb[133].mxu0 }
 0x1e8   :  { %v1521_v5 = vpop.f32.mrb[132].mxu1  ;;  %v1749_v50 = vpop.f32.mrb[134].mxu0 }
 0x1e9   :  { %v1617_v47 = vadd.f32 %v1521_v5, %v4640_v18  ;;  %v3299_v49 = vpop.f32.mrb[133].mxu1  ;;  %v4829_v4 = vadd.f32 %v1749_v50, %v1616_v17  ;;  %v3350_v37 = vpop.f32.mrb[135].mxu0 }
 0x1ea   :  { %v1524_v40 = vpop.f32.mrb[134].mxu1 }
 0x1eb   :  { %v1618_v36 = vadd.f32 %v1524_v40, %v4644_v41  ;;  %v3300_v48 = vpop.f32.mrb[135].mxu1 }
 0x1ee   :  { %v1754_v39 = vpop.f32.mrb[136].mxu0 }
 0x1ef   :  { %v4832_v57 = vadd.f32 %v1754_v39, %v1617_v47  ;;  %v3353_v14 = vpop.f32.mrb[137].mxu0 }
 0x1f0   :  { %v1529_v51 = vpop.f32.mrb[136].mxu1  ;;  %v1757_v28 = vpop.f32.mrb[138].mxu0 }
 0x1f1   :  { %v1619_v1 = vadd.f32 %v1529_v51, %v4659_v43  ;;  %v3303_v58 = vpop.f32.mrb[137].mxu1  ;;  %v4835_v18 = vadd.f32 %v1757_v28, %v1618_v36  ;;  %v3354_v25 = vpop.f32.mrb[139].mxu0 }
 0x1f2   :  { %v1532_v45 = vpop.f32.mrb[138].mxu1 }
 0x1f3   :  { %v1620_v11 = vadd.f32 %v1532_v45, %v4663_v21  ;;  %v3304_v54 = vpop.f32.mrb[139].mxu1 }
 0x1f6   :  { %v1762_v30 = vpop.f32.mrb[140].mxu0 }
 0x1f7   :  { %v4838_v41 = vadd.f32 %v1762_v30, %v1619_v1  ;;  %v3357_v13 = vpop.f32.mrb[141].mxu0 }
 0x1f8   :  { %v1537_v9 = vpop.f32.mrb[140].mxu1  ;;  %v1765_v19 = vpop.f32.mrb[142].mxu0 }
 0x1f9   :  { %v1621_v0 = vadd.f32 %v1537_v9, %v4678_v24  ;;  %v3307_v3 = vpop.f32.mrb[141].mxu1  ;;  %v4841_v43 = vadd.f32 %v1765_v19, %v1620_v11  ;;  %v3358_v7 = vpop.f32.mrb[143].mxu0 }
 0x1fa   :  { %v1540_v12 = vpop.f32.mrb[142].mxu1 }
 0x1fb   :  { %v1622_v29 = vadd.f32 %v1540_v12, %v4682_v15  ;;  %v3308_v62 = vpop.f32.mrb[143].mxu1 }
 0x1fe   :  { %v1770_v63 = vpop.f32.mrb[144].mxu0 }
 0x1ff   :  { %v4844_v21 = vadd.f32 %v1770_v63, %v1621_v0  ;;  %v3361_v26 = vpop.f32.mrb[145].mxu0 }
 0x200   :  { %v1545_v44 = vpop.f32.mrb[144].mxu1  ;;  %v1773_v61 = vpop.f32.mrb[146].mxu0 }
 0x201   :  { %v1623_v2 = vadd.f32 %v1545_v44, %v4697_v53  ;;  %v3311_v42 = vpop.f32.mrb[145].mxu1  ;;  %v4847_v24 = vadd.f32 %v1773_v61, %v1622_v29  ;;  %v3362_v23 = vpop.f32.mrb[147].mxu0 }
 0x202   :  { %v1548_v17 = vpop.f32.mrb[146].mxu1 }
 0x203   :  { %v1624_v20 = vadd.f32 %v1548_v17, %v4701_v22  ;;  %v3312_v5 = vpop.f32.mrb[147].mxu1 }
 0x206   :  { %v1778_v27 = vpop.f32.mrb[148].mxu0 }
 0x207   :  { %v4850_v15 = vadd.f32 %v1778_v27, %v1623_v2  ;;  %v3365_v49 = vpop.f32.mrb[149].mxu0 }
 0x208   :  { %v1553_v47 = vpop.f32.mrb[148].mxu1  ;;  %v1781_v37 = vpop.f32.mrb[150].mxu0 }
 0x209   :  { %v1625_v50 = vadd.f32 %v1553_v47, %v4716_v8  ;;  %v3315_v40 = vpop.f32.mrb[149].mxu1  ;;  %v4853_v53 = vadd.f32 %v1781_v37, %v1624_v20  ;;  %v3366_v48 = vpop.f32.mrb[151].mxu0 }
 0x20a   :  { %v1556_v36 = vpop.f32.mrb[150].mxu1 }
 0x20b   :  { %v1626_v39 = vadd.f32 %v1556_v36, %v4720_v55  ;;  %v3316_v51 = vpop.f32.mrb[151].mxu1 }
 0x20e   :  { %v1786_v14 = vpop.f32.mrb[152].mxu0 }
 0x20f   :  { %v4856_v22 = vadd.f32 %v1786_v14, %v1625_v50  ;;  %v3369_v58 = vpop.f32.mrb[153].mxu0 }
 0x210   :  { %v1561_v1 = vpop.f32.mrb[152].mxu1  ;;  %v1789_v25 = vpop.f32.mrb[154].mxu0 }
 0x211   :  { %v1627_v28 = vadd.f32 %v1561_v1, %v4735_v56  ;;  %v3319_v45 = vpop.f32.mrb[153].mxu1  ;;  %v4859_v8 = vadd.f32 %v1789_v25, %v1626_v39  ;;  %v3370_v54 = vpop.f32.mrb[155].mxu0 }
 0x212   :  { %v1564_v11 = vpop.f32.mrb[154].mxu1 }
 0x213   :  { %v1628_v30 = vadd.f32 %v1564_v11, %v4739_v31  ;;  %v3320_v9 = vpop.f32.mrb[155].mxu1 }
 0x216   :  { %v1794_v13 = vpop.f32.mrb[156].mxu0 }
 0x217   :  { %v4862_v55 = vadd.f32 %v1794_v13, %v1627_v28  ;;  %v3373_v3 = vpop.f32.mrb[157].mxu0 }
 0x218   :  { %v1569_v0 = vpop.f32.mrb[156].mxu1  ;;  %v1797_v7 = vpop.f32.mrb[158].mxu0 }
 0x219   :  { %v1629_v19 = vadd.f32 %v1569_v0, %v4754_v10  ;;  %v3323_v12 = vpop.f32.mrb[157].mxu1  ;;  %v4865_v56 = vadd.f32 %v1797_v7, %v1628_v30  ;;  %v3374_v62 = vpop.f32.mrb[159].mxu0 }
 0x21a   :  { %v1572_v29 = vpop.f32.mrb[158].mxu1 }
 0x21b   :  { %v1630_v63 = vadd.f32 %v1572_v29, %v4758_v16  ;;  %v3324_v44 = vpop.f32.mrb[159].mxu1 }
 0x21e   :  { %v1802_v26 = vpop.f32.mrb[160].mxu0 }
 0x21f   :  { %v4868_v31 = vadd.f32 %v1802_v26, %v1629_v19  ;;  %v3377_v42 = vpop.f32.mrb[161].mxu0 }
 0x220   :  { %v1577_v2 = vpop.f32.mrb[160].mxu1  ;;  %v1805_v23 = vpop.f32.mrb[162].mxu0 }
 0x221   :  { %v1631_v61 = vadd.f32 %v1577_v2, %v4775_v59  ;;  %v3327_v17 = vpop.f32.mrb[161].mxu1  ;;  %v4871_v10 = vadd.f32 %v1805_v23, %v1630_v63  ;;  %v3378_v5 = vpop.f32.mrb[163].mxu0 }
 0x222   :  { %v1580_v20 = vpop.f32.mrb[162].mxu1 }
 0x223   :  { %v1632_v27 = vadd.f32 %v1580_v20, %v4779_v35  ;;  %v3328_v47 = vpop.f32.mrb[163].mxu1 }
 0x226   :  { %v1810_v49 = vpop.f32.mrb[164].mxu0 }
 0x227   :  { %v4874_v16 = vadd.f32 %v1810_v49, %v1631_v61  ;;  %v3381_v40 = vpop.f32.mrb[165].mxu0 }
 0x228   :  { %v1585_v50 = vpop.f32.mrb[164].mxu1  ;;  %v1813_v48 = vpop.f32.mrb[166].mxu0 }
 0x229   :  { %v1633_v37 = vadd.f32 %v1585_v50, %v4790_v38  ;;  %v3331_v36 = vpop.f32.mrb[165].mxu1  ;;  %v4877_v59 = vadd.f32 %v1813_v48, %v1632_v27  ;;  %v3382_v51 = vpop.f32.mrb[167].mxu0 }
 0x22a   :  { %v1588_v39 = vpop.f32.mrb[166].mxu1 }
 0x22b   :  { %v1634_v14 = vadd.f32 %v1588_v39, %v4794_v6  ;;  %v3332_v1 = vpop.f32.mrb[167].mxu1 }
 0x22e   :  { %v1818_v58 = vpop.f32.mrb[168].mxu0 }
 0x22f   :  { %v4880_v35 = vadd.f32 %v1818_v58, %v1633_v37  ;;  %v3385_v45 = vpop.f32.mrb[169].mxu0 }
 0x230   :  { %v1593_v28 = vpop.f32.mrb[168].mxu1  ;;  %v1821_v54 = vpop.f32.mrb[170].mxu0 }
 0x231   :  { %v1635_v25 = vadd.f32 %v1593_v28, %v4805_v52  ;;  %v3335_v11 = vpop.f32.mrb[169].mxu1  ;;  %v4883_v38 = vadd.f32 %v1821_v54, %v1634_v14  ;;  %v3386_v9 = vpop.f32.mrb[171].mxu0  ;;  %v4904_v28 = vld [vmem:[%s5149_s3] ss:$0 sm:$0xff] }
 0x232   :  { %v1596_v30 = vpop.f32.mrb[170].mxu1 }
 0x233   :  { %v1636_v13 = vadd.f32 %v1596_v30, %v4809_v60  ;;  %v3336_v0 = vpop.f32.mrb[171].mxu1 }
 0x236   :  { %v1826_v3 = vpop.f32.mrb[172].mxu0 }
 0x237   :  { %v4886_v6 = vadd.f32 %v1826_v3, %v1635_v25  ;;  %v3389_v12 = vpop.f32.mrb[173].mxu0 }
 0x238   :  { %v1601_v19 = vpop.f32.mrb[172].mxu1  ;;  %v1829_v62 = vpop.f32.mrb[174].mxu0 }
 0x239   :  { %v1637_v7 = vadd.f32 %v1601_v19, %v4816_v34  ;;  %v3339_v29 = vpop.f32.mrb[173].mxu1  ;;  %v4889_v52 = vadd.f32 %v1829_v62, %v1636_v13  ;;  %v3390_v44 = vpop.f32.mrb[175].mxu0 }
 0x23a   :  { %v1604_v63 = vpop.f32.mrb[174].mxu1 }
 0x23b   :  { %v1638_v26 = vadd.f32 %v1604_v63, %v4819_v32  ;;  %v3340_v2 = vpop.f32.mrb[175].mxu1 }
 0x23e   :  { %v1834_v42 = vpop.f32.mrb[176].mxu0 }
 0x23f   :  { %v4892_v60 = vadd.f32 %v1834_v42, %v1637_v7  ;;  %v3393_v17 = vpop.f32.mrb[177].mxu0 }
 0x240   :  { %v1609_v61 = vpop.f32.mrb[176].mxu1  ;;  %v1837_v20 = vpop.f32.mrb[178].mxu0 }
 0x241   :  { %v1639_v23 = vadd.f32 %v1609_v61, %v4822_v33  ;;  %v3343_v5 = vpop.f32.mrb[177].mxu1  ;;  %v4895_v27 = vadd.f32 %v1837_v20, %v1638_v26  ;;  %v3394_v34 = vpop.f32.mrb[179].mxu0 }
 0x242   :  { %v1612_v47 = vpop.f32.mrb[178].mxu1 }
 0x243   :  { %v3344_v49 = vpop.f32.mrb[179].mxu1 }
 0x246   :  { %v1842_v50 = vpop.f32.mrb[180].mxu0 }
 0x247   :  { %v4897_v40 = vadd.f32 %v1842_v50, %v1639_v23  ;;  %v3397_v32 = vpop.f32.mrb[181].mxu0 }
 0x248   :  { %v2009_v37 = vpop.f32.mrb[180].mxu1  ;;  %v1845_v39 = vpop.f32.mrb[182].mxu0 }
 0x249   :  { %v2111_v36 = vadd.f32 %v2009_v37, %v4826_v46  ;;  %v3403_v48 = vpop.f32.mrb[181].mxu1  ;;  %v3398_v14 = vpop.f32.mrb[183].mxu0 }
 0x24a   :  { %v2012_v51 = vpop.f32.mrb[182].mxu1 }
 0x24b   :  { %v2112_v33 = vadd.f32 %v2012_v51, %v4829_v4  ;;  %v3404_v1 = vpop.f32.mrb[183].mxu1 }
 0x24e   :  { %v2241_v58 = vpop.f32.mrb[184].mxu0 }
 0x24f   :  { %v2343_v25 = vadd.f32 %v2241_v58, %v2111_v36  ;;  %v3457_v11 = vpop.f32.mrb[185].mxu0 }
 0x250   :  { %v2017_v45 = vpop.f32.mrb[184].mxu1  ;;  %v2244_v46 = vpop.f32.mrb[186].mxu0 }
 0x251   :  { %v2113_v54 = vadd.f32 %v2017_v45, %v4832_v57  ;;  %v3407_v30 = vpop.f32.mrb[185].mxu1  ;;  %v4908_v9 = vadd.f32 %v4904_v28, %v2343_v25  ;;  %v2344_v0 = vadd.f32 %v2244_v46, %v2112_v33  ;;  %v3458_v4 = vpop.f32.mrb[187].mxu0 }
 0x252   :  { %v2020_v13 = vpop.f32.mrb[186].mxu1 }
 0x253   :  { %v2114_v3 = vadd.f32 %v2020_v13, %v4835_v18  ;;  %v3408_v19 = vpop.f32.mrb[187].mxu1  ;;  %v2400_v12 = vsub.f32 0.0, %v4908_v9  ;;  %v4913_v7 = vadd.f32 %v4904_v28, %v2344_v0 }
 0x255   :  { %v2425_v29 = vmul.f32 1.442695, %v2400_v12  ;;  %v2401_v62 = vsub.f32 0.0, %v4913_v7 }
 0x256   :  { %v2249_v57 = vpop.f32.mrb[188].mxu0 }
 0x257   :  { %3547 = vpow2.f32 %v2425_v29  ;;  %v2427_v63 = vmul.f32 1.442695, %v2401_v62  ;;  %v2345_v26 = vadd.f32 %v2249_v57, %v2113_v54  ;;  %v3461_v2 = vpop.f32.mrb[189].mxu0 }
 0x258   :  { %v2025_v44 = vpop.f32.mrb[188].mxu1  ;;  %v2252_v17 = vpop.f32.mrb[190].mxu0 }
 0x259   :  { %v2115_v42 = vadd.f32 %v2025_v44, %v4838_v41  ;;  %v3411_v61 = vpop.f32.mrb[189].mxu1  ;;  %3549 = vpow2.f32 %v2427_v63  ;;  %v4918_v18 = vadd.f32 %v4904_v28, %v2345_v26  ;;  %v2346_v20 = vadd.f32 %v2252_v17, %v2114_v3  ;;  %v3462_v5 = vpop.f32.mrb[191].mxu0 }
 0x25a   :  { %v2028_v23 = vpop.f32.mrb[190].mxu1 }
 0x25b   :  { %v2116_v34 = vadd.f32 %v2028_v23, %v4841_v43  ;;  %v3412_v47 = vpop.f32.mrb[191].mxu1  ;;  %v2402_v49 = vsub.f32 0.0, %v4918_v18  ;;  %v4923_v50 = vadd.f32 %v4904_v28, %v2346_v20 }
 0x25d   :  { %v2429_v37 = vmul.f32 1.442695, %v2402_v49  ;;  %v2403_v41 = vsub.f32 0.0, %v4923_v50 }
 0x25e   :  { %v2257_v32 = vpop.f32.mrb[192].mxu0 }
 0x25f   :  { %3551 = vpow2.f32 %v2429_v37  ;;  %v2431_v36 = vmul.f32 1.442695, %v2403_v41  ;;  %v2347_v39 = vadd.f32 %v2257_v32, %v2115_v42  ;;  %v3465_v51 = vpop.f32.mrb[193].mxu0 }
 0x260   :  { %v2033_v48 = vpop.f32.mrb[192].mxu1  ;;  %v2260_v1 = vpop.f32.mrb[194].mxu0 }
 0x261   :  { %v2117_v14 = vadd.f32 %v2033_v48, %v4844_v21  ;;  %v3415_v33 = vpop.f32.mrb[193].mxu1  ;;  %v3548_v43 = vpop.eup %3547  ;;  %3553 = vpow2.f32 %v2431_v36  ;;  %v4928_v58 = vadd.f32 %v4904_v28, %v2347_v39  ;;  %v2348_v25 = vadd.f32 %v2260_v1, %v2116_v34 }
 0x262   :  { %v2036_v45 = vpop.f32.mrb[194].mxu1  ;;  %v3466_v11 = vpop.f32.mrb[195].mxu0  ;;  %v2475_v54 = vadd.f32 1.0, %v3548_v43 }
 0x263   :  { %v2118_v30 = vadd.f32 %v2036_v45, %v4847_v24  ;;  %v3416_v46 = vpop.f32.mrb[195].mxu1  ;;  %v3550_v13 = vpop.eup %3549  ;;  %v2404_v0 = vsub.f32 0.0, %v4928_v58  ;;  %v4933_v4 = vadd.f32 %v4904_v28, %v2348_v25 }
 0x264   :  { %3555 = vrcp.f32 %v2475_v54  ;;  %v2476_v21 = vadd.f32 1.0, %v3550_v13 }
 0x265   :  { %v2433_v3 = vmul.f32 1.442695, %v2404_v0  ;;  %v2405_v19 = vsub.f32 0.0, %v4933_v4 }
 0x266   :  { %3557 = vrcp.f32 %v2476_v21  ;;  %v2265_v12 = vpop.f32.mrb[196].mxu0 }
 0x267   :  { %3559 = vpow2.f32 %v2433_v3  ;;  %v2435_v29 = vmul.f32 1.442695, %v2405_v19  ;;  %v2349_v57 = vadd.f32 %v2265_v12, %v2117_v14  ;;  %v3469_v63 = vpop.f32.mrb[197].mxu0 }
 0x268   :  { %v2041_v62 = vpop.f32.mrb[196].mxu1  ;;  %v2268_v26 = vpop.f32.mrb[198].mxu0 }
 0x269   :  { %v2119_v24 = vadd.f32 %v2041_v62, %v4850_v15  ;;  %v3419_v44 = vpop.f32.mrb[197].mxu1  ;;  %v3552_v2 = vpop.eup %3551  ;;  %3561 = vpow2.f32 %v2435_v29  ;;  %v4938_v42 = vadd.f32 %v4904_v28, %v2349_v57  ;;  %v2350_v17 = vadd.f32 %v2268_v26, %v2118_v30 }
 0x26a   :  { %v2044_v61 = vpop.f32.mrb[198].mxu1  ;;  %v3470_v23 = vpop.f32.mrb[199].mxu0  ;;  %v2477_v20 = vadd.f32 1.0, %v3552_v2 }
 0x26b   :  { %v2120_v5 = vadd.f32 %v2044_v61, %v4853_v53  ;;  %v3420_v34 = vpop.f32.mrb[199].mxu1  ;;  %v3554_v47 = vpop.eup %3553  ;;  %v2406_v49 = vsub.f32 0.0, %v4938_v42  ;;  %v4943_v37 = vadd.f32 %v4904_v28, %v2350_v17 }
 0x26c   :  { %3563 = vrcp.f32 %v2477_v20  ;;  %v2478_v15 = vadd.f32 1.0, %v3554_v47 }
 0x26d   :  { %v2437_v41 = vmul.f32 1.442695, %v2406_v49  ;;  %v2407_v32 = vsub.f32 0.0, %v4943_v37 }
 0x26e   :  { %v3556_v36 = vpop.eup %3555  ;;  %3565 = vrcp.f32 %v2478_v15  ;;  %v2273_v48 = vpop.f32.mrb[200].mxu0 }
 0x26f   :  { %v2525_v39 = vmul.f32 %v3556_v36, %v4908_v9  ;;  %3567 = vpow2.f32 %v2437_v41  ;;  %v2439_v51 = vmul.f32 1.442695, %v2407_v32  ;;  %v2351_v14 = vadd.f32 %v2273_v48, %v2119_v24  ;;  %v3473_v33 = vpop.f32.mrb[201].mxu0 }
 0x270   :  { %v2049_v53 = vpop.f32.mrb[200].mxu1  ;;  %v3558_v1 = vpop.eup %3557 }
 0x271   :  { %v2121_v43 = vadd.f32 %v2049_v53, %v4856_v22  ;;  %v3423_v45 = vpop.f32.mrb[201].mxu1  ;;  %v2276_v25 = vpop.f32.mrb[202].mxu0  ;;  %v2870_v54 = vpack.c.bf16 %v2525_v39, %v2525_v39  ;;  %v2526_v30 = vmul.f32 %v3558_v1, %v4913_v7  ;;  %3569 = vpow2.f32 %v2439_v51 }
 0x272   :  { %v3560_v11 = vpop.eup %3559  ;;  %v4950_v46 = vadd.f32 %v4904_v28, %v2351_v14  ;;  %v2052_v9 = vpop.f32.mrb[202].mxu1  ;;  %v2352_v3 = vadd.f32 %v2276_v25, %v2120_v5 }
 0x273   :  { %v3474_v13 = vpop.f32.mrb[203].mxu0  ;;  %v2479_v0 = vadd.f32 1.0, %v3560_v11  ;;  %v2122_v21 = vadd.f32 %v2052_v9, %v4859_v8  ;;  %v3424_v19 = vpop.f32.mrb[203].mxu1  ;;  %2652 = vst.msk [vmem:[%s5150_s4] sm:$0xf] %vm2651_vm8, %v2870_v54  ;;  %v2871_v22 = vpack.c.bf16 %v2526_v30, %v2526_v30 }
 0x274   :  { %v3562_v12 = vpop.eup %3561  ;;  %v2408_v7 = vsub.f32 0.0, %v4950_v46  ;;  %v4959_v62 = vadd.f32 %v4904_v28, %v2352_v3 }
 0x275   :  { %3571 = vrcp.f32 %v2479_v0  ;;  %v2480_v29 = vadd.f32 1.0, %v3562_v12  ;;  %2653 = vst.msk [vmem:[%s5150_s4 + $0x4] sm:$0xf] %vm2651_vm8, %v2871_v22 }
 0x276   :  { %v2441_v8 = vmul.f32 1.442695, %v2408_v7  ;;  %v3564_v57 = vpop.eup %3563  ;;  %v2409_v63 = vsub.f32 0.0, %v4959_v62  ;;  %v2281_v24 = vpop.f32.mrb[204].mxu0 }
 0x277   :  { %3573 = vrcp.f32 %v2480_v29  ;;  %v2527_v44 = vmul.f32 %v3564_v57, %v4918_v18  ;;  %v2353_v2 = vadd.f32 %v2281_v24, %v2121_v43  ;;  %v3477_v61 = vpop.f32.mrb[205].mxu0 }
 0x278   :  { %3575 = vpow2.f32 %v2441_v8  ;;  %v2057_v26 = vpop.f32.mrb[204].mxu1  ;;  %v3566_v17 = vpop.eup %3565  ;;  %v2443_v23 = vmul.f32 1.442695, %v2409_v63 }
 0x279   :  { %v2123_v20 = vadd.f32 %v2057_v26, %v4862_v55  ;;  %v3427_v5 = vpop.f32.mrb[205].mxu1  ;;  %v2284_v34 = vpop.f32.mrb[206].mxu0  ;;  %v2872_v49 = vpack.c.bf16 %v2527_v44, %v2527_v44  ;;  %v2528_v15 = vmul.f32 %v3566_v17, %v4923_v50  ;;  %v4970_v41 = vadd.f32 %v4904_v28, %v2353_v2 }
 0x27a   :  { %v3568_v47 = vpop.eup %3567  ;;  %v2060_v32 = vpop.f32.mrb[206].mxu1  ;;  %v2354_v36 = vadd.f32 %v2284_v34, %v2122_v21  ;;  %3577 = vpow2.f32 %v2443_v23 }
 0x27b   :  { %v3478_v18 = vpop.f32.mrb[207].mxu0  ;;  %v2481_v48 = vadd.f32 1.0, %v3568_v47  ;;  %v2124_v39 = vadd.f32 %v2060_v32, %v4865_v56  ;;  %v3428_v51 = vpop.f32.mrb[207].mxu1  ;;  %2654 = vst.msk [vmem:[%s5150_s4 + $0x8] sm:$0xf] %vm2651_vm8, %v2872_v49  ;;  %v2873_v55 = vpack.c.bf16 %v2528_v15, %v2528_v15  ;;  %v2410_v50 = vsub.f32 0.0, %v4970_v41 }
 0x27c   :  { %v3570_v53 = vpop.eup %3569  ;;  %v4979_v14 = vadd.f32 %v4904_v28, %v2354_v36 }
 0x27d   :  { %3579 = vrcp.f32 %v2481_v48  ;;  %v2482_v33 = vadd.f32 1.0, %v3570_v53  ;;  %2655 = vst.msk [vmem:[%s5150_s4 + $0xc] sm:$0xf] %vm2651_vm8, %v2873_v55  ;;  %v2445_v56 = vmul.f32 1.442695, %v2410_v50 }
 0x27e   :  { %v2411_v1 = vsub.f32 0.0, %v4979_v14  ;;  %v2289_v45 = vpop.f32.mrb[208].mxu0 }
 0x27f   :  { %v3572_v43 = vpop.eup %3571  ;;  %3581 = vrcp.f32 %v2482_v33  ;;  %v2355_v30 = vadd.f32 %v2289_v45, %v2123_v20  ;;  %v3481_v9 = vpop.f32.mrb[209].mxu0 }
 0x280   :  { %v2529_v25 = vmul.f32 %v3572_v43, %v4928_v58  ;;  %3583 = vpow2.f32 %v2445_v56  ;;  %v2447_v11 = vmul.f32 1.442695, %v2411_v1  ;;  %v2065_v54 = vpop.f32.mrb[208].mxu1  ;;  %v2292_v3 = vpop.f32.mrb[210].mxu0 }
 0x281   :  { %v3574_v13 = vpop.eup %3573  ;;  %v2125_v0 = vadd.f32 %v2065_v54, %v4868_v31  ;;  %v3431_v21 = vpop.f32.mrb[209].mxu1  ;;  %v4990_v7 = vadd.f32 %v4904_v28, %v2355_v30  ;;  %v2356_v63 = vadd.f32 %v2292_v3, %v2124_v39 }
 0x282   :  { %v3576_v19 = vpop.eup %3575  ;;  %v2874_v12 = vpack.c.bf16 %v2529_v25, %v2529_v25  ;;  %v2530_v22 = vmul.f32 %v3574_v13, %v4933_v4  ;;  %3585 = vpow2.f32 %v2447_v11  ;;  %v2068_v29 = vpop.f32.mrb[210].mxu1 }
 0x283   :  { %v3482_v58 = vpop.f32.mrb[211].mxu0  ;;  %v2483_v8 = vadd.f32 1.0, %v3576_v19  ;;  %v2126_v57 = vadd.f32 %v2068_v29, %v4871_v10  ;;  %v3432_v24 = vpop.f32.mrb[211].mxu1  ;;  %v2412_v44 = vsub.f32 0.0, %v4990_v7  ;;  %v4999_v26 = vadd.f32 %v4904_v28, %v2356_v63 }
 0x284   :  { %2656 = vst.msk [vmem:[%s5150_s4 + $0x10] sm:$0xf] %vm2651_vm8, %v2874_v12  ;;  %v2875_v31 = vpack.c.bf16 %v2530_v22, %v2530_v22  ;;  %v3578_v4 = vpop.eup %3577 }
 0x285   :  { %3587 = vrcp.f32 %v2483_v8  ;;  %v2484_v10 = vadd.f32 1.0, %v3578_v4  ;;  %v2449_v2 = vmul.f32 1.442695, %v2412_v44  ;;  %v2413_v17 = vsub.f32 0.0, %v4999_v26 }
 0x286   :  { %2657 = vst.msk [vmem:[%s5150_s4 + $0x14] sm:$0xf] %vm2651_vm8, %v2875_v31  ;;  %v2297_v23 = vpop.f32.mrb[212].mxu0 }
 0x287   :  { %v3580_v61 = vpop.eup %3579  ;;  %3589 = vrcp.f32 %v2484_v10  ;;  %v2357_v34 = vadd.f32 %v2297_v23, %v2125_v0  ;;  %v3485_v47 = vpop.f32.mrb[213].mxu0  ;;  %v2451_v15 = vmul.f32 1.442695, %v2413_v17 }
 0x288   :  { %v2531_v20 = vmul.f32 %v3580_v61, %v4938_v42  ;;  %v2073_v5 = vpop.f32.mrb[212].mxu1  ;;  %3591 = vpow2.f32 %v2449_v2  ;;  %v2300_v18 = vpop.f32.mrb[214].mxu0 }
 0x289   :  { %v3582_v49 = vpop.eup %3581  ;;  %v2127_v32 = vadd.f32 %v2073_v5, %v4874_v16  ;;  %v3435_v36 = vpop.f32.mrb[213].mxu1  ;;  %v5010_v53 = vadd.f32 %v4904_v28, %v2357_v34  ;;  %v2358_v42 = vadd.f32 %v2300_v18, %v2126_v57  ;;  %3593 = vpow2.f32 %v2451_v15 }
 0x28a   :  { %v3584_v48 = vpop.eup %3583  ;;  %v2876_v39 = vpack.c.bf16 %v2531_v20, %v2531_v20  ;;  %v2532_v51 = vmul.f32 %v3582_v49, %v4943_v37  ;;  %v2076_v55 = vpop.f32.mrb[214].mxu1 }
 0x28b   :  { %v3486_v50 = vpop.f32.mrb[215].mxu0  ;;  %v2485_v33 = vadd.f32 1.0, %v3584_v48  ;;  %v2128_v56 = vadd.f32 %v2076_v55, %v4877_v59  ;;  %v3436_v1 = vpop.f32.mrb[215].mxu1  ;;  %v2414_v37 = vsub.f32 0.0, %v5010_v53  ;;  %v5019_v45 = vadd.f32 %v4904_v28, %v2358_v42 }
 0x28c   :  { %v3586_v43 = vpop.eup %3585  ;;  %2658 = vst.msk [vmem:[%s5150_s4 + $0x18] sm:$0xf] %vm2651_vm8, %v2876_v39  ;;  %v2877_v16 = vpack.c.bf16 %v2532_v51, %v2532_v51 }
 0x28d   :  { %3595 = vrcp.f32 %v2485_v33  ;;  %v2486_v25 = vadd.f32 1.0, %v3586_v43  ;;  %v2453_v59 = vmul.f32 1.442695, %v2414_v37  ;;  %v2415_v11 = vsub.f32 0.0, %v5019_v45 }
 0x28e   :  { %2659 = vst.msk [vmem:[%s5150_s4 + $0x1c] sm:$0xf] %vm2651_vm8, %v2877_v16  ;;  %v2305_v30 = vpop.f32.mrb[216].mxu0 }
 0x28f   :  { %v3588_v54 = vpop.eup %3587  ;;  %3597 = vrcp.f32 %v2486_v25  ;;  %v2455_v13 = vmul.f32 1.442695, %v2415_v11  ;;  %v2359_v21 = vadd.f32 %v2305_v30, %v2127_v32  ;;  %v3489_v3 = vpop.f32.mrb[217].mxu0 }
 0x290   :  { %v2533_v9 = vmul.f32 %v3588_v54, %v4950_v46  ;;  %3599 = vpow2.f32 %v2453_v59  ;;  %v2081_v0 = vpop.f32.mrb[216].mxu1  ;;  %v2308_v22 = vpop.f32.mrb[218].mxu0 }
 0x291   :  { %v2129_v19 = vadd.f32 %v2081_v0, %v4880_v35  ;;  %v3439_v12 = vpop.f32.mrb[217].mxu1  ;;  %v3590_v29 = vpop.eup %3589  ;;  %3601 = vpow2.f32 %v2455_v13  ;;  %v5029_v8 = vadd.f32 %v4904_v28, %v2359_v21  ;;  %v2360_v63 = vadd.f32 %v2308_v22, %v2128_v56 }
 0x292   :  { %v2878_v58 = vpack.c.bf16 %v2533_v9, %v2533_v9  ;;  %v2084_v57 = vpop.f32.mrb[218].mxu1  ;;  %v3490_v24 = vpop.f32.mrb[219].mxu0  ;;  %v2534_v46 = vmul.f32 %v3590_v29, %v4959_v62 }
 0x293   :  { %v3592_v31 = vpop.eup %3591  ;;  %v2130_v44 = vadd.f32 %v2084_v57, %v4883_v38  ;;  %v3440_v4 = vpop.f32.mrb[219].mxu1  ;;  %v2416_v10 = vsub.f32 0.0, %v5029_v8  ;;  %v5039_v2 = vadd.f32 %v4904_v28, %v2360_v63 }
 0x294   :  { %2660 = vst.msk [vmem:[%s5150_s4 + $0x20] sm:$0xf] %vm2651_vm8, %v2878_v58  ;;  %v2487_v35 = vadd.f32 1.0, %v3592_v31  ;;  %v3594_v61 = vpop.eup %3593  ;;  %v2879_v17 = vpack.c.bf16 %v2534_v46, %v2534_v46 }
 0x295   :  { %v2488_v23 = vadd.f32 1.0, %v3594_v61  ;;  %v2457_v20 = vmul.f32 1.442695, %v2416_v10  ;;  %v2417_v62 = vsub.f32 0.0, %v5039_v2 }
 0x296   :  { %3603 = vrcp.f32 %v2487_v35  ;;  %2661 = vst.msk [vmem:[%s5150_s4 + $0x24] sm:$0xf] %vm2651_vm8, %v2879_v17  ;;  %v2313_v5 = vpop.f32.mrb[220].mxu0 }
 0x297   :  { %v3596_v38 = vpop.eup %3595  ;;  %3605 = vrcp.f32 %v2488_v23  ;;  %v2459_v47 = vmul.f32 1.442695, %v2417_v62  ;;  %v2361_v15 = vadd.f32 %v2313_v5, %v2129_v19  ;;  %v3493_v32 = vpop.f32.mrb[221].mxu0 }
 0x298   :  { %v2535_v34 = vmul.f32 %v3596_v38, %v4970_v41  ;;  %v2089_v49 = vpop.f32.mrb[220].mxu1  ;;  %3607 = vpow2.f32 %v2457_v20  ;;  %v2316_v39 = vpop.f32.mrb[222].mxu0 }
 0x299   :  { %v3598_v36 = vpop.eup %3597  ;;  %v2131_v18 = vadd.f32 %v2089_v49, %v4886_v6  ;;  %v3443_v48 = vpop.f32.mrb[221].mxu1  ;;  %3609 = vpow2.f32 %v2459_v47  ;;  %v5050_v50 = vadd.f32 %v4904_v28, %v2361_v15  ;;  %v2362_v43 = vadd.f32 %v2316_v39, %v2130_v44 }
 0x29a   :  { %v3600_v51 = vpop.eup %3599  ;;  %v2880_v55 = vpack.c.bf16 %v2535_v34, %v2535_v34  ;;  %v2536_v42 = vmul.f32 %v3598_v36, %v4979_v14  ;;  %v2092_v41 = vpop.f32.mrb[222].mxu1 }
 0x29b   :  { %v3494_v33 = vpop.f32.mrb[223].mxu0  ;;  %v2489_v56 = vadd.f32 1.0, %v3600_v51  ;;  %v2132_v1 = vadd.f32 %v2092_v41, %v4889_v52  ;;  %v3444_v16 = vpop.f32.mrb[223].mxu1  ;;  %v2418_v14 = vsub.f32 0.0, %v5050_v50  ;;  %v5059_v59 = vadd.f32 %v4904_v28, %v2362_v43 }
 0x29c   :  { %v3602_v37 = vpop.eup %3601  ;;  %2662 = vst.msk [vmem:[%s5150_s4 + $0x28] sm:$0xf] %vm2651_vm8, %v2880_v55  ;;  %v2881_v6 = vpack.c.bf16 %v2536_v42, %v2536_v42 }
 0x29d   :  { %3611 = vrcp.f32 %v2489_v56  ;;  %v2490_v25 = vadd.f32 1.0, %v3602_v37  ;;  %v2461_v52 = vmul.f32 1.442695, %v2418_v14  ;;  %v2419_v11 = vsub.f32 0.0, %v5059_v59 }
 0x29e   :  { %2663 = vst.msk [vmem:[%s5150_s4 + $0x2c] sm:$0xf] %vm2651_vm8, %v2881_v6  ;;  %v2321_v54 = vpop.f32.mrb[224].mxu0 }
 0x29f   :  { %3613 = vrcp.f32 %v2490_v25  ;;  %v2363_v13 = vadd.f32 %v2321_v54, %v2131_v18  ;;  %v3497_v0 = vpop.f32.mrb[225].mxu0  ;;  %v2463_v3 = vmul.f32 1.442695, %v2419_v11 }
 0x2a0   :  { %v3604_v30 = vpop.eup %3603  ;;  %3615 = vpow2.f32 %v2461_v52  ;;  %v2097_v9 = vpop.f32.mrb[224].mxu1 }
 0x2a1   :  { %v2537_v21 = vmul.f32 %v3604_v30, %v4990_v7  ;;  %v2133_v19 = vadd.f32 %v2097_v9, %v4892_v60  ;;  %v3447_v12 = vpop.f32.mrb[225].mxu1  ;;  %v2324_v22 = vpop.f32.mrb[226].mxu0  ;;  %v5069_v58 = vadd.f32 %v4904_v28, %v2363_v13  ;;  %3617 = vpow2.f32 %v2463_v3 }
 0x2a2   :  { %v3606_v29 = vpop.eup %3605  ;;  %v2100_v57 = vpop.f32.mrb[226].mxu1  ;;  %v2364_v63 = vadd.f32 %v2324_v22, %v2132_v1 }
 0x2a3   :  { %v3498_v24 = vpop.f32.mrb[227].mxu0  ;;  %v3608_v31 = vpop.eup %3607  ;;  %v2882_v46 = vpack.c.bf16 %v2537_v21, %v2537_v21  ;;  %v2538_v44 = vmul.f32 %v3606_v29, %v4999_v26  ;;  %v2134_v4 = vadd.f32 %v2100_v57, %v4895_v27  ;;  %v2420_v60 = vsub.f32 0.0, %v5069_v58 }
 0x2a4   :  { %v3448_v7 = vpop.f32.mrb[227].mxu1  ;;  %v3610_v35 = vpop.eup %3609  ;;  %v2491_v10 = vadd.f32 1.0, %v3608_v31  ;;  %v5075_v61 = vadd.f32 %v4904_v28, %v2364_v63 }
 0x2a5   :  { %2664 = vst.msk [vmem:[%s5150_s4 + $0x30] sm:$0xf] %vm2651_vm8, %v2882_v46  ;;  %v2883_v17 = vpack.c.bf16 %v2538_v44, %v2538_v44  ;;  %v2492_v23 = vadd.f32 1.0, %v3610_v35  ;;  %v2465_v26 = vmul.f32 1.442695, %v2420_v60 }
 0x2a6   :  { %3619 = vrcp.f32 %v2491_v10  ;;  %v2421_v20 = vsub.f32 0.0, %v5075_v61  ;;  %v2329_v62 = vpop.f32.mrb[228].mxu0 }
 0x2a7   :  { %v3612_v27 = vpop.eup %3611  ;;  %2665 = vst.msk [vmem:[%s5150_s4 + $0x34] sm:$0xf] %vm2651_vm8, %v2883_v17  ;;  %3621 = vrcp.f32 %v2492_v23  ;;  %v2365_v47 = vadd.f32 %v2329_v62, %v2133_v19  ;;  %v3501_v49 = vpop.f32.mrb[229].mxu0 }
 0x2a8   :  { %v2539_v38 = vmul.f32 %v3612_v27, %v5010_v53  ;;  %3623 = vpow2.f32 %v2465_v26  ;;  %v2467_v5 = vmul.f32 1.442695, %v2421_v20  ;;  %v2105_v34 = vpop.f32.mrb[228].mxu1  ;;  %v2332_v36 = vpop.f32.mrb[230].mxu0 }
 0x2a9   :  { %v3614_v15 = vpop.eup %3613  ;;  %v2135_v32 = vadd.f32 %v2105_v34, %v4897_v40  ;;  %v3451_v18 = vpop.f32.mrb[229].mxu1  ;;  %v5090_v55 = vadd.f32 %v4904_v28, %v2365_v47  ;;  %v2366_v33 = vadd.f32 %v2332_v36, %v2134_v4 }
 0x2aa   :  { %v3616_v48 = vpop.eup %3615  ;;  %v2884_v39 = vpack.c.bf16 %v2539_v38, %v2539_v38  ;;  %v2540_v51 = vmul.f32 %v3614_v15, %v5019_v45  ;;  %3625 = vpow2.f32 %v2467_v5  ;;  %v3502_v42 = vpop.f32.mrb[231].mxu0 }
 0x2ab   :  { %v2108_v53 = vpop.f32.mrb[230].mxu1  ;;  %v2493_v41 = vadd.f32 1.0, %v3616_v48  ;;  %v2422_v1 = vsub.f32 0.0, %v5090_v55  ;;  %v3618_v43 = vpop.eup %3617  ;;  %v2398_v45 = vadd.f32 %v4904_v28, %v2366_v33 }
 0x2ac   :  { %v3452_v56 = vpop.f32.mrb[231].mxu1  ;;  %2666 = vst.msk [vmem:[%s5150_s4 + $0x38] sm:$0xf] %vm2651_vm8, %v2884_v39  ;;  %v2885_v40 = vpack.c.bf16 %v2540_v51, %v2540_v51  ;;  %v2494_v16 = vadd.f32 1.0, %v3618_v43 }
 0x2ad   :  { %3627 = vrcp.f32 %v2493_v41  ;;  %v2469_v37 = vmul.f32 1.442695, %v2422_v1  ;;  %v2423_v6 = vsub.f32 0.0, %v2398_v45 }
 0x2ae   :  { %2667 = vst.msk [vmem:[%s5150_s4 + $0x3c] sm:$0xf] %vm2651_vm8, %v2885_v40  ;;  %v2337_v14 = vpop.f32.mrb[232].mxu0  ;;  %3629 = vrcp.f32 %v2494_v16 }
 0x2af   :  { %v2367_v52 = vadd.f32 %v2337_v14, %v2135_v32  ;;  %v3505_v11 = vpop.f32.mrb[233].mxu0  ;;  %3631 = vpow2.f32 %v2469_v37  ;;  %v2471_v9 = vmul.f32 1.442695, %v2423_v6 }
 0x2b0   :  { %v3620_v25 = vpop.eup %3619  ;;  %v2340_v13 = vpop.f32.mrb[234].mxu0 }
 0x2b1   :  { %v3622_v54 = vpop.eup %3621  ;;  %v2541_v30 = vmul.f32 %v3620_v25, %v5029_v8  ;;  %v2399_v3 = vadd.f32 %v4904_v28, %v2367_v52  ;;  %v3506_v19 = vpop.f32.mrb[235].mxu0  ;;  %3633 = vpow2.f32 %v2471_v9 }
 0x2b2   :  { %v3624_v0 = vpop.eup %3623  ;;  %v2542_v21 = vmul.f32 %v3622_v54, %v5039_v2 }
 0x2b3   :  { %v2886_v12 = vpack.c.bf16 %v2541_v30, %v2541_v30  ;;  %v2495_v22 = vadd.f32 1.0, %v3624_v0  ;;  %v2424_v63 = vsub.f32 0.0, %v2399_v3 }
 0x2b4   :  { %v3626_v29 = vpop.eup %3625  ;;  %v2887_v57 = vpack.c.bf16 %v2542_v21, %v2542_v21 }
 0x2b5   :  { %2668 = vst.msk [vmem:[%s5150_s4 + $0x40] sm:$0xf] %vm2651_vm8, %v2886_v12  ;;  %3635 = vrcp.f32 %v2495_v22  ;;  %v2496_v8 = vadd.f32 1.0, %v3626_v29  ;;  %v2473_v28 = vmul.f32 1.442695, %v2424_v63 }
 0x2b6   :  { %2669 = vst.msk [vmem:[%s5150_s4 + $0x44] sm:$0xf] %vm2651_vm8, %v2887_v57 }
 0x2b7   :  { %v3628_v2 = vpop.eup %3627  ;;  %3637 = vrcp.f32 %v2496_v8 }
 0x2b8   :  { %v2543_v24 = vmul.f32 %v3628_v2, %v5050_v50  ;;  %3639 = vpow2.f32 %v2473_v28  ;;  %v3630_v31 = vpop.eup %3629 }
 0x2b9   :  { %v3632_v44 = vpop.eup %3631  ;;  %v2544_v4 = vmul.f32 %v3630_v31, %v5059_v59 }
 0x2ba   :  { %v2888_v46 = vpack.c.bf16 %v2543_v24, %v2543_v24  ;;  %v2497_v7 = vadd.f32 1.0, %v3632_v44 }
 0x2bb   :  { %v3634_v35 = vpop.eup %3633  ;;  %v2889_v10 = vpack.c.bf16 %v2544_v4, %v2544_v4 }
 0x2bc   :  { %2670 = vst.msk [vmem:[%s5150_s4 + $0x48] sm:$0xf] %vm2651_vm8, %v2888_v46  ;;  %3641 = vrcp.f32 %v2497_v7  ;;  %v2498_v60 = vadd.f32 1.0, %v3634_v35 }
 0x2bd   :  { %2671 = vst.msk [vmem:[%s5150_s4 + $0x4c] sm:$0xf] %vm2651_vm8, %v2889_v10 }
 0x2be   :  { %3643 = vrcp.f32 %v2498_v60 }
 0x2bf   :  { %v3636_v17 = vpop.eup %3635 }
 0x2c0   :  { %v2545_v50 = vmul.f32 %v3636_v17, %v5069_v58 }
 0x2c1   :  { %v3638_v59 = vpop.eup %3637 }
 0x2c2   :  { %v3640_v23 = vpop.eup %3639  ;;  %v2890_v26 = vpack.c.bf16 %v2545_v50, %v2545_v50  ;;  %v2546_v20 = vmul.f32 %v3638_v59, %v5075_v61 }
 0x2c3   :  { %v2499_v27 = vadd.f32 1.0, %v3640_v23 }
 0x2c4   :  { %2672 = vst.msk [vmem:[%s5150_s4 + $0x50] sm:$0xf] %vm2651_vm8, %v2890_v26  ;;  %v2891_v62 = vpack.c.bf16 %v2546_v20, %v2546_v20 }
 0x2c5   :  { %3645 = vrcp.f32 %v2499_v27 }
 0x2c6   :  { %2673 = vst.msk [vmem:[%s5150_s4 + $0x54] sm:$0xf] %vm2651_vm8, %v2891_v62  ;;  %v3642_v58 = vpop.eup %3641 }
 0x2c7   :  { %v2547_v38 = vmul.f32 %v3642_v58, %v5090_v55 }
 0x2c8   :  { %v3644_v5 = vpop.eup %3643 }
 0x2c9   :  { %v2892_v34 = vpack.c.bf16 %v2547_v38, %v2547_v38  ;;  %v2548_v47 = vmul.f32 %v3644_v5, %v2398_v45 }
 0x2cb   :  { %2674 = vst.msk [vmem:[%s5150_s4 + $0x58] sm:$0xf] %vm2651_vm8, %v2892_v34  ;;  %v2893_v61 = vpack.c.bf16 %v2548_v47, %v2548_v47 }
 0x2cd   :  { %2675 = vst.msk [vmem:[%s5150_s4 + $0x5c] sm:$0xf] %vm2651_vm8, %v2893_v61 }
 0x2cf   :  { %v3646_v49 = vpop.eup %3645 }
 0x2d0   :  { %v2549_v15 = vmul.f32 %v3646_v49, %v2399_v3 }
 0x2d2   :  { %v2894_v32 = vpack.c.bf16 %v2549_v15, %v2549_v15 }
 0x2d4   :  { %2676 = vst.msk [vmem:[%s5150_s4 + $0x60] sm:$0xf] %vm2651_vm8, %v2894_v32 }

// kernel: _lambda_.20
= control target key start
LH: loop header
LB: loop body
LE: loop exit
PB: predicated region body
PF: predicated region fallthrough
CT: control target
= control target key end

     0   :  { %v5361_v0 = vmov 0.0   ;;  %vm3785_vm0 = vmmov 0   ;;  %vm131_vm1 = vsmask.f32 7424  ;;  %vm241_vm2 = vcmask 130048   ;;  %s5335_s2 = inlined_call_operand.vmem [shape: bf16[9,16,16], index: 2, kind: input, shape index: {}]   ;;  %s5336_s0 = inlined_call_operand.vmem [shape: bf16[400,16], index: 0, kind: input, shape index: {}, may-alias: {0,1}]   ;;  %s5337_s1 = inlined_call_operand.vmem [shape: bf16[400,16], index: 1, kind: input, shape index: {}, may-alias: {0,1}]   ;;  %s5338_s3 = inlined_call_operand.vmem [shape: f32[1,16], index: 3, kind: input, shape index: {}]   ;;  %s5339_s4 = inlined_call_operand.vmem [shape: bf16[200,16], index: 4, kind: input, shape index: {}]   ;;  %s5340_s5 = inlined_call_operand.vmem [shape: bf16[200,16], index: 5, kind: output, shape index: {}]  }
   0x1   :  { %3158 = vmatprep.subr.bf16.mxu0 %v5361_v0  ;;  %3644 = vmatprep.subr.bf16.mxu1 %v5361_v0  ;;  %v3648_v1 = vld [vmem:[%s5335_s2 + $0x8] sm:$0xff]   ;;  %v43_v2 = vld [vmem:[%s5336_s0] sm:$0xf]  ;;  %v44_v3 = vld [vmem:[%s5336_s0 + $0x4] sm:$0xf]  ;;  %vm599_vm3 = vcmask 1046528  }
   0x2   :  { %3160 = vmatprep.mubr.msk.bf16.mxu0 %vm3785_vm0, %v5361_v0  ;;  %3188 = vmatprep.mubr.msk.bf16.mxu1 %vm3785_vm0, %v5361_v0  ;;  %v45_v4 = vld [vmem:[%s5336_s0 + $0x8] sm:$0xf]  ;;  %v3837_v5 = vld [vmem:[%s5336_s0 + $0xc] sm:$0xf]  ;;  %v3839_v6 = vcombine.low %v43_v2, %v44_v3  ;;  %v3846_v8 = vld [vmem:[%s5336_s0 + $0x38] sm:$0xf] }
   0x3   :  { %3159 = vmatpush3.bf16.msra.mxu0 %v3648_v1  ;;  %3645 = vmatpush3.bf16.msra.mxu1 %v3648_v1  ;;  %v3841_v7 = vcombine.low %v44_v3, %v45_v4  ;;  %v3851_v9 = vld [vmem:[%s5336_s0 + $0x3c] sm:$0xf]  ;;  %v3855_v10 = vcombine.low %v45_v4, %v3837_v5  ;;  %v3860_v11 = vld [vmem:[%s5336_s0 + $0x40] sm:$0xf]  ;;  %v3865_v12 = vld [vmem:[%s5336_s0 + $0x44] sm:$0xf] }
   0x4   :  { %3266 = vmatprep.subr.bf16.mxu0 %v5361_v0  ;;  %v3869_v13 = vcombine.low %v3846_v8, %v3851_v9  ;;  %3212 = vmatprep.subr.bf16.mxu1 %v5361_v0  ;;  %v133_v14 = vshrl.u32 %v3839_v6, 16  ;;  %v135_v15 = vshll.u32 %v3839_v6, 16  ;;  %v3876_v16 = vcombine.low %v3860_v11, %v3865_v12  ;;  %v3885_v22 = vld [vmem:[%s5336_s0 + $0x10] sm:$0xf]  ;;  %v3899_v26 = vld [vmem:[%s5336_s0 + $0x14] sm:$0xf] }
   0x5   :  { %5366 = vst [vmem:[#allocation2_spill] sm:$0xff] %v3855_v10  ;;  %v140_v17 = vshll.u32 %v3855_v10, 16  ;;  %v3654_v25 = vld [vmem:[%s5335_s2 + $0x10] sm:$0xff]   ;;  %v3905_v29 = vcombine.low %v3885_v22, %v3899_v26  ;;  %v144_v30 = vshrl.u32 %v3855_v10, 16  ;;  %v3911_v31 = vld [vmem:[%s5336_s0 + $0x48] sm:$0xf] }
   0x6   :  { %v5351_v18 = vshll.u32 %v3869_v13, 16  ;;  %v5352_v19 = vshrl.u32 %v3869_v13, 16  ;;  %v137_v20 = vrot.slane %v135_v15, 1  ;;  %v5349_v21 = vshll.u32 %v3876_v16, 16  ;;  %v3916_v32 = vld [vmem:[%s5336_s0 + $0x4c] sm:$0xf] }
   0x7   :  { %v142_v23 = vrot.slane %v140_v17, 1  ;;  %5367 = vst [vmem:[#allocation3_spill] sm:$0xff] %v3905_v29  ;;  %v3655_v34 = vld [vmem:[%s5335_s2] sm:$0xff]   ;;  %v3926_v35 = vcombine.low %v3911_v31, %v3916_v32  ;;  %v5350_v36 = vshrl.u32 %v3876_v16, 16  ;;  %v3932_v37 = vld [vmem:[%s5336_s0 + $0x18] sm:$0xf] }
   0x8   :  { %v3891_v24 = vrot.slane %v5351_v18, 1  ;;  %v138_v27 = vor.u32 %v137_v20, %v133_v14  ;;  %v198_v28 = vrot.slane %v5349_v21, 1  ;;  %v3937_v38 = vld [vmem:[%s5336_s0 + $0x1c] sm:$0xf]  ;;  %v148_v40 = vshll.u32 %v3905_v29, 16 }
   0x9   :  { %v3944_v41 = vld [vmem:[%s5336_s0 + $0x50] sm:$0xf]  ;;  %v3949_v42 = vld [vmem:[%s5336_s0 + $0x54] sm:$0xf]  ;;  %v5344_v44 = vshll.u32 %v3926_v35, 16  ;;  %v146_v45 = vor.u32 %v144_v30, %v142_v23  ;;  %v3961_v47 = vcombine.low %v3932_v37, %v3937_v38  ;;  %v152_v54 = vshrl.u32 %v3905_v29, 16 }
   0xa   :  { %v194_v33 = vor.u32 %v5352_v19, %v3891_v24  ;;  %v143_v39 = vsel %vm131_vm1, %v138_v27, %v142_v23  ;;  %v150_v46 = vrot.slane %v148_v40, 1  ;;  %v202_v48 = vor.u32 %v5350_v36, %v198_v28  ;;  %v3979_v51 = vld [vmem:[%s5336_s0 + $0x20] sm:$0xf]  ;;  %v3984_v52 = vld [vmem:[%s5336_s0 + $0x24] sm:$0xf] }
   0xb   :  { %3161 = vmatmul.mubr.msk.bf16.vlgmr.msra.gmra.mrb[0].mxu0 %vm241_vm2, %v143_v39  ;;  %v206_v49 = vrot.slane %v5344_v44, 1  ;;  %v3971_v50 = vcombine.low %v3944_v41, %v3949_v42  ;;  %v5359_v55 = vshll.u32 %v3961_v47, 16  ;;  %v3993_v56 = vld [vmem:[%s5336_s0 + $0x58] sm:$0xf]  ;;  %v5348_v58 = vshrl.u32 %v3926_v35, 16 }
   0xc   :  { %v199_v43 = vsel %vm131_vm1, %v194_v33, %v198_v28  ;;  %3267 = vmatpush3.bf16.msra.mxu0 %v3654_v25  ;;  %3164 = vmatprep.mubr.msk.bf16.mxu0 %vm3785_vm0, %v5361_v0  ;;  %v151_v53 = vsel %vm131_vm1, %v146_v45, %v150_v46  ;;  %v4001_v60 = vld [vmem:[%s5336_s0 + $0x5c] sm:$0xf]  ;;  %v154_v61 = vor.u32 %v152_v54, %v150_v46  ;;  %v5360_v14 = vshrl.u32 %v3961_v47, 16  ;;  %v53_v27 = vld [vmem:[%s5336_s0 + $0x28] sm:$0xf] }
   0xd   :  { %3189 = vmatmul.mubr.msk.bf16.vlgmr.msra.gmra.mrb[0].mxu1 %vm241_vm2, %v199_v43  ;;  %3374 = vmatprep.subr.bf16.mxu0 %v5361_v0  ;;  %v207_v57 = vsel %vm131_vm1, %v202_v48, %v206_v49  ;;  %v5342_v59 = vshll.u32 %v3971_v50, 16  ;;  %v158_v62 = vrot.slane %v5359_v55, 1  ;;  %v4013_v63 = vcombine.low %v3979_v51, %v3984_v52  ;;  %v4037_v28 = vld [vmem:[%s5336_s0 + $0x2c] sm:$0xf]  ;;  %v4042_v33 = vld [vmem:[%s5336_s0 + $0x60] sm:$0xf] }
   0xe   :  { %3213 = vmatpush3.bf16.msra.mxu1 %v3655_v34  ;;  %3192 = vmatprep.mubr.msk.bf16.mxu1 %vm3785_vm0, %v5361_v0  ;;  %v210_v1 = vor.u32 %v5348_v58, %v206_v49  ;;  %v4023_v3 = vcombine.low %v3993_v56, %v4001_v60  ;;  %v5343_v23 = vshrl.u32 %v3971_v50, 16  ;;  %v4047_v34 = vld [vmem:[%s5337_s1 + $0x64] sm:$0xf]  ;;  %v4058_v45 = vcombine.low %v53_v27, %v4037_v28 }
   0xf   :  { %3320 = vmatprep.subr.bf16.mxu1 %v5361_v0  ;;  %v214_v2 = vrot.slane %v5342_v59, 1  ;;  %v159_v4 = vsel %vm131_vm1, %v154_v61, %v158_v62  ;;  %v5357_v15 = vshll.u32 %v4013_v63, 16  ;;  %v162_v39 = vor.u32 %v5360_v14, %v158_v62 }
  0x10   :  { %v5341_v25 = vshll.u32 %v4023_v3, 16  ;;  %v4068_v49 = vcombine.low %v4042_v33, %v4047_v34  ;;  %v5358_v61 = vshrl.u32 %v4013_v63, 16  ;;  %v5355_v62 = vshll.u32 %v4058_v45, 16 }
  0x11   :  { %v215_v20 = vsel %vm131_vm1, %v210_v1, %v214_v2  ;;  %v166_v43 = vrot.slane %v5357_v15, 1  ;;  %v218_v46 = vor.u32 %v5343_v23, %v214_v2  ;;  %v5347_v2 = vshrl.u32 %v4023_v3, 16  ;;  %v3681_v15 = vld [vmem:[%s5335_s2 + $0x38] sm:$0xff]  }
  0x12   :  { %v222_v48 = vrot.slane %v5341_v25, 1  ;;  %v4107_v25 = vcombine.low %v3899_v26, %v3932_v37  ;;  %v5356_v59 = vshrl.u32 %v4058_v45, 16  ;;  %v5346_v37 = vshrl.u32 %v4068_v49, 16 }
  0x13   :  { %3165 = vmatmul.mubr.msk.bf16.gmra.mrb[4].mxu0 %vm241_vm2, %v151_v53  ;;  %v4072_v53 = vcombine.low %v3837_v5, %v3885_v22  ;;  %v4086_v5 = vld [vmem:[%s5336_s0 + $0x34] sm:$0xf]  ;;  %v170_v22 = vor.u32 %v5358_v61, %v166_v43  ;;  %vm1088_vm4 = vsmask.f32 6400  ;;  %v4425_v21 = vcombine.low %v4001_v60, %v4042_v33 }
  0x14   :  { %3168 = vmatprep.mubr.msk.bf16.mxu0 %vm3785_vm0, %v5361_v0  ;;  %v223_v1 = vsel %vm131_vm1, %v218_v46, %v222_v48  ;;  %v1877_v60 = vrot.slane %v144_v30, 2  ;;  %vm1876_vm5 = vsmask.f32 5376  ;;  %vm1411_vm6 = vcmask 1045504  }
  0x15   :  { %3193 = vmatmul.mubr.msk.bf16.gmra.mrb[4].mxu1 %vm241_vm2, %v207_v57  ;;  %v167_v57 = vsel %vm131_vm1, %v162_v39, %v166_v43  ;;  %v174_v39 = vrot.slane %v5355_v62, 1  ;;  %vm2139_vm7 = vcmask 1044480   ;;  %vm2729_vm8 = vcmask 125952  }
  0x16   :  { %3196 = vmatprep.mubr.msk.bf16.mxu1 %vm3785_vm0, %v5361_v0 }
  0x17   :  { %v175_v43 = vsel %vm131_vm1, %v170_v22, %v174_v39  ;;  %v4126_v22 = vcombine.low %v3937_v38, %v3979_v51  ;;  %v4141_v38 = vcombine.low %v3984_v52, %v53_v27  ;;  %v601_v52 = vrot.slane %v3855_v10, 1 }
  0x1b   :  { %3169 = vmatmul.mubr.msk.bf16.gmra.mrb[8].mxu0 %vm241_vm2, %v159_v4  ;;  %v5345_v4 = vshll.u32 %v4068_v49, 16 }
  0x1c   :  { %3172 = vmatprep.mubr.msk.bf16.mxu0 %vm3785_vm0, %v5361_v0 }
  0x1d   :  { %3197 = vmatmul.mubr.msk.bf16.gmra.mrb[8].mxu1 %vm241_vm2, %v215_v20  ;;  %v55_v20 = vld [vmem:[%s5336_s0 + $0x30] sm:$0xf] }
  0x1e   :  { %3200 = vmatprep.mubr.msk.bf16.mxu1 %vm3785_vm0, %v5361_v0  ;;  %v4097_v46 = vcombine.low %v55_v20, %v4086_v5 }
  0x20   :  { %v5353_v23 = vshll.u32 %v4097_v46, 16 }
  0x22   :  { %v182_v26 = vrot.slane %v5353_v23, 1 }
  0x23   :  { %3173 = vmatmul.mubr.msk.bf16.gmra.mrb[12].mxu0 %vm241_vm2, %v167_v57  ;;  %v226_v57 = vor.u32 %v5347_v2, %v222_v48  ;;  %v178_v48 = vor.u32 %v5356_v59, %v174_v39 }
  0x24   :  { %3176 = vmatprep.mubr.msk.bf16.mxu0 %vm3785_vm0, %v5361_v0 }
  0x25   :  { %3201 = vmatmul.mubr.msk.bf16.gmra.mrb[12].mxu1 %vm241_vm2, %v223_v1  ;;  %v230_v1 = vrot.slane %v5345_v4, 1  ;;  %v3668_v4 = vld [vmem:[%s5335_s2 + $0x28] sm:$0xff]  }
  0x26   :  { %3204 = vmatprep.mubr.msk.bf16.mxu1 %vm3785_vm0, %v5361_v0 }
  0x27   :  { %v231_v44 = vsel %vm131_vm1, %v226_v57, %v230_v1  ;;  %v234_v57 = vor.u32 %v5346_v37, %v230_v1  ;;  %v3664_v1 = vld [vmem:[%s5335_s2 + $0x18] sm:$0xff]  }
  0x2b   :  { %3177 = vmatmul.mubr.msk.bf16.gmra.mrb[16].mxu0 %vm241_vm2, %v175_v43  ;;  %v5354_v43 = vshrl.u32 %v4097_v46, 16 }
  0x2c   :  { %3180 = vmatprep.mubr.msk.bf16.mxu0 %vm3785_vm0, %v5361_v0 }
  0x2d   :  { %3205 = vmatmul.mubr.msk.bf16.gmra.mrb[16].mxu1 %vm241_vm2, %v231_v44  ;;  %v183_v44 = vsel %vm131_vm1, %v178_v48, %v182_v26  ;;  %v186_v39 = vor.u32 %v5354_v43, %v182_v26  ;;  %v600_v48 = vrot.slane %v3839_v6, 1  ;;  %v3665_v26 = vld [vmem:[%s5335_s2 + $0x20] sm:$0xff]  }
  0x2e   :  { %3208 = vmatprep.mubr.msk.bf16.mxu1 %vm3785_vm0, %v5361_v0 }
  0x2f   :  { %v191_v51 = vsel %vm131_vm1, %v186_v39, %v3891_v24  ;;  %v4158_v24 = vcombine.low %v4037_v28, %v55_v20  ;;  %v602_v27 = vsel %vm599_vm3, %v600_v48, %v601_v52  ;;  %v605_v20 = vrot.slane %v3961_v47, 1 }
  0x30   :  { %v611_v48 = vrot.slane %v4097_v46, 1 }
  0x33   :  { %3181 = vmatmul.mubr.msk.bf16.gmra.mrb[20].mxu0 %vm241_vm2, %v183_v44 }
  0x34   :  { %3184 = vmatprep.mubr.msk.bf16.mxu0 %vm3785_vm0, %v5361_v0 }
  0x35   :  { %3209 = vmatmul.mubr.msk.bf16.gmra.mrb[20].mxu1 %vm241_vm2, %v234_v57  ;;  %v607_v57 = vrot.slane %v4013_v63, 1 }
  0x36   :  { %3214 = vmatprep.mubr.msk.bf16.mxu1 %vm3785_vm0, %v5361_v0 }
  0x37   :  { %v608_v39 = vsel %vm599_vm3, %v605_v20, %v607_v57 }
  0x3b   :  { %3185 = vmatmul.mubr.msk.bf16.gmra.mrb[24].mxu0 %vm241_vm2, %v191_v51  ;;  %v609_v51 = vrot.slane %v4058_v45, 1 }
  0x3c   :  { %3268 = vmatprep.mubr.msk.bf16.mxu0 %vm3785_vm0, %v5361_v0 }
  0x3d   :  { %3215 = vmatmul.mubr.msk.bf16.vlgmr.msra.gmra.mrb[24].mxu1 %vm241_vm2, %v3839_v6  ;;  %v603_v6 = vrot.slane %v3905_v29, 1 }
  0x3e   :  { %3321 = vmatpush3.bf16.msra.mxu1 %v3664_v1  ;;  %3218 = vmatprep.mubr.msk.bf16.mxu1 %vm3785_vm0, %v5361_v0  ;;  %v610_v1 = vsel %vm599_vm3, %v607_v57, %v609_v51  ;;  %v619_v57 = vrot.slane %v3971_v50, 1 }
  0x3f   :  { %3428 = vmatprep.subr.bf16.mxu1 %v5361_v0  ;;  %v604_v28 = vsel %vm599_vm3, %v601_v52, %v603_v6  ;;  %v606_v44 = vsel %vm599_vm3, %v603_v6, %v605_v20  ;;  %v612_v52 = vsel %vm599_vm3, %v609_v51, %v611_v48  ;;  %v615_v6 = vrot.slane %v3876_v16, 1 }
  0x40   :  { %v617_v20 = vrot.slane %v3926_v35, 1  ;;  %v621_v51 = vrot.slane %v4023_v3, 1 }
  0x43   :  { %3269 = vmatmul.mubr.msk.bf16.vlgmr.msra.gmra.mrb[28].mxu0 %vm241_vm2, %v602_v27  ;;  %v613_v27 = vrot.slane %v3869_v13, 1 }
  0x44   :  { %3375 = vmatpush3.bf16.msra.mxu0 %v3665_v26  ;;  %3272 = vmatprep.mubr.msk.bf16.mxu0 %vm3785_vm0, %v5361_v0 }
  0x45   :  { %3219 = vmatmul.mubr.msk.bf16.gmra.mrb[28].mxu1 %vm241_vm2, %v3855_v10  ;;  %3482 = vmatprep.subr.bf16.mxu0 %v5361_v0  ;;  %v614_v26 = vsel %vm599_vm3, %v611_v48, %v613_v27  ;;  %v623_v48 = vrot.slane %v4068_v49, 1 }
  0x46   :  { %3222 = vmatprep.mubr.msk.bf16.mxu1 %vm3785_vm0, %v5361_v0 }
  0x4b   :  { %3273 = vmatmul.mubr.msk.bf16.gmra.mrb[32].mxu0 %vm241_vm2, %v604_v28  ;;  %v616_v28 = vsel %vm599_vm3, %v613_v27, %v615_v6  ;;  %v624_v27 = vsel %vm599_vm3, %v621_v51, %v623_v48 }
  0x4c   :  { %3276 = vmatprep.mubr.msk.bf16.mxu0 %vm3785_vm0, %v5361_v0 }
  0x4d   :  { %3223 = vmatmul.mubr.msk.bf16.gmra.mrb[32].mxu1 %vm241_vm2, %v3905_v29 }
  0x4e   :  { %3226 = vmatprep.mubr.msk.bf16.mxu1 %vm3785_vm0, %v5361_v0 }
  0x53   :  { %3277 = vmatmul.mubr.msk.bf16.gmra.mrb[36].mxu0 %vm241_vm2, %v606_v44  ;;  %v618_v44 = vsel %vm599_vm3, %v615_v6, %v617_v20  ;;  %v1093_v6 = vshll.u32 %v3841_v7, 16 }
  0x54   :  { %3280 = vmatprep.mubr.msk.bf16.mxu0 %vm3785_vm0, %v5361_v0 }
  0x55   :  { %3227 = vmatmul.mubr.msk.bf16.gmra.mrb[36].mxu1 %vm241_vm2, %v3961_v47 }
  0x56   :  { %3230 = vmatprep.mubr.msk.bf16.mxu1 %vm3785_vm0, %v5361_v0 }
  0x5b   :  { %3281 = vmatmul.mubr.msk.bf16.gmra.mrb[40].mxu0 %vm241_vm2, %v608_v39  ;;  %v620_v39 = vsel %vm599_vm3, %v617_v20, %v619_v57  ;;  %v1101_v20 = vshll.u32 %v4072_v53, 16 }
  0x5c   :  { %3284 = vmatprep.mubr.msk.bf16.mxu0 %vm3785_vm0, %v5361_v0 }
  0x5d   :  { %3231 = vmatmul.mubr.msk.bf16.gmra.mrb[40].mxu1 %vm241_vm2, %v4013_v63 }
  0x5e   :  { %3234 = vmatprep.mubr.msk.bf16.mxu1 %vm3785_vm0, %v5361_v0 }
  0x63   :  { %3285 = vmatmul.mubr.msk.bf16.gmra.mrb[44].mxu0 %vm241_vm2, %v610_v1  ;;  %v622_v1 = vsel %vm599_vm3, %v619_v57, %v621_v51  ;;  %v858_v57 = vrot.slane %v4072_v53, 1  ;;  %v1095_v51 = vrot.slane %v1093_v6, 2  ;;  %v1110_v6 = vshll.u32 %v4107_v25, 16 }
  0x64   :  { %3288 = vmatprep.mubr.msk.bf16.mxu0 %vm3785_vm0, %v5361_v0 }
  0x65   :  { %3235 = vmatmul.mubr.msk.bf16.gmra.mrb[44].mxu1 %vm241_vm2, %v4058_v45 }
  0x66   :  { %3238 = vmatprep.mubr.msk.bf16.mxu1 %vm3785_vm0, %v5361_v0 }
  0x6b   :  { %3289 = vmatmul.mubr.msk.bf16.gmra.mrb[48].mxu0 %vm241_vm2, %v612_v52  ;;  %v2780_v52 = vcombine.low %v4042_v33, %v4042_v33  ;;  %v1880_v33 = vrot.slane %v152_v54, 2 }
  0x6c   :  { %3292 = vmatprep.mubr.msk.bf16.mxu0 %vm3785_vm0, %v5361_v0 }
  0x6d   :  { %3239 = vmatmul.mubr.msk.bf16.gmra.mrb[48].mxu1 %vm241_vm2, %v4097_v46 }
  0x6e   :  { %3242 = vmatprep.mubr.msk.bf16.mxu1 %vm3785_vm0, %v5361_v0 }
  0x73   :  { %3293 = vmatmul.mubr.msk.bf16.gmra.mrb[52].mxu0 %vm241_vm2, %v614_v26  ;;  %v1090_v26 = vshrl.u32 %v3841_v7, 16 }
  0x74   :  { %3296 = vmatprep.mubr.msk.bf16.mxu0 %vm3785_vm0, %v5361_v0 }
  0x75   :  { %3243 = vmatmul.mubr.msk.bf16.gmra.mrb[52].mxu1 %vm241_vm2, %v3869_v13 }
  0x76   :  { %3246 = vmatprep.mubr.msk.bf16.mxu1 %vm3785_vm0, %v5361_v0 }
  0x7b   :  { %3297 = vmatmul.mubr.msk.bf16.gmra.mrb[56].mxu0 %vm241_vm2, %v616_v28  ;;  %v1098_v28 = vshrl.u32 %v4072_v53, 16 }
  0x7c   :  { %3300 = vmatprep.mubr.msk.bf16.mxu0 %vm3785_vm0, %v5361_v0 }
  0x7d   :  { %3247 = vmatmul.mubr.msk.bf16.gmra.mrb[56].mxu1 %vm241_vm2, %v3876_v16 }
  0x7e   :  { %3250 = vmatprep.mubr.msk.bf16.mxu1 %vm3785_vm0, %v5361_v0 }
  0x83   :  { %3301 = vmatmul.mubr.msk.bf16.gmra.mrb[60].mxu0 %vm241_vm2, %v618_v44  ;;  %v857_v44 = vrot.slane %v3841_v7, 1 }
  0x84   :  { %3304 = vmatprep.mubr.msk.bf16.mxu0 %vm3785_vm0, %v5361_v0 }
  0x85   :  { %3251 = vmatmul.mubr.msk.bf16.gmra.mrb[60].mxu1 %vm241_vm2, %v3926_v35 }
  0x86   :  { %3254 = vmatprep.mubr.msk.bf16.mxu1 %vm3785_vm0, %v5361_v0 }
  0x8b   :  { %3305 = vmatmul.mubr.msk.bf16.gmra.mrb[64].mxu0 %vm241_vm2, %v620_v39  ;;  %v1092_v39 = vrot.slane %v1090_v26, 1  ;;  %v1107_v26 = vshrl.u32 %v4107_v25, 16 }
  0x8c   :  { %3308 = vmatprep.mubr.msk.bf16.mxu0 %vm3785_vm0, %v5361_v0 }
  0x8d   :  { %3255 = vmatmul.mubr.msk.bf16.gmra.mrb[64].mxu1 %vm241_vm2, %v3971_v50  ;;  %v1096_v37 = vor.u32 %v1095_v51, %v1092_v39  ;;  %v1112_v39 = vrot.slane %v1110_v6, 2 }
  0x8e   :  { %3258 = vmatprep.mubr.msk.bf16.mxu1 %vm3785_vm0, %v5361_v0 }
  0x93   :  { %3309 = vmatmul.mubr.msk.bf16.gmra.mrb[68].mxu0 %vm241_vm2, %v622_v1  ;;  %v1100_v1 = vrot.slane %v1098_v28, 1  ;;  %v860_v28 = vrot.slane %v4107_v25, 1 }
  0x94   :  { %3312 = vmatprep.mubr.msk.bf16.mxu0 %vm3785_vm0, %v5361_v0 }
  0x95   :  { %3259 = vmatmul.mubr.msk.bf16.gmra.mrb[68].mxu1 %vm241_vm2, %v4023_v3  ;;  %v861_v51 = vsel %vm599_vm3, %v858_v57, %v860_v28 }
  0x96   :  { %3262 = vmatprep.mubr.msk.bf16.mxu1 %vm3785_vm0, %v5361_v0 }
  0x9b   :  { %3313 = vmatmul.mubr.msk.bf16.gmra.mrb[72].mxu0 %vm241_vm2, %v624_v27  ;;  %v859_v27 = vsel %vm599_vm3, %v857_v44, %v858_v57  ;;  %v1109_v44 = vrot.slane %v1107_v26, 1 }
  0x9c   :  { %3316 = vmatprep.mubr.msk.bf16.mxu0 %vm3785_vm0, %v5361_v0 }
  0x9d   :  { %3263 = vmatmul.mubr.msk.bf16.gmra.mrb[72].mxu1 %vm241_vm2, %v2780_v52  ;;  %v1103_v52 = vrot.slane %v1101_v20, 2  ;;  %v3670_v20 = vld [vmem:[%s5335_s2 + $0x30] sm:$0xff]  }
  0x9e   :  { %3322 = vmatprep.mubr.msk.bf16.mxu1 %vm3785_vm0, %v5361_v0 }
  0x9f   :  { %v1104_v2 = vor.u32 %v1103_v52, %v1100_v1  ;;  %v1116_v1 = vshrl.u32 %v4126_v22, 16  ;;  %v1119_v52 = vshll.u32 %v4126_v22, 16 }
  0xa1   :  { %v1121_v26 = vrot.slane %v1119_v52, 2 }
  0xa3   :  { %3317 = vmatmul.mubr.msk.bf16.gmra.mrb[76].mxu0 %vm241_vm2, %v623_v48  ;;  %v1105_v48 = vsel %vm1088_vm4, %v1096_v37, %v1104_v2  ;;  %v862_v37 = vrot.slane %v4126_v22, 1 }
  0xa4   :  { %3376 = vmatprep.mubr.msk.bf16.mxu0 %vm3785_vm0, %v5361_v0 }
  0xa5   :  { %3323 = vmatmul.mubr.msk.bf16.vlgmr.msra.gmra.mrb[76].mxu1 %vm241_vm2, %v859_v27  ;;  %v1118_v27 = vrot.slane %v1116_v1, 1  ;;  %v863_v6 = vsel %vm599_vm3, %v860_v28, %v862_v37 }
  0xa6   :  { %3429 = vmatpush3.bf16.msra.mxu1 %v3668_v4  ;;  %3326 = vmatprep.mubr.msk.bf16.mxu1 %vm3785_vm0, %v5361_v0  ;;  %v1113_v4 = vor.u32 %v1112_v39, %v1109_v44  ;;  %v1128_v44 = vshll.u32 %v4141_v38, 16 }
  0xa7   :  { %3536 = vmatprep.subr.bf16.mxu1 %v5361_v0 }
  0xa8   :  { %v1114_v57 = vsel %vm1088_vm4, %v1104_v2, %v1113_v4  ;;  %v864_v2 = vrot.slane %v4141_v38, 1 }
  0xaa   :  { %v865_v1 = vsel %vm599_vm3, %v862_v37, %v864_v2 }
  0xab   :  { %3377 = vmatmul.mubr.msk.bf16.vlgmr.msra.gmra.mrb[80].mxu0 %vm241_vm2, %v1105_v48  ;;  %v1122_v48 = vor.u32 %v1121_v26, %v1118_v27  ;;  %v1137_v27 = vshll.u32 %v4158_v24, 16 }
  0xac   :  { %3483 = vmatpush3.bf16.msra.mxu0 %v3670_v20  ;;  %3380 = vmatprep.mubr.msk.bf16.mxu0 %vm3785_vm0, %v5361_v0  ;;  %v1125_v20 = vshrl.u32 %v4141_v38, 16 }
  0xad   :  { %3327 = vmatmul.mubr.msk.bf16.gmra.mrb[80].mxu1 %vm241_vm2, %v861_v51  ;;  %3590 = vmatprep.subr.bf16.mxu0 %v5361_v0  ;;  %v1123_v39 = vsel %vm1088_vm4, %v1113_v4, %v1122_v48  ;;  %v1130_v51 = vrot.slane %v1128_v44, 2  ;;  %v866_v4 = vrot.slane %v4158_v24, 1  ;;  %v4334_v44 = vcombine.low %v4086_v5, %v3846_v8 }
  0xae   :  { %3330 = vmatprep.mubr.msk.bf16.mxu1 %vm3785_vm0, %v5361_v0  ;;  %v1127_v28 = vrot.slane %v1125_v20, 1 }
  0xaf   :  { %v867_v20 = vsel %vm599_vm3, %v864_v2, %v866_v4  ;;  %v868_v2 = vrot.slane %v4334_v44, 1 }
  0xb0   :  { %v1131_v52 = vor.u32 %v1130_v51, %v1127_v28  ;;  %v1143_v28 = vshrl.u32 %v4334_v44, 16 }
  0xb2   :  { %v1132_v26 = vsel %vm1088_vm4, %v1122_v48, %v1131_v52  ;;  %v1146_v48 = vshll.u32 %v4334_v44, 16  ;;  %v1145_v5 = vrot.slane %v1143_v28, 1 }
  0xb3   :  { %3381 = vmatmul.mubr.msk.bf16.gmra.mrb[84].mxu0 %vm241_vm2, %v1114_v57  ;;  %v1134_v57 = vshrl.u32 %v4158_v24, 16 }
  0xb4   :  { %3384 = vmatprep.mubr.msk.bf16.mxu0 %vm3785_vm0, %v5361_v0  ;;  %v1148_v51 = vrot.slane %v1146_v48, 2 }
  0xb5   :  { %3331 = vmatmul.mubr.msk.bf16.gmra.mrb[84].mxu1 %vm241_vm2, %v863_v6  ;;  %v1136_v37 = vrot.slane %v1134_v57, 1  ;;  %v1139_v6 = vrot.slane %v1137_v27, 2  ;;  %v4349_v57 = vcombine.low %v3851_v9, %v3860_v11 }
  0xb6   :  { %3334 = vmatprep.mubr.msk.bf16.mxu1 %vm3785_vm0, %v5361_v0  ;;  %v1149_v27 = vor.u32 %v1148_v51, %v1145_v5  ;;  %v4379_v51 = vcombine.low %v3916_v32, %v3944_v41 }
  0xbb   :  { %3385 = vmatmul.mubr.msk.bf16.gmra.mrb[88].mxu0 %vm241_vm2, %v1123_v39  ;;  %v1140_v39 = vor.u32 %v1139_v6, %v1136_v37 }
  0xbc   :  { %3388 = vmatprep.mubr.msk.bf16.mxu0 %vm3785_vm0, %v5361_v0 }
  0xbd   :  { %3335 = vmatmul.mubr.msk.bf16.gmra.mrb[88].mxu1 %vm241_vm2, %v865_v1  ;;  %v1141_v8 = vsel %vm1088_vm4, %v1131_v52, %v1140_v39  ;;  %v869_v1 = vsel %vm599_vm3, %v866_v4, %v868_v2  ;;  %v1155_v52 = vshll.u32 %v4349_v57, 16  ;;  %v870_v4 = vrot.slane %v4349_v57, 1 }
  0xbe   :  { %3338 = vmatprep.mubr.msk.bf16.mxu1 %vm3785_vm0, %v5361_v0  ;;  %v1150_v9 = vsel %vm1088_vm4, %v1140_v39, %v1149_v27 }
  0xbf   :  { %v1157_v37 = vrot.slane %v1155_v52, 2  ;;  %v871_v6 = vsel %vm599_vm3, %v868_v2, %v870_v4  ;;  %v874_v52 = vrot.slane %v4379_v51, 1 }
  0xc3   :  { %3389 = vmatmul.mubr.msk.bf16.gmra.mrb[92].mxu0 %vm241_vm2, %v1132_v26  ;;  %v1152_v26 = vshrl.u32 %v4349_v57, 16 }
  0xc4   :  { %3392 = vmatprep.mubr.msk.bf16.mxu0 %vm3785_vm0, %v5361_v0 }
  0xc5   :  { %3339 = vmatmul.mubr.msk.bf16.gmra.mrb[92].mxu1 %vm241_vm2, %v867_v20  ;;  %v1154_v11 = vrot.slane %v1152_v26, 1  ;;  %v4364_v20 = vcombine.low %v3865_v12, %v3911_v31  ;;  %v1170_v26 = vshrl.u32 %v4379_v51, 16 }
  0xc6   :  { %3342 = vmatprep.mubr.msk.bf16.mxu1 %vm3785_vm0, %v5361_v0 }
  0xc7   :  { %v1158_v28 = vor.u32 %v1157_v37, %v1154_v11  ;;  %v1161_v48 = vshrl.u32 %v4364_v20, 16  ;;  %v1164_v39 = vshll.u32 %v4364_v20, 16  ;;  %v872_v2 = vrot.slane %v4364_v20, 1 }
  0xc9   :  { %v1159_v12 = vsel %vm1088_vm4, %v1149_v27, %v1158_v28  ;;  %v1163_v31 = vrot.slane %v1161_v48, 1  ;;  %v873_v5 = vsel %vm599_vm3, %v870_v4, %v872_v2  ;;  %v1173_v27 = vshll.u32 %v4379_v51, 16 }
  0xcb   :  { %3393 = vmatmul.mubr.msk.bf16.gmra.mrb[96].mxu0 %vm241_vm2, %v1141_v8  ;;  %v1166_v8 = vrot.slane %v1164_v39, 2  ;;  %v1175_v48 = vrot.slane %v1173_v27, 2 }
  0xcc   :  { %3396 = vmatprep.mubr.msk.bf16.mxu0 %vm3785_vm0, %v5361_v0 }
  0xcd   :  { %3343 = vmatmul.mubr.msk.bf16.gmra.mrb[96].mxu1 %vm241_vm2, %v869_v1  ;;  %v1167_v1 = vor.u32 %v1166_v8, %v1163_v31  ;;  %v875_v31 = vsel %vm599_vm3, %v872_v2, %v874_v52  ;;  %v4402_v8 = vcombine.low %v3949_v42, %v3993_v56 }
  0xce   :  { %3346 = vmatprep.mubr.msk.bf16.mxu1 %vm3785_vm0, %v5361_v0 }
  0xcf   :  { %v1168_v37 = vsel %vm1088_vm4, %v1158_v28, %v1167_v1  ;;  %v1182_v27 = vshll.u32 %v4402_v8, 16  ;;  %v876_v2 = vrot.slane %v4402_v8, 1 }
  0xd1   :  { %v877_v58 = vsel %vm599_vm3, %v874_v52, %v876_v2  ;;  %v1191_v52 = vshll.u32 %v4425_v21, 16 }
  0xd3   :  { %3397 = vmatmul.mubr.msk.bf16.gmra.mrb[100].mxu0 %vm241_vm2, %v1150_v9 }
  0xd4   :  { %3400 = vmatprep.mubr.msk.bf16.mxu0 %vm3785_vm0, %v5361_v0 }
  0xd5   :  { %3347 = vmatmul.mubr.msk.bf16.gmra.mrb[100].mxu1 %vm241_vm2, %v871_v6  ;;  %v1172_v6 = vrot.slane %v1170_v26, 1  ;;  %v1179_v26 = vshrl.u32 %v4402_v8, 16 }
  0xd6   :  { %3350 = vmatprep.mubr.msk.bf16.mxu1 %vm3785_vm0, %v5361_v0 }
  0xd7   :  { %v1176_v28 = vor.u32 %v1175_v48, %v1172_v6  ;;  %v1181_v6 = vrot.slane %v1179_v26, 1  ;;  %v1184_v48 = vrot.slane %v1182_v27, 2  ;;  %v1188_v26 = vshrl.u32 %v4425_v21, 16  ;;  %v4449_v27 = vld [vmem:[%s5337_s1 + $0x68] sm:$0xf] }
  0xd8   :  { %v4461_v23 = vcombine.low %v4047_v34, %v4449_v27 }
  0xda   :  { %v1197_v34 = vshrl.u32 %v4461_v23, 16 }
  0xdb   :  { %3401 = vmatmul.mubr.msk.bf16.gmra.mrb[104].mxu0 %vm241_vm2, %v1159_v12 }
  0xdc   :  { %3404 = vmatprep.mubr.msk.bf16.mxu0 %vm3785_vm0, %v5361_v0 }
  0xdd   :  { %3351 = vmatmul.mubr.msk.bf16.gmra.mrb[104].mxu1 %vm241_vm2, %v873_v5 }
  0xde   :  { %3354 = vmatprep.mubr.msk.bf16.mxu1 %vm3785_vm0, %v5361_v0  ;;  %v4390_v4 = vpop.f32.mrb[0].mxu0 }
  0xdf   :  { %v3162_v32 = vpop.f32.mrb[1].mxu0 }
  0xe0   :  { %v4392_v41 = vpop.f32.mrb[0].mxu1  ;;  %v4394_v9 = vpop.f32.mrb[2].mxu0 }
  0xe1   :  { %v3190_v11 = vpop.f32.mrb[1].mxu1  ;;  %v3163_v39 = vpop.f32.mrb[3].mxu0 }
  0xe2   :  { %v4397_v12 = vpop.f32.mrb[2].mxu1  ;;  %v1177_v39 = vsel %vm1088_vm4, %v1167_v1, %v1176_v28  ;;  %v1185_v1 = vor.u32 %v1184_v48, %v1181_v6  ;;  %v1190_v6 = vrot.slane %v1188_v26, 1  ;;  %v1193_v48 = vrot.slane %v1191_v52, 2 }
  0xe3   :  { %v3191_v5 = vpop.f32.mrb[3].mxu1  ;;  %3405 = vmatmul.mubr.msk.bf16.gmra.mrb[108].mxu0 %vm241_vm2, %v1168_v37 }
  0xe4   :  { %3408 = vmatprep.mubr.msk.bf16.mxu0 %vm3785_vm0, %v5361_v0  ;;  %v1186_v54 = vsel %vm1088_vm4, %v1176_v28, %v1185_v1 }
  0xe5   :  { %3355 = vmatmul.mubr.msk.bf16.gmra.mrb[108].mxu1 %vm241_vm2, %v875_v31 }
  0xe6   :  { %3358 = vmatprep.mubr.msk.bf16.mxu1 %vm3785_vm0, %v5361_v0  ;;  %v4413_v42 = vpop.f32.mrb[4].mxu0 }
  0xe7   :  { %v3166_v56 = vpop.f32.mrb[5].mxu0 }
  0xe8   :  { %v4415_v32 = vpop.f32.mrb[4].mxu1  ;;  %v4417_v11 = vpop.f32.mrb[6].mxu0  ;;  %v1878_v56 = vrot.slane %v140_v17, 3  ;;  %v878_v17 = vrot.slane %v4425_v21, 1 }
  0xe9   :  { %v3194_v37 = vpop.f32.mrb[5].mxu1  ;;  %v3167_v31 = vpop.f32.mrb[7].mxu0 }
  0xea   :  { %v4420_v5 = vpop.f32.mrb[6].mxu1  ;;  %v879_v19 = vsel %vm599_vm3, %v876_v2, %v878_v17  ;;  %v1879_v43 = vor.u32 %v1878_v56, %v1877_v60  ;;  %v1194_v2 = vor.u32 %v1193_v48, %v1190_v6  ;;  %v1200_v56 = vshll.u32 %v4461_v23, 16 }
  0xeb   :  { %v3195_v36 = vpop.f32.mrb[7].mxu1  ;;  %3409 = vmatmul.mubr.msk.bf16.gmra.mrb[112].mxu0 %vm241_vm2, %v1177_v39 }
  0xec   :  { %3412 = vmatprep.mubr.msk.bf16.mxu0 %vm3785_vm0, %v5361_v0  ;;  %v1881_v36 = vrot.slane %v148_v40, 3 }
  0xed   :  { %3359 = vmatmul.mubr.msk.bf16.gmra.mrb[112].mxu1 %vm241_vm2, %v877_v58 }
  0xee   :  { %3362 = vmatprep.mubr.msk.bf16.mxu1 %vm3785_vm0, %v5361_v0  ;;  %v4444_v58 = vpop.f32.mrb[8].mxu0 }
  0xef   :  { %v3170_v37 = vpop.f32.mrb[9].mxu0 }
  0xf0   :  { %v4451_v30 = vpop.f32.mrb[8].mxu1  ;;  %v4453_v39 = vpop.f32.mrb[10].mxu0  ;;  %v4463_v37 = vor.u32 %v1881_v36, %v1880_v33  ;;  %v1195_v36 = vsel %vm1088_vm4, %v1185_v1, %v1194_v2  ;;  %v1199_v33 = vrot.slane %v1197_v34, 1 }
  0xf1   :  { %v3198_v40 = vpop.f32.mrb[9].mxu1  ;;  %v3171_v31 = vpop.f32.mrb[11].mxu0 }
  0xf2   :  { %v4456_v18 = vpop.f32.mrb[10].mxu1  ;;  %5368 = vst [vmem:[#allocation4_spill] sm:$0xff] %v4463_v37  ;;  %v4468_v28 = vsel %vm1876_vm5, %v1879_v43, %v4463_v37  ;;  %v1202_v40 = vrot.slane %v1200_v56, 2 }
  0xf3   :  { %v3199_v62 = vpop.f32.mrb[11].mxu1  ;;  %3413 = vmatmul.mubr.msk.bf16.gmra.mrb[116].mxu0 %vm241_vm2, %v1186_v54  ;;  %5369 = vst [vmem:[#allocation5_spill] sm:$0xff] %v4468_v28 }
  0xf4   :  { %3416 = vmatprep.mubr.msk.bf16.mxu0 %vm3785_vm0, %v5361_v0  ;;  %v880_v62 = vrot.slane %v4461_v23, 1 }
  0xf5   :  { %3363 = vmatmul.mubr.msk.bf16.gmra.mrb[116].mxu1 %vm241_vm2, %v879_v19 }
  0xf6   :  { %3366 = vmatprep.mubr.msk.bf16.mxu1 %vm3785_vm0, %v5361_v0  ;;  %v4478_v26 = vpop.f32.mrb[12].mxu0  ;;  %v881_v48 = vsel %vm599_vm3, %v878_v17, %v880_v62 }
  0xf7   :  { %v3174_v52 = vpop.f32.mrb[13].mxu0 }
  0xf8   :  { %v4480_v43 = vpop.f32.mrb[12].mxu1  ;;  %v4482_v60 = vpop.f32.mrb[14].mxu0  ;;  %v1203_v52 = vor.u32 %v1202_v40, %v1199_v33  ;;  %v1412_v33 = vrot.slane %v3841_v7, 2  ;;  %v1413_v40 = vrot.slane %v4072_v53, 2  ;;  %v1645_v53 = vrot.slane %v3855_v10, 2 }
  0xf9   :  { %v3202_v19 = vpop.f32.mrb[13].mxu1  ;;  %v3175_v54 = vpop.f32.mrb[15].mxu0 }
  0xfa   :  { %v4485_v6 = vpop.f32.mrb[14].mxu1  ;;  %v1204_v54 = vsel %vm1088_vm4, %v1194_v2, %v1203_v52  ;;  %v1414_v59 = vsel %vm1411_vm6, %v1412_v33, %v1413_v40  ;;  %v1415_v33 = vrot.slane %v4107_v25, 2 }
  0xfb   :  { %v3203_v31 = vpop.f32.mrb[15].mxu1  ;;  %3417 = vmatmul.mubr.msk.bf16.gmra.mrb[120].mxu0 %vm241_vm2, %v1195_v36 }
  0xfc   :  { %3420 = vmatprep.mubr.msk.bf16.mxu0 %vm3785_vm0, %v5361_v0 }
  0xfd   :  { %3367 = vmatmul.mubr.msk.bf16.gmra.mrb[120].mxu1 %vm241_vm2, %v881_v48 }
  0xfe   :  { %3370 = vmatprep.mubr.msk.bf16.mxu1 %vm3785_vm0, %v5361_v0  ;;  %v4494_v1 = vpop.f32.mrb[16].mxu0 }
  0xff   :  { %v3178_v34 = vpop.f32.mrb[17].mxu0 }
 0x100   :  { %v4496_v56 = vpop.f32.mrb[16].mxu1  ;;  %v4498_v19 = vpop.f32.mrb[18].mxu0 }
 0x101   :  { %v3206_v17 = vpop.f32.mrb[17].mxu1  ;;  %v3179_v36 = vpop.f32.mrb[19].mxu0 }
 0x102   :  { %v4501_v31 = vpop.f32.mrb[18].mxu1 }
 0x103   :  { %v3207_v48 = vpop.f32.mrb[19].mxu1  ;;  %3421 = vmatmul.mubr.msk.bf16.gmra.mrb[124].mxu0 %vm241_vm2, %v1204_v54 }
 0x104   :  { %3424 = vmatprep.mubr.msk.bf16.mxu0 %vm3785_vm0, %v5361_v0 }
 0x105   :  { %3371 = vmatmul.mubr.msk.bf16.gmra.mrb[124].mxu1 %vm241_vm2, %v880_v62 }
 0x106   :  { %3430 = vmatprep.mubr.msk.bf16.mxu1 %vm3785_vm0, %v5361_v0  ;;  %v4511_v34 = vpop.f32.mrb[20].mxu0 }
 0x107   :  { %v3182_v2 = vpop.f32.mrb[21].mxu0 }
 0x108   :  { %v4513_v17 = vpop.f32.mrb[20].mxu1  ;;  %v4515_v36 = vpop.f32.mrb[22].mxu0  ;;  %v1646_v2 = vrot.slane %v3905_v29, 2 }
 0x109   :  { %v3210_v54 = vpop.f32.mrb[21].mxu1  ;;  %v3183_v62 = vpop.f32.mrb[23].mxu0 }
 0x10a   :  { %v414_v48 = vpop.f32.mrb[22].mxu1  ;;  %v1647_v61 = vsel %vm1411_vm6, %v1645_v53, %v1646_v2 }
 0x10b   :  { %v3211_v7 = vpop.f32.mrb[23].mxu1  ;;  %3425 = vmatmul.mubr.msk.bf16.gmra.mrb[128].mxu0 %vm241_vm2, %v1203_v52 }
 0x10c   :  { %3484 = vmatprep.mubr.msk.bf16.mxu0 %vm3785_vm0, %v5361_v0 }
 0x10d   :  { %3431 = vmatmul.mubr.msk.bf16.vlgmr.msra.gmra.mrb[128].mxu1 %vm241_vm2, %v1414_v59 }
 0x10e   :  { %3537 = vmatpush3.bf16.msra.mxu1 %v3681_v15  ;;  %3434 = vmatprep.mubr.msk.bf16.mxu1 %vm3785_vm0, %v5361_v0  ;;  %v4530_v54 = vpop.f32.mrb[24].mxu0  ;;  %v3682_v15 = vld [vmem:[%s5335_s2 + $0x40] sm:$0xff]   ;;  %v1416_v0 = vsel %vm1411_vm6, %v1413_v40, %v1415_v33 }
 0x10f   :  { %v3186_v48 = vpop.f32.mrb[25].mxu0 }
 0x110   :  { %v484_v62 = vpop.f32.mrb[24].mxu1  ;;  %v4533_v7 = vpop.f32.mrb[26].mxu0 }
 0x111   :  { %v485_v52 = vadd.f32 %v484_v62, %v4390_v4  ;;  %v3216_v59 = vpop.f32.mrb[25].mxu1  ;;  %v3187_v14 = vpop.f32.mrb[27].mxu0  ;;  %v1648_v4 = vrot.slane %v3961_v47, 2  ;;  %v5370_v62 = vmov 0.0  }
 0x112   :  { %v487_v55 = vpop.f32.mrb[26].mxu1  ;;  %v1417_v14 = vrot.slane %v4126_v22, 2 }
 0x113   :  { %v488_v25 = vadd.f32 %v487_v55, %v4394_v9  ;;  %v3217_v37 = vpop.f32.mrb[27].mxu1  ;;  %3485 = vmatmul.mubr.msk.bf16.vlgmr.msra.gmra.mrb[132].mxu0 %vm241_vm2, %v1647_v61 }
 0x114   :  { %3591 = vmatpush3.bf16.msra.mxu0 %v3682_v15  ;;  %3488 = vmatprep.mubr.msk.bf16.mxu0 %vm3785_vm0, %v5370_v62  ;;  %v1649_v37 = vsel %vm1411_vm6, %v1646_v2, %v1648_v4  ;;  %v1418_v10 = vsel %vm1411_vm6, %v1415_v33, %v1417_v14  ;;  %v1419_v2 = vrot.slane %v4141_v38, 2 }
 0x115   :  { %3435 = vmatmul.mubr.msk.bf16.gmra.mrb[132].mxu1 %vm241_vm2, %v1416_v0 }
 0x116   :  { %3438 = vmatprep.mubr.msk.bf16.mxu1 %vm3785_vm0, %v5370_v62  ;;  %v704_v53 = vpop.f32.mrb[28].mxu0 }
 0x117   :  { %v4549_v48 = vadd.f32 %v704_v53, %v485_v52  ;;  %v3270_v55 = vpop.f32.mrb[29].mxu0 }
 0x118   :  { %v492_v40 = vpop.f32.mrb[28].mxu1  ;;  %v707_v0 = vpop.f32.mrb[30].mxu0 }
 0x119   :  { %v493_v61 = vadd.f32 %v492_v40, %v4413_v42  ;;  %v3220_v9 = vpop.f32.mrb[29].mxu1  ;;  %v4553_v15 = vadd.f32 %v707_v0, %v488_v25  ;;  %v3271_v29 = vpop.f32.mrb[31].mxu0  ;;  %v1650_v42 = vrot.slane %v4013_v63, 2 }
 0x11a   :  { %v495_v59 = vpop.f32.mrb[30].mxu1 }
 0x11b   :  { %v496_v28 = vadd.f32 %v495_v59, %v4417_v11  ;;  %v3221_v22 = vpop.f32.mrb[31].mxu1  ;;  %3489 = vmatmul.mubr.msk.bf16.gmra.mrb[136].mxu0 %vm241_vm2, %v1649_v37  ;;  %v1420_v37 = vsel %vm1411_vm6, %v1417_v14, %v1419_v2 }
 0x11c   :  { %3492 = vmatprep.mubr.msk.bf16.mxu0 %vm3785_vm0, %v5370_v62 }
 0x11d   :  { %3439 = vmatmul.mubr.msk.bf16.gmra.mrb[136].mxu1 %vm241_vm2, %v1418_v10  ;;  %v1651_v10 = vsel %vm1411_vm6, %v1648_v4, %v1650_v42 }
 0x11e   :  { %3442 = vmatprep.mubr.msk.bf16.mxu1 %vm3785_vm0, %v5370_v62  ;;  %v712_v29 = vpop.f32.mrb[32].mxu0 }
 0x11f   :  { %v4565_v33 = vadd.f32 %v712_v29, %v493_v61  ;;  %v3274_v11 = vpop.f32.mrb[33].mxu0 }
 0x120   :  { %v500_v52 = vpop.f32.mrb[32].mxu1  ;;  %v715_v40 = vpop.f32.mrb[34].mxu0 }
 0x121   :  { %v501_v25 = vadd.f32 %v500_v52, %v4444_v58  ;;  %v3224_v53 = vpop.f32.mrb[33].mxu1  ;;  %v4569_v9 = vadd.f32 %v715_v40, %v496_v28  ;;  %v3275_v0 = vpop.f32.mrb[35].mxu0  ;;  %v1652_v58 = vrot.slane %v4058_v45, 2  ;;  %v1421_v28 = vrot.slane %v4158_v24, 2 }
 0x122   :  { %v503_v55 = vpop.f32.mrb[34].mxu1 }
 0x123   :  { %v504_v59 = vadd.f32 %v503_v55, %v4453_v39  ;;  %v3225_v38 = vpop.f32.mrb[35].mxu1  ;;  %3493 = vmatmul.mubr.msk.bf16.gmra.mrb[140].mxu0 %vm241_vm2, %v1651_v10  ;;  %v1653_v11 = vsel %vm1411_vm6, %v1650_v42, %v1652_v58  ;;  %v1422_v55 = vsel %vm1411_vm6, %v1419_v2, %v1421_v28  ;;  %v1423_v42 = vrot.slane %v4334_v44, 2 }
 0x124   :  { %3496 = vmatprep.mubr.msk.bf16.mxu0 %vm3785_vm0, %v5370_v62 }
 0x125   :  { %3443 = vmatmul.mubr.msk.bf16.gmra.mrb[140].mxu1 %vm241_vm2, %v1420_v37 }
 0x126   :  { %3446 = vmatprep.mubr.msk.bf16.mxu1 %vm3785_vm0, %v5370_v62  ;;  %v720_v4 = vpop.f32.mrb[36].mxu0 }
 0x127   :  { %v4581_v14 = vadd.f32 %v720_v4, %v501_v25  ;;  %v3278_v39 = vpop.f32.mrb[37].mxu0 }
 0x128   :  { %v508_v61 = vpop.f32.mrb[36].mxu1  ;;  %v723_v52 = vpop.f32.mrb[38].mxu0 }
 0x129   :  { %v509_v22 = vadd.f32 %v508_v61, %v4478_v26  ;;  %v3228_v29 = vpop.f32.mrb[37].mxu1  ;;  %v4585_v40 = vadd.f32 %v723_v52, %v504_v59  ;;  %v3279_v10 = vpop.f32.mrb[39].mxu0  ;;  %v1654_v26 = vrot.slane %v4097_v46, 2 }
 0x12a   :  { %v511_v53 = vpop.f32.mrb[38].mxu1 }
 0x12b   :  { %v512_v0 = vadd.f32 %v511_v53, %v4482_v60  ;;  %v3229_v24 = vpop.f32.mrb[39].mxu1  ;;  %3497 = vmatmul.mubr.msk.bf16.gmra.mrb[144].mxu0 %vm241_vm2, %v1653_v11  ;;  %v1655_v61 = vsel %vm1411_vm6, %v1652_v58, %v1654_v26  ;;  %v1424_v11 = vsel %vm1411_vm6, %v1421_v28, %v1423_v42  ;;  %v1425_v58 = vrot.slane %v4349_v57, 2 }
 0x12c   :  { %3500 = vmatprep.mubr.msk.bf16.mxu0 %vm3785_vm0, %v5370_v62 }
 0x12d   :  { %3447 = vmatmul.mubr.msk.bf16.gmra.mrb[144].mxu1 %vm241_vm2, %v1422_v55 }
 0x12e   :  { %3450 = vmatprep.mubr.msk.bf16.mxu1 %vm3785_vm0, %v5370_v62  ;;  %v728_v25 = vpop.f32.mrb[40].mxu0 }
 0x12f   :  { %v4597_v2 = vadd.f32 %v728_v25, %v509_v22  ;;  %v3282_v60 = vpop.f32.mrb[41].mxu0 }
 0x130   :  { %v516_v37 = vpop.f32.mrb[40].mxu1  ;;  %v731_v4 = vpop.f32.mrb[42].mxu0 }
 0x131   :  { %v517_v59 = vadd.f32 %v516_v37, %v4494_v1  ;;  %v3232_v38 = vpop.f32.mrb[41].mxu1  ;;  %v4601_v29 = vadd.f32 %v731_v4, %v512_v0  ;;  %v3283_v52 = vpop.f32.mrb[43].mxu0  ;;  %v1656_v1 = vrot.slane %v3869_v13, 2  ;;  %v1426_v4 = vsel %vm1411_vm6, %v1423_v42, %v1425_v58 }
 0x132   :  { %v519_v39 = vpop.f32.mrb[42].mxu1 }
 0x133   :  { %v520_v53 = vadd.f32 %v519_v39, %v4498_v19  ;;  %v3233_v44 = vpop.f32.mrb[43].mxu1  ;;  %3501 = vmatmul.mubr.msk.bf16.gmra.mrb[148].mxu0 %vm241_vm2, %v1655_v61  ;;  %v1657_v25 = vsel %vm1411_vm6, %v1654_v26, %v1656_v1  ;;  %v1427_v26 = vrot.slane %v4364_v20, 2 }
 0x134   :  { %3504 = vmatprep.mubr.msk.bf16.mxu0 %vm3785_vm0, %v5370_v62 }
 0x135   :  { %3451 = vmatmul.mubr.msk.bf16.gmra.mrb[148].mxu1 %vm241_vm2, %v1424_v11 }
 0x136   :  { %3454 = vmatprep.mubr.msk.bf16.mxu1 %vm3785_vm0, %v5370_v62  ;;  %v736_v22 = vpop.f32.mrb[44].mxu0 }
 0x137   :  { %v4613_v28 = vadd.f32 %v736_v22, %v517_v59  ;;  %v3286_v19 = vpop.f32.mrb[45].mxu0 }
 0x138   :  { %v524_v10 = vpop.f32.mrb[44].mxu1  ;;  %v739_v24 = vpop.f32.mrb[46].mxu0 }
 0x139   :  { %v525_v55 = vadd.f32 %v524_v10, %v4511_v34  ;;  %v3236_v0 = vpop.f32.mrb[45].mxu1  ;;  %v4617_v60 = vadd.f32 %v739_v24, %v520_v53  ;;  %v3287_v38 = vpop.f32.mrb[47].mxu0  ;;  %v1658_v34 = vrot.slane %v3876_v16, 2 }
 0x13a   :  { %v527_v37 = vpop.f32.mrb[46].mxu1  ;;  %v1428_v0 = vsel %vm1411_vm6, %v1425_v58, %v1427_v26 }
 0x13b   :  { %v528_v61 = vadd.f32 %v527_v37, %v4515_v36  ;;  %v3237_v57 = vpop.f32.mrb[47].mxu1  ;;  %3505 = vmatmul.mubr.msk.bf16.gmra.mrb[152].mxu0 %vm241_vm2, %v1657_v25  ;;  %v1659_v44 = vsel %vm1411_vm6, %v1656_v1, %v1658_v34  ;;  %v1429_v1 = vrot.slane %v4379_v51, 2 }
 0x13c   :  { %3508 = vmatprep.mubr.msk.bf16.mxu0 %vm3785_vm0, %v5370_v62 }
 0x13d   :  { %3455 = vmatmul.mubr.msk.bf16.gmra.mrb[152].mxu1 %vm241_vm2, %v1426_v4 }
 0x13e   :  { %3458 = vmatprep.mubr.msk.bf16.mxu1 %vm3785_vm0, %v5370_v62  ;;  %v744_v59 = vpop.f32.mrb[48].mxu0 }
 0x13f   :  { %v4629_v42 = vadd.f32 %v744_v59, %v525_v55  ;;  %v3290_v36 = vpop.f32.mrb[49].mxu0 }
 0x140   :  { %v532_v39 = vpop.f32.mrb[48].mxu1  ;;  %v747_v53 = vpop.f32.mrb[50].mxu0  ;;  %v1430_v36 = vsel %vm1411_vm6, %v1427_v26, %v1429_v1 }
 0x141   :  { %v533_v52 = vadd.f32 %v532_v39, %v4530_v54  ;;  %v3240_v11 = vpop.f32.mrb[49].mxu1  ;;  %v4633_v10 = vadd.f32 %v747_v53, %v528_v61  ;;  %v3291_v19 = vpop.f32.mrb[51].mxu0  ;;  %v1660_v54 = vrot.slane %v3926_v35, 2 }
 0x142   :  { %v535_v22 = vpop.f32.mrb[50].mxu1 }
 0x143   :  { %v536_v24 = vadd.f32 %v535_v22, %v4533_v7  ;;  %v3241_v20 = vpop.f32.mrb[51].mxu1  ;;  %3509 = vmatmul.mubr.msk.bf16.gmra.mrb[156].mxu0 %vm241_vm2, %v1659_v44  ;;  %v1661_v61 = vsel %vm1411_vm6, %v1658_v34, %v1660_v54  ;;  %v1431_v34 = vrot.slane %v4402_v8, 2 }
 0x144   :  { %3512 = vmatprep.mubr.msk.bf16.mxu0 %vm3785_vm0, %v5370_v62 }
 0x145   :  { %3459 = vmatmul.mubr.msk.bf16.gmra.mrb[156].mxu1 %vm241_vm2, %v1428_v0 }
 0x146   :  { %3462 = vmatprep.mubr.msk.bf16.mxu1 %vm3785_vm0, %v5370_v62  ;;  %v752_v55 = vpop.f32.mrb[52].mxu0 }
 0x147   :  { %v4645_v58 = vadd.f32 %v752_v55, %v533_v52  ;;  %v3294_v7 = vpop.f32.mrb[53].mxu0 }
 0x148   :  { %v540_v25 = vpop.f32.mrb[52].mxu1  ;;  %v755_v4 = vpop.f32.mrb[54].mxu0 }
 0x149   :  { %v541_v37 = vadd.f32 %v540_v25, %v4392_v41  ;;  %v3244_v38 = vpop.f32.mrb[53].mxu1  ;;  %v4649_v59 = vadd.f32 %v755_v4, %v536_v24  ;;  %v3295_v39 = vpop.f32.mrb[55].mxu0  ;;  %v1662_v41 = vrot.slane %v3971_v50, 2  ;;  %v1432_v25 = vsel %vm1411_vm6, %v1429_v1, %v1431_v34 }
 0x14a   :  { %v543_v57 = vpop.f32.mrb[54].mxu1 }
 0x14b   :  { %v544_v11 = vadd.f32 %v543_v57, %v4397_v12  ;;  %v3245_v51 = vpop.f32.mrb[55].mxu1  ;;  %3513 = vmatmul.mubr.msk.bf16.gmra.mrb[160].mxu0 %vm241_vm2, %v1661_v61  ;;  %v1663_v0 = vsel %vm1411_vm6, %v1660_v54, %v1662_v41  ;;  %v1433_v54 = vrot.slane %v4425_v21, 2 }
 0x14c   :  { %3516 = vmatprep.mubr.msk.bf16.mxu0 %vm3785_vm0, %v5370_v62 }
 0x14d   :  { %3463 = vmatmul.mubr.msk.bf16.gmra.mrb[160].mxu1 %vm241_vm2, %v1430_v36 }
 0x14e   :  { %3466 = vmatprep.mubr.msk.bf16.mxu1 %vm3785_vm0, %v5370_v62  ;;  %v760_v52 = vpop.f32.mrb[56].mxu0 }
 0x14f   :  { %v4661_v26 = vadd.f32 %v760_v52, %v541_v37  ;;  %v3298_v12 = vpop.f32.mrb[57].mxu0  ;;  %v1434_v52 = vsel %vm1411_vm6, %v1431_v34, %v1433_v54  ;;  %v2767_v34 = vld [vmem:[%s5337_s1 + $0x6c] sm:$0xf] }
 0x150   :  { %v548_v53 = vpop.f32.mrb[56].mxu1  ;;  %v763_v19 = vpop.f32.mrb[58].mxu0 }
 0x151   :  { %v549_v44 = vadd.f32 %v548_v53, %v4415_v32  ;;  %v3248_v22 = vpop.f32.mrb[57].mxu1  ;;  %v4665_v20 = vadd.f32 %v763_v19, %v544_v11  ;;  %v3299_v55 = vpop.f32.mrb[59].mxu0  ;;  %v1664_v32 = vrot.slane %v4023_v3, 2 }
 0x152   :  { %v551_v24 = vpop.f32.mrb[58].mxu1 }
 0x153   :  { %v552_v7 = vadd.f32 %v551_v24, %v4420_v5  ;;  %v3249_v8 = vpop.f32.mrb[59].mxu1  ;;  %3517 = vmatmul.mubr.msk.bf16.gmra.mrb[164].mxu0 %vm241_vm2, %v1663_v0  ;;  %v1665_v39 = vsel %vm1411_vm6, %v1662_v41, %v1664_v32  ;;  %v1435_v41 = vrot.slane %v4461_v23, 2 }
 0x154   :  { %3520 = vmatprep.mubr.msk.bf16.mxu0 %vm3785_vm0, %v5370_v62 }
 0x155   :  { %3467 = vmatmul.mubr.msk.bf16.gmra.mrb[164].mxu1 %vm241_vm2, %v1432_v25  ;;  %v4701_v25 = vcombine.low %v4449_v27, %v2767_v34 }
 0x156   :  { %3470 = vmatprep.mubr.msk.bf16.mxu1 %vm3785_vm0, %v5370_v62  ;;  %v768_v37 = vpop.f32.mrb[60].mxu0 }
 0x157   :  { %v4677_v1 = vadd.f32 %v768_v37, %v549_v44  ;;  %v3302_v5 = vpop.f32.mrb[61].mxu0  ;;  %v1436_v37 = vsel %vm1411_vm6, %v1433_v54, %v1435_v41 }
 0x158   :  { %v556_v38 = vpop.f32.mrb[60].mxu1  ;;  %v771_v57 = vpop.f32.mrb[62].mxu0 }
 0x159   :  { %v557_v4 = vadd.f32 %v556_v38, %v4451_v30  ;;  %v3252_v61 = vpop.f32.mrb[61].mxu1  ;;  %v4681_v11 = vadd.f32 %v771_v57, %v552_v7  ;;  %v3303_v51 = vpop.f32.mrb[63].mxu0  ;;  %v1666_v30 = vrot.slane %v4068_v49, 2 }
 0x15a   :  { %v559_v36 = vpop.f32.mrb[62].mxu1 }
 0x15b   :  { %v560_v53 = vadd.f32 %v559_v36, %v4456_v18  ;;  %v3253_v21 = vpop.f32.mrb[63].mxu1  ;;  %3521 = vmatmul.mubr.msk.bf16.gmra.mrb[168].mxu0 %vm241_vm2, %v1665_v39  ;;  %v1667_v55 = vsel %vm1411_vm6, %v1664_v32, %v1666_v30 }
 0x15c   :  { %3524 = vmatprep.mubr.msk.bf16.mxu0 %vm3785_vm0, %v5370_v62 }
 0x15d   :  { %3471 = vmatmul.mubr.msk.bf16.gmra.mrb[168].mxu1 %vm241_vm2, %v1434_v52 }
 0x15e   :  { %3474 = vmatprep.mubr.msk.bf16.mxu1 %vm3785_vm0, %v5370_v62  ;;  %v776_v18 = vpop.f32.mrb[64].mxu0 }
 0x15f   :  { %v4696_v44 = vadd.f32 %v776_v18, %v557_v4  ;;  %v3306_v22 = vpop.f32.mrb[65].mxu0 }
 0x160   :  { %v564_v12 = vpop.f32.mrb[64].mxu1  ;;  %v779_v24 = vpop.f32.mrb[66].mxu0 }
 0x161   :  { %v565_v19 = vadd.f32 %v564_v12, %v4480_v43  ;;  %v3256_v0 = vpop.f32.mrb[65].mxu1  ;;  %v4703_v23 = vadd.f32 %v779_v24, %v560_v53  ;;  %v3307_v8 = vpop.f32.mrb[67].mxu0  ;;  %v1668_v43 = vrot.slane %v4701_v25, 2 }
 0x162   :  { %v567_v7 = vpop.f32.mrb[66].mxu1 }
 0x163   :  { %v568_v38 = vadd.f32 %v567_v7, %v4485_v6  ;;  %v3257_v5 = vpop.f32.mrb[67].mxu1  ;;  %3525 = vmatmul.mubr.msk.bf16.gmra.mrb[172].mxu0 %vm241_vm2, %v1667_v55  ;;  %v1669_v39 = vsel %vm1411_vm6, %v1666_v30, %v1668_v43  ;;  %v5372_v7 = vshll.u32 %v3961_v47, 16 }
 0x164   :  { %3528 = vmatprep.mubr.msk.bf16.mxu0 %vm3785_vm0, %v5370_v62 }
 0x165   :  { %3475 = vmatmul.mubr.msk.bf16.gmra.mrb[172].mxu1 %vm241_vm2, %v1436_v37  ;;  %v1885_v8 = vrot.slane %v5372_v7, 3 }
 0x166   :  { %3478 = vmatprep.mubr.msk.bf16.mxu1 %vm3785_vm0, %v5370_v62  ;;  %v784_v27 = vpop.f32.mrb[68].mxu0 }
 0x167   :  { %v4714_v4 = vadd.f32 %v784_v27, %v565_v19  ;;  %v3310_v54 = vpop.f32.mrb[69].mxu0  ;;  %v5375_v27 = vld [vmem:[#allocation3_spill] sm:$0xff] }
 0x168   :  { %v572_v32 = vpop.f32.mrb[68].mxu1  ;;  %v787_v57 = vpop.f32.mrb[70].mxu0 }
 0x169   :  { %v573_v6 = vadd.f32 %v572_v32, %v4496_v56  ;;  %v3260_v61 = vpop.f32.mrb[69].mxu1  ;;  %v4718_v51 = vadd.f32 %v787_v57, %v568_v38  ;;  %v3311_v52 = vpop.f32.mrb[71].mxu0  ;;  %v5373_v38 = vld [vmem:[#allocation5_spill] sm:$0xff]  ;;  %v2141_v32 = vrot.slane %v5375_v27, 3 }
 0x16a   :  { %v575_v36 = vpop.f32.mrb[70].mxu1 }
 0x16b   :  { %v576_v53 = vadd.f32 %v575_v36, %v4501_v31  ;;  %v3261_v21 = vpop.f32.mrb[71].mxu1  ;;  %3529 = vmatmul.mubr.msk.bf16.gmra.mrb[176].mxu0 %vm241_vm2, %v1669_v39 }
 0x16c   :  { %3532 = vmatprep.mubr.msk.bf16.mxu0 %vm3785_vm0, %v5370_v62 }
 0x16d   :  { %3479 = vmatmul.mubr.msk.bf16.gmra.mrb[176].mxu1 %vm241_vm2, %v1435_v41  ;;  %v5371_v41 = vshrl.u32 %v3961_v47, 16 }
 0x16e   :  { %3538 = vmatprep.mubr.msk.bf16.mxu1 %vm3785_vm0, %v5370_v62  ;;  %v792_v56 = vpop.f32.mrb[72].mxu0 }
 0x16f   :  { %v4727_v30 = vadd.f32 %v792_v56, %v573_v6  ;;  %v3314_v18 = vpop.f32.mrb[73].mxu0  ;;  %v1884_v55 = vrot.slane %v5371_v41, 2 }
 0x170   :  { %v580_v34 = vpop.f32.mrb[72].mxu1  ;;  %v795_v22 = vpop.f32.mrb[74].mxu0 }
 0x171   :  { %v581_v12 = vadd.f32 %v580_v34, %v4513_v17  ;;  %v3264_v31 = vpop.f32.mrb[73].mxu1  ;;  %v4730_v19 = vadd.f32 %v795_v22, %v576_v53  ;;  %v3315_v0 = vpop.f32.mrb[75].mxu0  ;;  %v5374_v17 = vld [vmem:[#allocation2_spill] sm:$0xff]  ;;  %v1886_v54 = vor.u32 %v1885_v8, %v1884_v55  ;;  %v5376_v34 = vld [vmem:[#allocation4_spill] sm:$0xff]  ;;  %v5377_v22 = vshrl.u32 %v4013_v63, 16 }
 0x172   :  { %v583_v24 = vpop.f32.mrb[74].mxu1  ;;  %v2140_v5 = vrot.slane %v5374_v17, 3  ;;  %v5378_v0 = vshll.u32 %v4013_v63, 16 }
 0x173   :  { %v3265_v37 = vpop.f32.mrb[75].mxu1  ;;  %3533 = vmatmul.mubr.msk.bf16.gmra.mrb[180].mxu0 %vm241_vm2, %v1668_v43  ;;  %v1887_v18 = vsel %vm1876_vm5, %v5376_v34, %v1886_v54  ;;  %v1888_v31 = vrot.slane %v5377_v22, 2 }
 0x174   :  { %3592 = vmatprep.mubr.msk.bf16.mxu0 %vm3785_vm0, %v5370_v62  ;;  %v2142_v53 = vsel %vm2139_vm7, %v2140_v5, %v2141_v32 }
 0x175   :  { %3539 = vmatmul.mubr.msk.bf16.vlgmr.msra.gmra.mrb[180].mxu1 %vm241_vm2, %v5373_v38 }
 0x176   :  { %3542 = vmatprep.mubr.msk.bf16.mxu1 %vm3785_vm0, %v5370_v62  ;;  %v800_v6 = vpop.f32.mrb[76].mxu0 }
 0x177   :  { %v4745_v61 = vadd.f32 %v800_v6, %v581_v12  ;;  %v3318_v43 = vpop.f32.mrb[77].mxu0  ;;  %v1889_v12 = vrot.slane %v5378_v0, 3 }
 0x178   :  { %v961_v57 = vpop.f32.mrb[76].mxu1  ;;  %v803_v52 = vpop.f32.mrb[78].mxu0 }
 0x179   :  { %v1063_v39 = vadd.f32 %v961_v57, %v4549_v48  ;;  %v3324_v36 = vpop.f32.mrb[77].mxu1  ;;  %v3319_v56 = vpop.f32.mrb[79].mxu0  ;;  %v2143_v48 = vrot.slane %v3961_v47, 3  ;;  %v1890_v55 = vor.u32 %v1889_v12, %v1888_v31 }
 0x17a   :  { %v964_v21 = vpop.f32.mrb[78].mxu1  ;;  %v5379_v36 = vshrl.u32 %v4058_v45, 16 }
 0x17b   :  { %v1064_v24 = vadd.f32 %v964_v21, %v4553_v15  ;;  %v3325_v41 = vpop.f32.mrb[79].mxu1  ;;  %3593 = vmatmul.mubr.msk.bf16.vlgmr.msra.gmra.mrb[184].mxu0 %vm241_vm2, %v2142_v53  ;;  %v2144_v27 = vsel %vm2139_vm7, %v2141_v32, %v2143_v48  ;;  %v1891_v47 = vsel %vm1876_vm5, %v1886_v54, %v1890_v55  ;;  %v5380_v53 = vshll.u32 %v4058_v45, 16 }
 0x17c   :  { %3596 = vmatprep.mubr.msk.bf16.mxu0 %vm3785_vm0, %v5370_v62  ;;  %v1892_v52 = vrot.slane %v5379_v36, 2 }
 0x17d   :  { %3543 = vmatmul.mubr.msk.bf16.gmra.mrb[184].mxu1 %vm241_vm2, %v1887_v18 }
 0x17e   :  { %3546 = vmatprep.mubr.msk.bf16.mxu1 %vm3785_vm0, %v5370_v62  ;;  %v1284_v7 = vpop.f32.mrb[80].mxu0 }
 0x17f   :  { %v4763_v37 = vadd.f32 %v1284_v7, %v1063_v39  ;;  %v3378_v38 = vpop.f32.mrb[81].mxu0  ;;  %v1893_v39 = vrot.slane %v5380_v53, 3 }
 0x180   :  { %v969_v8 = vpop.f32.mrb[80].mxu1  ;;  %v1287_v5 = vpop.f32.mrb[82].mxu0 }
 0x181   :  { %v1065_v15 = vadd.f32 %v969_v8, %v4565_v33  ;;  %v3328_v17 = vpop.f32.mrb[81].mxu1  ;;  %v4767_v57 = vadd.f32 %v1287_v5, %v1064_v24  ;;  %v3379_v43 = vpop.f32.mrb[83].mxu0  ;;  %v2145_v33 = vrot.slane %v4013_v63, 3  ;;  %v1894_v32 = vor.u32 %v1893_v39, %v1892_v52 }
 0x182   :  { %v972_v6 = vpop.f32.mrb[82].mxu1  ;;  %v5381_v8 = vshrl.u32 %v4097_v46, 16  ;;  %v5382_v17 = vshll.u32 %v4097_v46, 16 }
 0x183   :  { %v1066_v21 = vadd.f32 %v972_v6, %v4569_v9  ;;  %v3329_v56 = vpop.f32.mrb[83].mxu1  ;;  %3597 = vmatmul.mubr.msk.bf16.gmra.mrb[188].mxu0 %vm241_vm2, %v2144_v27  ;;  %v2146_v12 = vsel %vm2139_vm7, %v2143_v48, %v2145_v33  ;;  %v1895_v63 = vsel %vm1876_vm5, %v1890_v55, %v1894_v32 }
 0x184   :  { %3600 = vmatprep.mubr.msk.bf16.mxu0 %vm3785_vm0, %v5370_v62  ;;  %v1896_v38 = vrot.slane %v5381_v8, 2 }
 0x185   :  { %3547 = vmatmul.mubr.msk.bf16.gmra.mrb[188].mxu1 %vm241_vm2, %v1891_v47 }
 0x186   :  { %3550 = vmatprep.mubr.msk.bf16.mxu1 %vm3785_vm0, %v5370_v62  ;;  %v1292_v54 = vpop.f32.mrb[84].mxu0 }
 0x187   :  { %v4782_v18 = vadd.f32 %v1292_v54, %v1065_v15  ;;  %v3382_v22 = vpop.f32.mrb[85].mxu0  ;;  %v1897_v15 = vrot.slane %v5382_v17, 3  ;;  %v5383_v54 = vshrl.u32 %v3869_v13, 16 }
 0x188   :  { %v977_v34 = vpop.f32.mrb[84].mxu1  ;;  %v1295_v0 = vpop.f32.mrb[86].mxu0  ;;  %v5384_v22 = vshll.u32 %v3869_v13, 16 }
 0x189   :  { %v1067_v9 = vadd.f32 %v977_v34, %v4581_v14  ;;  %v3332_v31 = vpop.f32.mrb[85].mxu1  ;;  %v4786_v41 = vadd.f32 %v1295_v0, %v1066_v21  ;;  %v3383_v7 = vpop.f32.mrb[87].mxu0  ;;  %v2147_v14 = vrot.slane %v4058_v45, 3  ;;  %v1898_v48 = vor.u32 %v1897_v15, %v1896_v38 }
 0x18a   :  { %v980_v24 = vpop.f32.mrb[86].mxu1  ;;  %v1900_v34 = vrot.slane %v5383_v54, 2 }
 0x18b   :  { %v1068_v5 = vadd.f32 %v980_v24, %v4585_v40  ;;  %v3333_v27 = vpop.f32.mrb[87].mxu1  ;;  %3601 = vmatmul.mubr.msk.bf16.gmra.mrb[192].mxu0 %vm241_vm2, %v2146_v12  ;;  %v2148_v53 = vsel %vm2139_vm7, %v2145_v33, %v2147_v14  ;;  %v1899_v45 = vsel %vm1876_vm5, %v1894_v32, %v1898_v48 }
 0x18c   :  { %3604 = vmatprep.mubr.msk.bf16.mxu0 %vm3785_vm0, %v5370_v62  ;;  %v5385_v27 = vshrl.u32 %v3876_v16, 16 }
 0x18d   :  { %3551 = vmatmul.mubr.msk.bf16.gmra.mrb[192].mxu1 %vm241_vm2, %v1895_v63 }
 0x18e   :  { %3554 = vmatprep.mubr.msk.bf16.mxu1 %vm3785_vm0, %v5370_v62  ;;  %v1300_v55 = vpop.f32.mrb[88].mxu0 }
 0x18f   :  { %v4801_v43 = vadd.f32 %v1300_v55, %v1067_v9  ;;  %v3386_v47 = vpop.f32.mrb[89].mxu0  ;;  %v1901_v9 = vrot.slane %v5384_v22, 3  ;;  %v1904_v55 = vrot.slane %v5385_v27, 2 }
 0x190   :  { %v985_v6 = vpop.f32.mrb[88].mxu1  ;;  %v1303_v52 = vpop.f32.mrb[90].mxu0 }
 0x191   :  { %v1069_v40 = vadd.f32 %v985_v6, %v4597_v2  ;;  %v3336_v36 = vpop.f32.mrb[89].mxu1  ;;  %v4805_v21 = vadd.f32 %v1303_v52, %v1068_v5  ;;  %v3387_v56 = vpop.f32.mrb[91].mxu0  ;;  %v2149_v2 = vrot.slane %v4097_v46, 3  ;;  %v1902_v33 = vor.u32 %v1901_v9, %v1900_v34 }
 0x192   :  { %v988_v39 = vpop.f32.mrb[90].mxu1  ;;  %v5386_v6 = vshll.u32 %v3876_v16, 16 }
 0x193   :  { %v1070_v31 = vadd.f32 %v988_v39, %v4601_v29  ;;  %v3337_v0 = vpop.f32.mrb[91].mxu1  ;;  %3605 = vmatmul.mubr.msk.bf16.gmra.mrb[196].mxu0 %vm241_vm2, %v2148_v53  ;;  %v2150_v38 = vsel %vm2139_vm7, %v2147_v14, %v2149_v2  ;;  %v1903_v46 = vsel %vm1876_vm5, %v1898_v48, %v1902_v33 }
 0x194   :  { %3608 = vmatprep.mubr.msk.bf16.mxu0 %vm3785_vm0, %v5370_v62  ;;  %v1905_v47 = vrot.slane %v5386_v6, 3 }
 0x195   :  { %3555 = vmatmul.mubr.msk.bf16.gmra.mrb[196].mxu1 %vm241_vm2, %v1899_v45 }
 0x196   :  { %3558 = vmatprep.mubr.msk.bf16.mxu1 %vm3785_vm0, %v5370_v62  ;;  %v1308_v32 = vpop.f32.mrb[92].mxu0  ;;  %v1906_v14 = vor.u32 %v1905_v47, %v1904_v55  ;;  %v5389_v47 = vshrl.u32 %v3971_v50, 16 }
 0x197   :  { %v4820_v24 = vadd.f32 %v1308_v32, %v1069_v40  ;;  %v3390_v7 = vpop.f32.mrb[93].mxu0  ;;  %v5388_v32 = vshll.u32 %v3926_v35, 16 }
 0x198   :  { %v993_v12 = vpop.f32.mrb[92].mxu1  ;;  %v1311_v8 = vpop.f32.mrb[94].mxu0 }
 0x199   :  { %v1071_v29 = vadd.f32 %v993_v12, %v4613_v28  ;;  %v3340_v63 = vpop.f32.mrb[93].mxu1  ;;  %v4824_v15 = vadd.f32 %v1311_v8, %v1070_v31  ;;  %v3391_v5 = vpop.f32.mrb[95].mxu0  ;;  %v2151_v28 = vrot.slane %v3869_v13, 3  ;;  %v1907_v13 = vsel %vm1876_vm5, %v1902_v33, %v1906_v14 }
 0x19a   :  { %v996_v17 = vpop.f32.mrb[94].mxu1  ;;  %v5387_v31 = vshrl.u32 %v3926_v35, 16  ;;  %v1909_v12 = vrot.slane %v5388_v32, 3  ;;  %v5391_v32 = vshrl.u32 %v4023_v3, 16 }
 0x19b   :  { %v1072_v40 = vadd.f32 %v996_v17, %v4617_v60  ;;  %v3341_v36 = vpop.f32.mrb[95].mxu1  ;;  %3609 = vmatmul.mubr.msk.bf16.gmra.mrb[200].mxu0 %vm241_vm2, %v2150_v38  ;;  %v2152_v54 = vsel %vm2139_vm7, %v2149_v2, %v2151_v28 }
 0x19c   :  { %3612 = vmatprep.mubr.msk.bf16.mxu0 %vm3785_vm0, %v5370_v62  ;;  %v1908_v0 = vrot.slane %v5387_v31, 2  ;;  %v5390_v36 = vshll.u32 %v3971_v50, 16 }
 0x19d   :  { %3559 = vmatmul.mubr.msk.bf16.gmra.mrb[200].mxu1 %vm241_vm2, %v1903_v46 }
 0x19e   :  { %3562 = vmatprep.mubr.msk.bf16.mxu1 %vm3785_vm0, %v5370_v62  ;;  %v1316_v48 = vpop.f32.mrb[96].mxu0  ;;  %v1910_v2 = vor.u32 %v1909_v12, %v1908_v0  ;;  %v1916_v12 = vrot.slane %v5391_v32, 2 }
 0x19f   :  { %v4839_v53 = vadd.f32 %v1316_v48, %v1071_v29  ;;  %v3394_v39 = vpop.f32.mrb[97].mxu0  ;;  %v1913_v48 = vrot.slane %v5390_v36, 3 }
 0x1a0   :  { %v1001_v52 = vpop.f32.mrb[96].mxu1  ;;  %v1319_v45 = vpop.f32.mrb[98].mxu0 }
 0x1a1   :  { %v1073_v60 = vadd.f32 %v1001_v52, %v4629_v42  ;;  %v3344_v56 = vpop.f32.mrb[97].mxu1  ;;  %v4843_v22 = vadd.f32 %v1319_v45, %v1072_v40  ;;  %v3395_v9 = vpop.f32.mrb[99].mxu0  ;;  %v2153_v42 = vrot.slane %v3876_v16, 3  ;;  %v1911_v16 = vsel %vm1876_vm5, %v1906_v14, %v1910_v2 }
 0x1a2   :  { %v1004_v34 = vpop.f32.mrb[98].mxu1  ;;  %v1912_v40 = vrot.slane %v5389_v47, 2 }
 0x1a3   :  { %v1074_v7 = vadd.f32 %v1004_v34, %v4633_v10  ;;  %v3345_v29 = vpop.f32.mrb[99].mxu1  ;;  %3613 = vmatmul.mubr.msk.bf16.gmra.mrb[204].mxu0 %vm241_vm2, %v2152_v54  ;;  %v2154_v46 = vsel %vm2139_vm7, %v2151_v28, %v2153_v42 }
 0x1a4   :  { %3616 = vmatprep.mubr.msk.bf16.mxu0 %vm3785_vm0, %v5370_v62  ;;  %v1914_v28 = vor.u32 %v1913_v48, %v1912_v40  ;;  %v5393_v40 = vshrl.u32 %v4068_v49, 16  ;;  %v5394_v48 = vshll.u32 %v4068_v49, 16 }
 0x1a5   :  { %3563 = vmatmul.mubr.msk.bf16.gmra.mrb[204].mxu1 %vm241_vm2, %v1907_v13 }
 0x1a6   :  { %3566 = vmatprep.mubr.msk.bf16.mxu1 %vm3785_vm0, %v5370_v62  ;;  %v1324_v33 = vpop.f32.mrb[100].mxu0  ;;  %v1920_v36 = vrot.slane %v5393_v40, 2 }
 0x1a7   :  { %v4858_v8 = vadd.f32 %v1324_v33, %v1073_v60  ;;  %v3398_v38 = vpop.f32.mrb[101].mxu0 }
 0x1a8   :  { %v1009_v63 = vpop.f32.mrb[100].mxu1  ;;  %v1327_v5 = vpop.f32.mrb[102].mxu0 }
 0x1a9   :  { %v1075_v10 = vadd.f32 %v1009_v63, %v4645_v58  ;;  %v3348_v17 = vpop.f32.mrb[101].mxu1  ;;  %v4862_v55 = vadd.f32 %v1327_v5, %v1074_v7  ;;  %v3399_v6 = vpop.f32.mrb[103].mxu0  ;;  %v2155_v58 = vrot.slane %v3926_v35, 3  ;;  %v1915_v35 = vsel %vm1876_vm5, %v1910_v2, %v1914_v28 }
 0x1aa   :  { %v1012_v27 = vpop.f32.mrb[102].mxu1  ;;  %v5392_v7 = vshll.u32 %v4023_v3, 16 }
 0x1ab   :  { %v1076_v52 = vadd.f32 %v1012_v27, %v4649_v59  ;;  %v3349_v39 = vpop.f32.mrb[103].mxu1  ;;  %3617 = vmatmul.mubr.msk.bf16.gmra.mrb[208].mxu0 %vm241_vm2, %v2154_v46  ;;  %v2156_v9 = vsel %vm2139_vm7, %v2153_v42, %v2155_v58 }
 0x1ac   :  { %3620 = vmatprep.mubr.msk.bf16.mxu0 %vm3785_vm0, %v5370_v62  ;;  %v1917_v29 = vrot.slane %v5392_v7, 3 }
 0x1ad   :  { %3567 = vmatmul.mubr.msk.bf16.gmra.mrb[208].mxu1 %vm241_vm2, %v1911_v16 }
 0x1ae   :  { %3570 = vmatprep.mubr.msk.bf16.mxu1 %vm3785_vm0, %v5370_v62  ;;  %v1332_v14 = vpop.f32.mrb[104].mxu0  ;;  %v1918_v42 = vor.u32 %v1917_v29, %v1916_v12 }
 0x1af   :  { %v4877_v56 = vadd.f32 %v1332_v14, %v1075_v10  ;;  %v3402_v45 = vpop.f32.mrb[105].mxu0 }
 0x1b0   :  { %v1017_v60 = vpop.f32.mrb[104].mxu1  ;;  %v1335_v34 = vpop.f32.mrb[106].mxu0 }
 0x1b1   :  { %v1077_v59 = vadd.f32 %v1017_v60, %v4661_v26  ;;  %v3352_v54 = vpop.f32.mrb[105].mxu1  ;;  %v4881_v31 = vadd.f32 %v1335_v34, %v1076_v52  ;;  %v3403_v0 = vpop.f32.mrb[107].mxu0  ;;  %v2157_v26 = vrot.slane %v3971_v50, 3  ;;  %v1919_v50 = vsel %vm1876_vm5, %v1914_v28, %v1918_v42 }
 0x1b2   :  { %v1020_v13 = vpop.f32.mrb[106].mxu1  ;;  %v1921_v52 = vrot.slane %v5394_v48, 3  ;;  %v1925_v28 = vshrl.u32 %v4701_v25, 16  ;;  %v1928_v60 = vshll.u32 %v4701_v25, 16 }
 0x1b3   :  { %v1078_v33 = vadd.f32 %v1020_v13, %v4665_v20  ;;  %v3353_v63 = vpop.f32.mrb[107].mxu1  ;;  %3621 = vmatmul.mubr.msk.bf16.gmra.mrb[212].mxu0 %vm241_vm2, %v2156_v9  ;;  %v2158_v27 = vsel %vm2139_vm7, %v2155_v58, %v2157_v26 }
 0x1b4   :  { %3624 = vmatprep.mubr.msk.bf16.mxu0 %vm3785_vm0, %v5370_v62  ;;  %v1922_v58 = vor.u32 %v1921_v52, %v1920_v36  ;;  %v1927_v7 = vrot.slane %v1925_v28, 2  ;;  %v1930_v29 = vrot.slane %v1928_v60, 3 }
 0x1b5   :  { %3571 = vmatmul.mubr.msk.bf16.gmra.mrb[212].mxu1 %vm241_vm2, %v1915_v35 }
 0x1b6   :  { %3574 = vmatprep.mubr.msk.bf16.mxu1 %vm3785_vm0, %v5370_v62  ;;  %v1340_v2 = vpop.f32.mrb[108].mxu0  ;;  %v1923_v12 = vsel %vm1876_vm5, %v1918_v42, %v1922_v58 }
 0x1b7   :  { %v4896_v10 = vadd.f32 %v1340_v2, %v1077_v59  ;;  %v3406_v17 = vpop.f32.mrb[109].mxu0 }
 0x1b8   :  { %v1025_v38 = vpop.f32.mrb[108].mxu1  ;;  %v1343_v46 = vpop.f32.mrb[110].mxu0 }
 0x1b9   :  { %v1079_v20 = vadd.f32 %v1025_v38, %v4677_v1  ;;  %v3356_v5 = vpop.f32.mrb[109].mxu1  ;;  %v4900_v16 = vadd.f32 %v1343_v46, %v1078_v33  ;;  %v3407_v47 = vpop.f32.mrb[111].mxu0  ;;  %v2159_v1 = vrot.slane %v4023_v3, 3 }
 0x1ba   :  { %v1028_v6 = vpop.f32.mrb[110].mxu1 }
 0x1bb   :  { %v1080_v39 = vadd.f32 %v1028_v6, %v4681_v11  ;;  %v3357_v14 = vpop.f32.mrb[111].mxu1  ;;  %3625 = vmatmul.mubr.msk.bf16.gmra.mrb[216].mxu0 %vm241_vm2, %v2158_v27  ;;  %v2160_v0 = vsel %vm2139_vm7, %v2157_v26, %v2159_v1  ;;  %v1931_v26 = vor.u32 %v1930_v29, %v1927_v7 }
 0x1bc   :  { %3628 = vmatprep.mubr.msk.bf16.mxu0 %vm3785_vm0, %v5370_v62 }
 0x1bd   :  { %3575 = vmatmul.mubr.msk.bf16.gmra.mrb[216].mxu1 %vm241_vm2, %v1919_v50 }
 0x1be   :  { %3578 = vmatprep.mubr.msk.bf16.mxu1 %vm3785_vm0, %v5370_v62  ;;  %v1348_v45 = vpop.f32.mrb[112].mxu0 }
 0x1bf   :  { %v4917_v59 = vadd.f32 %v1348_v45, %v1079_v20  ;;  %v3410_v54 = vpop.f32.mrb[113].mxu0 }
 0x1c0   :  { %v1033_v11 = vpop.f32.mrb[112].mxu1  ;;  %v1351_v13 = vpop.f32.mrb[114].mxu0 }
 0x1c1   :  { %v1081_v34 = vadd.f32 %v1033_v11, %v4696_v44  ;;  %v3360_v9 = vpop.f32.mrb[113].mxu1  ;;  %v4921_v35 = vadd.f32 %v1351_v13, %v1080_v39  ;;  %v3411_v32 = vpop.f32.mrb[115].mxu0  ;;  %v2161_v44 = vrot.slane %v4068_v49, 3  ;;  %v1932_v49 = vsel %vm1876_vm5, %v1922_v58, %v1931_v26 }
 0x1c2   :  { %v1036_v3 = vpop.f32.mrb[114].mxu1 }
 0x1c3   :  { %v1082_v33 = vadd.f32 %v1036_v3, %v4703_v23  ;;  %v3361_v63 = vpop.f32.mrb[115].mxu1  ;;  %3629 = vmatmul.mubr.msk.bf16.gmra.mrb[220].mxu0 %vm241_vm2, %v2160_v0  ;;  %v2162_v46 = vsel %vm2139_vm7, %v2159_v1, %v2161_v44 }
 0x1c4   :  { %3632 = vmatprep.mubr.msk.bf16.mxu0 %vm3785_vm0, %v5370_v62 }
 0x1c5   :  { %3579 = vmatmul.mubr.msk.bf16.gmra.mrb[220].mxu1 %vm241_vm2, %v1923_v12 }
 0x1c6   :  { %3582 = vmatprep.mubr.msk.bf16.mxu1 %vm3785_vm0, %v5370_v62  ;;  %v1356_v2 = vpop.f32.mrb[116].mxu0 }
 0x1c7   :  { %v4932_v38 = vadd.f32 %v1356_v2, %v1081_v34  ;;  %v3414_v17 = vpop.f32.mrb[117].mxu0 }
 0x1c8   :  { %v1041_v42 = vpop.f32.mrb[116].mxu1  ;;  %v1359_v5 = vpop.f32.mrb[118].mxu0 }
 0x1c9   :  { %v1083_v23 = vadd.f32 %v1041_v42, %v4714_v4  ;;  %v3364_v20 = vpop.f32.mrb[117].mxu1  ;;  %v4936_v6 = vadd.f32 %v1359_v5, %v1082_v33  ;;  %v3415_v47 = vpop.f32.mrb[119].mxu0  ;;  %v2163_v4 = vrot.slane %v4701_v25, 3 }
 0x1ca   :  { %v1044_v27 = vpop.f32.mrb[118].mxu1 }
 0x1cb   :  { %v1084_v50 = vadd.f32 %v1044_v27, %v4718_v51  ;;  %v3365_v40 = vpop.f32.mrb[119].mxu1  ;;  %3633 = vmatmul.mubr.msk.bf16.gmra.mrb[224].mxu0 %vm241_vm2, %v2162_v46  ;;  %v2164_v58 = vsel %vm2139_vm7, %v2161_v44, %v2163_v4 }
 0x1cc   :  { %3636 = vmatprep.mubr.msk.bf16.mxu0 %vm3785_vm0, %v5370_v62 }
 0x1cd   :  { %3583 = vmatmul.mubr.msk.bf16.gmra.mrb[224].mxu1 %vm241_vm2, %v1932_v49 }
 0x1ce   :  { %3586 = vmatprep.mubr.msk.bf16.mxu1 %vm3785_vm0, %v5370_v62  ;;  %v1364_v36 = vpop.f32.mrb[120].mxu0 }
 0x1cf   :  { %v4947_v52 = vadd.f32 %v1364_v36, %v1083_v23  ;;  %v3418_v39 = vpop.f32.mrb[121].mxu0 }
 0x1d0   :  { %v1049_v48 = vpop.f32.mrb[120].mxu1  ;;  %v1367_v1 = vpop.f32.mrb[122].mxu0 }
 0x1d1   :  { %v1085_v51 = vadd.f32 %v1049_v48, %v4727_v30  ;;  %v3368_v14 = vpop.f32.mrb[121].mxu1  ;;  %v4951_v60 = vadd.f32 %v1367_v1, %v1084_v50  ;;  %v3419_v45 = vpop.f32.mrb[123].mxu0 }
 0x1d2   :  { %v1052_v28 = vpop.f32.mrb[122].mxu1 }
 0x1d3   :  { %v1086_v25 = vadd.f32 %v1052_v28, %v4730_v19  ;;  %v3369_v11 = vpop.f32.mrb[123].mxu1  ;;  %3637 = vmatmul.mubr.msk.bf16.gmra.mrb[228].mxu0 %vm241_vm2, %v2164_v58 }
 0x1d4   :  { %3640 = vmatprep.mubr.msk.bf16.mxu0 %vm3785_vm0, %v5370_v62 }
 0x1d5   :  { %3587 = vmatmul.mubr.msk.bf16.gmra.mrb[228].mxu1 %vm241_vm2, %v1931_v26 }
 0x1d6   :  { %v1372_v54 = vpop.f32.mrb[124].mxu0 }
 0x1d7   :  { %v4958_v34 = vadd.f32 %v1372_v54, %v1085_v51  ;;  %v3422_v9 = vpop.f32.mrb[125].mxu0 }
 0x1d8   :  { %v1057_v30 = vpop.f32.mrb[124].mxu1  ;;  %v1375_v0 = vpop.f32.mrb[126].mxu0 }
 0x1d9   :  { %v1087_v13 = vadd.f32 %v1057_v30, %v4745_v61  ;;  %v3372_v3 = vpop.f32.mrb[125].mxu1  ;;  %v4961_v32 = vadd.f32 %v1375_v0, %v1086_v25  ;;  %v3423_v19 = vpop.f32.mrb[127].mxu0 }
 0x1da   :  { %v1060_v12 = vpop.f32.mrb[126].mxu1 }
 0x1db   :  { %v3373_v7 = vpop.f32.mrb[127].mxu1  ;;  %3641 = vmatmul.mubr.msk.bf16.gmra.mrb[232].mxu0 %vm241_vm2, %v2163_v4 }
 0x1de   :  { %v1380_v29 = vpop.f32.mrb[128].mxu0 }
 0x1df   :  { %v4964_v33 = vadd.f32 %v1380_v29, %v1087_v13  ;;  %v3426_v63 = vpop.f32.mrb[129].mxu0 }
 0x1e0   :  { %v1516_v62 = vpop.f32.mrb[128].mxu1  ;;  %v1383_v2 = vpop.f32.mrb[130].mxu0 }
 0x1e1   :  { %v1618_v44 = vadd.f32 %v1516_v62, %v4763_v37  ;;  %v3432_v26 = vpop.f32.mrb[129].mxu1  ;;  %v3427_v61 = vpop.f32.mrb[131].mxu0 }
 0x1e2   :  { %v1519_v42 = vpop.f32.mrb[130].mxu1 }
 0x1e3   :  { %v1619_v17 = vadd.f32 %v1519_v42, %v4767_v57  ;;  %v3433_v23 = vpop.f32.mrb[131].mxu1 }
 0x1e6   :  { %v1749_v20 = vpop.f32.mrb[132].mxu0 }
 0x1e7   :  { %v4968_v46 = vadd.f32 %v1749_v20, %v1618_v44  ;;  %v3486_v27 = vpop.f32.mrb[133].mxu0 }
 0x1e8   :  { %v1524_v5 = vpop.f32.mrb[132].mxu1  ;;  %v1752_v50 = vpop.f32.mrb[134].mxu0 }
 0x1e9   :  { %v1620_v47 = vadd.f32 %v1524_v5, %v4782_v18  ;;  %v3436_v49 = vpop.f32.mrb[133].mxu1  ;;  %v4971_v4 = vadd.f32 %v1752_v50, %v1619_v17  ;;  %v3487_v37 = vpop.f32.mrb[135].mxu0 }
 0x1ea   :  { %v1527_v40 = vpop.f32.mrb[134].mxu1 }
 0x1eb   :  { %v1621_v36 = vadd.f32 %v1527_v40, %v4786_v41  ;;  %v3437_v48 = vpop.f32.mrb[135].mxu1 }
 0x1ee   :  { %v1757_v39 = vpop.f32.mrb[136].mxu0 }
 0x1ef   :  { %v4974_v57 = vadd.f32 %v1757_v39, %v1620_v47  ;;  %v3490_v14 = vpop.f32.mrb[137].mxu0 }
 0x1f0   :  { %v1532_v51 = vpop.f32.mrb[136].mxu1  ;;  %v1760_v28 = vpop.f32.mrb[138].mxu0 }
 0x1f1   :  { %v1622_v1 = vadd.f32 %v1532_v51, %v4801_v43  ;;  %v3440_v58 = vpop.f32.mrb[137].mxu1  ;;  %v4977_v18 = vadd.f32 %v1760_v28, %v1621_v36  ;;  %v3491_v25 = vpop.f32.mrb[139].mxu0 }
 0x1f2   :  { %v1535_v45 = vpop.f32.mrb[138].mxu1 }
 0x1f3   :  { %v1623_v11 = vadd.f32 %v1535_v45, %v4805_v21  ;;  %v3441_v54 = vpop.f32.mrb[139].mxu1 }
 0x1f6   :  { %v1765_v30 = vpop.f32.mrb[140].mxu0 }
 0x1f7   :  { %v4980_v41 = vadd.f32 %v1765_v30, %v1622_v1  ;;  %v3494_v13 = vpop.f32.mrb[141].mxu0 }
 0x1f8   :  { %v1540_v9 = vpop.f32.mrb[140].mxu1  ;;  %v1768_v19 = vpop.f32.mrb[142].mxu0 }
 0x1f9   :  { %v1624_v0 = vadd.f32 %v1540_v9, %v4820_v24  ;;  %v3444_v3 = vpop.f32.mrb[141].mxu1  ;;  %v4983_v43 = vadd.f32 %v1768_v19, %v1623_v11  ;;  %v3495_v7 = vpop.f32.mrb[143].mxu0 }
 0x1fa   :  { %v1543_v12 = vpop.f32.mrb[142].mxu1 }
 0x1fb   :  { %v1625_v29 = vadd.f32 %v1543_v12, %v4824_v15  ;;  %v3445_v62 = vpop.f32.mrb[143].mxu1 }
 0x1fe   :  { %v1773_v63 = vpop.f32.mrb[144].mxu0 }
 0x1ff   :  { %v4986_v21 = vadd.f32 %v1773_v63, %v1624_v0  ;;  %v3498_v26 = vpop.f32.mrb[145].mxu0 }
 0x200   :  { %v1548_v44 = vpop.f32.mrb[144].mxu1  ;;  %v1776_v61 = vpop.f32.mrb[146].mxu0 }
 0x201   :  { %v1626_v2 = vadd.f32 %v1548_v44, %v4839_v53  ;;  %v3448_v42 = vpop.f32.mrb[145].mxu1  ;;  %v4989_v24 = vadd.f32 %v1776_v61, %v1625_v29  ;;  %v3499_v23 = vpop.f32.mrb[147].mxu0 }
 0x202   :  { %v1551_v17 = vpop.f32.mrb[146].mxu1 }
 0x203   :  { %v1627_v20 = vadd.f32 %v1551_v17, %v4843_v22  ;;  %v3449_v5 = vpop.f32.mrb[147].mxu1 }
 0x206   :  { %v1781_v27 = vpop.f32.mrb[148].mxu0 }
 0x207   :  { %v4992_v15 = vadd.f32 %v1781_v27, %v1626_v2  ;;  %v3502_v49 = vpop.f32.mrb[149].mxu0 }
 0x208   :  { %v1556_v47 = vpop.f32.mrb[148].mxu1  ;;  %v1784_v37 = vpop.f32.mrb[150].mxu0 }
 0x209   :  { %v1628_v50 = vadd.f32 %v1556_v47, %v4858_v8  ;;  %v3452_v40 = vpop.f32.mrb[149].mxu1  ;;  %v4995_v53 = vadd.f32 %v1784_v37, %v1627_v20  ;;  %v3503_v48 = vpop.f32.mrb[151].mxu0 }
 0x20a   :  { %v1559_v36 = vpop.f32.mrb[150].mxu1 }
 0x20b   :  { %v1629_v39 = vadd.f32 %v1559_v36, %v4862_v55  ;;  %v3453_v51 = vpop.f32.mrb[151].mxu1 }
 0x20e   :  { %v1789_v14 = vpop.f32.mrb[152].mxu0 }
 0x20f   :  { %v4998_v22 = vadd.f32 %v1789_v14, %v1628_v50  ;;  %v3506_v58 = vpop.f32.mrb[153].mxu0 }
 0x210   :  { %v1564_v1 = vpop.f32.mrb[152].mxu1  ;;  %v1792_v25 = vpop.f32.mrb[154].mxu0 }
 0x211   :  { %v1630_v28 = vadd.f32 %v1564_v1, %v4877_v56  ;;  %v3456_v45 = vpop.f32.mrb[153].mxu1  ;;  %v5001_v8 = vadd.f32 %v1792_v25, %v1629_v39  ;;  %v3507_v54 = vpop.f32.mrb[155].mxu0 }
 0x212   :  { %v1567_v11 = vpop.f32.mrb[154].mxu1 }
 0x213   :  { %v1631_v30 = vadd.f32 %v1567_v11, %v4881_v31  ;;  %v3457_v9 = vpop.f32.mrb[155].mxu1 }
 0x216   :  { %v1797_v13 = vpop.f32.mrb[156].mxu0 }
 0x217   :  { %v5004_v55 = vadd.f32 %v1797_v13, %v1630_v28  ;;  %v3510_v3 = vpop.f32.mrb[157].mxu0 }
 0x218   :  { %v1572_v0 = vpop.f32.mrb[156].mxu1  ;;  %v1800_v7 = vpop.f32.mrb[158].mxu0 }
 0x219   :  { %v1632_v19 = vadd.f32 %v1572_v0, %v4896_v10  ;;  %v3460_v12 = vpop.f32.mrb[157].mxu1  ;;  %v5007_v56 = vadd.f32 %v1800_v7, %v1631_v30  ;;  %v3511_v62 = vpop.f32.mrb[159].mxu0 }
 0x21a   :  { %v1575_v29 = vpop.f32.mrb[158].mxu1 }
 0x21b   :  { %v1633_v63 = vadd.f32 %v1575_v29, %v4900_v16  ;;  %v3461_v44 = vpop.f32.mrb[159].mxu1 }
 0x21e   :  { %v1805_v26 = vpop.f32.mrb[160].mxu0 }
 0x21f   :  { %v5010_v31 = vadd.f32 %v1805_v26, %v1632_v19  ;;  %v3514_v42 = vpop.f32.mrb[161].mxu0 }
 0x220   :  { %v1580_v2 = vpop.f32.mrb[160].mxu1  ;;  %v1808_v23 = vpop.f32.mrb[162].mxu0 }
 0x221   :  { %v1634_v61 = vadd.f32 %v1580_v2, %v4917_v59  ;;  %v3464_v17 = vpop.f32.mrb[161].mxu1  ;;  %v5013_v10 = vadd.f32 %v1808_v23, %v1633_v63  ;;  %v3515_v5 = vpop.f32.mrb[163].mxu0 }
 0x222   :  { %v1583_v20 = vpop.f32.mrb[162].mxu1 }
 0x223   :  { %v1635_v27 = vadd.f32 %v1583_v20, %v4921_v35  ;;  %v3465_v47 = vpop.f32.mrb[163].mxu1 }
 0x226   :  { %v1813_v49 = vpop.f32.mrb[164].mxu0 }
 0x227   :  { %v5016_v16 = vadd.f32 %v1813_v49, %v1634_v61  ;;  %v3518_v40 = vpop.f32.mrb[165].mxu0 }
 0x228   :  { %v1588_v50 = vpop.f32.mrb[164].mxu1  ;;  %v1816_v48 = vpop.f32.mrb[166].mxu0 }
 0x229   :  { %v1636_v37 = vadd.f32 %v1588_v50, %v4932_v38  ;;  %v3468_v36 = vpop.f32.mrb[165].mxu1  ;;  %v5019_v59 = vadd.f32 %v1816_v48, %v1635_v27  ;;  %v3519_v51 = vpop.f32.mrb[167].mxu0 }
 0x22a   :  { %v1591_v39 = vpop.f32.mrb[166].mxu1 }
 0x22b   :  { %v1637_v14 = vadd.f32 %v1591_v39, %v4936_v6  ;;  %v3469_v1 = vpop.f32.mrb[167].mxu1 }
 0x22e   :  { %v1821_v58 = vpop.f32.mrb[168].mxu0 }
 0x22f   :  { %v5022_v35 = vadd.f32 %v1821_v58, %v1636_v37  ;;  %v3522_v45 = vpop.f32.mrb[169].mxu0 }
 0x230   :  { %v1596_v28 = vpop.f32.mrb[168].mxu1  ;;  %v1824_v54 = vpop.f32.mrb[170].mxu0 }
 0x231   :  { %v1638_v25 = vadd.f32 %v1596_v28, %v4947_v52  ;;  %v3472_v11 = vpop.f32.mrb[169].mxu1  ;;  %v5025_v38 = vadd.f32 %v1824_v54, %v1637_v14  ;;  %v3523_v9 = vpop.f32.mrb[171].mxu0  ;;  %v5046_v28 = vld [vmem:[%s5338_s3] ss:$0 sm:$0xff] }
 0x232   :  { %v1599_v30 = vpop.f32.mrb[170].mxu1 }
 0x233   :  { %v1639_v13 = vadd.f32 %v1599_v30, %v4951_v60  ;;  %v3473_v0 = vpop.f32.mrb[171].mxu1 }
 0x236   :  { %v1829_v3 = vpop.f32.mrb[172].mxu0 }
 0x237   :  { %v5028_v6 = vadd.f32 %v1829_v3, %v1638_v25  ;;  %v3526_v12 = vpop.f32.mrb[173].mxu0 }
 0x238   :  { %v1604_v19 = vpop.f32.mrb[172].mxu1  ;;  %v1832_v62 = vpop.f32.mrb[174].mxu0 }
 0x239   :  { %v1640_v7 = vadd.f32 %v1604_v19, %v4958_v34  ;;  %v3476_v29 = vpop.f32.mrb[173].mxu1  ;;  %v5031_v52 = vadd.f32 %v1832_v62, %v1639_v13  ;;  %v3527_v44 = vpop.f32.mrb[175].mxu0 }
 0x23a   :  { %v1607_v63 = vpop.f32.mrb[174].mxu1 }
 0x23b   :  { %v1641_v26 = vadd.f32 %v1607_v63, %v4961_v32  ;;  %v3477_v2 = vpop.f32.mrb[175].mxu1 }
 0x23e   :  { %v1837_v42 = vpop.f32.mrb[176].mxu0 }
 0x23f   :  { %v5034_v60 = vadd.f32 %v1837_v42, %v1640_v7  ;;  %v3530_v17 = vpop.f32.mrb[177].mxu0 }
 0x240   :  { %v1612_v61 = vpop.f32.mrb[176].mxu1  ;;  %v1840_v20 = vpop.f32.mrb[178].mxu0 }
 0x241   :  { %v1642_v23 = vadd.f32 %v1612_v61, %v4964_v33  ;;  %v3480_v5 = vpop.f32.mrb[177].mxu1  ;;  %v5037_v27 = vadd.f32 %v1840_v20, %v1641_v26  ;;  %v3531_v34 = vpop.f32.mrb[179].mxu0 }
 0x242   :  { %v1615_v47 = vpop.f32.mrb[178].mxu1 }
 0x243   :  { %v3481_v49 = vpop.f32.mrb[179].mxu1 }
 0x246   :  { %v1845_v50 = vpop.f32.mrb[180].mxu0 }
 0x247   :  { %v5039_v40 = vadd.f32 %v1845_v50, %v1642_v23  ;;  %v3534_v32 = vpop.f32.mrb[181].mxu0 }
 0x248   :  { %v2012_v37 = vpop.f32.mrb[180].mxu1  ;;  %v1848_v39 = vpop.f32.mrb[182].mxu0 }
 0x249   :  { %v2114_v36 = vadd.f32 %v2012_v37, %v4968_v46  ;;  %v3540_v48 = vpop.f32.mrb[181].mxu1  ;;  %v3535_v14 = vpop.f32.mrb[183].mxu0 }
 0x24a   :  { %v2015_v51 = vpop.f32.mrb[182].mxu1 }
 0x24b   :  { %v2115_v33 = vadd.f32 %v2015_v51, %v4971_v4  ;;  %v3541_v1 = vpop.f32.mrb[183].mxu1 }
 0x24e   :  { %v2244_v58 = vpop.f32.mrb[184].mxu0 }
 0x24f   :  { %v2346_v25 = vadd.f32 %v2244_v58, %v2114_v36  ;;  %v3594_v11 = vpop.f32.mrb[185].mxu0 }
 0x250   :  { %v2020_v45 = vpop.f32.mrb[184].mxu1  ;;  %v2247_v46 = vpop.f32.mrb[186].mxu0 }
 0x251   :  { %v2116_v54 = vadd.f32 %v2020_v45, %v4974_v57  ;;  %v3544_v30 = vpop.f32.mrb[185].mxu1  ;;  %v5050_v9 = vadd.f32 %v5046_v28, %v2346_v25  ;;  %v2347_v0 = vadd.f32 %v2247_v46, %v2115_v33  ;;  %v3595_v4 = vpop.f32.mrb[187].mxu0 }
 0x252   :  { %v2023_v13 = vpop.f32.mrb[186].mxu1 }
 0x253   :  { %v2117_v3 = vadd.f32 %v2023_v13, %v4977_v18  ;;  %v3545_v19 = vpop.f32.mrb[187].mxu1  ;;  %v2403_v12 = vsub.f32 0.0, %v5050_v9  ;;  %v5055_v7 = vadd.f32 %v5046_v28, %v2347_v0 }
 0x255   :  { %v2428_v29 = vmul.f32 1.442695, %v2403_v12  ;;  %v2404_v62 = vsub.f32 0.0, %v5055_v7 }
 0x256   :  { %v2252_v57 = vpop.f32.mrb[188].mxu0 }
 0x257   :  { %3684 = vpow2.f32 %v2428_v29  ;;  %v2430_v63 = vmul.f32 1.442695, %v2404_v62  ;;  %v2348_v26 = vadd.f32 %v2252_v57, %v2116_v54  ;;  %v3598_v2 = vpop.f32.mrb[189].mxu0 }
 0x258   :  { %v2028_v44 = vpop.f32.mrb[188].mxu1  ;;  %v2255_v17 = vpop.f32.mrb[190].mxu0 }
 0x259   :  { %v2118_v42 = vadd.f32 %v2028_v44, %v4980_v41  ;;  %v3548_v61 = vpop.f32.mrb[189].mxu1  ;;  %3686 = vpow2.f32 %v2430_v63  ;;  %v5060_v18 = vadd.f32 %v5046_v28, %v2348_v26  ;;  %v2349_v20 = vadd.f32 %v2255_v17, %v2117_v3  ;;  %v3599_v5 = vpop.f32.mrb[191].mxu0 }
 0x25a   :  { %v2031_v23 = vpop.f32.mrb[190].mxu1 }
 0x25b   :  { %v2119_v34 = vadd.f32 %v2031_v23, %v4983_v43  ;;  %v3549_v47 = vpop.f32.mrb[191].mxu1  ;;  %v2405_v49 = vsub.f32 0.0, %v5060_v18  ;;  %v5065_v50 = vadd.f32 %v5046_v28, %v2349_v20  ;;  %v2974_v20 = vld [vmem:[%s5339_s4] sm:$0xff]  }
 0x25d   :  { %v2432_v37 = vmul.f32 1.442695, %v2405_v49  ;;  %v2406_v41 = vsub.f32 0.0, %v5065_v50 }
 0x25e   :  { %v2260_v32 = vpop.f32.mrb[192].mxu0 }
 0x25f   :  { %3688 = vpow2.f32 %v2432_v37  ;;  %v2434_v36 = vmul.f32 1.442695, %v2406_v41  ;;  %v2350_v39 = vadd.f32 %v2260_v32, %v2118_v42  ;;  %v3602_v51 = vpop.f32.mrb[193].mxu0  ;;  %v2975_v32 = vunpack.c.l.bf16 %v2974_v20 }
 0x260   :  { %v2036_v48 = vpop.f32.mrb[192].mxu1  ;;  %v2263_v1 = vpop.f32.mrb[194].mxu0  ;;  %v2976_v51 = vunpack.c.h.bf16 %v2974_v20 }
 0x261   :  { %v2120_v14 = vadd.f32 %v2036_v48, %v4986_v21  ;;  %v3552_v33 = vpop.f32.mrb[193].mxu1  ;;  %v3685_v43 = vpop.eup %3684  ;;  %3690 = vpow2.f32 %v2434_v36  ;;  %v5070_v58 = vadd.f32 %v5046_v28, %v2350_v39  ;;  %v2351_v25 = vadd.f32 %v2263_v1, %v2119_v34 }
 0x262   :  { %v2039_v45 = vpop.f32.mrb[194].mxu1  ;;  %v3603_v11 = vpop.f32.mrb[195].mxu0  ;;  %v2478_v54 = vadd.f32 1.0, %v3685_v43 }
 0x263   :  { %v2121_v30 = vadd.f32 %v2039_v45, %v4989_v24  ;;  %v3553_v46 = vpop.f32.mrb[195].mxu1  ;;  %v3687_v13 = vpop.eup %3686  ;;  %v2407_v0 = vsub.f32 0.0, %v5070_v58  ;;  %v5075_v4 = vadd.f32 %v5046_v28, %v2351_v25 }
 0x264   :  { %3692 = vrcp.f32 %v2478_v54  ;;  %v2479_v21 = vadd.f32 1.0, %v3687_v13 }
 0x265   :  { %v2436_v3 = vmul.f32 1.442695, %v2407_v0  ;;  %v2408_v19 = vsub.f32 0.0, %v5075_v4 }
 0x266   :  { %3694 = vrcp.f32 %v2479_v21  ;;  %v2268_v12 = vpop.f32.mrb[196].mxu0 }
 0x267   :  { %3696 = vpow2.f32 %v2436_v3  ;;  %v2438_v29 = vmul.f32 1.442695, %v2408_v19  ;;  %v2352_v57 = vadd.f32 %v2268_v12, %v2120_v14  ;;  %v3606_v63 = vpop.f32.mrb[197].mxu0  ;;  %v3021_v19 = vld [vmem:[%s5339_s4 + $0x8] sm:$0xff]  }
 0x268   :  { %v2044_v62 = vpop.f32.mrb[196].mxu1  ;;  %v2271_v26 = vpop.f32.mrb[198].mxu0 }
 0x269   :  { %v2122_v24 = vadd.f32 %v2044_v62, %v4992_v15  ;;  %v3556_v44 = vpop.f32.mrb[197].mxu1  ;;  %v3689_v2 = vpop.eup %3688  ;;  %3698 = vpow2.f32 %v2438_v29  ;;  %v5080_v42 = vadd.f32 %v5046_v28, %v2352_v57  ;;  %v2353_v17 = vadd.f32 %v2271_v26, %v2121_v30 }
 0x26a   :  { %v2047_v61 = vpop.f32.mrb[198].mxu1  ;;  %v3607_v23 = vpop.f32.mrb[199].mxu0  ;;  %v2480_v5 = vadd.f32 1.0, %v3689_v2 }
 0x26b   :  { %v2123_v34 = vadd.f32 %v2047_v61, %v4995_v53  ;;  %v3557_v47 = vpop.f32.mrb[199].mxu1  ;;  %v3691_v49 = vpop.eup %3690  ;;  %v2409_v15 = vsub.f32 0.0, %v5080_v42  ;;  %v5088_v37 = vadd.f32 %v5046_v28, %v2353_v17  ;;  %v2979_v61 = vunpack.c.l.bf16 %v3021_v19 }
 0x26c   :  { %3700 = vrcp.f32 %v2480_v5  ;;  %v2481_v41 = vadd.f32 1.0, %v3691_v49 }
 0x26d   :  { %v2440_v36 = vmul.f32 1.442695, %v2409_v15  ;;  %v2410_v48 = vsub.f32 0.0, %v5088_v37 }
 0x26e   :  { %v3693_v39 = vpop.eup %3692  ;;  %3702 = vrcp.f32 %v2481_v41  ;;  %v2276_v14 = vpop.f32.mrb[200].mxu0 }
 0x26f   :  { %v2528_v33 = vmul.f32 %v3693_v39, %v5050_v9  ;;  %3704 = vpow2.f32 %v2440_v36  ;;  %v2442_v53 = vmul.f32 1.442695, %v2410_v48  ;;  %v2354_v43 = vadd.f32 %v2276_v14, %v2122_v24  ;;  %v3610_v45 = vpop.f32.mrb[201].mxu0 }
 0x270   :  { %v2052_v1 = vpop.f32.mrb[200].mxu1  ;;  %v3695_v25 = vpop.eup %3694  ;;  %v3022_v45 = vld [vmem:[%s5339_s4 + $0x10] sm:$0xff]  }
 0x271   :  { %v2124_v11 = vadd.f32 %v2052_v1, %v4998_v22  ;;  %v3560_v54 = vpop.f32.mrb[201].mxu1  ;;  %v2279_v30 = vpop.f32.mrb[202].mxu0  ;;  %v2603_v13 = vadd.f32 %v2975_v32, %v2528_v33  ;;  %v2529_v0 = vmul.f32 %v3695_v25, %v5055_v7  ;;  %3706 = vpow2.f32 %v2442_v53 }
 0x272   :  { %v3697_v46 = vpop.eup %3696  ;;  %v5095_v21 = vadd.f32 %v5046_v28, %v2354_v43  ;;  %v2055_v3 = vpop.f32.mrb[202].mxu1  ;;  %v2355_v29 = vadd.f32 %v2279_v30, %v2123_v34  ;;  %v2980_v34 = vunpack.c.h.bf16 %v3021_v19 }
 0x273   :  { %v3611_v9 = vpop.f32.mrb[203].mxu0  ;;  %v2482_v12 = vadd.f32 1.0, %v3697_v46  ;;  %v2125_v22 = vadd.f32 %v2055_v3, %v5001_v8  ;;  %v3561_v62 = vpop.f32.mrb[203].mxu1  ;;  %v2948_v63 = vpack.c.bf16 %v2603_v13, %v2603_v13  ;;  %v2604_v24 = vadd.f32 %v2976_v51, %v2529_v0 }
 0x274   :  { %v3699_v57 = vpop.eup %3698  ;;  %v2411_v7 = vsub.f32 0.0, %v5095_v21  ;;  %v5103_v26 = vadd.f32 %v5046_v28, %v2355_v29  ;;  %v2983_v9 = vunpack.c.l.bf16 %v3022_v45 }
 0x275   :  { %3708 = vrcp.f32 %v2482_v12  ;;  %v2483_v44 = vadd.f32 1.0, %v3699_v57  ;;  %2730 = vst.msk [vmem:[%s5340_s5] sm:$0xf] %vm2729_vm8, %v2948_v63  ;;  %v2949_v2 = vpack.c.bf16 %v2604_v24, %v2604_v24 }
 0x276   :  { %v2444_v8 = vmul.f32 1.442695, %v2411_v7  ;;  %v3701_v17 = vpop.eup %3700  ;;  %v2412_v23 = vsub.f32 0.0, %v5103_v26  ;;  %v2284_v20 = vpop.f32.mrb[204].mxu0 }
 0x277   :  { %3710 = vrcp.f32 %v2483_v44  ;;  %2731 = vst.msk [vmem:[%s5340_s5 + $0x4] sm:$0xf] %vm2729_vm8, %v2949_v2  ;;  %v2530_v5 = vmul.f32 %v3701_v17, %v5060_v18  ;;  %v2356_v49 = vadd.f32 %v2284_v20, %v2124_v11  ;;  %v3614_v15 = vpop.f32.mrb[205].mxu0 }
 0x278   :  { %3712 = vpow2.f32 %v2444_v8  ;;  %v2060_v47 = vpop.f32.mrb[204].mxu1  ;;  %v3703_v41 = vpop.eup %3702  ;;  %v2446_v32 = vmul.f32 1.442695, %v2412_v23 }
 0x279   :  { %v2126_v36 = vadd.f32 %v2060_v47, %v5004_v55  ;;  %v3564_v48 = vpop.f32.mrb[205].mxu1  ;;  %v2287_v39 = vpop.f32.mrb[206].mxu0  ;;  %v2605_v14 = vadd.f32 %v2979_v61, %v2530_v5  ;;  %v2531_v33 = vmul.f32 %v3703_v41, %v5065_v50  ;;  %v5118_v53 = vadd.f32 %v5046_v28, %v2356_v49  ;;  %v3023_v47 = vld [vmem:[%s5339_s4 + $0x18] sm:$0xff]  }
 0x27a   :  { %v3705_v51 = vpop.eup %3704  ;;  %v2063_v1 = vpop.f32.mrb[206].mxu1  ;;  %v2357_v18 = vadd.f32 %v2287_v39, %v2125_v22  ;;  %3714 = vpow2.f32 %v2446_v32  ;;  %v2984_v22 = vunpack.c.h.bf16 %v3022_v45 }
 0x27b   :  { %v3615_v43 = vpop.f32.mrb[207].mxu0  ;;  %v2484_v25 = vadd.f32 1.0, %v3705_v51  ;;  %v2127_v55 = vadd.f32 %v2063_v1, %v5007_v56  ;;  %v3565_v11 = vpop.f32.mrb[207].mxu1  ;;  %v2950_v30 = vpack.c.bf16 %v2605_v14, %v2605_v14  ;;  %v2606_v46 = vadd.f32 %v2980_v34, %v2531_v33 }
 0x27c   :  { %v3707_v54 = vpop.eup %3706  ;;  %v2413_v50 = vsub.f32 0.0, %v5118_v53  ;;  %v5126_v13 = vadd.f32 %v5046_v28, %v2357_v18  ;;  %v2987_v14 = vunpack.c.l.bf16 %v3023_v47 }
 0x27d   :  { %3716 = vrcp.f32 %v2484_v25  ;;  %v2485_v0 = vadd.f32 1.0, %v3707_v54  ;;  %2732 = vst.msk [vmem:[%s5340_s5 + $0x8] sm:$0xf] %vm2729_vm8, %v2950_v30  ;;  %v2951_v3 = vpack.c.bf16 %v2606_v46, %v2606_v46  ;;  %v2988_v25 = vunpack.c.h.bf16 %v3023_v47 }
 0x27e   :  { %v2448_v19 = vmul.f32 1.442695, %v2413_v50  ;;  %v2414_v56 = vsub.f32 0.0, %v5126_v13  ;;  %v2292_v29 = vpop.f32.mrb[208].mxu0 }
 0x27f   :  { %v3709_v12 = vpop.eup %3708  ;;  %3718 = vrcp.f32 %v2485_v0  ;;  %2733 = vst.msk [vmem:[%s5340_s5 + $0xc] sm:$0xf] %vm2729_vm8, %v2951_v3  ;;  %v2358_v24 = vadd.f32 %v2292_v29, %v2126_v36  ;;  %v3618_v7 = vpop.f32.mrb[209].mxu0 }
 0x280   :  { %v2532_v62 = vmul.f32 %v3709_v12, %v5070_v58  ;;  %3720 = vpow2.f32 %v2448_v19  ;;  %v2450_v57 = vmul.f32 1.442695, %v2414_v56  ;;  %v2068_v63 = vpop.f32.mrb[208].mxu1  ;;  %v2295_v8 = vpop.f32.mrb[210].mxu0 }
 0x281   :  { %v3711_v44 = vpop.eup %3710  ;;  %v2128_v2 = vadd.f32 %v2068_v63, %v5010_v31  ;;  %v3568_v61 = vpop.f32.mrb[209].mxu1  ;;  %v5141_v5 = vadd.f32 %v5046_v28, %v2358_v24  ;;  %v2359_v31 = vadd.f32 %v2295_v8, %v2127_v55 }
 0x282   :  { %v3713_v17 = vpop.eup %3712  ;;  %v2607_v23 = vadd.f32 %v2983_v9, %v2532_v62  ;;  %v2533_v20 = vmul.f32 %v3711_v44, %v5075_v4  ;;  %3722 = vpow2.f32 %v2450_v57  ;;  %v2071_v34 = vpop.f32.mrb[210].mxu1  ;;  %v3024_v62 = vld [vmem:[%s5339_s4 + $0x20] sm:$0xff]  }
 0x283   :  { %v3619_v58 = vpop.f32.mrb[211].mxu0  ;;  %v2486_v49 = vadd.f32 1.0, %v3713_v17  ;;  %v2129_v15 = vadd.f32 %v2071_v34, %v5013_v10  ;;  %v3569_v41 = vpop.f32.mrb[211].mxu1  ;;  %v2415_v48 = vsub.f32 0.0, %v5141_v5  ;;  %v5149_v39 = vadd.f32 %v5046_v28, %v2359_v31 }
 0x284   :  { %v2952_v32 = vpack.c.bf16 %v2607_v23, %v2607_v23  ;;  %v2608_v36 = vadd.f32 %v2984_v22, %v2533_v20  ;;  %v3715_v4 = vpop.eup %3714  ;;  %v2991_v17 = vunpack.c.l.bf16 %v3024_v62  ;;  %v2992_v41 = vunpack.c.h.bf16 %v3024_v62 }
 0x285   :  { %3724 = vrcp.f32 %v2486_v49  ;;  %v2487_v33 = vadd.f32 1.0, %v3715_v4  ;;  %v2452_v10 = vmul.f32 1.442695, %v2415_v48  ;;  %v2416_v18 = vsub.f32 0.0, %v5149_v39 }
 0x286   :  { %2734 = vst.msk [vmem:[%s5340_s5 + $0x10] sm:$0xf] %vm2729_vm8, %v2952_v32  ;;  %v2953_v51 = vpack.c.bf16 %v2608_v36, %v2608_v36  ;;  %v2300_v43 = vpop.f32.mrb[212].mxu0 }
 0x287   :  { %v3717_v1 = vpop.eup %3716  ;;  %3726 = vrcp.f32 %v2487_v33  ;;  %v2360_v11 = vadd.f32 %v2300_v43, %v2128_v2  ;;  %v3622_v54 = vpop.f32.mrb[213].mxu0  ;;  %v2454_v46 = vmul.f32 1.442695, %v2416_v18 }
 0x288   :  { %2735 = vst.msk [vmem:[%s5340_s5 + $0x14] sm:$0xf] %vm2729_vm8, %v2953_v51  ;;  %v2534_v45 = vmul.f32 %v3717_v1, %v5080_v42  ;;  %v2076_v55 = vpop.f32.mrb[212].mxu1  ;;  %3728 = vpow2.f32 %v2452_v10  ;;  %v2303_v3 = vpop.f32.mrb[214].mxu0 }
 0x289   :  { %v3719_v30 = vpop.eup %3718  ;;  %v2130_v50 = vadd.f32 %v2076_v55, %v5016_v16  ;;  %v3572_v0 = vpop.f32.mrb[213].mxu1  ;;  %v5164_v12 = vadd.f32 %v5046_v28, %v2360_v11  ;;  %v2361_v22 = vadd.f32 %v2303_v3, %v2129_v15  ;;  %3730 = vpow2.f32 %v2454_v46 }
 0x28a   :  { %v3721_v9 = vpop.eup %3720  ;;  %v2609_v19 = vadd.f32 %v2987_v14, %v2534_v45  ;;  %v2535_v56 = vmul.f32 %v3719_v30, %v5088_v37  ;;  %v2079_v42 = vpop.f32.mrb[214].mxu1  ;;  %v3025_v14 = vld [vmem:[%s5339_s4 + $0x28] sm:$0xff]  }
 0x28b   :  { %v3623_v29 = vpop.f32.mrb[215].mxu0  ;;  %v2488_v57 = vadd.f32 1.0, %v3721_v9  ;;  %v2131_v16 = vadd.f32 %v2079_v42, %v5019_v59  ;;  %v3573_v63 = vpop.f32.mrb[215].mxu1  ;;  %v2417_v37 = vsub.f32 0.0, %v5164_v12  ;;  %v5172_v2 = vadd.f32 %v5046_v28, %v2361_v22 }
 0x28c   :  { %v3723_v24 = vpop.eup %3722  ;;  %v2954_v7 = vpack.c.bf16 %v2609_v19, %v2609_v19  ;;  %v2610_v44 = vadd.f32 %v2988_v25, %v2535_v56  ;;  %v2996_v19 = vunpack.c.h.bf16 %v3025_v14 }
 0x28d   :  { %3732 = vrcp.f32 %v2488_v57  ;;  %v2489_v61 = vadd.f32 1.0, %v3723_v24  ;;  %v2456_v23 = vmul.f32 1.442695, %v2417_v37  ;;  %v2418_v59 = vsub.f32 0.0, %v5172_v2 }
 0x28e   :  { %2736 = vst.msk [vmem:[%s5340_s5 + $0x18] sm:$0xf] %vm2729_vm8, %v2954_v7  ;;  %v2955_v8 = vpack.c.bf16 %v2610_v44, %v2610_v44  ;;  %v2308_v34 = vpop.f32.mrb[216].mxu0 }
 0x28f   :  { %v3725_v20 = vpop.eup %3724  ;;  %3734 = vrcp.f32 %v2489_v61  ;;  %v2458_v47 = vmul.f32 1.442695, %v2418_v59  ;;  %v2362_v15 = vadd.f32 %v2308_v34, %v2130_v50  ;;  %v3626_v31 = vpop.f32.mrb[217].mxu0  ;;  %v2995_v50 = vunpack.c.l.bf16 %v3025_v14 }
 0x290   :  { %2737 = vst.msk [vmem:[%s5340_s5 + $0x1c] sm:$0xf] %vm2729_vm8, %v2955_v8  ;;  %v2536_v58 = vmul.f32 %v3725_v20, %v5095_v21  ;;  %3736 = vpow2.f32 %v2456_v23  ;;  %v2084_v49 = vpop.f32.mrb[216].mxu1  ;;  %v2311_v48 = vpop.f32.mrb[218].mxu0 }
 0x291   :  { %v2132_v32 = vadd.f32 %v2084_v49, %v5022_v35  ;;  %v3576_v36 = vpop.f32.mrb[217].mxu1  ;;  %v3727_v4 = vpop.eup %3726  ;;  %3738 = vpow2.f32 %v2458_v47  ;;  %v5189_v33 = vadd.f32 %v5046_v28, %v2362_v15  ;;  %v2363_v10 = vadd.f32 %v2311_v48, %v2131_v16  ;;  %v3026_v49 = vld [vmem:[%s5339_s4 + $0x30] sm:$0xff]  }
 0x292   :  { %v2611_v51 = vadd.f32 %v2991_v17, %v2536_v58  ;;  %v2087_v21 = vpop.f32.mrb[218].mxu1  ;;  %v3627_v1 = vpop.f32.mrb[219].mxu0  ;;  %v2537_v43 = vmul.f32 %v3727_v4, %v5103_v26 }
 0x293   :  { %v3729_v18 = vpop.eup %3728  ;;  %v2133_v35 = vadd.f32 %v2087_v21, %v5025_v38  ;;  %v3577_v45 = vpop.f32.mrb[219].mxu1  ;;  %v2419_v11 = vsub.f32 0.0, %v5189_v33  ;;  %v5195_v54 = vadd.f32 %v5046_v28, %v2363_v10  ;;  %v3000_v1 = vunpack.c.h.bf16 %v3026_v49 }
 0x294   :  { %v2956_v25 = vpack.c.bf16 %v2611_v51, %v2611_v51  ;;  %v2490_v55 = vadd.f32 1.0, %v3729_v18  ;;  %v3731_v30 = vpop.eup %3730  ;;  %v2612_v46 = vadd.f32 %v2992_v41, %v2537_v43 }
 0x295   :  { %v2491_v26 = vadd.f32 1.0, %v3731_v30  ;;  %v2460_v0 = vmul.f32 1.442695, %v2419_v11  ;;  %v2420_v38 = vsub.f32 0.0, %v5195_v54 }
 0x296   :  { %2738 = vst.msk [vmem:[%s5340_s5 + $0x20] sm:$0xf] %vm2729_vm8, %v2956_v25  ;;  %3740 = vrcp.f32 %v2490_v55  ;;  %v2957_v9 = vpack.c.bf16 %v2612_v46, %v2612_v46  ;;  %v2316_v56 = vpop.f32.mrb[220].mxu0 }
 0x297   :  { %v3733_v3 = vpop.eup %3732  ;;  %3742 = vrcp.f32 %v2491_v26  ;;  %v2462_v22 = vmul.f32 1.442695, %v2420_v38  ;;  %v2364_v62 = vadd.f32 %v2316_v56, %v2132_v32  ;;  %v3630_v57 = vpop.f32.mrb[221].mxu0  ;;  %v2999_v32 = vunpack.c.l.bf16 %v3026_v49 }
 0x298   :  { %v2538_v42 = vmul.f32 %v3733_v3, %v5118_v53  ;;  %v2092_v29 = vpop.f32.mrb[220].mxu1  ;;  %2739 = vst.msk [vmem:[%s5340_s5 + $0x24] sm:$0xf] %vm2729_vm8, %v2957_v9  ;;  %3744 = vpow2.f32 %v2460_v0  ;;  %v2319_v7 = vpop.f32.mrb[222].mxu0 }
 0x299   :  { %v3735_v16 = vpop.eup %3734  ;;  %v2134_v63 = vadd.f32 %v2092_v29, %v5028_v6  ;;  %v3580_v24 = vpop.f32.mrb[221].mxu1  ;;  %3746 = vpow2.f32 %v2462_v22  ;;  %v5210_v61 = vadd.f32 %v5046_v28, %v2364_v62  ;;  %v2365_v20 = vadd.f32 %v2319_v7, %v2133_v35 }
 0x29a   :  { %v3737_v44 = vpop.eup %3736  ;;  %v2613_v37 = vadd.f32 %v2995_v50, %v2538_v42  ;;  %v2539_v53 = vmul.f32 %v3735_v16, %v5126_v13  ;;  %v2095_v8 = vpop.f32.mrb[222].mxu1 }
 0x29b   :  { %v3631_v17 = vpop.f32.mrb[223].mxu0  ;;  %v2492_v23 = vadd.f32 1.0, %v3737_v44  ;;  %v2135_v59 = vadd.f32 %v2095_v8, %v5031_v52  ;;  %v3581_v34 = vpop.f32.mrb[223].mxu1  ;;  %v2421_v13 = vsub.f32 0.0, %v5210_v61  ;;  %v5218_v31 = vadd.f32 %v5046_v28, %v2365_v20 }
 0x29c   :  { %v3739_v58 = vpop.eup %3738  ;;  %v2958_v47 = vpack.c.bf16 %v2613_v37, %v2613_v37  ;;  %v2614_v6 = vadd.f32 %v2996_v19, %v2539_v53 }
 0x29d   :  { %3748 = vrcp.f32 %v2492_v23  ;;  %v2493_v15 = vadd.f32 1.0, %v3739_v58  ;;  %v2464_v41 = vmul.f32 1.442695, %v2421_v13  ;;  %v2422_v36 = vsub.f32 0.0, %v5218_v31 }
 0x29e   :  { %2740 = vst.msk [vmem:[%s5340_s5 + $0x28] sm:$0xf] %vm2729_vm8, %v2958_v47  ;;  %v2959_v52 = vpack.c.bf16 %v2614_v6, %v2614_v6  ;;  %v2324_v48 = vpop.f32.mrb[224].mxu0 }
 0x29f   :  { %3750 = vrcp.f32 %v2493_v15  ;;  %v2366_v14 = vadd.f32 %v2324_v48, %v2134_v63  ;;  %v3634_v21 = vpop.f32.mrb[225].mxu0  ;;  %v2466_v18 = vmul.f32 1.442695, %v2422_v36 }
 0x2a0   :  { %v3741_v4 = vpop.eup %3740  ;;  %2741 = vst.msk [vmem:[%s5340_s5 + $0x2c] sm:$0xf] %vm2729_vm8, %v2959_v52  ;;  %3752 = vpow2.f32 %v2464_v41  ;;  %v2100_v51 = vpop.f32.mrb[224].mxu1 }
 0x2a1   :  { %v2540_v10 = vmul.f32 %v3741_v4, %v5141_v5  ;;  %v2136_v43 = vadd.f32 %v2100_v51, %v5034_v60  ;;  %v3584_v35 = vpop.f32.mrb[225].mxu1  ;;  %v2327_v45 = vpop.f32.mrb[226].mxu0  ;;  %v5232_v55 = vadd.f32 %v5046_v28, %v2366_v14  ;;  %v3027_v5 = vld [vmem:[%s5339_s4 + $0x38] sm:$0xff]   ;;  %3754 = vpow2.f32 %v2466_v18 }
 0x2a2   :  { %v3743_v25 = vpop.eup %3742  ;;  %v2103_v11 = vpop.f32.mrb[226].mxu1  ;;  %v2367_v30 = vadd.f32 %v2327_v45, %v2135_v59  ;;  %v3003_v62 = vunpack.c.l.bf16 %v3027_v5  ;;  %v3004_v63 = vunpack.c.h.bf16 %v3027_v5 }
 0x2a3   :  { %v3635_v46 = vpop.f32.mrb[227].mxu0  ;;  %v3745_v50 = vpop.eup %3744  ;;  %v2615_v26 = vadd.f32 %v2999_v32, %v2540_v10  ;;  %v2541_v0 = vmul.f32 %v3743_v25, %v5149_v39  ;;  %v2137_v60 = vadd.f32 %v2103_v11, %v5037_v27  ;;  %v2423_v19 = vsub.f32 0.0, %v5232_v55 }
 0x2a4   :  { %v3585_v38 = vpop.f32.mrb[227].mxu1  ;;  %v3747_v3 = vpop.eup %3746  ;;  %v2494_v9 = vadd.f32 1.0, %v3745_v50  ;;  %v5241_v56 = vadd.f32 %v5046_v28, %v2367_v30 }
 0x2a5   :  { %v2960_v42 = vpack.c.bf16 %v2615_v26, %v2615_v26  ;;  %v2616_v22 = vadd.f32 %v3000_v1, %v2541_v0  ;;  %v2495_v29 = vadd.f32 1.0, %v3747_v3  ;;  %v2468_v39 = vmul.f32 1.442695, %v2423_v19  ;;  %v3029_v38 = vld [vmem:[%s5339_s4 + $0x48] sm:$0xff]  }
 0x2a6   :  { %3756 = vrcp.f32 %v2494_v9  ;;  %v2424_v57 = vsub.f32 0.0, %v5241_v56  ;;  %v2332_v24 = vpop.f32.mrb[228].mxu0 }
 0x2a7   :  { %v3749_v16 = vpop.eup %3748  ;;  %2742 = vst.msk [vmem:[%s5340_s5 + $0x30] sm:$0xf] %vm2729_vm8, %v2960_v42  ;;  %v2961_v27 = vpack.c.bf16 %v2616_v22, %v2616_v22  ;;  %3758 = vrcp.f32 %v2495_v29  ;;  %v2368_v53 = vadd.f32 %v2332_v24, %v2136_v43  ;;  %v3638_v8 = vpop.f32.mrb[229].mxu0 }
 0x2a8   :  { %v2542_v7 = vmul.f32 %v3749_v16, %v5164_v12  ;;  %3760 = vpow2.f32 %v2468_v39  ;;  %v2470_v44 = vmul.f32 1.442695, %v2424_v57  ;;  %v2108_v37 = vpop.f32.mrb[228].mxu1  ;;  %v2335_v59 = vpop.f32.mrb[230].mxu0  ;;  %v3012_v57 = vunpack.c.h.bf16 %v3029_v38 }
 0x2a9   :  { %v3751_v17 = vpop.eup %3750  ;;  %2743 = vst.msk [vmem:[%s5340_s5 + $0x34] sm:$0xf] %vm2729_vm8, %v2961_v27  ;;  %v2138_v23 = vadd.f32 %v2108_v37, %v5039_v40  ;;  %v3588_v20 = vpop.f32.mrb[229].mxu1  ;;  %v5256_v12 = vadd.f32 %v5046_v28, %v2368_v53  ;;  %v2369_v15 = vadd.f32 %v2335_v59, %v2137_v60  ;;  %v3028_v40 = vld [vmem:[%s5339_s4 + $0x40] sm:$0xff]  }
 0x2aa   :  { %v3753_v34 = vpop.eup %3752  ;;  %v2617_v58 = vadd.f32 %v3003_v62, %v2542_v7  ;;  %v2543_v47 = vmul.f32 %v3751_v17, %v5172_v2  ;;  %3762 = vpow2.f32 %v2470_v44  ;;  %v3639_v6 = vpop.f32.mrb[231].mxu0  ;;  %v3007_v21 = vunpack.c.l.bf16 %v3028_v40  ;;  %v3030_v7 = vld [vmem:[%s5339_s4 + $0x50] sm:$0xff]  }
 0x2ab   :  { %v2111_v49 = vpop.f32.mrb[230].mxu1  ;;  %v2496_v13 = vadd.f32 1.0, %v3753_v34  ;;  %v2425_v36 = vsub.f32 0.0, %v5256_v12  ;;  %v3755_v48 = vpop.eup %3754  ;;  %v5263_v2 = vadd.f32 %v5046_v28, %v2369_v15  ;;  %v3008_v43 = vunpack.c.h.bf16 %v3028_v40 }
 0x2ac   :  { %v3589_v52 = vpop.f32.mrb[231].mxu1  ;;  %v2962_v41 = vpack.c.bf16 %v2617_v58, %v2617_v58  ;;  %v2618_v32 = vadd.f32 %v3004_v63, %v2543_v47  ;;  %v2497_v51 = vadd.f32 1.0, %v3755_v48  ;;  %v3016_v20 = vunpack.c.h.bf16 %v3030_v7 }
 0x2ad   :  { %3764 = vrcp.f32 %v2496_v13  ;;  %v2472_v14 = vmul.f32 1.442695, %v2425_v36  ;;  %v2426_v10 = vsub.f32 0.0, %v5263_v2  ;;  %v3031_v52 = vld [vmem:[%s5339_s4 + $0x58] sm:$0xff]  }
 0x2ae   :  { %2744 = vst.msk [vmem:[%s5340_s5 + $0x38] sm:$0xf] %vm2729_vm8, %v2962_v41  ;;  %v2963_v4 = vpack.c.bf16 %v2618_v32, %v2618_v32  ;;  %v2340_v1 = vpop.f32.mrb[232].mxu0  ;;  %3766 = vrcp.f32 %v2497_v51  ;;  %v3019_v41 = vunpack.c.l.bf16 %v3031_v52  ;;  %v3020_v40 = vunpack.c.h.bf16 %v3031_v52  ;;  %v2577_v51 = vld [vmem:[%s5339_s4 + $0x60] sm:$0xf] }
 0x2af   :  { %v2370_v35 = vadd.f32 %v2340_v1, %v2138_v23  ;;  %v3642_v45 = vpop.f32.mrb[233].mxu0  ;;  %3768 = vpow2.f32 %v2472_v14  ;;  %v2474_v30 = vmul.f32 1.442695, %v2426_v10  ;;  %v2602_v10 = vunpack.c.l.bf16 %v2577_v51 }
 0x2b0   :  { %v3757_v18 = vpop.eup %3756  ;;  %2745 = vst.msk [vmem:[%s5340_s5 + $0x3c] sm:$0xf] %vm2729_vm8, %v2963_v4  ;;  %v2343_v46 = vpop.f32.mrb[234].mxu0 }
 0x2b1   :  { %v3759_v25 = vpop.eup %3758  ;;  %v2544_v11 = vmul.f32 %v3757_v18, %v5189_v33  ;;  %v5277_v0 = vadd.f32 %v5046_v28, %v2370_v35  ;;  %v3643_v5 = vpop.f32.mrb[235].mxu0  ;;  %3770 = vpow2.f32 %v2474_v30 }
 0x2b2   :  { %v3761_v50 = vpop.eup %3760  ;;  %v2545_v26 = vmul.f32 %v3759_v25, %v5195_v54  ;;  %v3011_v54 = vunpack.c.l.bf16 %v3029_v38 }
 0x2b3   :  { %v2619_v60 = vadd.f32 %v3007_v21, %v2544_v11  ;;  %v2498_v3 = vadd.f32 1.0, %v3761_v50  ;;  %v2427_v33 = vsub.f32 0.0, %v5277_v0 }
 0x2b4   :  { %v3763_v9 = vpop.eup %3762  ;;  %v2620_v19 = vadd.f32 %v3008_v43, %v2545_v26 }
 0x2b5   :  { %v2964_v42 = vpack.c.bf16 %v2619_v60, %v2619_v60  ;;  %3772 = vrcp.f32 %v2498_v3  ;;  %v2499_v22 = vadd.f32 1.0, %v3763_v9  ;;  %v2476_v62 = vmul.f32 1.442695, %v2427_v33 }
 0x2b6   :  { %v2965_v29 = vpack.c.bf16 %v2620_v19, %v2620_v19 }
 0x2b7   :  { %v3765_v28 = vpop.eup %3764  ;;  %2746 = vst.msk [vmem:[%s5340_s5 + $0x40] sm:$0xf] %vm2729_vm8, %v2964_v42  ;;  %3774 = vrcp.f32 %v2499_v22 }
 0x2b8   :  { %2747 = vst.msk [vmem:[%s5340_s5 + $0x44] sm:$0xf] %vm2729_vm8, %v2965_v29  ;;  %v2546_v39 = vmul.f32 %v3765_v28, %v5210_v61  ;;  %3776 = vpow2.f32 %v2476_v62  ;;  %v3767_v16 = vpop.eup %3766  ;;  %v3015_v61 = vunpack.c.l.bf16 %v3030_v7 }
 0x2b9   :  { %v3769_v63 = vpop.eup %3768  ;;  %v2547_v24 = vmul.f32 %v3767_v16, %v5218_v31 }
 0x2ba   :  { %v2621_v27 = vadd.f32 %v3011_v54, %v2546_v39  ;;  %v2500_v37 = vadd.f32 1.0, %v3769_v63 }
 0x2bb   :  { %v3771_v53 = vpop.eup %3770  ;;  %v2622_v8 = vadd.f32 %v3012_v57, %v2547_v24 }
 0x2bc   :  { %v2966_v44 = vpack.c.bf16 %v2621_v27, %v2621_v27  ;;  %3778 = vrcp.f32 %v2500_v37  ;;  %v2501_v17 = vadd.f32 1.0, %v3771_v53 }
 0x2bd   :  { %v2967_v59 = vpack.c.bf16 %v2622_v8, %v2622_v8 }
 0x2be   :  { %2748 = vst.msk [vmem:[%s5340_s5 + $0x48] sm:$0xf] %vm2729_vm8, %v2966_v44  ;;  %3780 = vrcp.f32 %v2501_v17 }
 0x2bf   :  { %v3773_v23 = vpop.eup %3772  ;;  %2749 = vst.msk [vmem:[%s5340_s5 + $0x4c] sm:$0xf] %vm2729_vm8, %v2967_v59 }
 0x2c0   :  { %v2548_v31 = vmul.f32 %v3773_v23, %v5232_v55 }
 0x2c1   :  { %v3775_v34 = vpop.eup %3774 }
 0x2c2   :  { %v3777_v58 = vpop.eup %3776  ;;  %v2623_v47 = vadd.f32 %v3015_v61, %v2548_v31  ;;  %v2549_v6 = vmul.f32 %v3775_v34, %v5241_v56 }
 0x2c3   :  { %v2502_v49 = vadd.f32 1.0, %v3777_v58 }
 0x2c4   :  { %v2968_v13 = vpack.c.bf16 %v2623_v47, %v2623_v47  ;;  %v2624_v15 = vadd.f32 %v3016_v20, %v2549_v6 }
 0x2c5   :  { %3782 = vrcp.f32 %v2502_v49 }
 0x2c6   :  { %2750 = vst.msk [vmem:[%s5340_s5 + $0x50] sm:$0xf] %vm2729_vm8, %v2968_v13  ;;  %v2969_v55 = vpack.c.bf16 %v2624_v15, %v2624_v15  ;;  %v3779_v32 = vpop.eup %3778 }
 0x2c7   :  { %v2550_v56 = vmul.f32 %v3779_v32, %v5256_v12 }
 0x2c8   :  { %2751 = vst.msk [vmem:[%s5340_s5 + $0x54] sm:$0xf] %vm2729_vm8, %v2969_v55  ;;  %v3781_v36 = vpop.eup %3780 }
 0x2c9   :  { %v2625_v48 = vadd.f32 %v3019_v41, %v2550_v56  ;;  %v2551_v4 = vmul.f32 %v3781_v36, %v5263_v2 }
 0x2cb   :  { %v2970_v14 = vpack.c.bf16 %v2625_v48, %v2625_v48  ;;  %v2626_v21 = vadd.f32 %v3020_v40, %v2551_v4 }
 0x2cd   :  { %2752 = vst.msk [vmem:[%s5340_s5 + $0x58] sm:$0xf] %vm2729_vm8, %v2970_v14  ;;  %v2971_v18 = vpack.c.bf16 %v2626_v21, %v2626_v21 }
 0x2cf   :  { %v3783_v1 = vpop.eup %3782  ;;  %2753 = vst.msk [vmem:[%s5340_s5 + $0x5c] sm:$0xf] %vm2729_vm8, %v2971_v18 }
 0x2d0   :  { %v2552_v12 = vmul.f32 %v3783_v1, %v5277_v0 }
 0x2d2   :  { %v2627_v2 = vadd.f32 %v2602_v10, %v2552_v12 }
 0x2d4   :  { %v2972_v43 = vpack.c.bf16 %v2627_v2, %v2627_v2 }
 0x2d6   :  { %2754 = vst.msk [vmem:[%s5340_s5 + $0x60] sm:$0xf] %vm2729_vm8, %v2972_v43 }

// kernel: _lambda_.22
= control target key start
LH: loop header
LB: loop body
LE: loop exit
PB: predicated region body
PF: predicated region fallthrough
CT: control target
= control target key end

     0   :  { %vm204_vm0 = vcmask 261120   ;;  %vm349_vm1 = vcmask 519168   ;;  %s582_s1 = inlined_call_operand.vmem [shape: bf16[288,64], index: 1, kind: input, shape index: {}]   ;;  %s583_s0 = inlined_call_operand.vmem [shape: bf16[32,288], index: 0, kind: input, shape index: {}]   ;;  %s584_s2 = inlined_call_operand.vmem [shape: f32[1,64], index: 2, kind: input, shape index: {}]   ;;  %s585_s3 = inlined_call_operand.vmem [shape: bf16[32,64], index: 3, kind: output, shape index: {}]  }
   0x1   :  { %v433_v0 = vld [vmem:[%s582_s1 + $0x40] sm:$0xff]   ;;  %v435_v2 = vld [vmem:[%s582_s1 + $0x48] sm:$0xff]   ;;  %v437_v4 = vld [vmem:[%s582_s1 + $0x50] sm:$0xff]  }
   0x2   :  { %v434_v1 = vld [vmem:[%s582_s1] sm:$0xff]   ;;  %393 = vmatprep.subr.bf16.mxu0 %v433_v0  ;;  %v436_v3 = vld [vmem:[%s582_s1 + $0x8] sm:$0xff]   ;;  %v438_v5 = vld [vmem:[%s582_s1 + $0x10] sm:$0xff]  }
   0x3   :  { %394 = vmatpush3.bf16.msra.mxu0 %v434_v1  ;;  %v439_v6 = vld [vmem:[%s582_s1 + $0x58] sm:$0xff]   ;;  %v441_v8 = vld [vmem:[%s582_s1 + $0x60] sm:$0xff]   ;;  %v443_v11 = vld [vmem:[%s582_s1 + $0x68] sm:$0xff]  }
   0x4   :  { %395 = vmatprep.subr.bf16.mxu0 %v435_v2  ;;  %v440_v7 = vld [vmem:[%s582_s1 + $0x18] sm:$0xff]   ;;  %v442_v9 = vld [vmem:[%s582_s1 + $0x20] sm:$0xff]   ;;  %v444_v12 = vld [vmem:[%s582_s1 + $0x28] sm:$0xff]  }
   0x5   :  { %v448_v10 = vld [vmem:[%s582_s1 + $0x80] sm:$0xff]   ;;  %v445_v13 = vld [vmem:[%s582_s1 + $0x70] sm:$0xff]   ;;  %v453_v15 = vld [vmem:[%s582_s1 + $0x88] sm:$0xff]  }
   0x6   :  { %425 = vmatprep.subr.bf16.mxu1 %v448_v10  ;;  %v452_v14 = vld [vmem:[%s583_s0 + $0x4] ss:$12 sps:$4 sm:$0xff]   ;;  %v454_v16 = vld [vmem:[%s583_s0 + $0x8] ss:$12 sps:$4 sm:$0xff]   ;;  %v455_v17 = vld [vmem:[%s583_s0 + $0x20] ss:$12 sps:$4 sm:$0xff]  }
   0x7   :  { %396 = vmatpush3.bf16.msra.mxu0 %v436_v3  ;;  %426 = vmatpush3.bf16.msra.mxu1 %v448_v10  ;;  %v446_v18 = vld [vmem:[%s582_s1 + $0x30] sm:$0xff]   ;;  %v447_v19 = vld [vmem:[%s582_s1 + $0x78] sm:$0xff]   ;;  %v450_v21 = vld [vmem:[%s583_s0] ss:$12 sps:$4 sm:$0xff]  }
   0x8   :  { %397 = vmatprep.subr.bf16.mxu0 %v437_v4  ;;  %243 = vmatprep.mubr.bf16.mxu0 %v452_v14  ;;  %v449_v20 = vld [vmem:[%s582_s1 + $0x38] sm:$0xff]   ;;  %v358_v30 = vld [vmem:[%s584_s2] ss:$0 sm:$0xff] }
   0x9   :  { %427 = vmatprep.subr.bf16.mxu1 %v453_v15  ;;  %429 = vmatprep.mubr.msk.bf16.mxu1 %vm204_vm0, %v454_v16  ;;  %v456_v22 = vld [vmem:[%s583_s0 + $0x1c] ss:$12 sps:$4 sm:$0xff]   ;;  %v458_v23 = vld [vmem:[%s583_s0 + $0x18] ss:$12 sps:$4 sm:$0xff]  }
   0xb   :  { %398 = vmatpush3.bf16.msra.mxu0 %v438_v5  ;;  %428 = vmatpush3.bf16.msra.mxu1 %v453_v15 }
   0xc   :  { %399 = vmatprep.subr.bf16.mxu0 %v439_v6 }
   0xe   :  { %430 = vmatmul.mubr.msk.bf16.vlgmr.msra.gmra.mrb[0].mxu1 %vm204_vm0, %v455_v17 }
   0xf   :  { %400 = vmatpush3.bf16.msra.mxu0 %v440_v7 }
  0x10   :  { %401 = vmatprep.subr.bf16.mxu0 %v441_v8 }
  0x13   :  { %402 = vmatpush3.bf16.msra.mxu0 %v442_v9 }
  0x14   :  { %403 = vmatprep.subr.bf16.mxu0 %v443_v11 }
  0x17   :  { %404 = vmatpush3.bf16.msra.mxu0 %v444_v12 }
  0x18   :  { %405 = vmatprep.subr.bf16.mxu0 %v445_v13 }
  0x1b   :  { %406 = vmatpush3.bf16.msra.mxu0 %v446_v18 }
  0x1c   :  { %407 = vmatprep.subr.bf16.mxu0 %v447_v19 }
  0x1f   :  { %408 = vmatpush3.bf16.msra.mxu0 %v449_v20 }
  0x22   :  { %244 = vmatmul.mubr.bf16.vlgmr.msra.gmra.mrb[0].mxu0 %v450_v21 }
  0x23   :  { %251 = vmatprep.mubr.bf16.mxu0 %v456_v22 }
  0x2a   :  { %252 = vmatmul.mubr.bf16.gmra.mrb[4].mxu0 %v458_v23 }
  0xe1   :  { %v431_v24 = vpop.f32.mrb[0].mxu1 }
  0xe2   :  { %v294_v25 = vpop.f32.mrb[1].mxu1 }
  0xe3   :  { %v432_v26 = vpop.f32.mrb[2].mxu1 }
  0xe4   :  { %v297_v27 = vpop.f32.mrb[3].mxu1 }
  0xf5   :  { %v409_v28 = vpop.f32.mrb[0].mxu0 }
  0xf6   :  { %v410_v29 = vpop.f32.mrb[1].mxu0 }
  0xf7   :  { %v411_v31 = vadd.f32 %v410_v29, %v409_v28  ;;  %v412_v32 = vpop.f32.mrb[2].mxu0 }
  0xf8   :  { %v413_v33 = vpop.f32.mrb[3].mxu0 }
  0xf9   :  { %v414_v34 = vadd.f32 %v413_v33, %v412_v32  ;;  %v246_v35 = vadd.f32 %v411_v31, %v358_v30 }
  0xfb   :  { %v295_v36 = vadd.f32 %v294_v25, %v246_v35  ;;  %v249_v37 = vadd.f32 %v414_v34, %v358_v30 }
  0xfd   :  { %v309_v38 = vsub.f32 0.0, %v295_v36  ;;  %v298_v39 = vadd.f32 %v297_v27, %v249_v37  ;;  %v415_v40 = vpop.f32.mrb[4].mxu0 }
  0xfe   :  { %v416_v41 = vpop.f32.mrb[5].mxu0 }
  0xff   :  { %v313_v42 = vmul.f32 1.442695, %v309_v38  ;;  %v310_v43 = vsub.f32 0.0, %v298_v39  ;;  %v417_v44 = vadd.f32 %v416_v41, %v415_v40  ;;  %v418_v45 = vpop.f32.mrb[6].mxu0 }
 0x100   :  { %v419_v46 = vpop.f32.mrb[7].mxu0 }
 0x101   :  { %459 = vpow2.f32 %v313_v42  ;;  %v315_v47 = vmul.f32 1.442695, %v310_v43  ;;  %v254_v48 = vadd.f32 %v417_v44, %v358_v30  ;;  %v420_v49 = vadd.f32 %v419_v46, %v418_v45 }
 0x103   :  { %461 = vpow2.f32 %v315_v47  ;;  %v303_v50 = vadd.f32 %v431_v24, %v254_v48  ;;  %v257_v51 = vadd.f32 %v420_v49, %v358_v30 }
 0x105   :  { %v311_v52 = vsub.f32 0.0, %v303_v50  ;;  %v306_v53 = vadd.f32 %v432_v26, %v257_v51 }
 0x107   :  { %v317_v54 = vmul.f32 1.442695, %v311_v52  ;;  %v312_v55 = vsub.f32 0.0, %v306_v53 }
 0x109   :  { %463 = vpow2.f32 %v317_v54  ;;  %v319_v56 = vmul.f32 1.442695, %v312_v55 }
 0x10b   :  { %v460_v57 = vpop.eup %459  ;;  %465 = vpow2.f32 %v319_v56 }
 0x10c   :  { %v321_v58 = vadd.f32 1.0, %v460_v57 }
 0x10d   :  { %v462_v59 = vpop.eup %461 }
 0x10e   :  { %467 = vrcp.f32 %v321_v58  ;;  %v322_v60 = vadd.f32 1.0, %v462_v59 }
 0x110   :  { %469 = vrcp.f32 %v322_v60 }
 0x113   :  { %v464_v61 = vpop.eup %463 }
 0x114   :  { %v323_v62 = vadd.f32 1.0, %v464_v61 }
 0x115   :  { %v466_v63 = vpop.eup %465 }
 0x116   :  { %471 = vrcp.f32 %v323_v62  ;;  %v324_v0 = vadd.f32 1.0, %v466_v63 }
 0x118   :  { %v468_v1 = vpop.eup %467  ;;  %473 = vrcp.f32 %v324_v0 }
 0x119   :  { %v329_v2 = vmul.f32 %v468_v1, %v295_v36 }
 0x11a   :  { %v470_v3 = vpop.eup %469 }
 0x11b   :  { %v389_v4 = vpack.c.bf16 %v329_v2, %v329_v2  ;;  %v330_v5 = vmul.f32 %v470_v3, %v298_v39 }
 0x11d   :  { %350 = vst.msk [vmem:[%s585_s3] sm:$0xf] %vm349_vm1, %v389_v4  ;;  %v390_v6 = vpack.c.bf16 %v330_v5, %v330_v5 }
 0x11f   :  { %351 = vst.msk [vmem:[%s585_s3 + $0x4] sm:$0xf] %vm349_vm1, %v390_v6 }
 0x120   :  { %v472_v7 = vpop.eup %471 }
 0x121   :  { %v331_v8 = vmul.f32 %v472_v7, %v303_v50 }
 0x122   :  { %v474_v9 = vpop.eup %473 }
 0x123   :  { %v391_v10 = vpack.c.bf16 %v331_v8, %v331_v8  ;;  %v332_v11 = vmul.f32 %v474_v9, %v306_v53 }
 0x125   :  { %352 = vst.msk [vmem:[%s585_s3 + $0x8] sm:$0xf] %vm349_vm1, %v391_v10  ;;  %v392_v12 = vpack.c.bf16 %v332_v11, %v332_v11 }
 0x127   :  { %353 = vst.msk [vmem:[%s585_s3 + $0xc] sm:$0xf] %vm349_vm1, %v392_v12 }

// kernel: _lambda_.23
= control target key start
LH: loop header
LB: loop body
LE: loop exit
PB: predicated region body
PF: predicated region fallthrough
CT: control target
= control target key end

     0   :  { %vm68_vm0 = vcmask 523264   ;;  %vm164_vm1 = vcmask 257024   ;;  %s283_s1 = inlined_call_operand.vmem [shape: bf16[64,32], index: 1, kind: input, shape index: {}]   ;;  %s284_s0 = inlined_call_operand.vmem [shape: bf16[32,64], index: 0, kind: input, shape index: {}]   ;;  %s285_s2 = inlined_call_operand.vmem [shape: f32[1,32], index: 2, kind: input, shape index: {}]   ;;  %s286_s3 = inlined_call_operand.vmem [shape: bf16[32,32], index: 3, kind: output, shape index: {}]  }
   0x1   :  { %v208_v0 = vld [vmem:[%s283_s1] sm:$0xff]   ;;  %v209_v1 = vld [vmem:[%s283_s1 + $0x8] sm:$0xff]   ;;  %v210_v2 = vld [vmem:[%s283_s1 + $0x10] sm:$0xff]  }
   0x2   :  { %196 = vmatprep.subr.bf16.mxu0 %v208_v0  ;;  %v212_v3 = vld [vmem:[%s284_s0] sm:$0xff]   ;;  %v211_v4 = vld [vmem:[%s283_s1 + $0x18] sm:$0xff]   ;;  %v213_v5 = vld [vmem:[%s284_s0 + $0x8] sm:$0xff]  }
   0x3   :  { %197 = vmatpush3.bf16.msra.mxu0 %v208_v0  ;;  %204 = vmatprep.mubr.msk.bf16.mxu0 %vm68_vm0, %v212_v3  ;;  %v173_v6 = vld [vmem:[%s285_s2] ss:$0 sm:$0xff] }
   0x4   :  { %198 = vmatprep.subr.bf16.mxu0 %v209_v1 }
   0x7   :  { %199 = vmatpush3.bf16.msra.mxu0 %v209_v1 }
   0x8   :  { %200 = vmatprep.subr.bf16.mxu0 %v210_v2 }
   0xb   :  { %201 = vmatpush3.bf16.msra.mxu0 %v210_v2 }
   0xc   :  { %202 = vmatprep.subr.bf16.mxu0 %v211_v4 }
   0xf   :  { %203 = vmatpush3.bf16.msra.mxu0 %v211_v4 }
  0x12   :  { %205 = vmatmul.mubr.msk.bf16.vlgmr.msra.gmra.mrb[0].mxu0 %vm68_vm0, %v213_v5 }
  0xe5   :  { %v206_v7 = vpop.f32.mrb[0].mxu0 }
  0xe6   :  { %v118_v8 = vadd.f32 %v206_v7, %v173_v6  ;;  %v109_v9 = vpop.f32.mrb[1].mxu0 }
  0xe7   :  { %v110_v10 = vadd.f32 %v173_v6, %v109_v9  ;;  %v207_v11 = vpop.f32.mrb[2].mxu0 }
  0xe8   :  { %v126_v12 = vsub.f32 0.0, %v118_v8  ;;  %v121_v13 = vadd.f32 %v207_v11, %v173_v6  ;;  %v112_v14 = vpop.f32.mrb[3].mxu0 }
  0xe9   :  { %v124_v15 = vsub.f32 0.0, %v110_v10  ;;  %v113_v16 = vadd.f32 %v173_v6, %v112_v14 }
  0xea   :  { %v132_v17 = vmul.f32 1.442695, %v126_v12  ;;  %v127_v18 = vsub.f32 0.0, %v121_v13 }
  0xeb   :  { %v128_v19 = vmul.f32 1.442695, %v124_v15  ;;  %v125_v20 = vsub.f32 0.0, %v113_v16 }
  0xec   :  { %214 = vpow2.f32 %v132_v17  ;;  %v134_v21 = vmul.f32 1.442695, %v127_v18 }
  0xed   :  { %216 = vpow2.f32 %v128_v19  ;;  %v130_v22 = vmul.f32 1.442695, %v125_v20 }
  0xee   :  { %218 = vpow2.f32 %v134_v21 }
  0xef   :  { %220 = vpow2.f32 %v130_v22 }
  0xf6   :  { %v215_v23 = vpop.eup %214 }
  0xf7   :  { %v217_v24 = vpop.eup %216  ;;  %v138_v25 = vadd.f32 1.0, %v215_v23 }
  0xf8   :  { %v219_v26 = vpop.eup %218  ;;  %v136_v27 = vadd.f32 1.0, %v217_v24 }
  0xf9   :  { %v221_v28 = vpop.eup %220  ;;  %222 = vrcp.f32 %v138_v25  ;;  %v139_v29 = vadd.f32 1.0, %v219_v26 }
  0xfa   :  { %224 = vrcp.f32 %v136_v27  ;;  %v137_v30 = vadd.f32 1.0, %v221_v28 }
  0xfb   :  { %226 = vrcp.f32 %v139_v29 }
  0xfc   :  { %228 = vrcp.f32 %v137_v30 }
 0x103   :  { %v223_v31 = vpop.eup %222 }
 0x104   :  { %v225_v32 = vpop.eup %224  ;;  %v146_v33 = vmul.f32 %v223_v31, %v118_v8 }
 0x105   :  { %v227_v34 = vpop.eup %226  ;;  %v144_v35 = vmul.f32 %v225_v32, %v110_v10 }
 0x106   :  { %v229_v36 = vpop.eup %228  ;;  %v188_v37 = vpack.c.bf16 %v146_v33, %v146_v33  ;;  %v147_v38 = vmul.f32 %v227_v34, %v121_v13 }
 0x107   :  { %v186_v39 = vpack.c.bf16 %v144_v35, %v144_v35  ;;  %v145_v40 = vmul.f32 %v229_v36, %v113_v16 }
 0x108   :  { %167 = vst.msk [vmem:[%s286_s3 + $0x8] sm:$0xf] %vm164_vm1, %v188_v37  ;;  %v189_v41 = vpack.c.bf16 %v147_v38, %v147_v38 }
 0x109   :  { %165 = vst.msk [vmem:[%s286_s3] sm:$0xf] %vm164_vm1, %v186_v39  ;;  %v187_v42 = vpack.c.bf16 %v145_v40, %v145_v40 }
 0x10a   :  { %168 = vst.msk [vmem:[%s286_s3 + $0xc] sm:$0xf] %vm164_vm1, %v189_v41 }
 0x10b   :  { %166 = vst.msk [vmem:[%s286_s3 + $0x4] sm:$0xf] %vm164_vm1, %v187_v42 }

// kernel: _lambda_.24
= control target key start
LH: loop header
LB: loop body
LE: loop exit
PB: predicated region body
PF: predicated region fallthrough
CT: control target
= control target key end

     0   :  { %s466_s6 = smov 0   ;;  %s468_s7 = smov 0   ;;  %s521_s0 = inlined_call_operand.vmem [shape: bf16[2,8,8,32], index: 0, kind: input, shape index: {}]   ;;  %s522_s1 = inlined_call_operand.vmem [shape: bf16[2,4,4,32], index: 1, kind: output, shape index: {}]  }
   0x1   :  { %s470_s8 = smov 0  }
   0x2 LB: > { %s23_s9 = sadd.s32 1, %s450_s7  ;;  %p380_p0 = scmp.ge.s32.totalorder %s454_s8, 1  ;;  %s454_s8 = sphi %s470_s8, %s11_s8   ;;  %s450_s7 = sphi %s468_s7, %s524_s7   ;;  %s446_s6 = sphi %s466_s6, %s523_s6  }
   0x3   : > { %p25_p1 = scmp.ge.s32.totalorder %s23_s9, 2  ;;  %p106_p2 = scmp.lt.s32.totalorder %s454_s8, 3 }
   0x5   : > { %s526_s9 = smov (%p25_p1, %s23_s9), 0  ;;  %p107_p3 = pnand %p380_p0, %p106_p2 }
   0x6   : > { %p132_p4 = scmp.lt.s32.totalorder (!%p107_p3), %s446_s6, 1  ;;  %vm288_vm0 = vcmask (!%p107_p3), 254976  }
   0x7   : > { %110 = sbr.rel (%p107_p3) target bundleno = 49 (0x31), region = 24 }
   0xe   : > { %s528_s6 = smov (!%p132_p4, %s446_s6), 1 }
   0xf   : > { %s387_s10 = sshll.u32 %s528_s6, 5  ;;  %s388_s14 = sshll.u32 %s528_s6, 3 }
  0x10   : > { %s139_s13 = scalar_lea.vmem %s521_s0, %s387_s10  ;;  %s147_s17 = scalar_lea.vmem %s522_s1, %s388_s14 }
  0x11   : > { %v390_v0 = vld [vmem:[%s139_s13] sm:$0xff]   ;;  %v405_v1 = vld [vmem:[%s139_s13 + $0x8] sm:$0xff]   ;;  %v406_v2 = vld [vmem:[%s139_s13 + $0x10] sm:$0xff]  }
  0x12   : > { %v391_v3 = vunpack.c.l.bf16 %v390_v0  ;;  %v392_v4 = vunpack.c.h.bf16 %v390_v0  ;;  %v395_v5 = vunpack.c.l.bf16 %v405_v1  ;;  %v396_v6 = vunpack.c.h.bf16 %v405_v1  ;;  %v407_v7 = vld [vmem:[%s139_s13 + $0x18] sm:$0xff]  }
  0x13   : > { %v399_v8 = vunpack.c.l.bf16 %v406_v2  ;;  %v490_v9 = vunpack.c.h.bf16 %v406_v2  ;;  %v492_v10 = vunpack.c.l.bf16 %v407_v7  ;;  %v404_v51 = vunpack.c.h.bf16 %v407_v7 }
  0x14   : > { %v172_v11 = vrot.slane %v391_v3, 1  ;;  %v173_v12 = vrot.slane %v392_v4, 1  ;;  %v174_v13 = vrot.slane %v395_v5, 1  ;;  %v175_v14 = vrot.slane %v396_v6, 1 }
  0x15   : > { %v176_v15 = vrot.slane %v399_v8, 1  ;;  %v196_v16 = vrot.slane %v391_v3, 2  ;;  %v197_v17 = vrot.slane %v392_v4, 2  ;;  %v198_v18 = vrot.slane %v395_v5, 2 }
  0x16   : > { %v188_v19 = vmax.f32 %v391_v3, %v172_v11  ;;  %v189_v20 = vmax.f32 %v392_v4, %v173_v12  ;;  %v190_v21 = vmax.f32 %v395_v5, %v174_v13  ;;  %v191_v22 = vmax.f32 %v396_v6, %v175_v14 }
  0x17   : > { %v192_v23 = vmax.f32 %v399_v8, %v176_v15  ;;  %v199_v24 = vrot.slane %v396_v6, 2  ;;  %v200_v25 = vrot.slane %v399_v8, 2  ;;  %v220_v26 = vrot.slane %v391_v3, 3 }
  0x18   : > { %v212_v27 = vmax.f32 %v188_v19, %v196_v16  ;;  %v213_v28 = vmax.f32 %v189_v20, %v197_v17  ;;  %v214_v29 = vmax.f32 %v190_v21, %v198_v18  ;;  %v221_v30 = vrot.slane %v392_v4, 3 }
  0x19   : > { %v215_v31 = vmax.f32 %v191_v22, %v199_v24  ;;  %v216_v32 = vmax.f32 %v192_v23, %v200_v25  ;;  %v222_v33 = vrot.slane %v395_v5, 3  ;;  %v223_v34 = vrot.slane %v396_v6, 3 }
  0x1a   : > { %v224_v35 = vrot.slane %v399_v8, 3  ;;  %v236_v36 = vmax.f32 %v212_v27, %v220_v26  ;;  %v237_v37 = vmax.f32 %v213_v28, %v221_v30  ;;  %v244_v38 = vrot.slane %v391_v3, 4 }
  0x1b   : > { %v238_v39 = vmax.f32 %v214_v29, %v222_v33  ;;  %v239_v40 = vmax.f32 %v215_v31, %v223_v34  ;;  %v245_v41 = vrot.slane %v392_v4, 4  ;;  %v246_v42 = vrot.slane %v395_v5, 4 }
  0x1c   : > { %v240_v43 = vmax.f32 %v216_v32, %v224_v35  ;;  %v247_v44 = vrot.slane %v396_v6, 4  ;;  %v248_v45 = vrot.slane %v399_v8, 4  ;;  %v260_v46 = vmax.f32 %v236_v36, %v244_v38 }
  0x1d   : > { %v261_v47 = vmax.f32 %v237_v37, %v245_v41  ;;  %v262_v48 = vmax.f32 %v238_v39, %v246_v42  ;;  %v177_v49 = vrot.slane %v490_v9, 1  ;;  %v201_v50 = vrot.slane %v490_v9, 2 }
  0x1e   : > { %v263_v52 = vmax.f32 %v239_v40, %v247_v44  ;;  %v264_v53 = vmax.f32 %v240_v43, %v248_v45  ;;  %v225_v54 = vrot.slane %v490_v9, 3  ;;  %v178_v58 = vrot.slane %v492_v10, 1 }
  0x1f   : > { %v268_v55 = vmax.f32 %v260_v46, %v261_v47  ;;  %v193_v56 = vmax.f32 %v490_v9, %v177_v49  ;;  %v269_v57 = vmax.f32 %v261_v47, %v262_v48  ;;  %v249_v59 = vrot.slane %v490_v9, 4 }
  0x20   : > { %v202_v60 = vrot.slane %v492_v10, 2  ;;  %v226_v61 = vrot.slane %v492_v10, 3  ;;  %v270_v62 = vmax.f32 %v262_v48, %v263_v52  ;;  %v194_v2 = vmax.f32 %v492_v10, %v178_v58 }
  0x21   : > { %v272_v63 = vmax.f32 %v268_v55, %v262_v48  ;;  %v217_v0 = vmax.f32 %v193_v56, %v201_v50  ;;  %v273_v1 = vmax.f32 %v269_v57, %v263_v52  ;;  %v250_v3 = vrot.slane %v492_v10, 4 }
  0x22   : > { %v274_v4 = vmax.f32 %v270_v62, %v264_v53  ;;  %v179_v5 = vrot.slane %v404_v51, 1  ;;  %v203_v6 = vrot.slane %v404_v51, 2  ;;  %v218_v9 = vmax.f32 %v194_v2, %v202_v60 }
  0x23   : > { %v276_v7 = vmax.f32 %v272_v63, %v263_v52  ;;  %v241_v8 = vmax.f32 %v217_v0, %v225_v54  ;;  %v277_v11 = vmax.f32 %v273_v1, %v264_v53  ;;  %v227_v13 = vrot.slane %v404_v51, 3 }
  0x24   : > { %v195_v12 = vmax.f32 %v404_v51, %v179_v5  ;;  %v271_v14 = vmax.f32 %v263_v52, %v264_v53  ;;  %v242_v17 = vmax.f32 %v218_v9, %v226_v61  ;;  %v251_v18 = vrot.slane %v404_v51, 4 }
  0x25   : > { %v280_v15 = vmax.f32 %v276_v7, %v264_v53  ;;  %v265_v16 = vmax.f32 %v241_v8, %v249_v59 }
  0x26   : > { %v219_v10 = vmax.f32 %v195_v12, %v203_v6  ;;  %v266_v21 = vmax.f32 %v242_v17, %v250_v3 }
  0x27   : > { %v284_v19 = vpack.c.bf16 %v280_v15, %v280_v15  ;;  %v281_v20 = vmax.f32 %v277_v11, %v265_v16  ;;  %v278_v22 = vmax.f32 %v274_v4, %v265_v16  ;;  %v275_v24 = vmax.f32 %v271_v14, %v265_v16 }
  0x28   : > { %v243_v23 = vmax.f32 %v219_v10, %v227_v13 }
  0x29   : > { %289 = vst.msk [vmem:[%s147_s17] sm:$0x3] %vm288_vm0, %v284_v19  ;;  %v285_v25 = vpack.c.bf16 %v281_v20, %v281_v20  ;;  %v282_v26 = vmax.f32 %v278_v22, %v266_v21  ;;  %v279_v28 = vmax.f32 %v275_v24, %v266_v21 }
  0x2a   : > { %v267_v27 = vmax.f32 %v243_v23, %v251_v18 }
  0x2b   : > { %290 = vst.msk [vmem:[%s147_s17 + $0x2] sm:$0x3] %vm288_vm0, %v285_v25  ;;  %v286_v29 = vpack.c.bf16 %v282_v26, %v282_v26 }
  0x2c   : > { %v283_v30 = vmax.f32 %v279_v28, %v267_v27 }
  0x2d   : > { %291 = vst.msk [vmem:[%s147_s17 + $0x4] sm:$0x3] %vm288_vm0, %v286_v29 }
  0x2e   : > { %v287_v31 = vpack.c.bf16 %v283_v30, %v283_v30 }
  0x30   : > { %292 = vst.msk [vmem:[%s147_s17 + $0x6] sm:$0x3] %vm288_vm0, %v287_v31 }
  0x31 PF: > { %s11_s8 = sadd.s32 1, %s454_s8   ;;  %s523_s6 = smov %s450_s7 }
  0x32   : > { %p8_p5 = scmp.ge.s32.totalorder %s11_s8, 4   ;;  %s524_s7 = smov %s526_s9 }
  0x34   :  { %10 = sbr.rel (!%p8_p5) target bundleno = 2 (0x2), region = 54 }

// kernel: _lambda_.28
= control target key start
LH: loop header
LB: loop body
LE: loop exit
PB: predicated region body
PF: predicated region fallthrough
CT: control target
= control target key end

     0   :  { %vm79_vm0 = vcmask 523264   ;;  %vm275_vm1 = vcmask 519168   ;;  %s462_s3 = inlined_call_operand.vmem [shape: bf16[64,64], index: 3, kind: input, shape index: {}]   ;;  %s463_s2 = inlined_call_operand.vmem [shape: bf16[64,64], index: 2, kind: input, shape index: {}]   ;;  %s464_s1 = inlined_call_operand.vmem [shape: bf16[32,64], index: 1, kind: input, shape index: {}]   ;;  %s465_s0 = inlined_call_operand.vmem [shape: bf16[32,64], index: 0, kind: input, shape index: {}]   ;;  %s466_s4 = inlined_call_operand.vmem [shape: f32[1,64], index: 4, kind: input, shape index: {}]   ;;  %s467_s5 = inlined_call_operand.vmem [shape: bf16[32,64], index: 5, kind: output, shape index: {}]  }
   0x1   :  { %v349_v0 = vld [vmem:[%s462_s3] sm:$0xff]   ;;  %v351_v2 = vld [vmem:[%s462_s3 + $0x8] sm:$0xff]   ;;  %v353_v4 = vld [vmem:[%s462_s3 + $0x10] sm:$0xff]  }
   0x2   :  { %v350_v1 = vld [vmem:[%s463_s2] sm:$0xff]   ;;  %321 = vmatprep.subr.bf16.mxu1 %v349_v0  ;;  %v352_v3 = vld [vmem:[%s463_s2 + $0x8] sm:$0xff]   ;;  %v354_v5 = vld [vmem:[%s463_s2 + $0x10] sm:$0xff]  }
   0x3   :  { %333 = vmatprep.subr.bf16.mxu0 %v350_v1  ;;  %322 = vmatpush3.bf16.msra.mxu1 %v349_v0  ;;  %v355_v6 = vld [vmem:[%s462_s3 + $0x18] sm:$0xff]   ;;  %v357_v8 = vld [vmem:[%s464_s1] sm:$0xff]   ;;  %v359_v10 = vld [vmem:[%s464_s1 + $0x8] sm:$0xff]  }
   0x4   :  { %334 = vmatpush3.bf16.msra.mxu0 %v350_v1  ;;  %323 = vmatprep.subr.bf16.mxu1 %v351_v2  ;;  %v356_v7 = vld [vmem:[%s463_s2 + $0x18] sm:$0xff]   ;;  %v358_v9 = vld [vmem:[%s465_s0] sm:$0xff]   ;;  %v360_v11 = vld [vmem:[%s465_s0 + $0x8] sm:$0xff]  }
   0x5   :  { %335 = vmatprep.subr.bf16.mxu0 %v352_v3  ;;  %329 = vmatprep.mubr.msk.bf16.mxu1 %vm79_vm0, %v357_v8  ;;  %v300_v14 = vld [vmem:[%s466_s4] ss:$0 sm:$0xff] }
   0x6   :  { %341 = vmatprep.mubr.msk.bf16.mxu0 %vm79_vm0, %v358_v9 }
   0x7   :  { %324 = vmatpush3.bf16.msra.mxu1 %v351_v2 }
   0x8   :  { %336 = vmatpush3.bf16.msra.mxu0 %v352_v3  ;;  %325 = vmatprep.subr.bf16.mxu1 %v353_v4 }
   0x9   :  { %337 = vmatprep.subr.bf16.mxu0 %v354_v5 }
   0xb   :  { %326 = vmatpush3.bf16.msra.mxu1 %v353_v4 }
   0xc   :  { %338 = vmatpush3.bf16.msra.mxu0 %v354_v5  ;;  %327 = vmatprep.subr.bf16.mxu1 %v355_v6 }
   0xd   :  { %339 = vmatprep.subr.bf16.mxu0 %v356_v7 }
   0xf   :  { %328 = vmatpush3.bf16.msra.mxu1 %v355_v6 }
  0x10   :  { %340 = vmatpush3.bf16.msra.mxu0 %v356_v7 }
  0x12   :  { %330 = vmatmul.mubr.msk.bf16.vlgmr.msra.gmra.mrb[0].mxu1 %vm79_vm0, %v359_v10 }
  0x13   :  { %342 = vmatmul.mubr.msk.bf16.vlgmr.msra.gmra.mrb[0].mxu0 %vm79_vm0, %v360_v11 }
  0xe5   :  { %v331_v12 = vpop.f32.mrb[0].mxu1 }
  0xe6   :  { %v343_v13 = vpop.f32.mrb[0].mxu0  ;;  %v120_v15 = vpop.f32.mrb[1].mxu1 }
  0xe7   :  { %v218_v16 = vadd.f32 %v343_v13, %v331_v12  ;;  %v209_v17 = vpop.f32.mrb[1].mxu0  ;;  %v332_v18 = vpop.f32.mrb[2].mxu1 }
  0xe8   :  { %v210_v19 = vadd.f32 %v209_v17, %v120_v15  ;;  %v344_v20 = vpop.f32.mrb[2].mxu0  ;;  %v123_v21 = vpop.f32.mrb[3].mxu1 }
  0xe9   :  { %v233_v22 = vadd.f32 %v300_v14, %v218_v16  ;;  %v221_v23 = vadd.f32 %v344_v20, %v332_v18  ;;  %v212_v24 = vpop.f32.mrb[3].mxu0 }
  0xea   :  { %v231_v25 = vadd.f32 %v300_v14, %v210_v19  ;;  %v213_v26 = vadd.f32 %v212_v24, %v123_v21 }
  0xeb   :  { %v237_v27 = vsub.f32 0.0, %v233_v22  ;;  %v234_v28 = vadd.f32 %v300_v14, %v221_v23 }
  0xec   :  { %v235_v29 = vsub.f32 0.0, %v231_v25  ;;  %v232_v30 = vadd.f32 %v300_v14, %v213_v26 }
  0xed   :  { %v243_v31 = vmul.f32 1.442695, %v237_v27  ;;  %v238_v32 = vsub.f32 0.0, %v234_v28 }
  0xee   :  { %v239_v33 = vmul.f32 1.442695, %v235_v29  ;;  %v236_v34 = vsub.f32 0.0, %v232_v30 }
  0xef   :  { %361 = vpow2.f32 %v243_v31  ;;  %v245_v35 = vmul.f32 1.442695, %v238_v32 }
  0xf0   :  { %363 = vpow2.f32 %v239_v33  ;;  %v241_v36 = vmul.f32 1.442695, %v236_v34 }
  0xf1   :  { %365 = vpow2.f32 %v245_v35 }
  0xf2   :  { %367 = vpow2.f32 %v241_v36 }
  0xf9   :  { %v362_v37 = vpop.eup %361 }
  0xfa   :  { %v364_v38 = vpop.eup %363  ;;  %v249_v39 = vadd.f32 1.0, %v362_v37 }
  0xfb   :  { %v366_v40 = vpop.eup %365  ;;  %v247_v41 = vadd.f32 1.0, %v364_v38 }
  0xfc   :  { %v368_v42 = vpop.eup %367  ;;  %369 = vrcp.f32 %v249_v39  ;;  %v250_v43 = vadd.f32 1.0, %v366_v40 }
  0xfd   :  { %371 = vrcp.f32 %v247_v41  ;;  %v248_v44 = vadd.f32 1.0, %v368_v42 }
  0xfe   :  { %373 = vrcp.f32 %v250_v43 }
  0xff   :  { %375 = vrcp.f32 %v248_v44 }
 0x106   :  { %v370_v45 = vpop.eup %369 }
 0x107   :  { %v372_v46 = vpop.eup %371  ;;  %v257_v47 = vmul.f32 %v370_v45, %v233_v22 }
 0x108   :  { %v374_v48 = vpop.eup %373  ;;  %v255_v49 = vmul.f32 %v372_v46, %v231_v25 }
 0x109   :  { %v376_v50 = vpop.eup %375  ;;  %v307_v51 = vpack.c.bf16 %v257_v47, %v257_v47  ;;  %v258_v52 = vmul.f32 %v374_v48, %v234_v28 }
 0x10a   :  { %v305_v53 = vpack.c.bf16 %v255_v49, %v255_v49  ;;  %v256_v54 = vmul.f32 %v376_v50, %v232_v30 }
 0x10b   :  { %278 = vst.msk [vmem:[%s467_s5 + $0x8] sm:$0xf] %vm275_vm1, %v307_v51  ;;  %v308_v55 = vpack.c.bf16 %v258_v52, %v258_v52 }
 0x10c   :  { %276 = vst.msk [vmem:[%s467_s5] sm:$0xf] %vm275_vm1, %v305_v53  ;;  %v306_v56 = vpack.c.bf16 %v256_v54, %v256_v54 }
 0x10d   :  { %279 = vst.msk [vmem:[%s467_s5 + $0xc] sm:$0xf] %vm275_vm1, %v308_v55 }
 0x10e   :  { %277 = vst.msk [vmem:[%s467_s5 + $0x4] sm:$0xf] %vm275_vm1, %v306_v56 }

// kernel: _lambda_.27
= control target key start
LH: loop header
LB: loop body
LE: loop exit
PB: predicated region body
PF: predicated region fallthrough
CT: control target
= control target key end

     0   :  { %vm71_vm0 = vcmask 261120   ;;  %vm433_vm1 = vcmask 519168   ;;  %s688_s5 = inlined_call_operand.vmem [shape: bf16[32,64], index: 5, kind: input, shape index: {}]   ;;  %s689_s6 = inlined_call_operand.vmem [shape: bf16[32,64], index: 6, kind: input, shape index: {}]   ;;  %s690_s1 = inlined_call_operand.vmem [shape: bf16[32,32], index: 1, kind: input, shape index: {}]   ;;  %s691_s2 = inlined_call_operand.vmem [shape: bf16[32,32], index: 2, kind: input, shape index: {}]   ;;  %s692_s4 = inlined_call_operand.vmem [shape: bf16[32,64], index: 4, kind: input, shape index: {}]   ;;  %s693_s7 = inlined_call_operand.vmem [shape: bf16[32,64], index: 7, kind: input, shape index: {}]   ;;  %s694_s0 = inlined_call_operand.vmem [shape: bf16[32,32], index: 0, kind: input, shape index: {}]   ;;  %s695_s3 = inlined_call_operand.vmem [shape: bf16[32,32], index: 3, kind: input, shape index: {}]   ;;  %s696_s8 = inlined_call_operand.vmem [shape: f32[1,64], index: 8, kind: input, shape index: {}]   ;;  %s697_s9 = inlined_call_operand.vmem [shape: bf16[32,64], index: 9, kind: output, shape index: {}]  }
   0x1   :  { %v535_v0 = vld [vmem:[%s688_s5] sm:$0xff]   ;;  %v537_v2 = vld [vmem:[%s688_s5 + $0x8] sm:$0xff]  }
   0x2   :  { %v536_v1 = vld [vmem:[%s689_s6] sm:$0xff]   ;;  %491 = vmatprep.subr.bf16.mxu1 %v535_v0  ;;  %v538_v3 = vld [vmem:[%s689_s6 + $0x8] sm:$0xff]  }
   0x3   :  { %507 = vmatprep.subr.bf16.mxu0 %v536_v1  ;;  %492 = vmatpush3.bf16.msra.mxu1 %v535_v0  ;;  %v539_v4 = vld [vmem:[%s690_s1] sm:$0xff]   ;;  %v541_v6 = vld [vmem:[%s690_s1 + $0x8] sm:$0xff]  }
   0x4   :  { %508 = vmatpush3.bf16.msra.mxu0 %v536_v1  ;;  %493 = vmatprep.subr.bf16.mxu1 %v537_v2  ;;  %v540_v5 = vld [vmem:[%s691_s2] sm:$0xff]   ;;  %v543_v8 = vld [vmem:[%s691_s2 + $0x8] sm:$0xff]  }
   0x5   :  { %509 = vmatprep.subr.bf16.mxu0 %v538_v3  ;;  %495 = vmatprep.mubr.msk.bf16.mxu1 %vm71_vm0, %v539_v4  ;;  %v542_v7 = vld [vmem:[%s692_s4] sm:$0xff]   ;;  %v545_v10 = vld [vmem:[%s692_s4 + $0x8] sm:$0xff]  }
   0x6   :  { %511 = vmatprep.mubr.msk.bf16.mxu0 %vm71_vm0, %v540_v5  ;;  %v544_v9 = vld [vmem:[%s693_s7] sm:$0xff]   ;;  %v546_v11 = vld [vmem:[%s693_s7 + $0x8] sm:$0xff]  }
   0x7   :  { %494 = vmatpush3.bf16.msra.mxu1 %v537_v2  ;;  %v547_v12 = vld [vmem:[%s694_s0] sm:$0xff]   ;;  %v549_v14 = vld [vmem:[%s694_s0 + $0x8] sm:$0xff]  }
   0x8   :  { %510 = vmatpush3.bf16.msra.mxu0 %v538_v3  ;;  %499 = vmatprep.subr.bf16.mxu1 %v542_v7  ;;  %v548_v13 = vld [vmem:[%s695_s3] sm:$0xff]   ;;  %v550_v15 = vld [vmem:[%s695_s3 + $0x8] sm:$0xff]  }
   0x9   :  { %515 = vmatprep.subr.bf16.mxu0 %v544_v9  ;;  %v466_v18 = vld [vmem:[%s696_s8] ss:$0 sm:$0xff] }
   0xa   :  { %496 = vmatmul.mubr.msk.bf16.vlgmr.msra.gmra.mrb[0].mxu1 %vm71_vm0, %v541_v6 }
   0xb   :  { %512 = vmatmul.mubr.msk.bf16.vlgmr.msra.gmra.mrb[0].mxu0 %vm71_vm0, %v543_v8  ;;  %500 = vmatpush3.bf16.msra.mxu1 %v542_v7 }
   0xc   :  { %516 = vmatpush3.bf16.msra.mxu0 %v544_v9  ;;  %501 = vmatprep.subr.bf16.mxu1 %v545_v10 }
   0xd   :  { %517 = vmatprep.subr.bf16.mxu0 %v546_v11  ;;  %503 = vmatprep.mubr.msk.bf16.mxu1 %vm71_vm0, %v547_v12 }
   0xe   :  { %519 = vmatprep.mubr.msk.bf16.mxu0 %vm71_vm0, %v548_v13 }
   0xf   :  { %502 = vmatpush3.bf16.msra.mxu1 %v545_v10 }
  0x10   :  { %518 = vmatpush3.bf16.msra.mxu0 %v546_v11 }
  0x16   :  { %504 = vmatmul.mubr.msk.bf16.vlgmr.msra.gmra.mrb[0].mxu1 %vm71_vm0, %v549_v14 }
  0x17   :  { %520 = vmatmul.mubr.msk.bf16.vlgmr.msra.gmra.mrb[0].mxu0 %vm71_vm0, %v550_v15 }
  0xe9   :  { %v505_v16 = vpop.f32.mrb[0].mxu1 }
  0xea   :  { %v521_v17 = vpop.f32.mrb[0].mxu0  ;;  %v189_v19 = vpop.f32.mrb[1].mxu1 }
  0xeb   :  { %v523_v20 = vadd.f32 %v521_v17, %v505_v16  ;;  %v363_v21 = vpop.f32.mrb[1].mxu0  ;;  %v506_v22 = vpop.f32.mrb[2].mxu1 }
  0xec   :  { %v524_v23 = vadd.f32 %v363_v21, %v189_v19  ;;  %v522_v24 = vpop.f32.mrb[2].mxu0  ;;  %v192_v25 = vpop.f32.mrb[3].mxu1 }
  0xed   :  { %v391_v26 = vadd.f32 %v523_v20, %v466_v18  ;;  %v525_v27 = vadd.f32 %v522_v24, %v506_v22  ;;  %v366_v28 = vpop.f32.mrb[3].mxu0 }
  0xee   :  { %v389_v29 = vadd.f32 %v524_v23, %v466_v18  ;;  %v526_v30 = vadd.f32 %v366_v28, %v192_v25 }
  0xef   :  { %v395_v31 = vsub.f32 0.0, %v391_v26  ;;  %v392_v32 = vadd.f32 %v525_v27, %v466_v18 }
  0xf0   :  { %v393_v33 = vsub.f32 0.0, %v389_v29  ;;  %v390_v34 = vadd.f32 %v526_v30, %v466_v18 }
  0xf1   :  { %v401_v35 = vmul.f32 1.442695, %v395_v31  ;;  %v396_v36 = vsub.f32 0.0, %v392_v32 }
  0xf2   :  { %v397_v37 = vmul.f32 1.442695, %v393_v33  ;;  %v394_v38 = vsub.f32 0.0, %v390_v34 }
  0xf3   :  { %551 = vpow2.f32 %v401_v35  ;;  %v403_v39 = vmul.f32 1.442695, %v396_v36 }
  0xf4   :  { %553 = vpow2.f32 %v397_v37  ;;  %v399_v40 = vmul.f32 1.442695, %v394_v38 }
  0xf5   :  { %555 = vpow2.f32 %v403_v39 }
  0xf6   :  { %557 = vpow2.f32 %v399_v40 }
  0xfd   :  { %v552_v41 = vpop.eup %551 }
  0xfe   :  { %v554_v42 = vpop.eup %553  ;;  %v407_v43 = vadd.f32 1.0, %v552_v41 }
  0xff   :  { %v556_v44 = vpop.eup %555  ;;  %v405_v45 = vadd.f32 1.0, %v554_v42 }
 0x100   :  { %v558_v46 = vpop.eup %557  ;;  %559 = vrcp.f32 %v407_v43  ;;  %v408_v47 = vadd.f32 1.0, %v556_v44 }
 0x101   :  { %561 = vrcp.f32 %v405_v45  ;;  %v406_v48 = vadd.f32 1.0, %v558_v46 }
 0x102   :  { %563 = vrcp.f32 %v408_v47 }
 0x103   :  { %565 = vrcp.f32 %v406_v48 }
 0x10a   :  { %v560_v49 = vpop.eup %559 }
 0x10b   :  { %v562_v50 = vpop.eup %561  ;;  %v415_v51 = vmul.f32 %v560_v49, %v391_v26 }
 0x10c   :  { %v564_v52 = vpop.eup %563  ;;  %v413_v53 = vmul.f32 %v562_v50, %v389_v29 }
 0x10d   :  { %v566_v54 = vpop.eup %565  ;;  %v473_v55 = vpack.c.bf16 %v415_v51, %v415_v51  ;;  %v416_v56 = vmul.f32 %v564_v52, %v392_v32 }
 0x10e   :  { %v471_v57 = vpack.c.bf16 %v413_v53, %v413_v53  ;;  %v414_v58 = vmul.f32 %v566_v54, %v390_v34 }
 0x10f   :  { %436 = vst.msk [vmem:[%s697_s9 + $0x8] sm:$0xf] %vm433_vm1, %v473_v55  ;;  %v474_v59 = vpack.c.bf16 %v416_v56, %v416_v56 }
 0x110   :  { %434 = vst.msk [vmem:[%s697_s9] sm:$0xf] %vm433_vm1, %v471_v57  ;;  %v472_v60 = vpack.c.bf16 %v414_v58, %v414_v58 }
 0x111   :  { %437 = vst.msk [vmem:[%s697_s9 + $0xc] sm:$0xf] %vm433_vm1, %v474_v59 }
 0x112   :  { %435 = vst.msk [vmem:[%s697_s9 + $0x4] sm:$0xf] %vm433_vm1, %v472_v60 }

// kernel: _lambda_.31
= control target key start
LH: loop header
LB: loop body
LE: loop exit
PB: predicated region body
PF: predicated region fallthrough
CT: control target
= control target key end

     0   :  { %vm63_vm0 = vcmask 261120   ;;  %vm153_vm1 = vcmask 523264   ;;  %vm260_vm2 = vcmask 519168   ;;  %s429_s2 = inlined_call_operand.vmem [shape: bf16[64,64], index: 2, kind: input, shape index: {}]   ;;  %s430_s3 = inlined_call_operand.vmem [shape: bf16[32,64], index: 3, kind: input, shape index: {}]   ;;  %s431_s1 = inlined_call_operand.vmem [shape: bf16[32,32], index: 1, kind: input, shape index: {}]   ;;  %s432_s0 = inlined_call_operand.vmem [shape: bf16[32,64], index: 0, kind: input, shape index: {}]   ;;  %s433_s4 = inlined_call_operand.vmem [shape: f32[1,64], index: 4, kind: input, shape index: {}]   ;;  %s434_s5 = inlined_call_operand.vmem [shape: bf16[32,64], index: 5, kind: output, shape index: {}]  }
   0x1   :  { %v326_v0 = vld [vmem:[%s429_s2] sm:$0xff]   ;;  %v327_v1 = vld [vmem:[%s429_s2 + $0x8] sm:$0xff]   ;;  %v329_v3 = vld [vmem:[%s429_s2 + $0x10] sm:$0xff]  }
   0x2   :  { %310 = vmatprep.subr.bf16.mxu0 %v326_v0  ;;  %v328_v2 = vld [vmem:[%s430_s3] sm:$0xff]   ;;  %v330_v4 = vld [vmem:[%s430_s3 + $0x8] sm:$0xff]   ;;  %v332_v6 = vld [vmem:[%s429_s2 + $0x18] sm:$0xff]  }
   0x3   :  { %311 = vmatpush3.bf16.msra.mxu0 %v326_v0  ;;  %302 = vmatprep.subr.bf16.mxu1 %v328_v2  ;;  %v331_v5 = vld [vmem:[%s431_s1] sm:$0xff]   ;;  %v333_v7 = vld [vmem:[%s431_s1 + $0x8] sm:$0xff]  }
   0x4   :  { %312 = vmatprep.subr.bf16.mxu0 %v327_v1  ;;  %303 = vmatpush3.bf16.msra.mxu1 %v328_v2  ;;  %v334_v8 = vld [vmem:[%s432_s0] sm:$0xff]   ;;  %v335_v9 = vld [vmem:[%s432_s0 + $0x8] sm:$0xff]  }
   0x5   :  { %304 = vmatprep.subr.bf16.mxu1 %v330_v4  ;;  %306 = vmatprep.mubr.msk.bf16.mxu1 %vm63_vm0, %v331_v5  ;;  %v283_v15 = vld [vmem:[%s433_s4] ss:$0 sm:$0xff] }
   0x6   :  { %318 = vmatprep.mubr.msk.bf16.mxu0 %vm153_vm1, %v334_v8 }
   0x7   :  { %313 = vmatpush3.bf16.msra.mxu0 %v327_v1 }
   0x8   :  { %314 = vmatprep.subr.bf16.mxu0 %v329_v3  ;;  %305 = vmatpush3.bf16.msra.mxu1 %v330_v4 }
   0xb   :  { %315 = vmatpush3.bf16.msra.mxu0 %v329_v3  ;;  %307 = vmatmul.mubr.msk.bf16.vlgmr.msra.gmra.mrb[0].mxu1 %vm63_vm0, %v333_v7 }
   0xc   :  { %316 = vmatprep.subr.bf16.mxu0 %v332_v6 }
   0xf   :  { %317 = vmatpush3.bf16.msra.mxu0 %v332_v6 }
  0x12   :  { %319 = vmatmul.mubr.msk.bf16.vlgmr.msra.gmra.mrb[0].mxu0 %vm153_vm1, %v335_v9 }
  0xde   :  { %v308_v10 = vpop.f32.mrb[0].mxu1 }
  0xdf   :  { %v104_v11 = vpop.f32.mrb[1].mxu1 }
  0xe0   :  { %v309_v12 = vpop.f32.mrb[2].mxu1 }
  0xe1   :  { %v107_v13 = vpop.f32.mrb[3].mxu1 }
  0xe5   :  { %v320_v14 = vpop.f32.mrb[0].mxu0 }
  0xe6   :  { %v203_v16 = vadd.f32 %v320_v14, %v308_v10  ;;  %v194_v17 = vpop.f32.mrb[1].mxu0 }
  0xe7   :  { %v195_v18 = vadd.f32 %v194_v17, %v104_v11  ;;  %v321_v19 = vpop.f32.mrb[2].mxu0 }
  0xe8   :  { %v218_v20 = vadd.f32 %v283_v15, %v203_v16  ;;  %v206_v21 = vadd.f32 %v321_v19, %v309_v12  ;;  %v197_v22 = vpop.f32.mrb[3].mxu0 }
  0xe9   :  { %v216_v23 = vadd.f32 %v283_v15, %v195_v18  ;;  %v198_v24 = vadd.f32 %v197_v22, %v107_v13 }
  0xea   :  { %v222_v25 = vsub.f32 0.0, %v218_v20  ;;  %v219_v26 = vadd.f32 %v283_v15, %v206_v21 }
  0xeb   :  { %v220_v27 = vsub.f32 0.0, %v216_v23  ;;  %v217_v28 = vadd.f32 %v283_v15, %v198_v24 }
  0xec   :  { %v228_v29 = vmul.f32 1.442695, %v222_v25  ;;  %v223_v30 = vsub.f32 0.0, %v219_v26 }
  0xed   :  { %v224_v31 = vmul.f32 1.442695, %v220_v27  ;;  %v221_v32 = vsub.f32 0.0, %v217_v28 }
  0xee   :  { %336 = vpow2.f32 %v228_v29  ;;  %v230_v33 = vmul.f32 1.442695, %v223_v30 }
  0xef   :  { %338 = vpow2.f32 %v224_v31  ;;  %v226_v34 = vmul.f32 1.442695, %v221_v32 }
  0xf0   :  { %340 = vpow2.f32 %v230_v33 }
  0xf1   :  { %342 = vpow2.f32 %v226_v34 }
  0xf8   :  { %v337_v35 = vpop.eup %336 }
  0xf9   :  { %v339_v36 = vpop.eup %338  ;;  %v234_v37 = vadd.f32 1.0, %v337_v35 }
  0xfa   :  { %v341_v38 = vpop.eup %340  ;;  %v232_v39 = vadd.f32 1.0, %v339_v36 }
  0xfb   :  { %v343_v40 = vpop.eup %342  ;;  %344 = vrcp.f32 %v234_v37  ;;  %v235_v41 = vadd.f32 1.0, %v341_v38 }
  0xfc   :  { %346 = vrcp.f32 %v232_v39  ;;  %v233_v42 = vadd.f32 1.0, %v343_v40 }
  0xfd   :  { %348 = vrcp.f32 %v235_v41 }
  0xfe   :  { %350 = vrcp.f32 %v233_v42 }
 0x105   :  { %v345_v43 = vpop.eup %344 }
 0x106   :  { %v347_v44 = vpop.eup %346  ;;  %v242_v45 = vmul.f32 %v345_v43, %v218_v20 }
 0x107   :  { %v349_v46 = vpop.eup %348  ;;  %v240_v47 = vmul.f32 %v347_v44, %v216_v23 }
 0x108   :  { %v351_v48 = vpop.eup %350  ;;  %v290_v49 = vpack.c.bf16 %v242_v45, %v242_v45  ;;  %v243_v50 = vmul.f32 %v349_v46, %v219_v26 }
 0x109   :  { %v288_v51 = vpack.c.bf16 %v240_v47, %v240_v47  ;;  %v241_v52 = vmul.f32 %v351_v48, %v217_v28 }
 0x10a   :  { %263 = vst.msk [vmem:[%s434_s5 + $0x8] sm:$0xf] %vm260_vm2, %v290_v49  ;;  %v291_v53 = vpack.c.bf16 %v243_v50, %v243_v50 }
 0x10b   :  { %261 = vst.msk [vmem:[%s434_s5] sm:$0xf] %vm260_vm2, %v288_v51  ;;  %v289_v54 = vpack.c.bf16 %v241_v52, %v241_v52 }
 0x10c   :  { %264 = vst.msk [vmem:[%s434_s5 + $0xc] sm:$0xf] %vm260_vm2, %v291_v53 }
 0x10d   :  { %262 = vst.msk [vmem:[%s434_s5 + $0x4] sm:$0xf] %vm260_vm2, %v289_v54 }

// kernel: _lambda_.29
= control target key start
LH: loop header
LB: loop body
LE: loop exit
PB: predicated region body
PF: predicated region fallthrough
CT: control target
= control target key end

     0   :  { %v1784_v0 = vmov 0.0   ;;  %vm1785_vm0 = vmmov 0   ;;  %vm104_vm1 = vsmask.f32 7424  ;;  %vm156_vm2 = vcmask 261120   ;;  %s2352_s2 = inlined_call_operand.vmem [shape: bf16[9,32,32], index: 2, kind: input, shape index: {}]   ;;  %s2353_s0 = inlined_call_operand.vmem [shape: bf16[144,32], index: 0, kind: input, shape index: {}, may-alias: {0,1}]   ;;  %s2354_s1 = inlined_call_operand.vmem [shape: bf16[144,32], index: 1, kind: input, shape index: {}, may-alias: {0,1}]   ;;  %s2355_s3 = inlined_call_operand.vmem [shape: f32[1,32], index: 3, kind: input, shape index: {}]   ;;  %s2356_s4 = inlined_call_operand.vmem [shape: bf16[72,32], index: 4, kind: output, shape index: {}]  }
   0x1   :  { %1497 = vmatprep.subr.bf16.mxu0 %v1784_v0  ;;  %1713 = vmatprep.subr.bf16.mxu1 %v1784_v0  ;;  %v1719_v1 = vld [vmem:[%s2352_s2 + $0x10] sm:$0xff]   ;;  %v1720_v2 = vld [vmem:[%s2352_s2 + $0x18] sm:$0xff]   ;;  %v40_v3 = vld [vmem:[%s2353_s0] sm:$0xf]  ;;  %vm462_vm3 = vcmask 1044480   ;;  %vm344_vm5 = vcmask 1046528  }
   0x2   :  { %1501 = vmatprep.mubr.msk.bf16.mxu0 %vm1785_vm0, %v1784_v0  ;;  %1513 = vmatprep.mubr.msk.bf16.mxu1 %vm1785_vm0, %v1784_v0  ;;  %v41_v4 = vld [vmem:[%s2353_s0 + $0x4] sm:$0xf]  ;;  %v42_v5 = vld [vmem:[%s2353_s0 + $0x8] sm:$0xf]  ;;  %v43_v6 = vld [vmem:[%s2353_s0 + $0xc] sm:$0xf] }
   0x3   :  { %1498 = vmatpush3.bf16.msra.mxu0 %v1719_v1  ;;  %1715 = vmatpush3.bf16.msra.mxu1 %v1719_v1  ;;  %v1837_v7 = vcombine.low %v40_v3, %v41_v4  ;;  %v46_v8 = vld [vmem:[%s2353_s0 + $0x18] sm:$0xf]  ;;  %v47_v9 = vld [vmem:[%s2353_s0 + $0x1c] sm:$0xf]  ;;  %v1845_v10 = vcombine.low %v41_v4, %v42_v5  ;;  %v1847_v11 = vcombine.low %v42_v5, %v43_v6  ;;  %v1852_v12 = vld [vmem:[%s2353_s0 + $0x20] sm:$0xf] }
   0x4   :  { %1499 = vmatprep.subr.bf16.mxu0 %v1784_v0  ;;  %1714 = vmatprep.subr.bf16.mxu1 %v1784_v0  ;;  %v1857_v13 = vld [vmem:[%s2354_s1 + $0x24] sm:$0xf]  ;;  %v1859_v14 = vcombine.low %v46_v8, %v47_v9  ;;  %v44_v26 = vld [vmem:[%s2353_s0 + $0x10] sm:$0xf]  ;;  %v45_v29 = vld [vmem:[%s2353_s0 + $0x14] sm:$0xf]  ;;  %v1916_v43 = vcombine.low %v47_v9, %v1852_v12 }
   0x5   :  { %v106_v15 = vshrl.u32 %v1837_v7, 16  ;;  %v108_v16 = vshll.u32 %v1837_v7, 16  ;;  %v1865_v17 = vcombine.low %v1852_v12, %v1857_v13  ;;  %v113_v18 = vshll.u32 %v1847_v11, 16  ;;  %v1724_v25 = vld [vmem:[%s2352_s2 + $0x20] sm:$0xff]   ;;  %v1728_v40 = vld [vmem:[%s2352_s2 + $0x28] sm:$0xff]   ;;  %v1729_v4 = vld [vmem:[%s2352_s2 + $0x30] sm:$0xff]  }
   0x6   :  { %v129_v19 = vshll.u32 %v1859_v14, 16  ;;  %v133_v20 = vshrl.u32 %v1859_v14, 16  ;;  %v117_v30 = vshrl.u32 %v1847_v11, 16  ;;  %v1889_v32 = vcombine.low %v44_v26, %v45_v29  ;;  %v1725_v34 = vld [vmem:[%s2352_s2] sm:$0xff]   ;;  %v1727_v44 = vld [vmem:[%s2352_s2 + $0x8] sm:$0xff]  }
   0x7   :  { %1500 = vmatpush3.bf16.msra.mxu0 %v1720_v2  ;;  %1716 = vmatpush3.bf16.msra.mxu1 %v1720_v2  ;;  %v110_v21 = vrot.slane %v108_v16, 1  ;;  %v137_v22 = vshll.u32 %v1865_v17, 16  ;;  %v115_v23 = vrot.slane %v113_v18, 1  ;;  %v1898_v37 = vcombine.low %v43_v6, %v44_v26 }
   0x8   :  { %1545 = vmatprep.subr.bf16.mxu0 %v1784_v0  ;;  %1521 = vmatprep.subr.bf16.mxu1 %v1784_v0  ;;  %v131_v24 = vrot.slane %v129_v19, 1  ;;  %v121_v36 = vshll.u32 %v1889_v32, 16  ;;  %v141_v39 = vshrl.u32 %v1865_v17, 16  ;;  %v1907_v41 = vcombine.low %v45_v29, %v46_v8 }
   0x9   :  { %v111_v27 = vor.u32 %v110_v21, %v106_v15  ;;  %v139_v28 = vrot.slane %v137_v22, 1  ;;  %v119_v38 = vor.u32 %v117_v30, %v115_v23  ;;  %v125_v45 = vshrl.u32 %v1889_v32, 16 }
   0xa   :  { %v135_v31 = vor.u32 %v133_v20, %v131_v24  ;;  %v123_v42 = vrot.slane %v121_v36, 1  ;;  %v345_v48 = vrot.slane %v1837_v7, 1  ;;  %v468_v49 = vrot.slane %v1859_v14, 3 }
   0xb   :  { %v116_v33 = vsel %vm104_vm1, %v111_v27, %v115_v23  ;;  %v143_v47 = vor.u32 %v141_v39, %v139_v28  ;;  %v470_v50 = vrot.slane %v1865_v17, 3  ;;  %v592_v52 = vrot.slane %v133_v20, 3 }
   0xc   :  { %1502 = vmatmul.mubr.msk.bf16.vlgmr.msra.gmra.mrb[0].mxu0 %vm156_vm2, %v116_v33  ;;  %v140_v35 = vsel %vm104_vm1, %v135_v31, %v139_v28  ;;  %v124_v46 = vsel %vm104_vm1, %v119_v38, %v123_v42  ;;  %v127_v51 = vor.u32 %v125_v45, %v123_v42  ;;  %v593_v53 = vrot.slane %v129_v19, 4  ;;  %v1339_v19 = vld [vmem:[%s2354_s1 + $0x28] sm:$0xf]  ;;  %v1731_v38 = vld [vmem:[%s2352_s2 + $0x38] sm:$0xff]  }
   0xd   :  { %1514 = vmatmul.mubr.msk.bf16.vlgmr.msra.gmra.mrb[0].mxu1 %vm156_vm2, %v140_v35  ;;  %1546 = vmatpush3.bf16.msra.mxu0 %v1724_v25  ;;  %vm580_vm4 = vsmask.f32 4352  ;;  %v1941_v54 = vsel %vm462_vm3, %v468_v49, %v470_v50  ;;  %v596_v55 = vrot.slane %v141_v39, 3  ;;  %v597_v56 = vrot.slane %v137_v22, 4 }
   0xe   :  { %1505 = vmatprep.mubr.msk.bf16.mxu0 %vm1785_vm0, %v1784_v0  ;;  %1517 = vmatprep.mubr.msk.bf16.mxu1 %vm1785_vm0, %v1784_v0  ;;  %v1945_v57 = vor.u32 %v593_v53, %v592_v52  ;;  %vm827_vm6 = vcmask 1045504   ;;  %v828_v58 = vrot.slane %v1845_v10, 2  ;;  %v829_v59 = vrot.slane %v1898_v37, 2 }
   0xf   :  { %1522 = vmatpush3.bf16.msra.mxu1 %v1725_v34  ;;  %1547 = vmatprep.subr.bf16.mxu0 %v1784_v0  ;;  %v1949_v60 = vor.u32 %v597_v56, %v596_v55  ;;  %v831_v61 = vrot.slane %v1907_v41, 2  ;;  %v833_v62 = vrot.slane %v1916_v43, 2  ;;  %v132_v63 = vsel %vm104_vm1, %v127_v51, %v131_v24  ;;  %v1730_v56 = vld [vmem:[%s2352_s2 + $0x40] sm:$0xff]  }
  0x10   :  { %1523 = vmatprep.subr.bf16.mxu1 %v1784_v0  ;;  %v346_v1 = vrot.slane %v1847_v11, 1  ;;  %v1956_v2 = vsel %vm827_vm6, %v828_v58, %v829_v59  ;;  %v946_v3 = vshrl.u32 %v1845_v10, 16  ;;  %v949_v9 = vshll.u32 %v1845_v10, 16 }
  0x11   :  { %1548 = vmatpush3.bf16.msra.mxu0 %v1728_v40  ;;  %v1965_v5 = vsel %vm580_vm4, %v1945_v57, %v1949_v60  ;;  %v1968_v6 = vsel %vm827_vm6, %v829_v59, %v831_v61  ;;  %v1971_v8 = vsel %vm827_vm6, %v831_v61, %v833_v62  ;;  %vm945_vm7 = vsmask.f32 5376 }
  0x12   :  { %1593 = vmatprep.subr.bf16.mxu0 %v1784_v0  ;;  %v948_v20 = vrot.slane %v946_v3, 2  ;;  %v953_v21 = vshrl.u32 %v1898_v37, 16  ;;  %v1979_v22 = vcombine.low %v1857_v13, %v1339_v19  ;;  %v951_v23 = vrot.slane %v949_v9, 3 }
  0x13   :  { %1524 = vmatpush3.bf16.msra.mxu1 %v1727_v44  ;;  %v956_v24 = vshll.u32 %v1898_v37, 16  ;;  %v961_v25 = vshrl.u32 %v1907_v41, 16  ;;  %v964_v27 = vshll.u32 %v1907_v41, 16  ;;  %v1094_v28 = vrot.slane %v1845_v10, 3 }
  0x14   :  { %1506 = vmatmul.mubr.msk.bf16.gmra.mrb[4].mxu0 %vm156_vm2, %v124_v46  ;;  %1569 = vmatprep.subr.bf16.mxu1 %v1784_v0  ;;  %v955_v26 = vrot.slane %v953_v21, 2  ;;  %v1095_v29 = vrot.slane %v1898_v37, 3  ;;  %v835_v31 = vrot.slane %v1979_v22, 2  ;;  %v952_v33 = vor.u32 %v951_v23, %v948_v20 }
  0x15   :  { %1518 = vmatmul.mubr.msk.bf16.gmra.mrb[4].mxu1 %vm156_vm2, %v143_v47  ;;  %1509 = vmatprep.mubr.msk.bf16.mxu0 %vm1785_vm0, %v1784_v0  ;;  %v958_v34 = vrot.slane %v956_v24, 3  ;;  %v963_v35 = vrot.slane %v961_v25, 2  ;;  %v966_v39 = vrot.slane %v964_v27, 3  ;;  %v969_v42 = vshrl.u32 %v1916_v43, 16 }
  0x16   :  { %1525 = vmatprep.mubr.msk.bf16.mxu1 %vm1785_vm0, %v1784_v0  ;;  %v1998_v40 = vsel %vm462_vm3, %v1094_v28, %v1095_v29  ;;  %v972_v44 = vshll.u32 %v1916_v43, 16  ;;  %v2006_v46 = vsel %vm827_vm6, %v833_v62, %v835_v31  ;;  %v347_v55 = vsel %vm344_vm5, %v345_v48, %v346_v1 }
  0x17   :  { %v959_v47 = vor.u32 %v958_v34, %v955_v26  ;;  %v967_v51 = vor.u32 %v966_v39, %v963_v35  ;;  %v971_v52 = vrot.slane %v969_v42, 2  ;;  %v1097_v62 = vrot.slane %v1907_v41, 3 }
  0x18   :  { %v974_v53 = vrot.slane %v972_v44, 3  ;;  %v348_v3 = vrot.slane %v1889_v32, 1  ;;  %v978_v9 = vshrl.u32 %v1979_v22, 16  ;;  %v981_v19 = vshll.u32 %v1979_v22, 16 }
  0x19   :  { %v2017_v58 = vsel %vm945_vm7, %v952_v33, %v959_v47  ;;  %v2020_v59 = vsel %vm945_vm7, %v959_v47, %v967_v51  ;;  %v1099_v25 = vrot.slane %v1916_v43, 3  ;;  %v352_v34 = vrot.slane %v1865_v17, 1  ;;  %v1744_v17 = vld [vmem:[%s2352_s2 + $0x78] sm:$0xff]  }
  0x1a   :  { %v975_v61 = vor.u32 %v974_v53, %v971_v52  ;;  %v980_v20 = vrot.slane %v978_v9, 2  ;;  %v983_v21 = vrot.slane %v981_v19, 3  ;;  %v349_v23 = vsel %vm344_vm5, %v346_v1, %v348_v3  ;;  %v1734_v53 = vld [vmem:[%s2352_s2 + $0x50] sm:$0xff]  }
  0x1b   :  { %v2057_v27 = vsel %vm462_vm3, %v1097_v62, %v1099_v25  ;;  %v350_v1 = vrot.slane %v1859_v14, 1  ;;  %v1344_v35 = vcombine.low %v1852_v12, %v1852_v12  ;;  %v463_v39 = vrot.slane %v1837_v7, 3 }
  0x1c   :  { %1510 = vmatmul.mubr.msk.bf16.gmra.mrb[8].mxu0 %vm156_vm2, %v132_v63  ;;  %v2026_v48 = vsel %vm945_vm7, %v967_v51, %v975_v61  ;;  %v2029_v63 = vsel %vm462_vm3, %v1095_v29, %v1097_v62  ;;  %v2048_v24 = vor.u32 %v983_v21, %v980_v20  ;;  %v1101_v29 = vrot.slane %v1979_v22, 3 }
  0x1d   :  { %1526 = vmatmul.mubr.msk.bf16.vlgmr.msra.gmra.mrb[8].mxu1 %vm156_vm2, %v1837_v7  ;;  %1549 = vmatprep.mubr.msk.bf16.mxu0 %vm1785_vm0, %v1784_v0  ;;  %v351_v28 = vsel %vm344_vm5, %v348_v3, %v350_v1  ;;  %v464_v42 = vrot.slane %v1847_v11, 3  ;;  %v581_v44 = vrot.slane %v106_v15, 3  ;;  %v582_v12 = vrot.slane %v108_v16, 4  ;;  %v1736_v16 = vld [vmem:[%s2352_s2 + $0x58] sm:$0xff]   ;;  %v1737_v3 = vld [vmem:[%s2352_s2 + $0x68] sm:$0xff]  }
  0x1e   :  { %1529 = vmatprep.mubr.msk.bf16.mxu1 %vm1785_vm0, %v1784_v0  ;;  %1570 = vmatpush3.bf16.msra.mxu1 %v1729_v4  ;;  %v1732_v4 = vld [vmem:[%s2352_s2 + $0x48] sm:$0xff]   ;;  %v2054_v26 = vsel %vm945_vm7, %v975_v61, %v2048_v24  ;;  %v2072_v33 = vsel %vm462_vm3, %v1099_v25, %v1101_v29  ;;  %v585_v47 = vrot.slane %v113_v18, 4  ;;  %v584_v51 = vrot.slane %v117_v30, 3  ;;  %v1735_v30 = vld [vmem:[%s2352_s2 + $0x60] sm:$0xff]  }
  0x1f   :  { %1571 = vmatprep.subr.bf16.mxu1 %v1784_v0  ;;  %v465_v52 = vsel %vm462_vm3, %v463_v39, %v464_v42  ;;  %v583_v7 = vor.u32 %v582_v12, %v581_v44  ;;  %vm1318_vm8 = vcmask 257024  }
  0x20   :  { %v586_v15 = vor.u32 %v585_v47, %v584_v51 }
  0x22   :  { %1572 = vmatpush3.bf16.msra.mxu1 %v1731_v38  ;;  %v353_v38 = vsel %vm344_vm5, %v350_v1, %v352_v34  ;;  %v587_v18 = vsel %vm580_vm4, %v583_v7, %v586_v15 }
  0x23   :  { %1617 = vmatprep.subr.bf16.mxu1 %v1784_v0 }
  0x24   :  { %1550 = vmatmul.mubr.msk.bf16.vlgmr.msra.gmra.mrb[12].mxu0 %vm156_vm2, %v347_v55  ;;  %v588_v55 = vrot.slane %v125_v45, 3 }
  0x25   :  { %1530 = vmatmul.mubr.msk.bf16.gmra.mrb[12].mxu1 %vm156_vm2, %v1847_v11  ;;  %1594 = vmatpush3.bf16.msra.mxu0 %v1730_v56  ;;  %v466_v11 = vrot.slane %v1889_v32, 3  ;;  %v589_v56 = vrot.slane %v121_v36, 4 }
  0x26   :  { %1533 = vmatprep.mubr.msk.bf16.mxu1 %vm1785_vm0, %v1784_v0  ;;  %1553 = vmatprep.mubr.msk.bf16.mxu0 %vm1785_vm0, %v1784_v0 }
  0x27   :  { %1595 = vmatprep.subr.bf16.mxu0 %v1784_v0  ;;  %v467_v61 = vsel %vm462_vm3, %v464_v42, %v466_v11  ;;  %v590_v62 = vor.u32 %v589_v56, %v588_v55  ;;  %v469_v36 = vsel %vm462_vm3, %v466_v11, %v468_v49  ;;  %v1741_v49 = vld [vmem:[%s2352_s2 + $0x80] sm:$0xff]  }
  0x29   :  { %1596 = vmatpush3.bf16.msra.mxu0 %v1732_v4  ;;  %v595_v45 = vsel %vm580_vm4, %v590_v62, %v1945_v57 }
  0x2a   :  { %1641 = vmatprep.subr.bf16.mxu0 %v1784_v0 }
  0x2c   :  { %1554 = vmatmul.mubr.msk.bf16.gmra.mrb[16].mxu0 %vm156_vm2, %v349_v23 }
  0x2d   :  { %1534 = vmatmul.mubr.msk.bf16.gmra.mrb[16].mxu1 %vm156_vm2, %v1889_v32  ;;  %1557 = vmatprep.mubr.msk.bf16.mxu0 %vm1785_vm0, %v1784_v0  ;;  %v591_v32 = vsel %vm580_vm4, %v586_v15, %v590_v62 }
  0x2e   :  { %1537 = vmatprep.mubr.msk.bf16.mxu1 %vm1785_vm0, %v1784_v0 }
  0x34   :  { %1558 = vmatmul.mubr.msk.bf16.gmra.mrb[20].mxu0 %vm156_vm2, %v351_v28 }
  0x35   :  { %1538 = vmatmul.mubr.msk.bf16.gmra.mrb[20].mxu1 %vm156_vm2, %v1859_v14  ;;  %1561 = vmatprep.mubr.msk.bf16.mxu0 %vm1785_vm0, %v1784_v0  ;;  %v1739_v14 = vld [vmem:[%s2352_s2 + $0x70] sm:$0xff]  }
  0x36   :  { %1541 = vmatprep.mubr.msk.bf16.mxu1 %vm1785_vm0, %v1784_v0 }
  0x3c   :  { %1562 = vmatmul.mubr.msk.bf16.gmra.mrb[24].mxu0 %vm156_vm2, %v353_v38 }
  0x3d   :  { %1542 = vmatmul.mubr.msk.bf16.gmra.mrb[24].mxu1 %vm156_vm2, %v1344_v35  ;;  %1565 = vmatprep.mubr.msk.bf16.mxu0 %vm1785_vm0, %v1784_v0 }
  0x3e   :  { %1573 = vmatprep.mubr.msk.bf16.mxu1 %vm1785_vm0, %v1784_v0 }
  0x44   :  { %1566 = vmatmul.mubr.msk.bf16.gmra.mrb[28].mxu0 %vm156_vm2, %v352_v34 }
  0x45   :  { %1574 = vmatmul.mubr.msk.bf16.vlgmr.msra.gmra.mrb[28].mxu1 %vm156_vm2, %v465_v52  ;;  %1597 = vmatprep.mubr.msk.bf16.mxu0 %vm1785_vm0, %v1784_v0 }
  0x46   :  { %1577 = vmatprep.mubr.msk.bf16.mxu1 %vm1785_vm0, %v1784_v0  ;;  %1618 = vmatpush3.bf16.msra.mxu1 %v1734_v53 }
  0x47   :  { %1619 = vmatprep.subr.bf16.mxu1 %v1784_v0 }
  0x4a   :  { %1620 = vmatpush3.bf16.msra.mxu1 %v1736_v16 }
  0x4b   :  { %1665 = vmatprep.subr.bf16.mxu1 %v1784_v0 }
  0x4c   :  { %1598 = vmatmul.mubr.msk.bf16.vlgmr.msra.gmra.mrb[32].mxu0 %vm156_vm2, %v587_v18 }
  0x4d   :  { %1578 = vmatmul.mubr.msk.bf16.gmra.mrb[32].mxu1 %vm156_vm2, %v467_v61  ;;  %1642 = vmatpush3.bf16.msra.mxu0 %v1735_v30 }
  0x4e   :  { %1581 = vmatprep.mubr.msk.bf16.mxu1 %vm1785_vm0, %v1784_v0  ;;  %1601 = vmatprep.mubr.msk.bf16.mxu0 %vm1785_vm0, %v1784_v0 }
  0x4f   :  { %1643 = vmatprep.subr.bf16.mxu0 %v1784_v0 }
  0x51   :  { %1644 = vmatpush3.bf16.msra.mxu0 %v1737_v3 }
  0x52   :  { %1689 = vmatprep.subr.bf16.mxu0 %v1784_v0 }
  0x54   :  { %1602 = vmatmul.mubr.msk.bf16.gmra.mrb[36].mxu0 %vm156_vm2, %v591_v32 }
  0x55   :  { %1582 = vmatmul.mubr.msk.bf16.gmra.mrb[36].mxu1 %vm156_vm2, %v469_v36  ;;  %1605 = vmatprep.mubr.msk.bf16.mxu0 %vm1785_vm0, %v1784_v0 }
  0x56   :  { %1585 = vmatprep.mubr.msk.bf16.mxu1 %vm1785_vm0, %v1784_v0 }
  0x5c   :  { %1606 = vmatmul.mubr.msk.bf16.gmra.mrb[40].mxu0 %vm156_vm2, %v595_v45 }
  0x5d   :  { %1586 = vmatmul.mubr.msk.bf16.gmra.mrb[40].mxu1 %vm156_vm2, %v1941_v54  ;;  %1609 = vmatprep.mubr.msk.bf16.mxu0 %vm1785_vm0, %v1784_v0 }
  0x5e   :  { %1589 = vmatprep.mubr.msk.bf16.mxu1 %vm1785_vm0, %v1784_v0 }
  0x64   :  { %1610 = vmatmul.mubr.msk.bf16.gmra.mrb[44].mxu0 %vm156_vm2, %v1965_v5 }
  0x65   :  { %1590 = vmatmul.mubr.msk.bf16.gmra.mrb[44].mxu1 %vm156_vm2, %v470_v50  ;;  %1613 = vmatprep.mubr.msk.bf16.mxu0 %vm1785_vm0, %v1784_v0 }
  0x66   :  { %1621 = vmatprep.mubr.msk.bf16.mxu1 %vm1785_vm0, %v1784_v0 }
  0x6c   :  { %1614 = vmatmul.mubr.msk.bf16.gmra.mrb[48].mxu0 %vm156_vm2, %v1949_v60 }
  0x6d   :  { %1622 = vmatmul.mubr.msk.bf16.vlgmr.msra.gmra.mrb[48].mxu1 %vm156_vm2, %v1845_v10  ;;  %1645 = vmatprep.mubr.msk.bf16.mxu0 %vm1785_vm0, %v1784_v0  ;;  %v1745_v10 = vld [vmem:[%s2352_s2 + $0x88] sm:$0xff]  }
  0x6e   :  { %1625 = vmatprep.mubr.msk.bf16.mxu1 %vm1785_vm0, %v1784_v0  ;;  %1666 = vmatpush3.bf16.msra.mxu1 %v1739_v14 }
  0x6f   :  { %1667 = vmatprep.subr.bf16.mxu1 %v1784_v0 }
  0x72   :  { %1668 = vmatpush3.bf16.msra.mxu1 %v1744_v17 }
  0x74   :  { %1646 = vmatmul.mubr.msk.bf16.vlgmr.msra.gmra.mrb[52].mxu0 %vm156_vm2, %v1956_v2 }
  0x75   :  { %1626 = vmatmul.mubr.msk.bf16.gmra.mrb[52].mxu1 %vm156_vm2, %v1898_v37  ;;  %1690 = vmatpush3.bf16.msra.mxu0 %v1741_v49  ;;  %v1385_v37 = vcombine.low %v1857_v13, %v1857_v13 }
  0x76   :  { %1629 = vmatprep.mubr.msk.bf16.mxu1 %vm1785_vm0, %v1784_v0  ;;  %1649 = vmatprep.mubr.msk.bf16.mxu0 %vm1785_vm0, %v1784_v0 }
  0x77   :  { %1691 = vmatprep.subr.bf16.mxu0 %v1784_v0 }
  0x79   :  { %1692 = vmatpush3.bf16.msra.mxu0 %v1745_v10 }
  0x7c   :  { %1650 = vmatmul.mubr.msk.bf16.gmra.mrb[56].mxu0 %vm156_vm2, %v1968_v6 }
  0x7d   :  { %1630 = vmatmul.mubr.msk.bf16.gmra.mrb[56].mxu1 %vm156_vm2, %v1907_v41  ;;  %1653 = vmatprep.mubr.msk.bf16.mxu0 %vm1785_vm0, %v1784_v0 }
  0x7e   :  { %1633 = vmatprep.mubr.msk.bf16.mxu1 %vm1785_vm0, %v1784_v0 }
  0x84   :  { %1654 = vmatmul.mubr.msk.bf16.gmra.mrb[60].mxu0 %vm156_vm2, %v1971_v8 }
  0x85   :  { %1634 = vmatmul.mubr.msk.bf16.gmra.mrb[60].mxu1 %vm156_vm2, %v1916_v43  ;;  %1657 = vmatprep.mubr.msk.bf16.mxu0 %vm1785_vm0, %v1784_v0 }
  0x86   :  { %1637 = vmatprep.mubr.msk.bf16.mxu1 %vm1785_vm0, %v1784_v0 }
  0x8c   :  { %1658 = vmatmul.mubr.msk.bf16.gmra.mrb[64].mxu0 %vm156_vm2, %v2006_v46 }
  0x8d   :  { %1638 = vmatmul.mubr.msk.bf16.gmra.mrb[64].mxu1 %vm156_vm2, %v1385_v37  ;;  %1661 = vmatprep.mubr.msk.bf16.mxu0 %vm1785_vm0, %v1784_v0 }
  0x8e   :  { %1669 = vmatprep.mubr.msk.bf16.mxu1 %vm1785_vm0, %v1784_v0 }
  0x94   :  { %1662 = vmatmul.mubr.msk.bf16.gmra.mrb[68].mxu0 %vm156_vm2, %v835_v31 }
  0x95   :  { %1670 = vmatmul.mubr.msk.bf16.vlgmr.msra.gmra.mrb[68].mxu1 %vm156_vm2, %v2017_v58  ;;  %1693 = vmatprep.mubr.msk.bf16.mxu0 %vm1785_vm0, %v1784_v0 }
  0x96   :  { %1673 = vmatprep.mubr.msk.bf16.mxu1 %vm1785_vm0, %v1784_v0 }
  0x9c   :  { %1694 = vmatmul.mubr.msk.bf16.vlgmr.msra.gmra.mrb[72].mxu0 %vm156_vm2, %v1998_v40 }
  0x9d   :  { %1674 = vmatmul.mubr.msk.bf16.gmra.mrb[72].mxu1 %vm156_vm2, %v2020_v59  ;;  %1697 = vmatprep.mubr.msk.bf16.mxu0 %vm1785_vm0, %v1784_v0 }
  0x9e   :  { %1677 = vmatprep.mubr.msk.bf16.mxu1 %vm1785_vm0, %v1784_v0 }
  0xa4   :  { %1698 = vmatmul.mubr.msk.bf16.gmra.mrb[76].mxu0 %vm156_vm2, %v2029_v63 }
  0xa5   :  { %1678 = vmatmul.mubr.msk.bf16.gmra.mrb[76].mxu1 %vm156_vm2, %v2026_v48  ;;  %1701 = vmatprep.mubr.msk.bf16.mxu0 %vm1785_vm0, %v1784_v0 }
  0xa6   :  { %1681 = vmatprep.mubr.msk.bf16.mxu1 %vm1785_vm0, %v1784_v0 }
  0xac   :  { %1702 = vmatmul.mubr.msk.bf16.gmra.mrb[80].mxu0 %vm156_vm2, %v2057_v27 }
  0xad   :  { %1682 = vmatmul.mubr.msk.bf16.gmra.mrb[80].mxu1 %vm156_vm2, %v2054_v26  ;;  %1705 = vmatprep.mubr.msk.bf16.mxu0 %vm1785_vm0, %v1784_v0 }
  0xae   :  { %1685 = vmatprep.mubr.msk.bf16.mxu1 %vm1785_vm0, %v1784_v0 }
  0xb4   :  { %1706 = vmatmul.mubr.msk.bf16.gmra.mrb[84].mxu0 %vm156_vm2, %v2072_v33 }
  0xb5   :  { %1686 = vmatmul.mubr.msk.bf16.gmra.mrb[84].mxu1 %vm156_vm2, %v2048_v24  ;;  %1709 = vmatprep.mubr.msk.bf16.mxu0 %vm1785_vm0, %v1784_v0 }
  0xbc   :  { %1710 = vmatmul.mubr.msk.bf16.gmra.mrb[88].mxu0 %vm156_vm2, %v1101_v29 }
  0xdf   :  { %v206_v13 = vpop.f32.mrb[0].mxu0 }
  0xe0   :  { %v1503_v41 = vpop.f32.mrb[1].mxu0  ;;  %v230_v43 = vpop.f32.mrb[0].mxu1 }
  0xe1   :  { %v209_v50 = vpop.f32.mrb[2].mxu0  ;;  %v1515_v54 = vpop.f32.mrb[1].mxu1 }
  0xe2   :  { %v1504_v57 = vpop.f32.mrb[3].mxu0  ;;  %v233_v60 = vpop.f32.mrb[2].mxu1 }
  0xe3   :  { %v1516_v2 = vpop.f32.mrb[3].mxu1 }
  0xe7   :  { %v214_v5 = vpop.f32.mrb[4].mxu0 }
  0xe8   :  { %v1507_v6 = vpop.f32.mrb[5].mxu0  ;;  %v238_v8 = vpop.f32.mrb[4].mxu1 }
  0xe9   :  { %v217_v31 = vpop.f32.mrb[6].mxu0  ;;  %v1519_v40 = vpop.f32.mrb[5].mxu1 }
  0xea   :  { %v1508_v46 = vpop.f32.mrb[7].mxu0  ;;  %v241_v58 = vpop.f32.mrb[6].mxu1 }
  0xeb   :  { %v1520_v0 = vpop.f32.mrb[7].mxu1 }
  0xef   :  { %v222_v59 = vpop.f32.mrb[8].mxu0 }
  0xf0   :  { %v301_v22 = vpop.f32.mrb[8].mxu1  ;;  %v1511_v48 = vpop.f32.mrb[9].mxu0 }
  0xf1   :  { %v302_v63 = vadd.f32 %v301_v22, %v206_v13  ;;  %v1527_v4 = vpop.f32.mrb[9].mxu1  ;;  %v225_v9 = vpop.f32.mrb[10].mxu0 }
  0xf2   :  { %v304_v19 = vpop.f32.mrb[10].mxu1  ;;  %v1512_v20 = vpop.f32.mrb[11].mxu0 }
  0xf3   :  { %v305_v21 = vadd.f32 %v304_v19, %v209_v50  ;;  %v1528_v23 = vpop.f32.mrb[11].mxu1 }
  0xf7   :  { %v415_v24 = vpop.f32.mrb[12].mxu0 }
  0xf8   :  { %v309_v25 = vpop.f32.mrb[12].mxu1  ;;  %v453_v26 = vadd.f32 %v415_v24, %v302_v63  ;;  %v1551_v27 = vpop.f32.mrb[13].mxu0 }
  0xf9   :  { %v310_v1 = vadd.f32 %v309_v25, %v214_v5  ;;  %v1531_v28 = vpop.f32.mrb[13].mxu1  ;;  %v418_v29 = vpop.f32.mrb[14].mxu0 }
  0xfa   :  { %v312_v33 = vpop.f32.mrb[14].mxu1  ;;  %v454_v34 = vadd.f32 %v418_v29, %v305_v21  ;;  %v1552_v35 = vpop.f32.mrb[15].mxu0 }
  0xfb   :  { %v313_v38 = vadd.f32 %v312_v33, %v217_v31  ;;  %v1532_v39 = vpop.f32.mrb[15].mxu1 }
  0xff   :  { %v423_v42 = vpop.f32.mrb[16].mxu0 }
 0x100   :  { %v317_v44 = vpop.f32.mrb[16].mxu1  ;;  %v455_v12 = vadd.f32 %v423_v42, %v310_v1  ;;  %v1555_v47 = vpop.f32.mrb[17].mxu0 }
 0x101   :  { %v318_v51 = vadd.f32 %v317_v44, %v222_v59  ;;  %v1535_v52 = vpop.f32.mrb[17].mxu1  ;;  %v426_v53 = vpop.f32.mrb[18].mxu0 }
 0x102   :  { %v320_v7 = vpop.f32.mrb[18].mxu1  ;;  %v456_v15 = vadd.f32 %v426_v53, %v313_v38  ;;  %v1556_v11 = vpop.f32.mrb[19].mxu0 }
 0x103   :  { %v321_v16 = vadd.f32 %v320_v7, %v225_v9  ;;  %v1536_v18 = vpop.f32.mrb[19].mxu1 }
 0x107   :  { %v431_v30 = vpop.f32.mrb[20].mxu0 }
 0x108   :  { %v325_v55 = vpop.f32.mrb[20].mxu1  ;;  %v457_v56 = vadd.f32 %v431_v30, %v318_v51  ;;  %v1559_v61 = vpop.f32.mrb[21].mxu0 }
 0x109   :  { %v326_v62 = vadd.f32 %v325_v55, %v230_v43  ;;  %v1539_v3 = vpop.f32.mrb[21].mxu1  ;;  %v434_v32 = vpop.f32.mrb[22].mxu0 }
 0x10a   :  { %v328_v36 = vpop.f32.mrb[22].mxu1  ;;  %v458_v45 = vadd.f32 %v434_v32, %v321_v16  ;;  %v1560_v14 = vpop.f32.mrb[23].mxu0 }
 0x10b   :  { %v329_v17 = vadd.f32 %v328_v36, %v233_v60  ;;  %v1540_v49 = vpop.f32.mrb[23].mxu1 }
 0x10f   :  { %v439_v10 = vpop.f32.mrb[24].mxu0 }
 0x110   :  { %v333_v37 = vpop.f32.mrb[24].mxu1  ;;  %v459_v13 = vadd.f32 %v439_v10, %v326_v62  ;;  %v1563_v41 = vpop.f32.mrb[25].mxu0 }
 0x111   :  { %v334_v50 = vadd.f32 %v333_v37, %v238_v8  ;;  %v442_v54 = vpop.f32.mrb[26].mxu0  ;;  %v1543_v57 = vpop.f32.mrb[25].mxu1 }
 0x112   :  { %v460_v2 = vadd.f32 %v442_v54, %v329_v17  ;;  %v1564_v5 = vpop.f32.mrb[27].mxu0  ;;  %v336_v6 = vpop.f32.mrb[26].mxu1 }
 0x113   :  { %v1544_v31 = vpop.f32.mrb[27].mxu1 }
 0x117   :  { %v447_v40 = vpop.f32.mrb[28].mxu0 }
 0x118   :  { %v461_v43 = vadd.f32 %v447_v40, %v334_v50  ;;  %v533_v46 = vpop.f32.mrb[28].mxu1  ;;  %v1567_v58 = vpop.f32.mrb[29].mxu0 }
 0x119   :  { %v571_v0 = vadd.f32 %v533_v46, %v453_v26  ;;  %v1575_v59 = vpop.f32.mrb[29].mxu1  ;;  %v450_v22 = vpop.f32.mrb[30].mxu0 }
 0x11a   :  { %v536_v60 = vpop.f32.mrb[30].mxu1  ;;  %v1568_v48 = vpop.f32.mrb[31].mxu0 }
 0x11b   :  { %v572_v63 = vadd.f32 %v536_v60, %v454_v34  ;;  %v1576_v4 = vpop.f32.mrb[31].mxu1 }
 0x11f   :  { %v661_v9 = vpop.f32.mrb[32].mxu0 }
 0x120   :  { %v541_v19 = vpop.f32.mrb[32].mxu1  ;;  %v699_v8 = vadd.f32 %v661_v9, %v571_v0  ;;  %v1599_v20 = vpop.f32.mrb[33].mxu0 }
 0x121   :  { %v573_v21 = vadd.f32 %v541_v19, %v455_v12  ;;  %v1579_v23 = vpop.f32.mrb[33].mxu1  ;;  %v664_v24 = vpop.f32.mrb[34].mxu0 }
 0x122   :  { %v544_v25 = vpop.f32.mrb[34].mxu1  ;;  %v700_v27 = vadd.f32 %v664_v24, %v572_v63  ;;  %v1600_v1 = vpop.f32.mrb[35].mxu0 }
 0x123   :  { %v574_v28 = vadd.f32 %v544_v25, %v456_v15  ;;  %v1580_v29 = vpop.f32.mrb[35].mxu1 }
 0x127   :  { %v669_v33 = vpop.f32.mrb[36].mxu0 }
 0x128   :  { %v549_v26 = vpop.f32.mrb[36].mxu1  ;;  %v701_v35 = vadd.f32 %v669_v33, %v573_v21  ;;  %v1603_v38 = vpop.f32.mrb[37].mxu0 }
 0x129   :  { %v575_v39 = vadd.f32 %v549_v26, %v457_v56  ;;  %v1583_v42 = vpop.f32.mrb[37].mxu1  ;;  %v672_v34 = vpop.f32.mrb[38].mxu0 }
 0x12a   :  { %v552_v44 = vpop.f32.mrb[38].mxu1  ;;  %v702_v47 = vadd.f32 %v672_v34, %v574_v28  ;;  %v1604_v51 = vpop.f32.mrb[39].mxu0 }
 0x12b   :  { %v576_v52 = vadd.f32 %v552_v44, %v458_v45  ;;  %v1584_v53 = vpop.f32.mrb[39].mxu1 }
 0x12f   :  { %v677_v12 = vpop.f32.mrb[40].mxu0 }
 0x130   :  { %v557_v7 = vpop.f32.mrb[40].mxu1  ;;  %v703_v11 = vadd.f32 %v677_v12, %v575_v39  ;;  %v1607_v16 = vpop.f32.mrb[41].mxu0 }
 0x131   :  { %v577_v18 = vadd.f32 %v557_v7, %v459_v13  ;;  %v1587_v30 = vpop.f32.mrb[41].mxu1  ;;  %v680_v15 = vpop.f32.mrb[42].mxu0 }
 0x132   :  { %v560_v55 = vpop.f32.mrb[42].mxu1  ;;  %v704_v61 = vadd.f32 %v680_v15, %v576_v52  ;;  %v1608_v62 = vpop.f32.mrb[43].mxu0 }
 0x133   :  { %v578_v3 = vadd.f32 %v560_v55, %v460_v2  ;;  %v1588_v32 = vpop.f32.mrb[43].mxu1 }
 0x137   :  { %v685_v56 = vpop.f32.mrb[44].mxu0 }
 0x138   :  { %v565_v36 = vpop.f32.mrb[44].mxu1  ;;  %v705_v14 = vadd.f32 %v685_v56, %v577_v18  ;;  %v1611_v17 = vpop.f32.mrb[45].mxu0 }
 0x139   :  { %v579_v49 = vadd.f32 %v565_v36, %v461_v43  ;;  %v688_v10 = vpop.f32.mrb[46].mxu0  ;;  %v1591_v45 = vpop.f32.mrb[45].mxu1 }
 0x13a   :  { %v706_v37 = vadd.f32 %v688_v10, %v578_v3  ;;  %v1612_v41 = vpop.f32.mrb[47].mxu0  ;;  %v568_v50 = vpop.f32.mrb[46].mxu1 }
 0x13b   :  { %v1592_v54 = vpop.f32.mrb[47].mxu1 }
 0x13f   :  { %v693_v57 = vpop.f32.mrb[48].mxu0 }
 0x140   :  { %v707_v13 = vadd.f32 %v693_v57, %v579_v49  ;;  %v774_v5 = vpop.f32.mrb[48].mxu1  ;;  %v1615_v6 = vpop.f32.mrb[49].mxu0 }
 0x141   :  { %v812_v31 = vadd.f32 %v774_v5, %v699_v8  ;;  %v1623_v40 = vpop.f32.mrb[49].mxu1  ;;  %v696_v46 = vpop.f32.mrb[50].mxu0 }
 0x142   :  { %v777_v2 = vpop.f32.mrb[50].mxu1  ;;  %v1616_v58 = vpop.f32.mrb[51].mxu0  ;;  %v2270_v46 = vld [vmem:[%s2355_s3] ss:$0 sm:$0xff] }
 0x143   :  { %v813_v0 = vadd.f32 %v777_v2, %v700_v27  ;;  %v1624_v59 = vpop.f32.mrb[51].mxu1 }
 0x147   :  { %v898_v22 = vpop.f32.mrb[52].mxu0 }
 0x148   :  { %v782_v60 = vpop.f32.mrb[52].mxu1  ;;  %v936_v43 = vadd.f32 %v898_v22, %v812_v31  ;;  %v1647_v48 = vpop.f32.mrb[53].mxu0 }
 0x149   :  { %v814_v63 = vadd.f32 %v782_v60, %v701_v35  ;;  %v1627_v4 = vpop.f32.mrb[53].mxu1  ;;  %v901_v9 = vpop.f32.mrb[54].mxu0 }
 0x14a   :  { %v785_v19 = vpop.f32.mrb[54].mxu1  ;;  %v937_v20 = vadd.f32 %v901_v9, %v813_v0  ;;  %v1648_v21 = vpop.f32.mrb[55].mxu0 }
 0x14b   :  { %v815_v23 = vadd.f32 %v785_v19, %v702_v47  ;;  %v1628_v24 = vpop.f32.mrb[55].mxu1 }
 0x14f   :  { %v906_v25 = vpop.f32.mrb[56].mxu0 }
 0x150   :  { %v790_v8 = vpop.f32.mrb[56].mxu1  ;;  %v938_v1 = vadd.f32 %v906_v25, %v814_v63  ;;  %v1651_v28 = vpop.f32.mrb[57].mxu0 }
 0x151   :  { %v816_v29 = vadd.f32 %v790_v8, %v703_v11  ;;  %v1631_v33 = vpop.f32.mrb[57].mxu1  ;;  %v909_v27 = vpop.f32.mrb[58].mxu0 }
 0x152   :  { %v793_v26 = vpop.f32.mrb[58].mxu1  ;;  %v939_v38 = vadd.f32 %v909_v27, %v815_v23  ;;  %v1652_v39 = vpop.f32.mrb[59].mxu0 }
 0x153   :  { %v817_v42 = vadd.f32 %v793_v26, %v704_v61  ;;  %v1632_v34 = vpop.f32.mrb[59].mxu1 }
 0x157   :  { %v914_v35 = vpop.f32.mrb[60].mxu0 }
 0x158   :  { %v798_v44 = vpop.f32.mrb[60].mxu1  ;;  %v940_v51 = vadd.f32 %v914_v35, %v816_v29  ;;  %v1655_v52 = vpop.f32.mrb[61].mxu0 }
 0x159   :  { %v818_v53 = vadd.f32 %v798_v44, %v705_v14  ;;  %v1635_v12 = vpop.f32.mrb[61].mxu1  ;;  %v917_v47 = vpop.f32.mrb[62].mxu0 }
 0x15a   :  { %v801_v7 = vpop.f32.mrb[62].mxu1  ;;  %v941_v16 = vadd.f32 %v917_v47, %v817_v42  ;;  %v1656_v18 = vpop.f32.mrb[63].mxu0 }
 0x15b   :  { %v819_v30 = vadd.f32 %v801_v7, %v706_v37  ;;  %v1636_v15 = vpop.f32.mrb[63].mxu1 }
 0x15f   :  { %v922_v11 = vpop.f32.mrb[64].mxu0 }
 0x160   :  { %v806_v55 = vpop.f32.mrb[64].mxu1  ;;  %v2261_v62 = vadd.f32 %v922_v11, %v818_v53  ;;  %v1659_v3 = vpop.f32.mrb[65].mxu0 }
 0x161   :  { %v820_v32 = vadd.f32 %v806_v55, %v707_v13  ;;  %v925_v61 = vpop.f32.mrb[66].mxu0  ;;  %v1639_v56 = vpop.f32.mrb[65].mxu1 }
 0x162   :  { %v2263_v36 = vadd.f32 %v925_v61, %v819_v30  ;;  %v1660_v17 = vpop.f32.mrb[67].mxu0  ;;  %v809_v49 = vpop.f32.mrb[66].mxu1 }
 0x163   :  { %v1640_v14 = vpop.f32.mrb[67].mxu1 }
 0x167   :  { %v930_v10 = vpop.f32.mrb[68].mxu0 }
 0x168   :  { %v2265_v45 = vadd.f32 %v930_v10, %v820_v32  ;;  %v1047_v41 = vpop.f32.mrb[68].mxu1  ;;  %v1663_v50 = vpop.f32.mrb[69].mxu0 }
 0x169   :  { %v1085_v37 = vadd.f32 %v1047_v41, %v936_v43  ;;  %v1671_v54 = vpop.f32.mrb[69].mxu1  ;;  %v933_v57 = vpop.f32.mrb[70].mxu0 }
 0x16a   :  { %v1050_v5 = vpop.f32.mrb[70].mxu1  ;;  %v1664_v6 = vpop.f32.mrb[71].mxu0 }
 0x16b   :  { %v1086_v31 = vadd.f32 %v1050_v5, %v937_v20  ;;  %v1672_v40 = vpop.f32.mrb[71].mxu1 }
 0x16f   :  { %v1164_v13 = vpop.f32.mrb[72].mxu0 }
 0x170   :  { %v1055_v2 = vpop.f32.mrb[72].mxu1  ;;  %v1202_v58 = vadd.f32 %v1164_v13, %v1085_v37  ;;  %v1695_v0 = vpop.f32.mrb[73].mxu0 }
 0x171   :  { %v1087_v59 = vadd.f32 %v1055_v2, %v938_v1  ;;  %v1675_v22 = vpop.f32.mrb[73].mxu1  ;;  %v1167_v60 = vpop.f32.mrb[74].mxu0 }
 0x172   :  { %v2273_v43 = vadd.f32 %v2270_v46, %v1202_v58  ;;  %v1058_v48 = vpop.f32.mrb[74].mxu1  ;;  %v1203_v63 = vadd.f32 %v1167_v60, %v1086_v31  ;;  %v1696_v4 = vpop.f32.mrb[75].mxu0 }
 0x173   :  { %v1088_v9 = vadd.f32 %v1058_v48, %v939_v38  ;;  %v1676_v19 = vpop.f32.mrb[75].mxu1 }
 0x174   :  { %v1227_v20 = vsub.f32 0.0, %v2273_v43  ;;  %v2277_v21 = vadd.f32 %v2270_v46, %v1203_v63 }
 0x176   :  { %v1236_v23 = vmul.f32 1.442695, %v1227_v20  ;;  %v1228_v24 = vsub.f32 0.0, %v2277_v21 }
 0x177   :  { %v1172_v25 = vpop.f32.mrb[76].mxu0 }
 0x178   :  { %1748 = vpow2.f32 %v1236_v23  ;;  %v1238_v8 = vmul.f32 1.442695, %v1228_v24  ;;  %v1063_v1 = vpop.f32.mrb[76].mxu1  ;;  %v1204_v28 = vadd.f32 %v1172_v25, %v1087_v59  ;;  %v1699_v29 = vpop.f32.mrb[77].mxu0 }
 0x179   :  { %v1089_v33 = vadd.f32 %v1063_v1, %v940_v51  ;;  %v1679_v27 = vpop.f32.mrb[77].mxu1  ;;  %v1175_v26 = vpop.f32.mrb[78].mxu0 }
 0x17a   :  { %1750 = vpow2.f32 %v1238_v8  ;;  %v2281_v38 = vadd.f32 %v2270_v46, %v1204_v28  ;;  %v1066_v39 = vpop.f32.mrb[78].mxu1  ;;  %v1205_v42 = vadd.f32 %v1175_v26, %v1088_v9  ;;  %v1700_v34 = vpop.f32.mrb[79].mxu0 }
 0x17b   :  { %v1090_v35 = vadd.f32 %v1066_v39, %v941_v16  ;;  %v1680_v44 = vpop.f32.mrb[79].mxu1 }
 0x17c   :  { %v1229_v52 = vsub.f32 0.0, %v2281_v38  ;;  %v2285_v53 = vadd.f32 %v2270_v46, %v1205_v42 }
 0x17e   :  { %v1240_v12 = vmul.f32 1.442695, %v1229_v52  ;;  %v1230_v47 = vsub.f32 0.0, %v2285_v53 }
 0x17f   :  { %v1180_v51 = vpop.f32.mrb[80].mxu0 }
 0x180   :  { %1752 = vpow2.f32 %v1240_v12  ;;  %v1242_v7 = vmul.f32 1.442695, %v1230_v47  ;;  %v1071_v18 = vpop.f32.mrb[80].mxu1  ;;  %v1206_v30 = vadd.f32 %v1180_v51, %v1089_v33  ;;  %v1703_v15 = vpop.f32.mrb[81].mxu0 }
 0x181   :  { %v1091_v11 = vadd.f32 %v1071_v18, %v2261_v62  ;;  %v1683_v55 = vpop.f32.mrb[81].mxu1  ;;  %v1183_v3 = vpop.f32.mrb[82].mxu0 }
 0x182   :  { %v1749_v16 = vpop.eup %1748  ;;  %1754 = vpow2.f32 %v1242_v7  ;;  %v2290_v32 = vadd.f32 %v2270_v46, %v1206_v30  ;;  %v1074_v61 = vpop.f32.mrb[82].mxu1  ;;  %v1207_v56 = vadd.f32 %v1183_v3, %v1090_v35 }
 0x183   :  { %v1704_v17 = vpop.f32.mrb[83].mxu0  ;;  %v1254_v49 = vadd.f32 1.0, %v1749_v16  ;;  %v1092_v14 = vadd.f32 %v1074_v61, %v2263_v36  ;;  %v1684_v10 = vpop.f32.mrb[83].mxu1 }
 0x184   :  { %v1751_v41 = vpop.eup %1750  ;;  %v1231_v50 = vsub.f32 0.0, %v2290_v32  ;;  %v2295_v37 = vadd.f32 %v2270_v46, %v1207_v56 }
 0x185   :  { %1756 = vrcp.f32 %v1254_v49  ;;  %v1255_v62 = vadd.f32 1.0, %v1751_v41 }
 0x186   :  { %v1244_v54 = vmul.f32 1.442695, %v1231_v50  ;;  %v1232_v57 = vsub.f32 0.0, %v2295_v37 }
 0x187   :  { %1758 = vrcp.f32 %v1255_v62  ;;  %v1188_v5 = vpop.f32.mrb[84].mxu0 }
 0x188   :  { %1760 = vpow2.f32 %v1244_v54  ;;  %v1246_v6 = vmul.f32 1.442695, %v1232_v57  ;;  %v1079_v31 = vpop.f32.mrb[84].mxu1  ;;  %v1208_v40 = vadd.f32 %v1188_v5, %v1091_v11  ;;  %v1707_v13 = vpop.f32.mrb[85].mxu0 }
 0x189   :  { %v1093_v36 = vadd.f32 %v1079_v31, %v2265_v45  ;;  %v1191_v2 = vpop.f32.mrb[86].mxu0  ;;  %v1687_v58 = vpop.f32.mrb[85].mxu1 }
 0x18a   :  { %v1753_v0 = vpop.eup %1752  ;;  %1762 = vpow2.f32 %v1246_v6  ;;  %v2300_v59 = vadd.f32 %v2270_v46, %v1208_v40  ;;  %v1209_v22 = vadd.f32 %v1191_v2, %v1092_v14  ;;  %v1708_v60 = vpop.f32.mrb[87].mxu0 }
 0x18b   :  { %v1082_v48 = vpop.f32.mrb[86].mxu1  ;;  %v1256_v63 = vadd.f32 1.0, %v1753_v0 }
 0x18c   :  { %v1688_v4 = vpop.f32.mrb[87].mxu1  ;;  %v1755_v9 = vpop.eup %1754  ;;  %v1233_v19 = vsub.f32 0.0, %v2300_v59  ;;  %v2304_v20 = vadd.f32 %v2270_v46, %v1209_v22 }
 0x18d   :  { %1764 = vrcp.f32 %v1256_v63  ;;  %v1257_v45 = vadd.f32 1.0, %v1755_v9 }
 0x18e   :  { %v1248_v23 = vmul.f32 1.442695, %v1233_v19  ;;  %v1234_v24 = vsub.f32 0.0, %v2304_v20 }
 0x18f   :  { %v1757_v25 = vpop.eup %1756  ;;  %1766 = vrcp.f32 %v1257_v45  ;;  %v1196_v8 = vpop.f32.mrb[88].mxu0 }
 0x190   :  { %v1272_v1 = vmul.f32 %v1757_v25, %v2273_v43  ;;  %1768 = vpow2.f32 %v1248_v23  ;;  %v1250_v28 = vmul.f32 1.442695, %v1234_v24  ;;  %v1210_v29 = vadd.f32 %v1196_v8, %v1093_v36  ;;  %v1711_v33 = vpop.f32.mrb[89].mxu0 }
 0x191   :  { %v1759_v27 = vpop.eup %1758  ;;  %v1199_v26 = vpop.f32.mrb[90].mxu0 }
 0x192   :  { %v1761_v39 = vpop.eup %1760  ;;  %v1425_v42 = vpack.c.bf16 %v1272_v1, %v1272_v1  ;;  %v1273_v34 = vmul.f32 %v1759_v27, %v2277_v21  ;;  %1770 = vpow2.f32 %v1250_v28  ;;  %v1226_v35 = vadd.f32 %v2270_v46, %v1210_v29  ;;  %v1712_v44 = vpop.f32.mrb[91].mxu0 }
 0x193   :  { %v1258_v52 = vadd.f32 1.0, %v1761_v39 }
 0x194   :  { %v1763_v12 = vpop.eup %1762  ;;  %1319 = vst.msk [vmem:[%s2356_s4] sm:$0xf] %vm1318_vm8, %v1425_v42  ;;  %v1426_v43 = vpack.c.bf16 %v1273_v34, %v1273_v34  ;;  %v1235_v47 = vsub.f32 0.0, %v1226_v35 }
 0x195   :  { %1772 = vrcp.f32 %v1258_v52  ;;  %v1259_v51 = vadd.f32 1.0, %v1763_v12 }
 0x196   :  { %1320 = vst.msk [vmem:[%s2356_s4 + $0x4] sm:$0xf] %vm1318_vm8, %v1426_v43  ;;  %v1252_v21 = vmul.f32 1.442695, %v1235_v47 }
 0x197   :  { %v1765_v7 = vpop.eup %1764  ;;  %1774 = vrcp.f32 %v1259_v51 }
 0x198   :  { %v1274_v46 = vmul.f32 %v1765_v7, %v2281_v38  ;;  %1776 = vpow2.f32 %v1252_v21 }
 0x199   :  { %v1767_v18 = vpop.eup %1766 }
 0x19a   :  { %v1769_v30 = vpop.eup %1768  ;;  %v1427_v15 = vpack.c.bf16 %v1274_v46, %v1274_v46  ;;  %v1275_v11 = vmul.f32 %v1767_v18, %v2285_v53 }
 0x19b   :  { %v1260_v55 = vadd.f32 1.0, %v1769_v30 }
 0x19c   :  { %v1771_v3 = vpop.eup %1770  ;;  %1321 = vst.msk [vmem:[%s2356_s4 + $0x8] sm:$0xf] %vm1318_vm8, %v1427_v15  ;;  %v1428_v16 = vpack.c.bf16 %v1275_v11, %v1275_v11 }
 0x19d   :  { %1778 = vrcp.f32 %v1260_v55  ;;  %v1261_v61 = vadd.f32 1.0, %v1771_v3 }
 0x19e   :  { %1322 = vst.msk [vmem:[%s2356_s4 + $0xc] sm:$0xf] %vm1318_vm8, %v1428_v16 }
 0x19f   :  { %v1773_v38 = vpop.eup %1772  ;;  %1780 = vrcp.f32 %v1261_v61 }
 0x1a0   :  { %v1276_v56 = vmul.f32 %v1773_v38, %v2290_v32 }
 0x1a1   :  { %v1775_v53 = vpop.eup %1774 }
 0x1a2   :  { %v1777_v17 = vpop.eup %1776  ;;  %v1429_v49 = vpack.c.bf16 %v1276_v56, %v1276_v56  ;;  %v1277_v14 = vmul.f32 %v1775_v53, %v2295_v37 }
 0x1a3   :  { %v1262_v10 = vadd.f32 1.0, %v1777_v17 }
 0x1a4   :  { %1323 = vst.msk [vmem:[%s2356_s4 + $0x10] sm:$0xf] %vm1318_vm8, %v1429_v49  ;;  %v1430_v41 = vpack.c.bf16 %v1277_v14, %v1277_v14 }
 0x1a5   :  { %1782 = vrcp.f32 %v1262_v10 }
 0x1a6   :  { %1324 = vst.msk [vmem:[%s2356_s4 + $0x14] sm:$0xf] %vm1318_vm8, %v1430_v41 }
 0x1a7   :  { %v1779_v50 = vpop.eup %1778 }
 0x1a8   :  { %v1278_v32 = vmul.f32 %v1779_v50, %v2300_v59 }
 0x1a9   :  { %v1781_v62 = vpop.eup %1780 }
 0x1aa   :  { %v1431_v54 = vpack.c.bf16 %v1278_v32, %v1278_v32  ;;  %v1279_v37 = vmul.f32 %v1781_v62, %v2304_v20 }
 0x1ac   :  { %1325 = vst.msk [vmem:[%s2356_s4 + $0x18] sm:$0xf] %vm1318_vm8, %v1431_v54  ;;  %v1432_v57 = vpack.c.bf16 %v1279_v37, %v1279_v37 }
 0x1ae   :  { %1326 = vst.msk [vmem:[%s2356_s4 + $0x1c] sm:$0xf] %vm1318_vm8, %v1432_v57 }
 0x1af   :  { %v1783_v5 = vpop.eup %1782 }
 0x1b0   :  { %v1280_v6 = vmul.f32 %v1783_v5, %v1226_v35 }
 0x1b2   :  { %v1433_v31 = vpack.c.bf16 %v1280_v6, %v1280_v6 }
 0x1b4   :  { %1327 = vst.msk [vmem:[%s2356_s4 + $0x20] sm:$0xf] %vm1318_vm8, %v1433_v31 }

</bundles_post_ra>
